<compile_context>
chip_gen: v7x
topology: tpu7x:2x2x1
jax: 0.10.0
libtpu: 0.0.40
codegen_flags: <defaults>
</compile_context>

<pallas_src>
import jax
import jax.numpy as jnp
from jax.experimental import pallas as pl
from jax.experimental.pallas import tpu as pltpu

_BN_EPS = 1e-5
_LANE = 128          # lane-dense channel padding for all weights / activations
_STEM_C = 16         # self.inplanes in the torch module


def _round_up(v, m):
    return ((v + m - 1) // m) * m


# ----------------------------------------------------------------------------
# Parameters (deterministic, matching the torch module's __init__)
# ----------------------------------------------------------------------------
def init_params(key, num_classes=10):
    keys = iter(jax.random.split(key, 16))

    def conv_w(cin, cout, k):            # kaiming_normal, fan_out, relu
        std = (2.0 / (cout * k * k)) ** 0.5
        return jax.random.normal(next(keys), (k, k, cin, cout), jnp.float32) * std

    def bn(c):                           # (gamma, beta, running_mean, running_var)
        return (jnp.ones((c,), jnp.float32), jnp.zeros((c,), jnp.float32),
                jnp.zeros((c,), jnp.float32), jnp.ones((c,), jnp.float32))

    params = {
        "conv1_w": conv_w(3, 16, 3), "bn1": bn(16),
        "layer1": {"conv1_w": conv_w(16, 16, 3), "bn1": bn(16),
                   "conv2_w": conv_w(16, 16, 3), "bn2": bn(16)},
        "layer2": {"conv1_w": conv_w(16, 32, 3), "bn1": bn(32),
                   "conv2_w": conv_w(32, 32, 3), "bn2": bn(32),
                   "down_w": conv_w(16, 32, 1)[0, 0], "down_bn": bn(32)},
        "layer3": {"conv1_w": conv_w(32, 64, 3), "bn1": bn(64),
                   "conv2_w": conv_w(64, 64, 3), "bn2": bn(64),
                   "down_w": conv_w(32, 64, 1)[0, 0], "down_bn": bn(64)},
    }
    bound = 1.0 / (64.0 ** 0.5)
    params["fc_w"] = jax.random.uniform(next(keys), (64, num_classes),
                                        jnp.float32, -bound, bound)
    params["fc_b"] = jax.random.uniform(next(keys), (num_classes,),
                                        jnp.float32, -bound, bound)
    return params


# ----------------------------------------------------------------------------
# One-time weight preparation: fold BN (inference), pad Cout to 128 lanes.
# ----------------------------------------------------------------------------
def _fold_conv_bn(w_hwio, bn):
    gamma, beta, mean, var = bn
    scale = gamma * jax.lax.rsqrt(var + _BN_EPS)
    kh, kw, cin, cout = w_hwio.shape
    w = (w_hwio * scale).reshape(kh * kw * cin, cout)
    w = jnp.pad(w, ((0, 0), (0, _LANE - cout))).astype(jnp.bfloat16)
    b = jnp.pad(beta - mean * scale, (0, _LANE - cout))
    return w, b.reshape(1, _LANE).astype(jnp.float32)


def _fold_down_bn(w_io, bn):
    gamma, beta, mean, var = bn
    scale = gamma * jax.lax.rsqrt(var + _BN_EPS)
    cout = w_io.shape[1]
    w = jnp.pad(w_io * scale, ((0, 0), (0, _LANE - cout))).astype(jnp.bfloat16)
    b = jnp.pad(beta - mean * scale, (0, _LANE - cout))
    return w, b.reshape(1, _LANE).astype(jnp.float32)


def prepare_params(params):
    """Run once (not per forward call)."""
    p = params
    l1, l2, l3 = p["layer1"], p["layer2"], p["layer3"]
    w0, b0 = _fold_conv_bn(p["conv1_w"], p["bn1"])
    w11, b11 = _fold_conv_bn(l1["conv1_w"], l1["bn1"])
    w12, b12 = _fold_conv_bn(l1["conv2_w"], l1["bn2"])
    w21, b21 = _fold_conv_bn(l2["conv1_w"], l2["bn1"])
    w22, b22 = _fold_conv_bn(l2["conv2_w"], l2["bn2"])
    wd2, bd2 = _fold_down_bn(l2["down_w"], l2["down_bn"])
    w31, b31 = _fold_conv_bn(l3["conv1_w"], l3["bn1"])
    w32, b32 = _fold_conv_bn(l3["conv2_w"], l3["bn2"])
    wd3, bd3 = _fold_down_bn(l3["down_w"], l3["down_bn"])
    nc = p["fc_w"].shape[1]
    fcw = jnp.pad(p["fc_w"], ((0, 0), (0, _LANE - nc))).astype(jnp.float32)
    fcb = jnp.pad(p["fc_b"], (0, _LANE - nc)).reshape(1, _LANE).astype(jnp.float32)
    return (w0, b0, w11, b11, w12, b12, w21, b21, w22, b22, wd2, bd2,
            w31, b31, w32, b32, wd3, bd3, fcw, fcb)


# ----------------------------------------------------------------------------
# Fused kernel (one grid step = one batch element)
# ----------------------------------------------------------------------------
def _make_kernel(H0, W0, WF, H1, W1, H2, W2, H3, W3, WS0, WS1, WS2, WS3):
    """Activation slabs are flattened padded-NHWC rows: row = ip*WS + jp,
    lanes = channels (zero-padded to 128).  WS is the padded width, a multiple
    of 8 so the 3 dy tap offsets stay sublane-aligned."""

    def conv_s1(src, w, cin, ws, ho, wo):
        """Stride-1 3x3 conv over contiguous anchor rows; f32 [m, 128].
        Valid output (io, jo) lives at row io*ws + jo (jo < wo)."""
        m = (ho - 1) * ws + wo
        acc = jnp.zeros((m, _LANE), jnp.float32)
        for t in range(9):
            dy, dx = divmod(t, 3)
            lhs = src[pl.ds(dy * ws + dx, m), :]
            if lhs.shape[1] != cin:
                lhs = lhs[:, :cin]
            acc = acc + jnp.dot(lhs.astype(jnp.bfloat16),
                                w[t * cin:(t + 1) * cin, :],
                                preferred_element_type=jnp.float32)
        return acc

    def conv_row_s2(src, w, cin, ws, io, wo):
        """Stride-2 3x3 conv, a single output row io; f32 [wo, 128]."""
        acc = jnp.zeros((wo, _LANE), jnp.float32)
        for t in range(9):
            dy, dx = divmod(t, 3)
            lhs = src[pl.ds((2 * io + dy) * ws + dx, wo, stride=2), :]
            if lhs.shape[1] != cin:
                lhs = lhs[:, :cin]
            acc = acc + jnp.dot(lhs.astype(jnp.bfloat16),
                                w[t * cin:(t + 1) * cin, :],
                                preferred_element_type=jnp.float32)
        return acc

    def kernel(x_ref, feat_ref,
               w0, b0, w11, b11, w12, b12,
               w21, b21, w22, b22, wd2, bd2,
               w31, b31, w32, b32, wd3, bd3,
               fcw, fcb,
               logits_ref, extr_ref,
               cat_s, h1_s, x2_s, h2_s, x3_s, h3_s):
        # padding rows / padding lanes of every slab must be zero
        for s in (cat_s, h1_s, x2_s, h2_s, x3_s, h3_s):
            s[...] = jnp.zeros_like(s)

        # ---- stem: conv1 + BN + ReLU -> extracted output & right half of concat ----
        acc = conv_s1(x_ref, w0, 3, WS0, H0, W0)
        bias = b0[...]
        for io in range(H0):
            rows = jnp.maximum(acc[io * WS0:io * WS0 + W0, :] + bias, 0.0)
            extr_ref[pl.ds(io * W0, W0), :] = rows
            cat_s[pl.ds((io + 1) * WS1 + 1 + WF, W0), :] = rows
            cat_s[pl.ds((io + 1) * WS1 + 1, WF), :] = feat_ref[pl.ds(io * WF, WF), :]

        # ---- layer1: BasicBlock(16 -> 16, stride 1, identity residual) ----
        acc = conv_s1(cat_s, w11, 16, WS1, H1, W1)
        bias = b11[...]
        for io in range(H1):
            rows = jnp.maximum(acc[io * WS1:io * WS1 + W1, :] + bias, 0.0)
            h1_s[pl.ds((io + 1) * WS1 + 1, W1), :] = rows
        acc = conv_s1(h1_s, w12, 16, WS1, H1, W1)
        bias = b12[...]
        for io in range(H1):
            ident = cat_s[pl.ds((io + 1) * WS1 + 1, W1), :]
            rows = jnp.maximum(acc[io * WS1:io * WS1 + W1, :] + bias + ident, 0.0)
            x2_s[pl.ds((io + 1) * WS1 + 1, W1), :] = rows

        # ---- layer2: BasicBlock(16 -> 32, stride 2, 1x1-downsample residual) ----
        bias = b21[...]
        for io in range(H2):
            rows = jnp.maximum(conv_row_s2(x2_s, w21, 16, WS1, io, W2) + bias, 0.0)
            h2_s[pl.ds((io + 1) * WS2 + 1, W2), :] = rows
        acc = conv_s1(h2_s, w22, 32, WS2, H2, W2)
        bias = b22[...]
        dwn, dbn = wd2[...], bd2[...]
        for io in range(H2):
            idl = x2_s[pl.ds((2 * io + 1) * WS1 + 1, W2, stride=2), :]
            ident = jnp.dot(idl[:, :16].astype(jnp.bfloat16), dwn,
                            preferred_element_type=jnp.float32) + dbn
            rows = jnp.maximum(acc[io * WS2:io * WS2 + W2, :] + bias + ident, 0.0)
            x3_s[pl.ds((io + 1) * WS2 + 1, W2), :] = rows

        # ---- layer3: BasicBlock(32 -> 64, stride 2, downsample) + avgpool + fc ----
        bias = b31[...]
        for io in range(H3):
            rows = jnp.maximum(conv_row_s2(x3_s, w31, 32, WS2, io, W3) + bias, 0.0)
            h3_s[pl.ds((io + 1) * WS3 + 1, W3), :] = rows
        acc = conv_s1(h3_s, w32, 64, WS3, H3, W3)
        bias = b32[...]
        dwn, dbn = wd3[...], bd3[...]
        pooled = jnp.zeros((1, _LANE), jnp.float32)
        for io in range(H3):
            idl = x3_s[pl.ds((2 * io + 1) * WS2 + 1, W3, stride=2), :]
            ident = jnp.dot(idl[:, :32].astype(jnp.bfloat16), dwn,
                            preferred_element_type=jnp.float32) + dbn
            rows = jnp.maximum(acc[io * WS3:io * WS3 + W3, :] + bias + ident, 0.0)
            pooled = pooled + jnp.sum(rows, axis=0, keepdims=True)
        pooled = pooled * (1.0 / float(H3 * W3))            # adaptive avg-pool (1,1)
        logits = jnp.dot(pooled[:, :64], fcw[...],
                         preferred_element_type=jnp.float32) + fcb[...]
        logits_ref[...] = logits.reshape(1, 1, _LANE)

    return kernel


# ----------------------------------------------------------------------------
# Forward pass (mirrors ResNetServer.forward)
# ----------------------------------------------------------------------------
def resnet_server_forward(prep, x_nchw, feature_nchw, num_classes=10):
    B = x_nchw.shape[0]
    H0, W0 = x_nchw.shape[2], x_nchw.shape[3]
    WF = feature_nchw.shape[3]
    H1, W1 = H0, WF + W0                      # torch.cat((feature, extracted), dim=3)
    H2, W2 = (H1 + 1) // 2, (W1 + 1) // 2     # layer2 (stride 2)
    H3, W3 = (H2 + 1) // 2, (W2 + 1) // 2     # layer3 (stride 2)
    HP0, WS0 = H0 + 2, _round_up(W0 + 2, 8)
    HP1, WS1 = H1 + 2, _round_up(W1 + 2, 8)
    HP2, WS2 = H2 + 2, _round_up(W2 + 2, 8)
    HP3, WS3 = H3 + 2, _round_up(W3 + 2, 8)

    # Input glue: NCHW -> NHWC, zero-pad spatially, flatten to per-batch row slabs.
    x = jnp.transpose(x_nchw, (0, 2, 3, 1))
    x = jnp.pad(x, ((0, 0), (1, 1), (1, WS0 - W0 - 1), (0, 0)))
    x_slab = x.reshape(B * HP0 * WS0, x.shape[-1])
    f = jnp.transpose(feature_nchw, (0, 2, 3, 1))
    f = jnp.pad(f, ((0, 0), (0, 0), (0, 0), (0, _LANE - f.shape[-1])))
    f_slab = f.reshape(B * H0 * WF, _LANE)

    kernel = _make_kernel(H0, W0, WF, H1, W1, H2, W2, H3, W3, WS0, WS1, WS2, WS3)

    def whole(a):
        return pl.BlockSpec(a.shape, lambda b, _n=a.ndim: (0,) * _n)

    in_specs = ([pl.BlockSpec((HP0 * WS0, x_slab.shape[-1]), lambda b: (b, 0)),
                 pl.BlockSpec((H0 * WF, _LANE), lambda b: (b, 0))]
                + [whole(a) for a in prep])
    out_shape = (jax.ShapeDtypeStruct((B, 1, _LANE), jnp.float32),
                 jax.ShapeDtypeStruct((B * H0 * W0, _LANE), jnp.float32))
    out_specs = (pl.BlockSpec((1, 1, _LANE), lambda b: (b, 0, 0)),
                 pl.BlockSpec((H0 * W0, _LANE), lambda b: (b, 0)))
    scratch_shapes = [
        pltpu.VMEM((HP1 * WS1, _LANE), jnp.float32),   # concat (layer1 input)
        pltpu.VMEM((HP1 * WS1, _LANE), jnp.float32),   # layer1 conv1 output
        pltpu.VMEM((HP1 * WS1, _LANE), jnp.float32),   # layer1 out / layer2 in
        pltpu.VMEM((HP2 * WS2, _LANE), jnp.float32),   # layer2 conv1 output
        pltpu.VMEM((HP2 * WS2, _LANE), jnp.float32),   # layer2 out / layer3 in
        pltpu.VMEM((HP3 * WS3, _LANE), jnp.float32),   # layer3 conv1 output
    ]

    logits_pad, extr_flat = pl.pallas_call(
        kernel,
        out_shape=out_shape,
        grid=(B,),
        in_specs=in_specs,
        out_specs=out_specs,
        scratch_shapes=scratch_shapes,
        compiler_params=pltpu.CompilerParams(
            dimension_semantics=("parallel",)),       # batch over cores (v7x megacore)
    )(x_slab, f_slab, *prep)

    logits = logits_pad.reshape(B, _LANE)[:, :num_classes]
    extracted = extr_flat.reshape(B, H0, W0, _LANE)[..., :_STEM_C]
    extracted = jnp.transpose(extracted, (0, 3, 1, 2))    # back to NCHW like torch
    return logits, extracted


# ----------------------------------------------------------------------------
if __name__ == "__main__":
    key = jax.random.PRNGKey(0)
    kp, kx, kf = jax.random.split(key, 3)

    params = init_params(kp, num_classes=10)
    prep = prepare_params(params)          # BN fold + lane padding, done ONCE

    B, H, W = 2, 8, 8
    x = jax.random.normal(kx, (B, 3, H, W), jnp.float32)          # NCHW input
    feature = jax.random.normal(kf, (B, 16, H, W), jnp.float32)   # NCHW feature

    fwd = jax.jit(resnet_server_forward)
    logits, extracted = fwd(prep, x, feature)
    jax.block_until_ready((logits, extracted))

    assert logits.shape == (B, 10), logits.shape
    assert extracted.shape == (B, 16, H, W), extracted.shape
    assert bool(jnp.all(jnp.isfinite(logits)))
    assert bool(jnp.all(jnp.isfinite(extracted)))
    print("KERNEL_OK")
</pallas_src>

<mosaic_0001>
module attributes {stable_mosaic.version = 11 : i64} {
  func.func @kernel(%arg0: i32, %arg1: memref<160x3xf32, #tpu.memory_space<vmem>>, %arg2: memref<64x128xf32, #tpu.memory_space<vmem>>, %arg3: memref<27x128xbf16, #tpu.memory_space<vmem>>, %arg4: memref<1x128xf32, #tpu.memory_space<vmem>>, %arg5: memref<144x128xbf16, #tpu.memory_space<vmem>>, %arg6: memref<1x128xf32, #tpu.memory_space<vmem>>, %arg7: memref<144x128xbf16, #tpu.memory_space<vmem>>, %arg8: memref<1x128xf32, #tpu.memory_space<vmem>>, %arg9: memref<144x128xbf16, #tpu.memory_space<vmem>>, %arg10: memref<1x128xf32, #tpu.memory_space<vmem>>, %arg11: memref<288x128xbf16, #tpu.memory_space<vmem>>, %arg12: memref<1x128xf32, #tpu.memory_space<vmem>>, %arg13: memref<16x128xbf16, #tpu.memory_space<vmem>>, %arg14: memref<1x128xf32, #tpu.memory_space<vmem>>, %arg15: memref<288x128xbf16, #tpu.memory_space<vmem>>, %arg16: memref<1x128xf32, #tpu.memory_space<vmem>>, %arg17: memref<576x128xbf16, #tpu.memory_space<vmem>>, %arg18: memref<1x128xf32, #tpu.memory_space<vmem>>, %arg19: memref<32x128xbf16, #tpu.memory_space<vmem>>, %arg20: memref<1x128xf32, #tpu.memory_space<vmem>>, %arg21: memref<64x128xf32, #tpu.memory_space<vmem>>, %arg22: memref<1x128xf32, #tpu.memory_space<vmem>>, %arg23: memref<1x1x128xf32, #tpu.memory_space<vmem>>, %arg24: memref<64x128xf32, #tpu.memory_space<vmem>>, %arg25: memref<240x128xf32, #tpu.memory_space<vmem>>, %arg26: memref<240x128xf32, #tpu.memory_space<vmem>>, %arg27: memref<240x128xf32, #tpu.memory_space<vmem>>, %arg28: memref<96x128xf32, #tpu.memory_space<vmem>>, %arg29: memref<96x128xf32, #tpu.memory_space<vmem>>, %arg30: memref<32x128xf32, #tpu.memory_space<vmem>>) attributes {dimension_semantics = [#tpu.dimension_semantics<parallel>], iteration_bounds = array<i64: 2>, scalar_prefetch = 0 : i64, scratch_operands = 6 : i64, tpu.core_type = #tpu.core_type<tc>, window_params = [{transform_indices = @transform_0, window_bounds = array<i64: 160, 3>}, {transform_indices = @transform_1, window_bounds = array<i64: 64, 128>}, {pipeline_mode = #tpu.pipeline_mode<synchronous>, transform_indices = @transform_2, window_bounds = array<i64: 27, 128>}, {pipeline_mode = #tpu.pipeline_mode<synchronous>, transform_indices = @transform_3, window_bounds = array<i64: 1, 128>}, {pipeline_mode = #tpu.pipeline_mode<synchronous>, transform_indices = @transform_4, window_bounds = array<i64: 144, 128>}, {pipeline_mode = #tpu.pipeline_mode<synchronous>, transform_indices = @transform_5, window_bounds = array<i64: 1, 128>}, {pipeline_mode = #tpu.pipeline_mode<synchronous>, transform_indices = @transform_6, window_bounds = array<i64: 144, 128>}, {pipeline_mode = #tpu.pipeline_mode<synchronous>, transform_indices = @transform_7, window_bounds = array<i64: 1, 128>}, {pipeline_mode = #tpu.pipeline_mode<synchronous>, transform_indices = @transform_8, window_bounds = array<i64: 144, 128>}, {pipeline_mode = #tpu.pipeline_mode<synchronous>, transform_indices = @transform_9, window_bounds = array<i64: 1, 128>}, {pipeline_mode = #tpu.pipeline_mode<synchronous>, transform_indices = @transform_10, window_bounds = array<i64: 288, 128>}, {pipeline_mode = #tpu.pipeline_mode<synchronous>, transform_indices = @transform_11, window_bounds = array<i64: 1, 128>}, {pipeline_mode = #tpu.pipeline_mode<synchronous>, transform_indices = @transform_12, window_bounds = array<i64: 16, 128>}, {pipeline_mode = #tpu.pipeline_mode<synchronous>, transform_indices = @transform_13, window_bounds = array<i64: 1, 128>}, {pipeline_mode = #tpu.pipeline_mode<synchronous>, transform_indices = @transform_14, window_bounds = array<i64: 288, 128>}, {pipeline_mode = #tpu.pipeline_mode<synchronous>, transform_indices = @transform_15, window_bounds = array<i64: 1, 128>}, {pipeline_mode = #tpu.pipeline_mode<synchronous>, transform_indices = @transform_16, window_bounds = array<i64: 576, 128>}, {pipeline_mode = #tpu.pipeline_mode<synchronous>, transform_indices = @transform_17, window_bounds = array<i64: 1, 128>}, {pipeline_mode = #tpu.pipeline_mode<synchronous>, transform_indices = @transform_18, window_bounds = array<i64: 32, 128>}, {pipeline_mode = #tpu.pipeline_mode<synchronous>, transform_indices = @transform_19, window_bounds = array<i64: 1, 128>}, {pipeline_mode = #tpu.pipeline_mode<synchronous>, transform_indices = @transform_20, window_bounds = array<i64: 64, 128>}, {pipeline_mode = #tpu.pipeline_mode<synchronous>, transform_indices = @transform_21, window_bounds = array<i64: 1, 128>}, {transform_indices = @transform_22, window_bounds = array<i64: 1, 1, 128>}, {transform_indices = @transform_23, window_bounds = array<i64: 64, 128>}]} {
    %cst = arith.constant 0.000000e+00 : f32
    %0 = vector.broadcast %cst : f32 to vector<240x128xf32>
    %c0 = arith.constant 0 : index
    %c0_0 = arith.constant 0 : index
    %1 = vector.load %arg25[%c0, %c0_0] : memref<240x128xf32, #tpu.memory_space<vmem>>, vector<240x128xf32>
    tpu.vector_store %arg25[%c0, %c0_0], %0 {strides = array<i32>} : memref<240x128xf32, #tpu.memory_space<vmem>>, vector<240x128xf32>,
    %cst_1 = arith.constant 0.000000e+00 : f32
    %2 = vector.broadcast %cst_1 : f32 to vector<240x128xf32>
    %c0_2 = arith.constant 0 : index
    %c0_3 = arith.constant 0 : index
    %3 = vector.load %arg26[%c0_2, %c0_3] : memref<240x128xf32, #tpu.memory_space<vmem>>, vector<240x128xf32>
    tpu.vector_store %arg26[%c0_2, %c0_3], %2 {strides = array<i32>} : memref<240x128xf32, #tpu.memory_space<vmem>>, vector<240x128xf32>,
    %cst_4 = arith.constant 0.000000e+00 : f32
    %4 = vector.broadcast %cst_4 : f32 to vector<240x128xf32>
    %c0_5 = arith.constant 0 : index
    %c0_6 = arith.constant 0 : index
    %5 = vector.load %arg27[%c0_5, %c0_6] : memref<240x128xf32, #tpu.memory_space<vmem>>, vector<240x128xf32>
    tpu.vector_store %arg27[%c0_5, %c0_6], %4 {strides = array<i32>} : memref<240x128xf32, #tpu.memory_space<vmem>>, vector<240x128xf32>,
    %cst_7 = arith.constant 0.000000e+00 : f32
    %6 = vector.broadcast %cst_7 : f32 to vector<96x128xf32>
    %c0_8 = arith.constant 0 : index
    %c0_9 = arith.constant 0 : index
    %7 = vector.load %arg28[%c0_8, %c0_9] : memref<96x128xf32, #tpu.memory_space<vmem>>, vector<96x128xf32>
    tpu.vector_store %arg28[%c0_8, %c0_9], %6 {strides = array<i32>} : memref<96x128xf32, #tpu.memory_space<vmem>>, vector<96x128xf32>,
    %cst_10 = arith.constant 0.000000e+00 : f32
    %8 = vector.broadcast %cst_10 : f32 to vector<96x128xf32>
    %c0_11 = arith.constant 0 : index
    %c0_12 = arith.constant 0 : index
    %9 = vector.load %arg29[%c0_11, %c0_12] : memref<96x128xf32, #tpu.memory_space<vmem>>, vector<96x128xf32>
    tpu.vector_store %arg29[%c0_11, %c0_12], %8 {strides = array<i32>} : memref<96x128xf32, #tpu.memory_space<vmem>>, vector<96x128xf32>,
    %cst_13 = arith.constant 0.000000e+00 : f32
    %10 = vector.broadcast %cst_13 : f32 to vector<32x128xf32>
    %c0_14 = arith.constant 0 : index
    %c0_15 = arith.constant 0 : index
    %11 = vector.load %arg30[%c0_14, %c0_15] : memref<32x128xf32, #tpu.memory_space<vmem>>, vector<32x128xf32>
    tpu.vector_store %arg30[%c0_14, %c0_15], %10 {strides = array<i32>} : memref<32x128xf32, #tpu.memory_space<vmem>>, vector<32x128xf32>,
    %cst_16 = arith.constant 0.000000e+00 : f32
    %12 = vector.broadcast %cst_16 : f32 to vector<120x128xf32>
    %c0_17 = arith.constant 0 : index
    %c0_18 = arith.constant 0 : index
    %13 = vector.load %arg1[%c0_17, %c0_18] : memref<160x3xf32, #tpu.memory_space<vmem>>, vector<120x3xf32>
    %14 = arith.truncf %13 : vector<120x3xf32> to vector<120x3xbf16>
    %c0_19 = arith.constant 0 : index
    %c0_20 = arith.constant 0 : index
    %15 = vector.load %arg3[%c0_19, %c0_20] : memref<27x128xbf16, #tpu.memory_space<vmem>>, vector<3x128xbf16>
    %cst_21 = arith.constant dense<0.000000e+00> : vector<120x128xf32>
    %16 = tpu.matmul %14, %15, %cst_21 {dimension_numbers = #tpu.dot_dimension_numbers<[1], [0], [0], [1], [0, 0, 1, 1], [], []>} : vector<120x3xbf16>, vector<3x128xbf16>, vector<120x128xf32> -> vector<120x128xf32>
    %17 = arith.addf %12, %16 : vector<120x128xf32>
    %c1 = arith.constant 1 : index
    %c0_22 = arith.constant 0 : index
    %18 = vector.load %arg1[%c1, %c0_22] : memref<160x3xf32, #tpu.memory_space<vmem>>, vector<120x3xf32>
    %19 = arith.truncf %18 : vector<120x3xf32> to vector<120x3xbf16>
    %c3 = arith.constant 3 : index
    %c0_23 = arith.constant 0 : index
    %20 = vector.load %arg3[%c3, %c0_23] : memref<27x128xbf16, #tpu.memory_space<vmem>>, vector<3x128xbf16>
    %cst_24 = arith.constant dense<0.000000e+00> : vector<120x128xf32>
    %21 = tpu.matmul %19, %20, %cst_24 {dimension_numbers = #tpu.dot_dimension_numbers<[1], [0], [0], [1], [0, 0, 1, 1], [], []>} : vector<120x3xbf16>, vector<3x128xbf16>, vector<120x128xf32> -> vector<120x128xf32>
    %22 = arith.addf %17, %21 : vector<120x128xf32>
    %c2 = arith.constant 2 : index
    %c0_25 = arith.constant 0 : index
    %23 = vector.load %arg1[%c2, %c0_25] : memref<160x3xf32, #tpu.memory_space<vmem>>, vector<120x3xf32>
    %24 = arith.truncf %23 : vector<120x3xf32> to vector<120x3xbf16>
    %c6 = arith.constant 6 : index
    %c0_26 = arith.constant 0 : index
    %25 = vector.load %arg3[%c6, %c0_26] : memref<27x128xbf16, #tpu.memory_space<vmem>>, vector<3x128xbf16>
    %cst_27 = arith.constant dense<0.000000e+00> : vector<120x128xf32>
    %26 = tpu.matmul %24, %25, %cst_27 {dimension_numbers = #tpu.dot_dimension_numbers<[1], [0], [0], [1], [0, 0, 1, 1], [], []>} : vector<120x3xbf16>, vector<3x128xbf16>, vector<120x128xf32> -> vector<120x128xf32>
    %27 = arith.addf %22, %26 : vector<120x128xf32>
    %c16 = arith.constant 16 : index
    %c0_28 = arith.constant 0 : index
    %28 = vector.load %arg1[%c16, %c0_28] : memref<160x3xf32, #tpu.memory_space<vmem>>, vector<120x3xf32>
    %29 = arith.truncf %28 : vector<120x3xf32> to vector<120x3xbf16>
    %c9 = arith.constant 9 : index
    %c0_29 = arith.constant 0 : index
    %30 = vector.load %arg3[%c9, %c0_29] : memref<27x128xbf16, #tpu.memory_space<vmem>>, vector<3x128xbf16>
    %cst_30 = arith.constant dense<0.000000e+00> : vector<120x128xf32>
    %31 = tpu.matmul %29, %30, %cst_30 {dimension_numbers = #tpu.dot_dimension_numbers<[1], [0], [0], [1], [0, 0, 1, 1], [], []>} : vector<120x3xbf16>, vector<3x128xbf16>, vector<120x128xf32> -> vector<120x128xf32>
    %32 = arith.addf %27, %31 : vector<120x128xf32>
    %c17 = arith.constant 17 : index
    %c0_31 = arith.constant 0 : index
    %33 = vector.load %arg1[%c17, %c0_31] : memref<160x3xf32, #tpu.memory_space<vmem>>, vector<120x3xf32>
    %34 = arith.truncf %33 : vector<120x3xf32> to vector<120x3xbf16>
    %c12 = arith.constant 12 : index
    %c0_32 = arith.constant 0 : index
    %35 = vector.load %arg3[%c12, %c0_32] : memref<27x128xbf16, #tpu.memory_space<vmem>>, vector<3x128xbf16>
    %cst_33 = arith.constant dense<0.000000e+00> : vector<120x128xf32>
    %36 = tpu.matmul %34, %35, %cst_33 {dimension_numbers = #tpu.dot_dimension_numbers<[1], [0], [0], [1], [0, 0, 1, 1], [], []>} : vector<120x3xbf16>, vector<3x128xbf16>, vector<120x128xf32> -> vector<120x128xf32>
    %37 = arith.addf %32, %36 : vector<120x128xf32>
    %c18 = arith.constant 18 : index
    %c0_34 = arith.constant 0 : index
    %38 = vector.load %arg1[%c18, %c0_34] : memref<160x3xf32, #tpu.memory_space<vmem>>, vector<120x3xf32>
    %39 = arith.truncf %38 : vector<120x3xf32> to vector<120x3xbf16>
    %c15 = arith.constant 15 : index
    %c0_35 = arith.constant 0 : index
    %40 = vector.load %arg3[%c15, %c0_35] : memref<27x128xbf16, #tpu.memory_space<vmem>>, vector<3x128xbf16>
    %cst_36 = arith.constant dense<0.000000e+00> : vector<120x128xf32>
    %41 = tpu.matmul %39, %40, %cst_36 {dimension_numbers = #tpu.dot_dimension_numbers<[1], [0], [0], [1], [0, 0, 1, 1], [], []>} : vector<120x3xbf16>, vector<3x128xbf16>, vector<120x128xf32> -> vector<120x128xf32>
    %42 = arith.addf %37, %41 : vector<120x128xf32>
    %c32 = arith.constant 32 : index
    %c0_37 = arith.constant 0 : index
    %43 = vector.load %arg1[%c32, %c0_37] : memref<160x3xf32, #tpu.memory_space<vmem>>, vector<120x3xf32>
    %44 = arith.truncf %43 : vector<120x3xf32> to vector<120x3xbf16>
    %c18_38 = arith.constant 18 : index
    %c0_39 = arith.constant 0 : index
    %45 = vector.load %arg3[%c18_38, %c0_39] : memref<27x128xbf16, #tpu.memory_space<vmem>>, vector<3x128xbf16>
    %cst_40 = arith.constant dense<0.000000e+00> : vector<120x128xf32>
    %46 = tpu.matmul %44, %45, %cst_40 {dimension_numbers = #tpu.dot_dimension_numbers<[1], [0], [0], [1], [0, 0, 1, 1], [], []>} : vector<120x3xbf16>, vector<3x128xbf16>, vector<120x128xf32> -> vector<120x128xf32>
    %47 = arith.addf %42, %46 : vector<120x128xf32>
    %c33 = arith.constant 33 : index
    %c0_41 = arith.constant 0 : index
    %48 = vector.load %arg1[%c33, %c0_41] : memref<160x3xf32, #tpu.memory_space<vmem>>, vector<120x3xf32>
    %49 = arith.truncf %48 : vector<120x3xf32> to vector<120x3xbf16>
    %c21 = arith.constant 21 : index
    %c0_42 = arith.constant 0 : index
    %50 = vector.load %arg3[%c21, %c0_42] : memref<27x128xbf16, #tpu.memory_space<vmem>>, vector<3x128xbf16>
    %cst_43 = arith.constant dense<0.000000e+00> : vector<120x128xf32>
    %51 = tpu.matmul %49, %50, %cst_43 {dimension_numbers = #tpu.dot_dimension_numbers<[1], [0], [0], [1], [0, 0, 1, 1], [], []>} : vector<120x3xbf16>, vector<3x128xbf16>, vector<120x128xf32> -> vector<120x128xf32>
    %52 = arith.addf %47, %51 : vector<120x128xf32>
    %c34 = arith.constant 34 : index
    %c0_44 = arith.constant 0 : index
    %53 = vector.load %arg1[%c34, %c0_44] : memref<160x3xf32, #tpu.memory_space<vmem>>, vector<120x3xf32>
    %54 = arith.truncf %53 : vector<120x3xf32> to vector<120x3xbf16>
    %c24 = arith.constant 24 : index
    %c0_45 = arith.constant 0 : index
    %55 = vector.load %arg3[%c24, %c0_45] : memref<27x128xbf16, #tpu.memory_space<vmem>>, vector<3x128xbf16>
    %cst_46 = arith.constant dense<0.000000e+00> : vector<120x128xf32>
    %56 = tpu.matmul %54, %55, %cst_46 {dimension_numbers = #tpu.dot_dimension_numbers<[1], [0], [0], [1], [0, 0, 1, 1], [], []>} : vector<120x3xbf16>, vector<3x128xbf16>, vector<120x128xf32> -> vector<120x128xf32>
    %57 = arith.addf %52, %56 : vector<120x128xf32>
    %c0_47 = arith.constant 0 : index
    %c0_48 = arith.constant 0 : index
    %58 = vector.load %arg4[%c0_47, %c0_48] : memref<1x128xf32, #tpu.memory_space<vmem>>, vector<1x128xf32>
    %59 = vector.extract_strided_slice %57 {offsets = [0, 0], sizes = [8, 128], strides = [1, 1]} : vector<120x128xf32> to vector<8x128xf32>
    %60 = vector.broadcast %58 : vector<1x128xf32> to vector<8x128xf32>
    %61 = arith.addf %59, %60 : vector<8x128xf32>
    %cst_49 = arith.constant 0.000000e+00 : f32
    %62 = vector.broadcast %cst_49 : f32 to vector<8x128xf32>
    %63 = arith.maximumf %61, %62 : vector<8x128xf32>
    %c0_50 = arith.constant 0 : index
    %c0_51 = arith.constant 0 : index
    %64 = vector.load %arg24[%c0_50, %c0_51] : memref<64x128xf32, #tpu.memory_space<vmem>>, vector<8x128xf32>
    tpu.vector_store %arg24[%c0_50, %c0_51], %63 {strides = array<i32>} : memref<64x128xf32, #tpu.memory_space<vmem>>, vector<8x128xf32>,
    %c33_52 = arith.constant 33 : index
    %c0_53 = arith.constant 0 : index
    %65 = vector.load %arg25[%c33_52, %c0_53] : memref<240x128xf32, #tpu.memory_space<vmem>>, vector<8x128xf32>
    tpu.vector_store %arg25[%c33_52, %c0_53], %63 {strides = array<i32>} : memref<240x128xf32, #tpu.memory_space<vmem>>, vector<8x128xf32>,
    %c0_54 = arith.constant 0 : index
    %c0_55 = arith.constant 0 : index
    %66 = vector.load %arg2[%c0_54, %c0_55] : memref<64x128xf32, #tpu.memory_space<vmem>>, vector<8x128xf32>
    %c25 = arith.constant 25 : index
    %c0_56 = arith.constant 0 : index
    %67 = vector.load %arg25[%c25, %c0_56] : memref<240x128xf32, #tpu.memory_space<vmem>>, vector<8x128xf32>
    tpu.vector_store %arg25[%c25, %c0_56], %66 {strides = array<i32>} : memref<240x128xf32, #tpu.memory_space<vmem>>, vector<8x128xf32>,
    %68 = vector.extract_strided_slice %57 {offsets = [16, 0], sizes = [8, 128], strides = [1, 1]} : vector<120x128xf32> to vector<8x128xf32>
    %69 = vector.broadcast %58 : vector<1x128xf32> to vector<8x128xf32>
    %70 = arith.addf %68, %69 : vector<8x128xf32>
    %cst_57 = arith.constant 0.000000e+00 : f32
    %71 = vector.broadcast %cst_57 : f32 to vector<8x128xf32>
    %72 = arith.maximumf %70, %71 : vector<8x128xf32>
    %c8 = arith.constant 8 : index
    %c0_58 = arith.constant 0 : index
    %73 = vector.load %arg24[%c8, %c0_58] : memref<64x128xf32, #tpu.memory_space<vmem>>, vector<8x128xf32>
    tpu.vector_store %arg24[%c8, %c0_58], %72 {strides = array<i32>} : memref<64x128xf32, #tpu.memory_space<vmem>>, vector<8x128xf32>,
    %c57 = arith.constant 57 : index
    %c0_59 = arith.constant 0 : index
    %74 = vector.load %arg25[%c57, %c0_59] : memref<240x128xf32, #tpu.memory_space<vmem>>, vector<8x128xf32>
    tpu.vector_store %arg25[%c57, %c0_59], %72 {strides = array<i32>} : memref<240x128xf32, #tpu.memory_space<vmem>>, vector<8x128xf32>,
    %c8_60 = arith.constant 8 : index
    %c0_61 = arith.constant 0 : index
    %75 = vector.load %arg2[%c8_60, %c0_61] : memref<64x128xf32, #tpu.memory_space<vmem>>, vector<8x128xf32>
    %c49 = arith.constant 49 : index
    %c0_62 = arith.constant 0 : index
    %76 = vector.load %arg25[%c49, %c0_62] : memref<240x128xf32, #tpu.memory_space<vmem>>, vector<8x128xf32>
    tpu.vector_store %arg25[%c49, %c0_62], %75 {strides = array<i32>} : memref<240x128xf32, #tpu.memory_space<vmem>>, vector<8x128xf32>,
    %77 = vector.extract_strided_slice %57 {offsets = [32, 0], sizes = [8, 128], strides = [1, 1]} : vector<120x128xf32> to vector<8x128xf32>
    %78 = vector.broadcast %58 : vector<1x128xf32> to vector<8x128xf32>
    %79 = arith.addf %77, %78 : vector<8x128xf32>
    %cst_63 = arith.constant 0.000000e+00 : f32
    %80 = vector.broadcast %cst_63 : f32 to vector<8x128xf32>
    %81 = arith.maximumf %79, %80 : vector<8x128xf32>
    %c16_64 = arith.constant 16 : index
    %c0_65 = arith.constant 0 : index
    %82 = vector.load %arg24[%c16_64, %c0_65] : memref<64x128xf32, #tpu.memory_space<vmem>>, vector<8x128xf32>
    tpu.vector_store %arg24[%c16_64, %c0_65], %81 {strides = array<i32>} : memref<64x128xf32, #tpu.memory_space<vmem>>, vector<8x128xf32>,
    %c81 = arith.constant 81 : index
    %c0_66 = arith.constant 0 : index
    %83 = vector.load %arg25[%c81, %c0_66] : memref<240x128xf32, #tpu.memory_space<vmem>>, vector<8x128xf32>
    tpu.vector_store %arg25[%c81, %c0_66], %81 {strides = array<i32>} : memref<240x128xf32, #tpu.memory_space<vmem>>, vector<8x128xf32>,
    %c16_67 = arith.constant 16 : index
    %c0_68 = arith.constant 0 : index
    %84 = vector.load %arg2[%c16_67, %c0_68] : memref<64x128xf32, #tpu.memory_space<vmem>>, vector<8x128xf32>
    %c73 = arith.constant 73 : index
    %c0_69 = arith.constant 0 : index
    %85 = vector.load %arg25[%c73, %c0_69] : memref<240x128xf32, #tpu.memory_space<vmem>>, vector<8x128xf32>
    tpu.vector_store %arg25[%c73, %c0_69], %84 {strides = array<i32>} : memref<240x128xf32, #tpu.memory_space<vmem>>, vector<8x128xf32>,
    %86 = vector.extract_strided_slice %57 {offsets = [48, 0], sizes = [8, 128], strides = [1, 1]} : vector<120x128xf32> to vector<8x128xf32>
    %87 = vector.broadcast %58 : vector<1x128xf32> to vector<8x128xf32>
    %88 = arith.addf %86, %87 : vector<8x128xf32>
    %cst_70 = arith.constant 0.000000e+00 : f32
    %89 = vector.broadcast %cst_70 : f32 to vector<8x128xf32>
    %90 = arith.maximumf %88, %89 : vector<8x128xf32>
    %c24_71 = arith.constant 24 : index
    %c0_72 = arith.constant 0 : index
    %91 = vector.load %arg24[%c24_71, %c0_72] : memref<64x128xf32, #tpu.memory_space<vmem>>, vector<8x128xf32>
    tpu.vector_store %arg24[%c24_71, %c0_72], %90 {strides = array<i32>} : memref<64x128xf32, #tpu.memory_space<vmem>>, vector<8x128xf32>,
    %c105 = arith.constant 105 : index
    %c0_73 = arith.constant 0 : index
    %92 = vector.load %arg25[%c105, %c0_73] : memref<240x128xf32, #tpu.memory_space<vmem>>, vector<8x128xf32>
    tpu.vector_store %arg25[%c105, %c0_73], %90 {strides = array<i32>} : memref<240x128xf32, #tpu.memory_space<vmem>>, vector<8x128xf32>,
    %c24_74 = arith.constant 24 : index
    %c0_75 = arith.constant 0 : index
    %93 = vector.load %arg2[%c24_74, %c0_75] : memref<64x128xf32, #tpu.memory_space<vmem>>, vector<8x128xf32>
    %c97 = arith.constant 97 : index
    %c0_76 = arith.constant 0 : index
    %94 = vector.load %arg25[%c97, %c0_76] : memref<240x128xf32, #tpu.memory_space<vmem>>, vector<8x128xf32>
    tpu.vector_store %arg25[%c97, %c0_76], %93 {strides = array<i32>} : memref<240x128xf32, #tpu.memory_space<vmem>>, vector<8x128xf32>,
    %95 = vector.extract_strided_slice %57 {offsets = [64, 0], sizes = [8, 128], strides = [1, 1]} : vector<120x128xf32> to vector<8x128xf32>
    %96 = vector.broadcast %58 : vector<1x128xf32> to vector<8x128xf32>
    %97 = arith.addf %95, %96 : vector<8x128xf32>
    %cst_77 = arith.constant 0.000000e+00 : f32
    %98 = vector.broadcast %cst_77 : f32 to vector<8x128xf32>
    %99 = arith.maximumf %97, %98 : vector<8x128xf32>
    %c32_78 = arith.constant 32 : index
    %c0_79 = arith.constant 0 : index
    %100 = vector.load %arg24[%c32_78, %c0_79] : memref<64x128xf32, #tpu.memory_space<vmem>>, vector<8x128xf32>
    tpu.vector_store %arg24[%c32_78, %c0_79], %99 {strides = array<i32>} : memref<64x128xf32, #tpu.memory_space<vmem>>, vector<8x128xf32>,
    %c129 = arith.constant 129 : index
    %c0_80 = arith.constant 0 : index
    %101 = vector.load %arg25[%c129, %c0_80] : memref<240x128xf32, #tpu.memory_space<vmem>>, vector<8x128xf32>
    tpu.vector_store %arg25[%c129, %c0_80], %99 {strides = array<i32>} : memref<240x128xf32, #tpu.memory_space<vmem>>, vector<8x128xf32>,
    %c32_81 = arith.constant 32 : index
    %c0_82 = arith.constant 0 : index
    %102 = vector.load %arg2[%c32_81, %c0_82] : memref<64x128xf32, #tpu.memory_space<vmem>>, vector<8x128xf32>
    %c121 = arith.constant 121 : index
    %c0_83 = arith.constant 0 : index
    %103 = vector.load %arg25[%c121, %c0_83] : memref<240x128xf32, #tpu.memory_space<vmem>>, vector<8x128xf32>
    tpu.vector_store %arg25[%c121, %c0_83], %102 {strides = array<i32>} : memref<240x128xf32, #tpu.memory_space<vmem>>, vector<8x128xf32>,
    %104 = vector.extract_strided_slice %57 {offsets = [80, 0], sizes = [8, 128], strides = [1, 1]} : vector<120x128xf32> to vector<8x128xf32>
    %105 = vector.broadcast %58 : vector<1x128xf32> to vector<8x128xf32>
    %106 = arith.addf %104, %105 : vector<8x128xf32>
    %cst_84 = arith.constant 0.000000e+00 : f32
    %107 = vector.broadcast %cst_84 : f32 to vector<8x128xf32>
    %108 = arith.maximumf %106, %107 : vector<8x128xf32>
    %c40 = arith.constant 40 : index
    %c0_85 = arith.constant 0 : index
    %109 = vector.load %arg24[%c40, %c0_85] : memref<64x128xf32, #tpu.memory_space<vmem>>, vector<8x128xf32>
    tpu.vector_store %arg24[%c40, %c0_85], %108 {strides = array<i32>} : memref<64x128xf32, #tpu.memory_space<vmem>>, vector<8x128xf32>,
    %c153 = arith.constant 153 : index
    %c0_86 = arith.constant 0 : index
    %110 = vector.load %arg25[%c153, %c0_86] : memref<240x128xf32, #tpu.memory_space<vmem>>, vector<8x128xf32>
    tpu.vector_store %arg25[%c153, %c0_86], %108 {strides = array<i32>} : memref<240x128xf32, #tpu.memory_space<vmem>>, vector<8x128xf32>,
    %c40_87 = arith.constant 40 : index
    %c0_88 = arith.constant 0 : index
    %111 = vector.load %arg2[%c40_87, %c0_88] : memref<64x128xf32, #tpu.memory_space<vmem>>, vector<8x128xf32>
    %c145 = arith.constant 145 : index
    %c0_89 = arith.constant 0 : index
    %112 = vector.load %arg25[%c145, %c0_89] : memref<240x128xf32, #tpu.memory_space<vmem>>, vector<8x128xf32>
    tpu.vector_store %arg25[%c145, %c0_89], %111 {strides = array<i32>} : memref<240x128xf32, #tpu.memory_space<vmem>>, vector<8x128xf32>,
    %113 = vector.extract_strided_slice %57 {offsets = [96, 0], sizes = [8, 128], strides = [1, 1]} : vector<120x128xf32> to vector<8x128xf32>
    %114 = vector.broadcast %58 : vector<1x128xf32> to vector<8x128xf32>
    %115 = arith.addf %113, %114 : vector<8x128xf32>
    %cst_90 = arith.constant 0.000000e+00 : f32
    %116 = vector.broadcast %cst_90 : f32 to vector<8x128xf32>
    %117 = arith.maximumf %115, %116 : vector<8x128xf32>
    %c48 = arith.constant 48 : index
    %c0_91 = arith.constant 0 : index
    %118 = vector.load %arg24[%c48, %c0_91] : memref<64x128xf32, #tpu.memory_space<vmem>>, vector<8x128xf32>
    tpu.vector_store %arg24[%c48, %c0_91], %117 {strides = array<i32>} : memref<64x128xf32, #tpu.memory_space<vmem>>, vector<8x128xf32>,
    %c177 = arith.constant 177 : index
    %c0_92 = arith.constant 0 : index
    %119 = vector.load %arg25[%c177, %c0_92] : memref<240x128xf32, #tpu.memory_space<vmem>>, vector<8x128xf32>
    tpu.vector_store %arg25[%c177, %c0_92], %117 {strides = array<i32>} : memref<240x128xf32, #tpu.memory_space<vmem>>, vector<8x128xf32>,
    %c48_93 = arith.constant 48 : index
    %c0_94 = arith.constant 0 : index
    %120 = vector.load %arg2[%c48_93, %c0_94] : memref<64x128xf32, #tpu.memory_space<vmem>>, vector<8x128xf32>
    %c169 = arith.constant 169 : index
    %c0_95 = arith.constant 0 : index
    %121 = vector.load %arg25[%c169, %c0_95] : memref<240x128xf32, #tpu.memory_space<vmem>>, vector<8x128xf32>
    tpu.vector_store %arg25[%c169, %c0_95], %120 {strides = array<i32>} : memref<240x128xf32, #tpu.memory_space<vmem>>, vector<8x128xf32>,
    %122 = vector.extract_strided_slice %57 {offsets = [112, 0], sizes = [8, 128], strides = [1, 1]} : vector<120x128xf32> to vector<8x128xf32>
    %123 = vector.broadcast %58 : vector<1x128xf32> to vector<8x128xf32>
    %124 = arith.addf %122, %123 : vector<8x128xf32>
    %cst_96 = arith.constant 0.000000e+00 : f32
    %125 = vector.broadcast %cst_96 : f32 to vector<8x128xf32>
    %126 = arith.maximumf %124, %125 : vector<8x128xf32>
    %c56 = arith.constant 56 : index
    %c0_97 = arith.constant 0 : index
    %127 = vector.load %arg24[%c56, %c0_97] : memref<64x128xf32, #tpu.memory_space<vmem>>, vector<8x128xf32>
    tpu.vector_store %arg24[%c56, %c0_97], %126 {strides = array<i32>} : memref<64x128xf32, #tpu.memory_space<vmem>>, vector<8x128xf32>,
    %c201 = arith.constant 201 : index
    %c0_98 = arith.constant 0 : index
    %128 = vector.load %arg25[%c201, %c0_98] : memref<240x128xf32, #tpu.memory_space<vmem>>, vector<8x128xf32>
    tpu.vector_store %arg25[%c201, %c0_98], %126 {strides = array<i32>} : memref<240x128xf32, #tpu.memory_space<vmem>>, vector<8x128xf32>,
    %c56_99 = arith.constant 56 : index
    %c0_100 = arith.constant 0 : index
    %129 = vector.load %arg2[%c56_99, %c0_100] : memref<64x128xf32, #tpu.memory_space<vmem>>, vector<8x128xf32>
    %c193 = arith.constant 193 : index
    %c0_101 = arith.constant 0 : index
    %130 = vector.load %arg25[%c193, %c0_101] : memref<240x128xf32, #tpu.memory_space<vmem>>, vector<8x128xf32>
    tpu.vector_store %arg25[%c193, %c0_101], %129 {strides = array<i32>} : memref<240x128xf32, #tpu.memory_space<vmem>>, vector<8x128xf32>,
    %cst_102 = arith.constant 0.000000e+00 : f32
    %131 = vector.broadcast %cst_102 : f32 to vector<184x128xf32>
    %c0_103 = arith.constant 0 : index
    %c0_104 = arith.constant 0 : index
    %132 = vector.load %arg25[%c0_103, %c0_104] : memref<240x128xf32, #tpu.memory_space<vmem>>, vector<184x128xf32>
    %133 = vector.extract_strided_slice %132 {offsets = [0, 0], sizes = [184, 16], strides = [1, 1]} : vector<184x128xf32> to vector<184x16xf32>
    %134 = arith.truncf %133 : vector<184x16xf32> to vector<184x16xbf16>
    %c0_105 = arith.constant 0 : index
    %c0_106 = arith.constant 0 : index
    %135 = vector.load %arg5[%c0_105, %c0_106] : memref<144x128xbf16, #tpu.memory_space<vmem>>, vector<16x128xbf16>
    %cst_107 = arith.constant dense<0.000000e+00> : vector<184x128xf32>
    %136 = tpu.matmul %134, %135, %cst_107 {dimension_numbers = #tpu.dot_dimension_numbers<[1], [0], [0], [1], [0, 0, 1, 1], [], []>} : vector<184x16xbf16>, vector<16x128xbf16>, vector<184x128xf32> -> vector<184x128xf32>
    %137 = arith.addf %131, %136 : vector<184x128xf32>
    %c1_108 = arith.constant 1 : index
    %c0_109 = arith.constant 0 : index
    %138 = vector.load %arg25[%c1_108, %c0_109] : memref<240x128xf32, #tpu.memory_space<vmem>>, vector<184x128xf32>
    %139 = vector.extract_strided_slice %138 {offsets = [0, 0], sizes = [184, 16], strides = [1, 1]} : vector<184x128xf32> to vector<184x16xf32>
    %140 = arith.truncf %139 : vector<184x16xf32> to vector<184x16xbf16>
    %c16_110 = arith.constant 16 : index
    %c0_111 = arith.constant 0 : index
    %141 = vector.load %arg5[%c16_110, %c0_111] : memref<144x128xbf16, #tpu.memory_space<vmem>>, vector<16x128xbf16>
    %cst_112 = arith.constant dense<0.000000e+00> : vector<184x128xf32>
    %142 = tpu.matmul %140, %141, %cst_112 {dimension_numbers = #tpu.dot_dimension_numbers<[1], [0], [0], [1], [0, 0, 1, 1], [], []>} : vector<184x16xbf16>, vector<16x128xbf16>, vector<184x128xf32> -> vector<184x128xf32>
    %143 = arith.addf %137, %142 : vector<184x128xf32>
    %c2_113 = arith.constant 2 : index
    %c0_114 = arith.constant 0 : index
    %144 = vector.load %arg25[%c2_113, %c0_114] : memref<240x128xf32, #tpu.memory_space<vmem>>, vector<184x128xf32>
    %145 = vector.extract_strided_slice %144 {offsets = [0, 0], sizes = [184, 16], strides = [1, 1]} : vector<184x128xf32> to vector<184x16xf32>
    %146 = arith.truncf %145 : vector<184x16xf32> to vector<184x16xbf16>
    %c32_115 = arith.constant 32 : index
    %c0_116 = arith.constant 0 : index
    %147 = vector.load %arg5[%c32_115, %c0_116] : memref<144x128xbf16, #tpu.memory_space<vmem>>, vector<16x128xbf16>
    %cst_117 = arith.constant dense<0.000000e+00> : vector<184x128xf32>
    %148 = tpu.matmul %146, %147, %cst_117 {dimension_numbers = #tpu.dot_dimension_numbers<[1], [0], [0], [1], [0, 0, 1, 1], [], []>} : vector<184x16xbf16>, vector<16x128xbf16>, vector<184x128xf32> -> vector<184x128xf32>
    %149 = arith.addf %143, %148 : vector<184x128xf32>
    %c24_118 = arith.constant 24 : index
    %c0_119 = arith.constant 0 : index
    %150 = vector.load %arg25[%c24_118, %c0_119] : memref<240x128xf32, #tpu.memory_space<vmem>>, vector<184x128xf32>
    %151 = vector.extract_strided_slice %150 {offsets = [0, 0], sizes = [184, 16], strides = [1, 1]} : vector<184x128xf32> to vector<184x16xf32>
    %152 = arith.truncf %151 : vector<184x16xf32> to vector<184x16xbf16>
    %c48_120 = arith.constant 48 : index
    %c0_121 = arith.constant 0 : index
    %153 = vector.load %arg5[%c48_120, %c0_121] : memref<144x128xbf16, #tpu.memory_space<vmem>>, vector<16x128xbf16>
    %cst_122 = arith.constant dense<0.000000e+00> : vector<184x128xf32>
    %154 = tpu.matmul %152, %153, %cst_122 {dimension_numbers = #tpu.dot_dimension_numbers<[1], [0], [0], [1], [0, 0, 1, 1], [], []>} : vector<184x16xbf16>, vector<16x128xbf16>, vector<184x128xf32> -> vector<184x128xf32>
    %155 = arith.addf %149, %154 : vector<184x128xf32>
    %c25_123 = arith.constant 25 : index
    %c0_124 = arith.constant 0 : index
    %156 = vector.load %arg25[%c25_123, %c0_124] : memref<240x128xf32, #tpu.memory_space<vmem>>, vector<184x128xf32>
    %157 = vector.extract_strided_slice %156 {offsets = [0, 0], sizes = [184, 16], strides = [1, 1]} : vector<184x128xf32> to vector<184x16xf32>
    %158 = arith.truncf %157 : vector<184x16xf32> to vector<184x16xbf16>
    %c64 = arith.constant 64 : index
    %c0_125 = arith.constant 0 : index
    %159 = vector.load %arg5[%c64, %c0_125] : memref<144x128xbf16, #tpu.memory_space<vmem>>, vector<16x128xbf16>
    %cst_126 = arith.constant dense<0.000000e+00> : vector<184x128xf32>
    %160 = tpu.matmul %158, %159, %cst_126 {dimension_numbers = #tpu.dot_dimension_numbers<[1], [0], [0], [1], [0, 0, 1, 1], [], []>} : vector<184x16xbf16>, vector<16x128xbf16>, vector<184x128xf32> -> vector<184x128xf32>
    %161 = arith.addf %155, %160 : vector<184x128xf32>
    %c26 = arith.constant 26 : index
    %c0_127 = arith.constant 0 : index
    %162 = vector.load %arg25[%c26, %c0_127] : memref<240x128xf32, #tpu.memory_space<vmem>>, vector<184x128xf32>
    %163 = vector.extract_strided_slice %162 {offsets = [0, 0], sizes = [184, 16], strides = [1, 1]} : vector<184x128xf32> to vector<184x16xf32>
    %164 = arith.truncf %163 : vector<184x16xf32> to vector<184x16xbf16>
    %c80 = arith.constant 80 : index
    %c0_128 = arith.constant 0 : index
    %165 = vector.load %arg5[%c80, %c0_128] : memref<144x128xbf16, #tpu.memory_space<vmem>>, vector<16x128xbf16>
    %cst_129 = arith.constant dense<0.000000e+00> : vector<184x128xf32>
    %166 = tpu.matmul %164, %165, %cst_129 {dimension_numbers = #tpu.dot_dimension_numbers<[1], [0], [0], [1], [0, 0, 1, 1], [], []>} : vector<184x16xbf16>, vector<16x128xbf16>, vector<184x128xf32> -> vector<184x128xf32>
    %167 = arith.addf %161, %166 : vector<184x128xf32>
    %c48_130 = arith.constant 48 : index
    %c0_131 = arith.constant 0 : index
    %168 = vector.load %arg25[%c48_130, %c0_131] : memref<240x128xf32, #tpu.memory_space<vmem>>, vector<184x128xf32>
    %169 = vector.extract_strided_slice %168 {offsets = [0, 0], sizes = [184, 16], strides = [1, 1]} : vector<184x128xf32> to vector<184x16xf32>
    %170 = arith.truncf %169 : vector<184x16xf32> to vector<184x16xbf16>
    %c96 = arith.constant 96 : index
    %c0_132 = arith.constant 0 : index
    %171 = vector.load %arg5[%c96, %c0_132] : memref<144x128xbf16, #tpu.memory_space<vmem>>, vector<16x128xbf16>
    %cst_133 = arith.constant dense<0.000000e+00> : vector<184x128xf32>
    %172 = tpu.matmul %170, %171, %cst_133 {dimension_numbers = #tpu.dot_dimension_numbers<[1], [0], [0], [1], [0, 0, 1, 1], [], []>} : vector<184x16xbf16>, vector<16x128xbf16>, vector<184x128xf32> -> vector<184x128xf32>
    %173 = arith.addf %167, %172 : vector<184x128xf32>
    %c49_134 = arith.constant 49 : index
    %c0_135 = arith.constant 0 : index
    %174 = vector.load %arg25[%c49_134, %c0_135] : memref<240x128xf32, #tpu.memory_space<vmem>>, vector<184x128xf32>
    %175 = vector.extract_strided_slice %174 {offsets = [0, 0], sizes = [184, 16], strides = [1, 1]} : vector<184x128xf32> to vector<184x16xf32>
    %176 = arith.truncf %175 : vector<184x16xf32> to vector<184x16xbf16>
    %c112 = arith.constant 112 : index
    %c0_136 = arith.constant 0 : index
    %177 = vector.load %arg5[%c112, %c0_136] : memref<144x128xbf16, #tpu.memory_space<vmem>>, vector<16x128xbf16>
    %cst_137 = arith.constant dense<0.000000e+00> : vector<184x128xf32>
    %178 = tpu.matmul %176, %177, %cst_137 {dimension_numbers = #tpu.dot_dimension_numbers<[1], [0], [0], [1], [0, 0, 1, 1], [], []>} : vector<184x16xbf16>, vector<16x128xbf16>, vector<184x128xf32> -> vector<184x128xf32>
    %179 = arith.addf %173, %178 : vector<184x128xf32>
    %c50 = arith.constant 50 : index
    %c0_138 = arith.constant 0 : index
    %180 = vector.load %arg25[%c50, %c0_138] : memref<240x128xf32, #tpu.memory_space<vmem>>, vector<184x128xf32>
    %181 = vector.extract_strided_slice %180 {offsets = [0, 0], sizes = [184, 16], strides = [1, 1]} : vector<184x128xf32> to vector<184x16xf32>
    %182 = arith.truncf %181 : vector<184x16xf32> to vector<184x16xbf16>
    %c128 = arith.constant 128 : index
    %c0_139 = arith.constant 0 : index
    %183 = vector.load %arg5[%c128, %c0_139] : memref<144x128xbf16, #tpu.memory_space<vmem>>, vector<16x128xbf16>
    %cst_140 = arith.constant dense<0.000000e+00> : vector<184x128xf32>
    %184 = tpu.matmul %182, %183, %cst_140 {dimension_numbers = #tpu.dot_dimension_numbers<[1], [0], [0], [1], [0, 0, 1, 1], [], []>} : vector<184x16xbf16>, vector<16x128xbf16>, vector<184x128xf32> -> vector<184x128xf32>
    %185 = arith.addf %179, %184 : vector<184x128xf32>
    %c0_141 = arith.constant 0 : index
    %c0_142 = arith.constant 0 : index
    %186 = vector.load %arg6[%c0_141, %c0_142] : memref<1x128xf32, #tpu.memory_space<vmem>>, vector<1x128xf32>
    %187 = vector.extract_strided_slice %185 {offsets = [0, 0], sizes = [16, 128], strides = [1, 1]} : vector<184x128xf32> to vector<16x128xf32>
    %188 = vector.broadcast %186 : vector<1x128xf32> to vector<16x128xf32>
    %189 = arith.addf %187, %188 : vector<16x128xf32>
    %cst_143 = arith.constant 0.000000e+00 : f32
    %190 = vector.broadcast %cst_143 : f32 to vector<16x128xf32>
    %191 = arith.maximumf %189, %190 : vector<16x128xf32>
    %c25_144 = arith.constant 25 : index
    %c0_145 = arith.constant 0 : index
    %192 = vector.load %arg26[%c25_144, %c0_145] : memref<240x128xf32, #tpu.memory_space<vmem>>, vector<16x128xf32>
    tpu.vector_store %arg26[%c25_144, %c0_145], %191 {strides = array<i32>} : memref<240x128xf32, #tpu.memory_space<vmem>>, vector<16x128xf32>,
    %193 = vector.extract_strided_slice %185 {offsets = [24, 0], sizes = [16, 128], strides = [1, 1]} : vector<184x128xf32> to vector<16x128xf32>
    %194 = vector.broadcast %186 : vector<1x128xf32> to vector<16x128xf32>
    %195 = arith.addf %193, %194 : vector<16x128xf32>
    %cst_146 = arith.constant 0.000000e+00 : f32
    %196 = vector.broadcast %cst_146 : f32 to vector<16x128xf32>
    %197 = arith.maximumf %195, %196 : vector<16x128xf32>
    %c49_147 = arith.constant 49 : index
    %c0_148 = arith.constant 0 : index
    %198 = vector.load %arg26[%c49_147, %c0_148] : memref<240x128xf32, #tpu.memory_space<vmem>>, vector<16x128xf32>
    tpu.vector_store %arg26[%c49_147, %c0_148], %197 {strides = array<i32>} : memref<240x128xf32, #tpu.memory_space<vmem>>, vector<16x128xf32>,
    %199 = vector.extract_strided_slice %185 {offsets = [48, 0], sizes = [16, 128], strides = [1, 1]} : vector<184x128xf32> to vector<16x128xf32>
    %200 = vector.broadcast %186 : vector<1x128xf32> to vector<16x128xf32>
    %201 = arith.addf %199, %200 : vector<16x128xf32>
    %cst_149 = arith.constant 0.000000e+00 : f32
    %202 = vector.broadcast %cst_149 : f32 to vector<16x128xf32>
    %203 = arith.maximumf %201, %202 : vector<16x128xf32>
    %c73_150 = arith.constant 73 : index
    %c0_151 = arith.constant 0 : index
    %204 = vector.load %arg26[%c73_150, %c0_151] : memref<240x128xf32, #tpu.memory_space<vmem>>, vector<16x128xf32>
    tpu.vector_store %arg26[%c73_150, %c0_151], %203 {strides = array<i32>} : memref<240x128xf32, #tpu.memory_space<vmem>>, vector<16x128xf32>,
    %205 = vector.extract_strided_slice %185 {offsets = [72, 0], sizes = [16, 128], strides = [1, 1]} : vector<184x128xf32> to vector<16x128xf32>
    %206 = vector.broadcast %186 : vector<1x128xf32> to vector<16x128xf32>
    %207 = arith.addf %205, %206 : vector<16x128xf32>
    %cst_152 = arith.constant 0.000000e+00 : f32
    %208 = vector.broadcast %cst_152 : f32 to vector<16x128xf32>
    %209 = arith.maximumf %207, %208 : vector<16x128xf32>
    %c97_153 = arith.constant 97 : index
    %c0_154 = arith.constant 0 : index
    %210 = vector.load %arg26[%c97_153, %c0_154] : memref<240x128xf32, #tpu.memory_space<vmem>>, vector<16x128xf32>
    tpu.vector_store %arg26[%c97_153, %c0_154], %209 {strides = array<i32>} : memref<240x128xf32, #tpu.memory_space<vmem>>, vector<16x128xf32>,
    %211 = vector.extract_strided_slice %185 {offsets = [96, 0], sizes = [16, 128], strides = [1, 1]} : vector<184x128xf32> to vector<16x128xf32>
    %212 = vector.broadcast %186 : vector<1x128xf32> to vector<16x128xf32>
    %213 = arith.addf %211, %212 : vector<16x128xf32>
    %cst_155 = arith.constant 0.000000e+00 : f32
    %214 = vector.broadcast %cst_155 : f32 to vector<16x128xf32>
    %215 = arith.maximumf %213, %214 : vector<16x128xf32>
    %c121_156 = arith.constant 121 : index
    %c0_157 = arith.constant 0 : index
    %216 = vector.load %arg26[%c121_156, %c0_157] : memref<240x128xf32, #tpu.memory_space<vmem>>, vector<16x128xf32>
    tpu.vector_store %arg26[%c121_156, %c0_157], %215 {strides = array<i32>} : memref<240x128xf32, #tpu.memory_space<vmem>>, vector<16x128xf32>,
    %217 = vector.extract_strided_slice %185 {offsets = [120, 0], sizes = [16, 128], strides = [1, 1]} : vector<184x128xf32> to vector<16x128xf32>
    %218 = vector.broadcast %186 : vector<1x128xf32> to vector<16x128xf32>
    %219 = arith.addf %217, %218 : vector<16x128xf32>
    %cst_158 = arith.constant 0.000000e+00 : f32
    %220 = vector.broadcast %cst_158 : f32 to vector<16x128xf32>
    %221 = arith.maximumf %219, %220 : vector<16x128xf32>
    %c145_159 = arith.constant 145 : index
    %c0_160 = arith.constant 0 : index
    %222 = vector.load %arg26[%c145_159, %c0_160] : memref<240x128xf32, #tpu.memory_space<vmem>>, vector<16x128xf32>
    tpu.vector_store %arg26[%c145_159, %c0_160], %221 {strides = array<i32>} : memref<240x128xf32, #tpu.memory_space<vmem>>, vector<16x128xf32>,
    %223 = vector.extract_strided_slice %185 {offsets = [144, 0], sizes = [16, 128], strides = [1, 1]} : vector<184x128xf32> to vector<16x128xf32>
    %224 = vector.broadcast %186 : vector<1x128xf32> to vector<16x128xf32>
    %225 = arith.addf %223, %224 : vector<16x128xf32>
    %cst_161 = arith.constant 0.000000e+00 : f32
    %226 = vector.broadcast %cst_161 : f32 to vector<16x128xf32>
    %227 = arith.maximumf %225, %226 : vector<16x128xf32>
    %c169_162 = arith.constant 169 : index
    %c0_163 = arith.constant 0 : index
    %228 = vector.load %arg26[%c169_162, %c0_163] : memref<240x128xf32, #tpu.memory_space<vmem>>, vector<16x128xf32>
    tpu.vector_store %arg26[%c169_162, %c0_163], %227 {strides = array<i32>} : memref<240x128xf32, #tpu.memory_space<vmem>>, vector<16x128xf32>,
    %229 = vector.extract_strided_slice %185 {offsets = [168, 0], sizes = [16, 128], strides = [1, 1]} : vector<184x128xf32> to vector<16x128xf32>
    %230 = vector.broadcast %186 : vector<1x128xf32> to vector<16x128xf32>
    %231 = arith.addf %229, %230 : vector<16x128xf32>
    %cst_164 = arith.constant 0.000000e+00 : f32
    %232 = vector.broadcast %cst_164 : f32 to vector<16x128xf32>
    %233 = arith.maximumf %231, %232 : vector<16x128xf32>
    %c193_165 = arith.constant 193 : index
    %c0_166 = arith.constant 0 : index
    %234 = vector.load %arg26[%c193_165, %c0_166] : memref<240x128xf32, #tpu.memory_space<vmem>>, vector<16x128xf32>
    tpu.vector_store %arg26[%c193_165, %c0_166], %233 {strides = array<i32>} : memref<240x128xf32, #tpu.memory_space<vmem>>, vector<16x128xf32>,
    %cst_167 = arith.constant 0.000000e+00 : f32
    %235 = vector.broadcast %cst_167 : f32 to vector<184x128xf32>
    %c0_168 = arith.constant 0 : index
    %c0_169 = arith.constant 0 : index
    %236 = vector.load %arg26[%c0_168, %c0_169] : memref<240x128xf32, #tpu.memory_space<vmem>>, vector<184x128xf32>
    %237 = vector.extract_strided_slice %236 {offsets = [0, 0], sizes = [184, 16], strides = [1, 1]} : vector<184x128xf32> to vector<184x16xf32>
    %238 = arith.truncf %237 : vector<184x16xf32> to vector<184x16xbf16>
    %c0_170 = arith.constant 0 : index
    %c0_171 = arith.constant 0 : index
    %239 = vector.load %arg7[%c0_170, %c0_171] : memref<144x128xbf16, #tpu.memory_space<vmem>>, vector<16x128xbf16>
    %cst_172 = arith.constant dense<0.000000e+00> : vector<184x128xf32>
    %240 = tpu.matmul %238, %239, %cst_172 {dimension_numbers = #tpu.dot_dimension_numbers<[1], [0], [0], [1], [0, 0, 1, 1], [], []>} : vector<184x16xbf16>, vector<16x128xbf16>, vector<184x128xf32> -> vector<184x128xf32>
    %241 = arith.addf %235, %240 : vector<184x128xf32>
    %c1_173 = arith.constant 1 : index
    %c0_174 = arith.constant 0 : index
    %242 = vector.load %arg26[%c1_173, %c0_174] : memref<240x128xf32, #tpu.memory_space<vmem>>, vector<184x128xf32>
    %243 = vector.extract_strided_slice %242 {offsets = [0, 0], sizes = [184, 16], strides = [1, 1]} : vector<184x128xf32> to vector<184x16xf32>
    %244 = arith.truncf %243 : vector<184x16xf32> to vector<184x16xbf16>
    %c16_175 = arith.constant 16 : index
    %c0_176 = arith.constant 0 : index
    %245 = vector.load %arg7[%c16_175, %c0_176] : memref<144x128xbf16, #tpu.memory_space<vmem>>, vector<16x128xbf16>
    %cst_177 = arith.constant dense<0.000000e+00> : vector<184x128xf32>
    %246 = tpu.matmul %244, %245, %cst_177 {dimension_numbers = #tpu.dot_dimension_numbers<[1], [0], [0], [1], [0, 0, 1, 1], [], []>} : vector<184x16xbf16>, vector<16x128xbf16>, vector<184x128xf32> -> vector<184x128xf32>
    %247 = arith.addf %241, %246 : vector<184x128xf32>
    %c2_178 = arith.constant 2 : index
    %c0_179 = arith.constant 0 : index
    %248 = vector.load %arg26[%c2_178, %c0_179] : memref<240x128xf32, #tpu.memory_space<vmem>>, vector<184x128xf32>
    %249 = vector.extract_strided_slice %248 {offsets = [0, 0], sizes = [184, 16], strides = [1, 1]} : vector<184x128xf32> to vector<184x16xf32>
    %250 = arith.truncf %249 : vector<184x16xf32> to vector<184x16xbf16>
    %c32_180 = arith.constant 32 : index
    %c0_181 = arith.constant 0 : index
    %251 = vector.load %arg7[%c32_180, %c0_181] : memref<144x128xbf16, #tpu.memory_space<vmem>>, vector<16x128xbf16>
    %cst_182 = arith.constant dense<0.000000e+00> : vector<184x128xf32>
    %252 = tpu.matmul %250, %251, %cst_182 {dimension_numbers = #tpu.dot_dimension_numbers<[1], [0], [0], [1], [0, 0, 1, 1], [], []>} : vector<184x16xbf16>, vector<16x128xbf16>, vector<184x128xf32> -> vector<184x128xf32>
    %253 = arith.addf %247, %252 : vector<184x128xf32>
    %c24_183 = arith.constant 24 : index
    %c0_184 = arith.constant 0 : index
    %254 = vector.load %arg26[%c24_183, %c0_184] : memref<240x128xf32, #tpu.memory_space<vmem>>, vector<184x128xf32>
    %255 = vector.extract_strided_slice %254 {offsets = [0, 0], sizes = [184, 16], strides = [1, 1]} : vector<184x128xf32> to vector<184x16xf32>
    %256 = arith.truncf %255 : vector<184x16xf32> to vector<184x16xbf16>
    %c48_185 = arith.constant 48 : index
    %c0_186 = arith.constant 0 : index
    %257 = vector.load %arg7[%c48_185, %c0_186] : memref<144x128xbf16, #tpu.memory_space<vmem>>, vector<16x128xbf16>
    %cst_187 = arith.constant dense<0.000000e+00> : vector<184x128xf32>
    %258 = tpu.matmul %256, %257, %cst_187 {dimension_numbers = #tpu.dot_dimension_numbers<[1], [0], [0], [1], [0, 0, 1, 1], [], []>} : vector<184x16xbf16>, vector<16x128xbf16>, vector<184x128xf32> -> vector<184x128xf32>
    %259 = arith.addf %253, %258 : vector<184x128xf32>
    %c25_188 = arith.constant 25 : index
    %c0_189 = arith.constant 0 : index
    %260 = vector.load %arg26[%c25_188, %c0_189] : memref<240x128xf32, #tpu.memory_space<vmem>>, vector<184x128xf32>
    %261 = vector.extract_strided_slice %260 {offsets = [0, 0], sizes = [184, 16], strides = [1, 1]} : vector<184x128xf32> to vector<184x16xf32>
    %262 = arith.truncf %261 : vector<184x16xf32> to vector<184x16xbf16>
    %c64_190 = arith.constant 64 : index
    %c0_191 = arith.constant 0 : index
    %263 = vector.load %arg7[%c64_190, %c0_191] : memref<144x128xbf16, #tpu.memory_space<vmem>>, vector<16x128xbf16>
    %cst_192 = arith.constant dense<0.000000e+00> : vector<184x128xf32>
    %264 = tpu.matmul %262, %263, %cst_192 {dimension_numbers = #tpu.dot_dimension_numbers<[1], [0], [0], [1], [0, 0, 1, 1], [], []>} : vector<184x16xbf16>, vector<16x128xbf16>, vector<184x128xf32> -> vector<184x128xf32>
    %265 = arith.addf %259, %264 : vector<184x128xf32>
    %c26_193 = arith.constant 26 : index
    %c0_194 = arith.constant 0 : index
    %266 = vector.load %arg26[%c26_193, %c0_194] : memref<240x128xf32, #tpu.memory_space<vmem>>, vector<184x128xf32>
    %267 = vector.extract_strided_slice %266 {offsets = [0, 0], sizes = [184, 16], strides = [1, 1]} : vector<184x128xf32> to vector<184x16xf32>
    %268 = arith.truncf %267 : vector<184x16xf32> to vector<184x16xbf16>
    %c80_195 = arith.constant 80 : index
    %c0_196 = arith.constant 0 : index
    %269 = vector.load %arg7[%c80_195, %c0_196] : memref<144x128xbf16, #tpu.memory_space<vmem>>, vector<16x128xbf16>
    %cst_197 = arith.constant dense<0.000000e+00> : vector<184x128xf32>
    %270 = tpu.matmul %268, %269, %cst_197 {dimension_numbers = #tpu.dot_dimension_numbers<[1], [0], [0], [1], [0, 0, 1, 1], [], []>} : vector<184x16xbf16>, vector<16x128xbf16>, vector<184x128xf32> -> vector<184x128xf32>
    %271 = arith.addf %265, %270 : vector<184x128xf32>
    %c48_198 = arith.constant 48 : index
    %c0_199 = arith.constant 0 : index
    %272 = vector.load %arg26[%c48_198, %c0_199] : memref<240x128xf32, #tpu.memory_space<vmem>>, vector<184x128xf32>
    %273 = vector.extract_strided_slice %272 {offsets = [0, 0], sizes = [184, 16], strides = [1, 1]} : vector<184x128xf32> to vector<184x16xf32>
    %274 = arith.truncf %273 : vector<184x16xf32> to vector<184x16xbf16>
    %c96_200 = arith.constant 96 : index
    %c0_201 = arith.constant 0 : index
    %275 = vector.load %arg7[%c96_200, %c0_201] : memref<144x128xbf16, #tpu.memory_space<vmem>>, vector<16x128xbf16>
    %cst_202 = arith.constant dense<0.000000e+00> : vector<184x128xf32>
    %276 = tpu.matmul %274, %275, %cst_202 {dimension_numbers = #tpu.dot_dimension_numbers<[1], [0], [0], [1], [0, 0, 1, 1], [], []>} : vector<184x16xbf16>, vector<16x128xbf16>, vector<184x128xf32> -> vector<184x128xf32>
    %277 = arith.addf %271, %276 : vector<184x128xf32>
    %c49_203 = arith.constant 49 : index
    %c0_204 = arith.constant 0 : index
    %278 = vector.load %arg26[%c49_203, %c0_204] : memref<240x128xf32, #tpu.memory_space<vmem>>, vector<184x128xf32>
    %279 = vector.extract_strided_slice %278 {offsets = [0, 0], sizes = [184, 16], strides = [1, 1]} : vector<184x128xf32> to vector<184x16xf32>
    %280 = arith.truncf %279 : vector<184x16xf32> to vector<184x16xbf16>
    %c112_205 = arith.constant 112 : index
    %c0_206 = arith.constant 0 : index
    %281 = vector.load %arg7[%c112_205, %c0_206] : memref<144x128xbf16, #tpu.memory_space<vmem>>, vector<16x128xbf16>
    %cst_207 = arith.constant dense<0.000000e+00> : vector<184x128xf32>
    %282 = tpu.matmul %280, %281, %cst_207 {dimension_numbers = #tpu.dot_dimension_numbers<[1], [0], [0], [1], [0, 0, 1, 1], [], []>} : vector<184x16xbf16>, vector<16x128xbf16>, vector<184x128xf32> -> vector<184x128xf32>
    %283 = arith.addf %277, %282 : vector<184x128xf32>
    %c50_208 = arith.constant 50 : index
    %c0_209 = arith.constant 0 : index
    %284 = vector.load %arg26[%c50_208, %c0_209] : memref<240x128xf32, #tpu.memory_space<vmem>>, vector<184x128xf32>
    %285 = vector.extract_strided_slice %284 {offsets = [0, 0], sizes = [184, 16], strides = [1, 1]} : vector<184x128xf32> to vector<184x16xf32>
    %286 = arith.truncf %285 : vector<184x16xf32> to vector<184x16xbf16>
    %c128_210 = arith.constant 128 : index
    %c0_211 = arith.constant 0 : index
    %287 = vector.load %arg7[%c128_210, %c0_211] : memref<144x128xbf16, #tpu.memory_space<vmem>>, vector<16x128xbf16>
    %cst_212 = arith.constant dense<0.000000e+00> : vector<184x128xf32>
    %288 = tpu.matmul %286, %287, %cst_212 {dimension_numbers = #tpu.dot_dimension_numbers<[1], [0], [0], [1], [0, 0, 1, 1], [], []>} : vector<184x16xbf16>, vector<16x128xbf16>, vector<184x128xf32> -> vector<184x128xf32>
    %289 = arith.addf %283, %288 : vector<184x128xf32>
    %c0_213 = arith.constant 0 : index
    %c0_214 = arith.constant 0 : index
    %290 = vector.load %arg8[%c0_213, %c0_214] : memref<1x128xf32, #tpu.memory_space<vmem>>, vector<1x128xf32>
    %c25_215 = arith.constant 25 : index
    %c0_216 = arith.constant 0 : index
    %291 = vector.load %arg25[%c25_215, %c0_216] : memref<240x128xf32, #tpu.memory_space<vmem>>, vector<16x128xf32>
    %292 = vector.extract_strided_slice %289 {offsets = [0, 0], sizes = [16, 128], strides = [1, 1]} : vector<184x128xf32> to vector<16x128xf32>
    %293 = vector.broadcast %290 : vector<1x128xf32> to vector<16x128xf32>
    %294 = arith.addf %292, %293 : vector<16x128xf32>
    %295 = arith.addf %294, %291 : vector<16x128xf32>
    %cst_217 = arith.constant 0.000000e+00 : f32
    %296 = vector.broadcast %cst_217 : f32 to vector<16x128xf32>
    %297 = arith.maximumf %295, %296 : vector<16x128xf32>
    %c25_218 = arith.constant 25 : index
    %c0_219 = arith.constant 0 : index
    %298 = vector.load %arg27[%c25_218, %c0_219] : memref<240x128xf32, #tpu.memory_space<vmem>>, vector<16x128xf32>
    tpu.vector_store %arg27[%c25_218, %c0_219], %297 {strides = array<i32>} : memref<240x128xf32, #tpu.memory_space<vmem>>, vector<16x128xf32>,
    %c49_220 = arith.constant 49 : index
    %c0_221 = arith.constant 0 : index
    %299 = vector.load %arg25[%c49_220, %c0_221] : memref<240x128xf32, #tpu.memory_space<vmem>>, vector<16x128xf32>
    %300 = vector.extract_strided_slice %289 {offsets = [24, 0], sizes = [16, 128], strides = [1, 1]} : vector<184x128xf32> to vector<16x128xf32>
    %301 = vector.broadcast %290 : vector<1x128xf32> to vector<16x128xf32>
    %302 = arith.addf %300, %301 : vector<16x128xf32>
    %303 = arith.addf %302, %299 : vector<16x128xf32>
    %cst_222 = arith.constant 0.000000e+00 : f32
    %304 = vector.broadcast %cst_222 : f32 to vector<16x128xf32>
    %305 = arith.maximumf %303, %304 : vector<16x128xf32>
    %c49_223 = arith.constant 49 : index
    %c0_224 = arith.constant 0 : index
    %306 = vector.load %arg27[%c49_223, %c0_224] : memref<240x128xf32, #tpu.memory_space<vmem>>, vector<16x128xf32>
    tpu.vector_store %arg27[%c49_223, %c0_224], %305 {strides = array<i32>} : memref<240x128xf32, #tpu.memory_space<vmem>>, vector<16x128xf32>,
    %c73_225 = arith.constant 73 : index
    %c0_226 = arith.constant 0 : index
    %307 = vector.load %arg25[%c73_225, %c0_226] : memref<240x128xf32, #tpu.memory_space<vmem>>, vector<16x128xf32>
    %308 = vector.extract_strided_slice %289 {offsets = [48, 0], sizes = [16, 128], strides = [1, 1]} : vector<184x128xf32> to vector<16x128xf32>
    %309 = vector.broadcast %290 : vector<1x128xf32> to vector<16x128xf32>
    %310 = arith.addf %308, %309 : vector<16x128xf32>
    %311 = arith.addf %310, %307 : vector<16x128xf32>
    %cst_227 = arith.constant 0.000000e+00 : f32
    %312 = vector.broadcast %cst_227 : f32 to vector<16x128xf32>
    %313 = arith.maximumf %311, %312 : vector<16x128xf32>
    %c73_228 = arith.constant 73 : index
    %c0_229 = arith.constant 0 : index
    %314 = vector.load %arg27[%c73_228, %c0_229] : memref<240x128xf32, #tpu.memory_space<vmem>>, vector<16x128xf32>
    tpu.vector_store %arg27[%c73_228, %c0_229], %313 {strides = array<i32>} : memref<240x128xf32, #tpu.memory_space<vmem>>, vector<16x128xf32>,
    %c97_230 = arith.constant 97 : index
    %c0_231 = arith.constant 0 : index
    %315 = vector.load %arg25[%c97_230, %c0_231] : memref<240x128xf32, #tpu.memory_space<vmem>>, vector<16x128xf32>
    %316 = vector.extract_strided_slice %289 {offsets = [72, 0], sizes = [16, 128], strides = [1, 1]} : vector<184x128xf32> to vector<16x128xf32>
    %317 = vector.broadcast %290 : vector<1x128xf32> to vector<16x128xf32>
    %318 = arith.addf %316, %317 : vector<16x128xf32>
    %319 = arith.addf %318, %315 : vector<16x128xf32>
    %cst_232 = arith.constant 0.000000e+00 : f32
    %320 = vector.broadcast %cst_232 : f32 to vector<16x128xf32>
    %321 = arith.maximumf %319, %320 : vector<16x128xf32>
    %c97_233 = arith.constant 97 : index
    %c0_234 = arith.constant 0 : index
    %322 = vector.load %arg27[%c97_233, %c0_234] : memref<240x128xf32, #tpu.memory_space<vmem>>, vector<16x128xf32>
    tpu.vector_store %arg27[%c97_233, %c0_234], %321 {strides = array<i32>} : memref<240x128xf32, #tpu.memory_space<vmem>>, vector<16x128xf32>,
    %c121_235 = arith.constant 121 : index
    %c0_236 = arith.constant 0 : index
    %323 = vector.load %arg25[%c121_235, %c0_236] : memref<240x128xf32, #tpu.memory_space<vmem>>, vector<16x128xf32>
    %324 = vector.extract_strided_slice %289 {offsets = [96, 0], sizes = [16, 128], strides = [1, 1]} : vector<184x128xf32> to vector<16x128xf32>
    %325 = vector.broadcast %290 : vector<1x128xf32> to vector<16x128xf32>
    %326 = arith.addf %324, %325 : vector<16x128xf32>
    %327 = arith.addf %326, %323 : vector<16x128xf32>
    %cst_237 = arith.constant 0.000000e+00 : f32
    %328 = vector.broadcast %cst_237 : f32 to vector<16x128xf32>
    %329 = arith.maximumf %327, %328 : vector<16x128xf32>
    %c121_238 = arith.constant 121 : index
    %c0_239 = arith.constant 0 : index
    %330 = vector.load %arg27[%c121_238, %c0_239] : memref<240x128xf32, #tpu.memory_space<vmem>>, vector<16x128xf32>
    tpu.vector_store %arg27[%c121_238, %c0_239], %329 {strides = array<i32>} : memref<240x128xf32, #tpu.memory_space<vmem>>, vector<16x128xf32>,
    %c145_240 = arith.constant 145 : index
    %c0_241 = arith.constant 0 : index
    %331 = vector.load %arg25[%c145_240, %c0_241] : memref<240x128xf32, #tpu.memory_space<vmem>>, vector<16x128xf32>
    %332 = vector.extract_strided_slice %289 {offsets = [120, 0], sizes = [16, 128], strides = [1, 1]} : vector<184x128xf32> to vector<16x128xf32>
    %333 = vector.broadcast %290 : vector<1x128xf32> to vector<16x128xf32>
    %334 = arith.addf %332, %333 : vector<16x128xf32>
    %335 = arith.addf %334, %331 : vector<16x128xf32>
    %cst_242 = arith.constant 0.000000e+00 : f32
    %336 = vector.broadcast %cst_242 : f32 to vector<16x128xf32>
    %337 = arith.maximumf %335, %336 : vector<16x128xf32>
    %c145_243 = arith.constant 145 : index
    %c0_244 = arith.constant 0 : index
    %338 = vector.load %arg27[%c145_243, %c0_244] : memref<240x128xf32, #tpu.memory_space<vmem>>, vector<16x128xf32>
    tpu.vector_store %arg27[%c145_243, %c0_244], %337 {strides = array<i32>} : memref<240x128xf32, #tpu.memory_space<vmem>>, vector<16x128xf32>,
    %c169_245 = arith.constant 169 : index
    %c0_246 = arith.constant 0 : index
    %339 = vector.load %arg25[%c169_245, %c0_246] : memref<240x128xf32, #tpu.memory_space<vmem>>, vector<16x128xf32>
    %340 = vector.extract_strided_slice %289 {offsets = [144, 0], sizes = [16, 128], strides = [1, 1]} : vector<184x128xf32> to vector<16x128xf32>
    %341 = vector.broadcast %290 : vector<1x128xf32> to vector<16x128xf32>
    %342 = arith.addf %340, %341 : vector<16x128xf32>
    %343 = arith.addf %342, %339 : vector<16x128xf32>
    %cst_247 = arith.constant 0.000000e+00 : f32
    %344 = vector.broadcast %cst_247 : f32 to vector<16x128xf32>
    %345 = arith.maximumf %343, %344 : vector<16x128xf32>
    %c169_248 = arith.constant 169 : index
    %c0_249 = arith.constant 0 : index
    %346 = vector.load %arg27[%c169_248, %c0_249] : memref<240x128xf32, #tpu.memory_space<vmem>>, vector<16x128xf32>
    tpu.vector_store %arg27[%c169_248, %c0_249], %345 {strides = array<i32>} : memref<240x128xf32, #tpu.memory_space<vmem>>, vector<16x128xf32>,
    %c193_250 = arith.constant 193 : index
    %c0_251 = arith.constant 0 : index
    %347 = vector.load %arg25[%c193_250, %c0_251] : memref<240x128xf32, #tpu.memory_space<vmem>>, vector<16x128xf32>
    %348 = vector.extract_strided_slice %289 {offsets = [168, 0], sizes = [16, 128], strides = [1, 1]} : vector<184x128xf32> to vector<16x128xf32>
    %349 = vector.broadcast %290 : vector<1x128xf32> to vector<16x128xf32>
    %350 = arith.addf %348, %349 : vector<16x128xf32>
    %351 = arith.addf %350, %347 : vector<16x128xf32>
    %cst_252 = arith.constant 0.000000e+00 : f32
    %352 = vector.broadcast %cst_252 : f32 to vector<16x128xf32>
    %353 = arith.maximumf %351, %352 : vector<16x128xf32>
    %c193_253 = arith.constant 193 : index
    %c0_254 = arith.constant 0 : index
    %354 = vector.load %arg27[%c193_253, %c0_254] : memref<240x128xf32, #tpu.memory_space<vmem>>, vector<16x128xf32>
    tpu.vector_store %arg27[%c193_253, %c0_254], %353 {strides = array<i32>} : memref<240x128xf32, #tpu.memory_space<vmem>>, vector<16x128xf32>,
    %c0_255 = arith.constant 0 : index
    %c0_256 = arith.constant 0 : index
    %355 = vector.load %arg10[%c0_255, %c0_256] : memref<1x128xf32, #tpu.memory_space<vmem>>, vector<1x128xf32>
    %cst_257 = arith.constant 0.000000e+00 : f32
    %356 = vector.broadcast %cst_257 : f32 to vector<8x128xf32>
    %c0_258 = arith.constant 0 : index
    %c0_259 = arith.constant 0 : index
    %357 = tpu.strided_load %arg27[%c0_258, %c0_259] {strides = array<i32: 2, 1>} : memref<240x128xf32, #tpu.memory_space<vmem>>, vector<8x128xf32>
    %358 = vector.extract_strided_slice %357 {offsets = [0, 0], sizes = [8, 16], strides = [1, 1]} : vector<8x128xf32> to vector<8x16xf32>
    %359 = arith.truncf %358 : vector<8x16xf32> to vector<8x16xbf16>
    %c0_260 = arith.constant 0 : index
    %c0_261 = arith.constant 0 : index
    %360 = vector.load %arg9[%c0_260, %c0_261] : memref<144x128xbf16, #tpu.memory_space<vmem>>, vector<16x128xbf16>
    %cst_262 = arith.constant dense<0.000000e+00> : vector<8x128xf32>
    %361 = tpu.matmul %359, %360, %cst_262 {dimension_numbers = #tpu.dot_dimension_numbers<[1], [0], [0], [1], [0, 0, 1, 1], [], []>} : vector<8x16xbf16>, vector<16x128xbf16>, vector<8x128xf32> -> vector<8x128xf32>
    %362 = arith.addf %356, %361 : vector<8x128xf32>
    %c1_263 = arith.constant 1 : index
    %c0_264 = arith.constant 0 : index
    %363 = tpu.strided_load %arg27[%c1_263, %c0_264] {strides = array<i32: 2, 1>} : memref<240x128xf32, #tpu.memory_space<vmem>>, vector<8x128xf32>
    %364 = vector.extract_strided_slice %363 {offsets = [0, 0], sizes = [8, 16], strides = [1, 1]} : vector<8x128xf32> to vector<8x16xf32>
    %365 = arith.truncf %364 : vector<8x16xf32> to vector<8x16xbf16>
    %c16_265 = arith.constant 16 : index
    %c0_266 = arith.constant 0 : index
    %366 = vector.load %arg9[%c16_265, %c0_266] : memref<144x128xbf16, #tpu.memory_space<vmem>>, vector<16x128xbf16>
    %cst_267 = arith.constant dense<0.000000e+00> : vector<8x128xf32>
    %367 = tpu.matmul %365, %366, %cst_267 {dimension_numbers = #tpu.dot_dimension_numbers<[1], [0], [0], [1], [0, 0, 1, 1], [], []>} : vector<8x16xbf16>, vector<16x128xbf16>, vector<8x128xf32> -> vector<8x128xf32>
    %368 = arith.addf %362, %367 : vector<8x128xf32>
    %c2_268 = arith.constant 2 : index
    %c0_269 = arith.constant 0 : index
    %369 = tpu.strided_load %arg27[%c2_268, %c0_269] {strides = array<i32: 2, 1>} : memref<240x128xf32, #tpu.memory_space<vmem>>, vector<8x128xf32>
    %370 = vector.extract_strided_slice %369 {offsets = [0, 0], sizes = [8, 16], strides = [1, 1]} : vector<8x128xf32> to vector<8x16xf32>
    %371 = arith.truncf %370 : vector<8x16xf32> to vector<8x16xbf16>
    %c32_270 = arith.constant 32 : index
    %c0_271 = arith.constant 0 : index
    %372 = vector.load %arg9[%c32_270, %c0_271] : memref<144x128xbf16, #tpu.memory_space<vmem>>, vector<16x128xbf16>
    %cst_272 = arith.constant dense<0.000000e+00> : vector<8x128xf32>
    %373 = tpu.matmul %371, %372, %cst_272 {dimension_numbers = #tpu.dot_dimension_numbers<[1], [0], [0], [1], [0, 0, 1, 1], [], []>} : vector<8x16xbf16>, vector<16x128xbf16>, vector<8x128xf32> -> vector<8x128xf32>
    %374 = arith.addf %368, %373 : vector<8x128xf32>
    %c24_273 = arith.constant 24 : index
    %c0_274 = arith.constant 0 : index
    %375 = tpu.strided_load %arg27[%c24_273, %c0_274] {strides = array<i32: 2, 1>} : memref<240x128xf32, #tpu.memory_space<vmem>>, vector<8x128xf32>
    %376 = vector.extract_strided_slice %375 {offsets = [0, 0], sizes = [8, 16], strides = [1, 1]} : vector<8x128xf32> to vector<8x16xf32>
    %377 = arith.truncf %376 : vector<8x16xf32> to vector<8x16xbf16>
    %c48_275 = arith.constant 48 : index
    %c0_276 = arith.constant 0 : index
    %378 = vector.load %arg9[%c48_275, %c0_276] : memref<144x128xbf16, #tpu.memory_space<vmem>>, vector<16x128xbf16>
    %cst_277 = arith.constant dense<0.000000e+00> : vector<8x128xf32>
    %379 = tpu.matmul %377, %378, %cst_277 {dimension_numbers = #tpu.dot_dimension_numbers<[1], [0], [0], [1], [0, 0, 1, 1], [], []>} : vector<8x16xbf16>, vector<16x128xbf16>, vector<8x128xf32> -> vector<8x128xf32>
    %380 = arith.addf %374, %379 : vector<8x128xf32>
    %c25_278 = arith.constant 25 : index
    %c0_279 = arith.constant 0 : index
    %381 = tpu.strided_load %arg27[%c25_278, %c0_279] {strides = array<i32: 2, 1>} : memref<240x128xf32, #tpu.memory_space<vmem>>, vector<8x128xf32>
    %382 = vector.extract_strided_slice %381 {offsets = [0, 0], sizes = [8, 16], strides = [1, 1]} : vector<8x128xf32> to vector<8x16xf32>
    %383 = arith.truncf %382 : vector<8x16xf32> to vector<8x16xbf16>
    %c64_280 = arith.constant 64 : index
    %c0_281 = arith.constant 0 : index
    %384 = vector.load %arg9[%c64_280, %c0_281] : memref<144x128xbf16, #tpu.memory_space<vmem>>, vector<16x128xbf16>
    %cst_282 = arith.constant dense<0.000000e+00> : vector<8x128xf32>
    %385 = tpu.matmul %383, %384, %cst_282 {dimension_numbers = #tpu.dot_dimension_numbers<[1], [0], [0], [1], [0, 0, 1, 1], [], []>} : vector<8x16xbf16>, vector<16x128xbf16>, vector<8x128xf32> -> vector<8x128xf32>
    %386 = arith.addf %380, %385 : vector<8x128xf32>
    %c26_283 = arith.constant 26 : index
    %c0_284 = arith.constant 0 : index
    %387 = tpu.strided_load %arg27[%c26_283, %c0_284] {strides = array<i32: 2, 1>} : memref<240x128xf32, #tpu.memory_space<vmem>>, vector<8x128xf32>
    %388 = vector.extract_strided_slice %387 {offsets = [0, 0], sizes = [8, 16], strides = [1, 1]} : vector<8x128xf32> to vector<8x16xf32>
    %389 = arith.truncf %388 : vector<8x16xf32> to vector<8x16xbf16>
    %c80_285 = arith.constant 80 : index
    %c0_286 = arith.constant 0 : index
    %390 = vector.load %arg9[%c80_285, %c0_286] : memref<144x128xbf16, #tpu.memory_space<vmem>>, vector<16x128xbf16>
    %cst_287 = arith.constant dense<0.000000e+00> : vector<8x128xf32>
    %391 = tpu.matmul %389, %390, %cst_287 {dimension_numbers = #tpu.dot_dimension_numbers<[1], [0], [0], [1], [0, 0, 1, 1], [], []>} : vector<8x16xbf16>, vector<16x128xbf16>, vector<8x128xf32> -> vector<8x128xf32>
    %392 = arith.addf %386, %391 : vector<8x128xf32>
    %c48_288 = arith.constant 48 : index
    %c0_289 = arith.constant 0 : index
    %393 = tpu.strided_load %arg27[%c48_288, %c0_289] {strides = array<i32: 2, 1>} : memref<240x128xf32, #tpu.memory_space<vmem>>, vector<8x128xf32>
    %394 = vector.extract_strided_slice %393 {offsets = [0, 0], sizes = [8, 16], strides = [1, 1]} : vector<8x128xf32> to vector<8x16xf32>
    %395 = arith.truncf %394 : vector<8x16xf32> to vector<8x16xbf16>
    %c96_290 = arith.constant 96 : index
    %c0_291 = arith.constant 0 : index
    %396 = vector.load %arg9[%c96_290, %c0_291] : memref<144x128xbf16, #tpu.memory_space<vmem>>, vector<16x128xbf16>
    %cst_292 = arith.constant dense<0.000000e+00> : vector<8x128xf32>
    %397 = tpu.matmul %395, %396, %cst_292 {dimension_numbers = #tpu.dot_dimension_numbers<[1], [0], [0], [1], [0, 0, 1, 1], [], []>} : vector<8x16xbf16>, vector<16x128xbf16>, vector<8x128xf32> -> vector<8x128xf32>
    %398 = arith.addf %392, %397 : vector<8x128xf32>
    %c49_293 = arith.constant 49 : index
    %c0_294 = arith.constant 0 : index
    %399 = tpu.strided_load %arg27[%c49_293, %c0_294] {strides = array<i32: 2, 1>} : memref<240x128xf32, #tpu.memory_space<vmem>>, vector<8x128xf32>
    %400 = vector.extract_strided_slice %399 {offsets = [0, 0], sizes = [8, 16], strides = [1, 1]} : vector<8x128xf32> to vector<8x16xf32>
    %401 = arith.truncf %400 : vector<8x16xf32> to vector<8x16xbf16>
    %c112_295 = arith.constant 112 : index
    %c0_296 = arith.constant 0 : index
    %402 = vector.load %arg9[%c112_295, %c0_296] : memref<144x128xbf16, #tpu.memory_space<vmem>>, vector<16x128xbf16>
    %cst_297 = arith.constant dense<0.000000e+00> : vector<8x128xf32>
    %403 = tpu.matmul %401, %402, %cst_297 {dimension_numbers = #tpu.dot_dimension_numbers<[1], [0], [0], [1], [0, 0, 1, 1], [], []>} : vector<8x16xbf16>, vector<16x128xbf16>, vector<8x128xf32> -> vector<8x128xf32>
    %404 = arith.addf %398, %403 : vector<8x128xf32>
    %c50_298 = arith.constant 50 : index
    %c0_299 = arith.constant 0 : index
    %405 = tpu.strided_load %arg27[%c50_298, %c0_299] {strides = array<i32: 2, 1>} : memref<240x128xf32, #tpu.memory_space<vmem>>, vector<8x128xf32>
    %406 = vector.extract_strided_slice %405 {offsets = [0, 0], sizes = [8, 16], strides = [1, 1]} : vector<8x128xf32> to vector<8x16xf32>
    %407 = arith.truncf %406 : vector<8x16xf32> to vector<8x16xbf16>
    %c128_300 = arith.constant 128 : index
    %c0_301 = arith.constant 0 : index
    %408 = vector.load %arg9[%c128_300, %c0_301] : memref<144x128xbf16, #tpu.memory_space<vmem>>, vector<16x128xbf16>
    %cst_302 = arith.constant dense<0.000000e+00> : vector<8x128xf32>
    %409 = tpu.matmul %407, %408, %cst_302 {dimension_numbers = #tpu.dot_dimension_numbers<[1], [0], [0], [1], [0, 0, 1, 1], [], []>} : vector<8x16xbf16>, vector<16x128xbf16>, vector<8x128xf32> -> vector<8x128xf32>
    %410 = arith.addf %404, %409 : vector<8x128xf32>
    %411 = vector.broadcast %355 : vector<1x128xf32> to vector<8x128xf32>
    %412 = arith.addf %410, %411 : vector<8x128xf32>
    %cst_303 = arith.constant 0.000000e+00 : f32
    %413 = vector.broadcast %cst_303 : f32 to vector<8x128xf32>
    %414 = arith.maximumf %412, %413 : vector<8x128xf32>
    %c17_304 = arith.constant 17 : index
    %c0_305 = arith.constant 0 : index
    %415 = vector.load %arg28[%c17_304, %c0_305] : memref<96x128xf32, #tpu.memory_space<vmem>>, vector<8x128xf32>
    tpu.vector_store %arg28[%c17_304, %c0_305], %414 {strides = array<i32>} : memref<96x128xf32, #tpu.memory_space<vmem>>, vector<8x128xf32>,
    %cst_306 = arith.constant 0.000000e+00 : f32
    %416 = vector.broadcast %cst_306 : f32 to vector<8x128xf32>
    %c48_307 = arith.constant 48 : index
    %c0_308 = arith.constant 0 : index
    %417 = tpu.strided_load %arg27[%c48_307, %c0_308] {strides = array<i32: 2, 1>} : memref<240x128xf32, #tpu.memory_space<vmem>>, vector<8x128xf32>
    %418 = vector.extract_strided_slice %417 {offsets = [0, 0], sizes = [8, 16], strides = [1, 1]} : vector<8x128xf32> to vector<8x16xf32>
    %419 = arith.truncf %418 : vector<8x16xf32> to vector<8x16xbf16>
    %c0_309 = arith.constant 0 : index
    %c0_310 = arith.constant 0 : index
    %420 = vector.load %arg9[%c0_309, %c0_310] : memref<144x128xbf16, #tpu.memory_space<vmem>>, vector<16x128xbf16>
    %cst_311 = arith.constant dense<0.000000e+00> : vector<8x128xf32>
    %421 = tpu.matmul %419, %420, %cst_311 {dimension_numbers = #tpu.dot_dimension_numbers<[1], [0], [0], [1], [0, 0, 1, 1], [], []>} : vector<8x16xbf16>, vector<16x128xbf16>, vector<8x128xf32> -> vector<8x128xf32>
    %422 = arith.addf %416, %421 : vector<8x128xf32>
    %c49_312 = arith.constant 49 : index
    %c0_313 = arith.constant 0 : index
    %423 = tpu.strided_load %arg27[%c49_312, %c0_313] {strides = array<i32: 2, 1>} : memref<240x128xf32, #tpu.memory_space<vmem>>, vector<8x128xf32>
    %424 = vector.extract_strided_slice %423 {offsets = [0, 0], sizes = [8, 16], strides = [1, 1]} : vector<8x128xf32> to vector<8x16xf32>
    %425 = arith.truncf %424 : vector<8x16xf32> to vector<8x16xbf16>
    %c16_314 = arith.constant 16 : index
    %c0_315 = arith.constant 0 : index
    %426 = vector.load %arg9[%c16_314, %c0_315] : memref<144x128xbf16, #tpu.memory_space<vmem>>, vector<16x128xbf16>
    %cst_316 = arith.constant dense<0.000000e+00> : vector<8x128xf32>
    %427 = tpu.matmul %425, %426, %cst_316 {dimension_numbers = #tpu.dot_dimension_numbers<[1], [0], [0], [1], [0, 0, 1, 1], [], []>} : vector<8x16xbf16>, vector<16x128xbf16>, vector<8x128xf32> -> vector<8x128xf32>
    %428 = arith.addf %422, %427 : vector<8x128xf32>
    %c50_317 = arith.constant 50 : index
    %c0_318 = arith.constant 0 : index
    %429 = tpu.strided_load %arg27[%c50_317, %c0_318] {strides = array<i32: 2, 1>} : memref<240x128xf32, #tpu.memory_space<vmem>>, vector<8x128xf32>
    %430 = vector.extract_strided_slice %429 {offsets = [0, 0], sizes = [8, 16], strides = [1, 1]} : vector<8x128xf32> to vector<8x16xf32>
    %431 = arith.truncf %430 : vector<8x16xf32> to vector<8x16xbf16>
    %c32_319 = arith.constant 32 : index
    %c0_320 = arith.constant 0 : index
    %432 = vector.load %arg9[%c32_319, %c0_320] : memref<144x128xbf16, #tpu.memory_space<vmem>>, vector<16x128xbf16>
    %cst_321 = arith.constant dense<0.000000e+00> : vector<8x128xf32>
    %433 = tpu.matmul %431, %432, %cst_321 {dimension_numbers = #tpu.dot_dimension_numbers<[1], [0], [0], [1], [0, 0, 1, 1], [], []>} : vector<8x16xbf16>, vector<16x128xbf16>, vector<8x128xf32> -> vector<8x128xf32>
    %434 = arith.addf %428, %433 : vector<8x128xf32>
    %c72 = arith.constant 72 : index
    %c0_322 = arith.constant 0 : index
    %435 = tpu.strided_load %arg27[%c72, %c0_322] {strides = array<i32: 2, 1>} : memref<240x128xf32, #tpu.memory_space<vmem>>, vector<8x128xf32>
    %436 = vector.extract_strided_slice %435 {offsets = [0, 0], sizes = [8, 16], strides = [1, 1]} : vector<8x128xf32> to vector<8x16xf32>
    %437 = arith.truncf %436 : vector<8x16xf32> to vector<8x16xbf16>
    %c48_323 = arith.constant 48 : index
    %c0_324 = arith.constant 0 : index
    %438 = vector.load %arg9[%c48_323, %c0_324] : memref<144x128xbf16, #tpu.memory_space<vmem>>, vector<16x128xbf16>
    %cst_325 = arith.constant dense<0.000000e+00> : vector<8x128xf32>
    %439 = tpu.matmul %437, %438, %cst_325 {dimension_numbers = #tpu.dot_dimension_numbers<[1], [0], [0], [1], [0, 0, 1, 1], [], []>} : vector<8x16xbf16>, vector<16x128xbf16>, vector<8x128xf32> -> vector<8x128xf32>
    %440 = arith.addf %434, %439 : vector<8x128xf32>
    %c73_326 = arith.constant 73 : index
    %c0_327 = arith.constant 0 : index
    %441 = tpu.strided_load %arg27[%c73_326, %c0_327] {strides = array<i32: 2, 1>} : memref<240x128xf32, #tpu.memory_space<vmem>>, vector<8x128xf32>
    %442 = vector.extract_strided_slice %441 {offsets = [0, 0], sizes = [8, 16], strides = [1, 1]} : vector<8x128xf32> to vector<8x16xf32>
    %443 = arith.truncf %442 : vector<8x16xf32> to vector<8x16xbf16>
    %c64_328 = arith.constant 64 : index
    %c0_329 = arith.constant 0 : index
    %444 = vector.load %arg9[%c64_328, %c0_329] : memref<144x128xbf16, #tpu.memory_space<vmem>>, vector<16x128xbf16>
    %cst_330 = arith.constant dense<0.000000e+00> : vector<8x128xf32>
    %445 = tpu.matmul %443, %444, %cst_330 {dimension_numbers = #tpu.dot_dimension_numbers<[1], [0], [0], [1], [0, 0, 1, 1], [], []>} : vector<8x16xbf16>, vector<16x128xbf16>, vector<8x128xf32> -> vector<8x128xf32>
    %446 = arith.addf %440, %445 : vector<8x128xf32>
    %c74 = arith.constant 74 : index
    %c0_331 = arith.constant 0 : index
    %447 = tpu.strided_load %arg27[%c74, %c0_331] {strides = array<i32: 2, 1>} : memref<240x128xf32, #tpu.memory_space<vmem>>, vector<8x128xf32>
    %448 = vector.extract_strided_slice %447 {offsets = [0, 0], sizes = [8, 16], strides = [1, 1]} : vector<8x128xf32> to vector<8x16xf32>
    %449 = arith.truncf %448 : vector<8x16xf32> to vector<8x16xbf16>
    %c80_332 = arith.constant 80 : index
    %c0_333 = arith.constant 0 : index
    %450 = vector.load %arg9[%c80_332, %c0_333] : memref<144x128xbf16, #tpu.memory_space<vmem>>, vector<16x128xbf16>
    %cst_334 = arith.constant dense<0.000000e+00> : vector<8x128xf32>
    %451 = tpu.matmul %449, %450, %cst_334 {dimension_numbers = #tpu.dot_dimension_numbers<[1], [0], [0], [1], [0, 0, 1, 1], [], []>} : vector<8x16xbf16>, vector<16x128xbf16>, vector<8x128xf32> -> vector<8x128xf32>
    %452 = arith.addf %446, %451 : vector<8x128xf32>
    %c96_335 = arith.constant 96 : index
    %c0_336 = arith.constant 0 : index
    %453 = tpu.strided_load %arg27[%c96_335, %c0_336] {strides = array<i32: 2, 1>} : memref<240x128xf32, #tpu.memory_space<vmem>>, vector<8x128xf32>
    %454 = vector.extract_strided_slice %453 {offsets = [0, 0], sizes = [8, 16], strides = [1, 1]} : vector<8x128xf32> to vector<8x16xf32>
    %455 = arith.truncf %454 : vector<8x16xf32> to vector<8x16xbf16>
    %c96_337 = arith.constant 96 : index
    %c0_338 = arith.constant 0 : index
    %456 = vector.load %arg9[%c96_337, %c0_338] : memref<144x128xbf16, #tpu.memory_space<vmem>>, vector<16x128xbf16>
    %cst_339 = arith.constant dense<0.000000e+00> : vector<8x128xf32>
    %457 = tpu.matmul %455, %456, %cst_339 {dimension_numbers = #tpu.dot_dimension_numbers<[1], [0], [0], [1], [0, 0, 1, 1], [], []>} : vector<8x16xbf16>, vector<16x128xbf16>, vector<8x128xf32> -> vector<8x128xf32>
    %458 = arith.addf %452, %457 : vector<8x128xf32>
    %c97_340 = arith.constant 97 : index
    %c0_341 = arith.constant 0 : index
    %459 = tpu.strided_load %arg27[%c97_340, %c0_341] {strides = array<i32: 2, 1>} : memref<240x128xf32, #tpu.memory_space<vmem>>, vector<8x128xf32>
    %460 = vector.extract_strided_slice %459 {offsets = [0, 0], sizes = [8, 16], strides = [1, 1]} : vector<8x128xf32> to vector<8x16xf32>
    %461 = arith.truncf %460 : vector<8x16xf32> to vector<8x16xbf16>
    %c112_342 = arith.constant 112 : index
    %c0_343 = arith.constant 0 : index
    %462 = vector.load %arg9[%c112_342, %c0_343] : memref<144x128xbf16, #tpu.memory_space<vmem>>, vector<16x128xbf16>
    %cst_344 = arith.constant dense<0.000000e+00> : vector<8x128xf32>
    %463 = tpu.matmul %461, %462, %cst_344 {dimension_numbers = #tpu.dot_dimension_numbers<[1], [0], [0], [1], [0, 0, 1, 1], [], []>} : vector<8x16xbf16>, vector<16x128xbf16>, vector<8x128xf32> -> vector<8x128xf32>
    %464 = arith.addf %458, %463 : vector<8x128xf32>
    %c98 = arith.constant 98 : index
    %c0_345 = arith.constant 0 : index
    %465 = tpu.strided_load %arg27[%c98, %c0_345] {strides = array<i32: 2, 1>} : memref<240x128xf32, #tpu.memory_space<vmem>>, vector<8x128xf32>
    %466 = vector.extract_strided_slice %465 {offsets = [0, 0], sizes = [8, 16], strides = [1, 1]} : vector<8x128xf32> to vector<8x16xf32>
    %467 = arith.truncf %466 : vector<8x16xf32> to vector<8x16xbf16>
    %c128_346 = arith.constant 128 : index
    %c0_347 = arith.constant 0 : index
    %468 = vector.load %arg9[%c128_346, %c0_347] : memref<144x128xbf16, #tpu.memory_space<vmem>>, vector<16x128xbf16>
    %cst_348 = arith.constant dense<0.000000e+00> : vector<8x128xf32>
    %469 = tpu.matmul %467, %468, %cst_348 {dimension_numbers = #tpu.dot_dimension_numbers<[1], [0], [0], [1], [0, 0, 1, 1], [], []>} : vector<8x16xbf16>, vector<16x128xbf16>, vector<8x128xf32> -> vector<8x128xf32>
    %470 = arith.addf %464, %469 : vector<8x128xf32>
    %471 = vector.broadcast %355 : vector<1x128xf32> to vector<8x128xf32>
    %472 = arith.addf %470, %471 : vector<8x128xf32>
    %cst_349 = arith.constant 0.000000e+00 : f32
    %473 = vector.broadcast %cst_349 : f32 to vector<8x128xf32>
    %474 = arith.maximumf %472, %473 : vector<8x128xf32>
    %c33_350 = arith.constant 33 : index
    %c0_351 = arith.constant 0 : index
    %475 = vector.load %arg28[%c33_350, %c0_351] : memref<96x128xf32, #tpu.memory_space<vmem>>, vector<8x128xf32>
    tpu.vector_store %arg28[%c33_350, %c0_351], %474 {strides = array<i32>} : memref<96x128xf32, #tpu.memory_space<vmem>>, vector<8x128xf32>,
    %cst_352 = arith.constant 0.000000e+00 : f32
    %476 = vector.broadcast %cst_352 : f32 to vector<8x128xf32>
    %c96_353 = arith.constant 96 : index
    %c0_354 = arith.constant 0 : index
    %477 = tpu.strided_load %arg27[%c96_353, %c0_354] {strides = array<i32: 2, 1>} : memref<240x128xf32, #tpu.memory_space<vmem>>, vector<8x128xf32>
    %478 = vector.extract_strided_slice %477 {offsets = [0, 0], sizes = [8, 16], strides = [1, 1]} : vector<8x128xf32> to vector<8x16xf32>
    %479 = arith.truncf %478 : vector<8x16xf32> to vector<8x16xbf16>
    %c0_355 = arith.constant 0 : index
    %c0_356 = arith.constant 0 : index
    %480 = vector.load %arg9[%c0_355, %c0_356] : memref<144x128xbf16, #tpu.memory_space<vmem>>, vector<16x128xbf16>
    %cst_357 = arith.constant dense<0.000000e+00> : vector<8x128xf32>
    %481 = tpu.matmul %479, %480, %cst_357 {dimension_numbers = #tpu.dot_dimension_numbers<[1], [0], [0], [1], [0, 0, 1, 1], [], []>} : vector<8x16xbf16>, vector<16x128xbf16>, vector<8x128xf32> -> vector<8x128xf32>
    %482 = arith.addf %476, %481 : vector<8x128xf32>
    %c97_358 = arith.constant 97 : index
    %c0_359 = arith.constant 0 : index
    %483 = tpu.strided_load %arg27[%c97_358, %c0_359] {strides = array<i32: 2, 1>} : memref<240x128xf32, #tpu.memory_space<vmem>>, vector<8x128xf32>
    %484 = vector.extract_strided_slice %483 {offsets = [0, 0], sizes = [8, 16], strides = [1, 1]} : vector<8x128xf32> to vector<8x16xf32>
    %485 = arith.truncf %484 : vector<8x16xf32> to vector<8x16xbf16>
    %c16_360 = arith.constant 16 : index
    %c0_361 = arith.constant 0 : index
    %486 = vector.load %arg9[%c16_360, %c0_361] : memref<144x128xbf16, #tpu.memory_space<vmem>>, vector<16x128xbf16>
    %cst_362 = arith.constant dense<0.000000e+00> : vector<8x128xf32>
    %487 = tpu.matmul %485, %486, %cst_362 {dimension_numbers = #tpu.dot_dimension_numbers<[1], [0], [0], [1], [0, 0, 1, 1], [], []>} : vector<8x16xbf16>, vector<16x128xbf16>, vector<8x128xf32> -> vector<8x128xf32>
    %488 = arith.addf %482, %487 : vector<8x128xf32>
    %c98_363 = arith.constant 98 : index
    %c0_364 = arith.constant 0 : index
    %489 = tpu.strided_load %arg27[%c98_363, %c0_364] {strides = array<i32: 2, 1>} : memref<240x128xf32, #tpu.memory_space<vmem>>, vector<8x128xf32>
    %490 = vector.extract_strided_slice %489 {offsets = [0, 0], sizes = [8, 16], strides = [1, 1]} : vector<8x128xf32> to vector<8x16xf32>
    %491 = arith.truncf %490 : vector<8x16xf32> to vector<8x16xbf16>
    %c32_365 = arith.constant 32 : index
    %c0_366 = arith.constant 0 : index
    %492 = vector.load %arg9[%c32_365, %c0_366] : memref<144x128xbf16, #tpu.memory_space<vmem>>, vector<16x128xbf16>
    %cst_367 = arith.constant dense<0.000000e+00> : vector<8x128xf32>
    %493 = tpu.matmul %491, %492, %cst_367 {dimension_numbers = #tpu.dot_dimension_numbers<[1], [0], [0], [1], [0, 0, 1, 1], [], []>} : vector<8x16xbf16>, vector<16x128xbf16>, vector<8x128xf32> -> vector<8x128xf32>
    %494 = arith.addf %488, %493 : vector<8x128xf32>
    %c120 = arith.constant 120 : index
    %c0_368 = arith.constant 0 : index
    %495 = tpu.strided_load %arg27[%c120, %c0_368] {strides = array<i32: 2, 1>} : memref<240x128xf32, #tpu.memory_space<vmem>>, vector<8x128xf32>
    %496 = vector.extract_strided_slice %495 {offsets = [0, 0], sizes = [8, 16], strides = [1, 1]} : vector<8x128xf32> to vector<8x16xf32>
    %497 = arith.truncf %496 : vector<8x16xf32> to vector<8x16xbf16>
    %c48_369 = arith.constant 48 : index
    %c0_370 = arith.constant 0 : index
    %498 = vector.load %arg9[%c48_369, %c0_370] : memref<144x128xbf16, #tpu.memory_space<vmem>>, vector<16x128xbf16>
    %cst_371 = arith.constant dense<0.000000e+00> : vector<8x128xf32>
    %499 = tpu.matmul %497, %498, %cst_371 {dimension_numbers = #tpu.dot_dimension_numbers<[1], [0], [0], [1], [0, 0, 1, 1], [], []>} : vector<8x16xbf16>, vector<16x128xbf16>, vector<8x128xf32> -> vector<8x128xf32>
    %500 = arith.addf %494, %499 : vector<8x128xf32>
    %c121_372 = arith.constant 121 : index
    %c0_373 = arith.constant 0 : index
    %501 = tpu.strided_load %arg27[%c121_372, %c0_373] {strides = array<i32: 2, 1>} : memref<240x128xf32, #tpu.memory_space<vmem>>, vector<8x128xf32>
    %502 = vector.extract_strided_slice %501 {offsets = [0, 0], sizes = [8, 16], strides = [1, 1]} : vector<8x128xf32> to vector<8x16xf32>
    %503 = arith.truncf %502 : vector<8x16xf32> to vector<8x16xbf16>
    %c64_374 = arith.constant 64 : index
    %c0_375 = arith.constant 0 : index
    %504 = vector.load %arg9[%c64_374, %c0_375] : memref<144x128xbf16, #tpu.memory_space<vmem>>, vector<16x128xbf16>
    %cst_376 = arith.constant dense<0.000000e+00> : vector<8x128xf32>
    %505 = tpu.matmul %503, %504, %cst_376 {dimension_numbers = #tpu.dot_dimension_numbers<[1], [0], [0], [1], [0, 0, 1, 1], [], []>} : vector<8x16xbf16>, vector<16x128xbf16>, vector<8x128xf32> -> vector<8x128xf32>
    %506 = arith.addf %500, %505 : vector<8x128xf32>
    %c122 = arith.constant 122 : index
    %c0_377 = arith.constant 0 : index
    %507 = tpu.strided_load %arg27[%c122, %c0_377] {strides = array<i32: 2, 1>} : memref<240x128xf32, #tpu.memory_space<vmem>>, vector<8x128xf32>
    %508 = vector.extract_strided_slice %507 {offsets = [0, 0], sizes = [8, 16], strides = [1, 1]} : vector<8x128xf32> to vector<8x16xf32>
    %509 = arith.truncf %508 : vector<8x16xf32> to vector<8x16xbf16>
    %c80_378 = arith.constant 80 : index
    %c0_379 = arith.constant 0 : index
    %510 = vector.load %arg9[%c80_378, %c0_379] : memref<144x128xbf16, #tpu.memory_space<vmem>>, vector<16x128xbf16>
    %cst_380 = arith.constant dense<0.000000e+00> : vector<8x128xf32>
    %511 = tpu.matmul %509, %510, %cst_380 {dimension_numbers = #tpu.dot_dimension_numbers<[1], [0], [0], [1], [0, 0, 1, 1], [], []>} : vector<8x16xbf16>, vector<16x128xbf16>, vector<8x128xf32> -> vector<8x128xf32>
    %512 = arith.addf %506, %511 : vector<8x128xf32>
    %c144 = arith.constant 144 : index
    %c0_381 = arith.constant 0 : index
    %513 = tpu.strided_load %arg27[%c144, %c0_381] {strides = array<i32: 2, 1>} : memref<240x128xf32, #tpu.memory_space<vmem>>, vector<8x128xf32>
    %514 = vector.extract_strided_slice %513 {offsets = [0, 0], sizes = [8, 16], strides = [1, 1]} : vector<8x128xf32> to vector<8x16xf32>
    %515 = arith.truncf %514 : vector<8x16xf32> to vector<8x16xbf16>
    %c96_382 = arith.constant 96 : index
    %c0_383 = arith.constant 0 : index
    %516 = vector.load %arg9[%c96_382, %c0_383] : memref<144x128xbf16, #tpu.memory_space<vmem>>, vector<16x128xbf16>
    %cst_384 = arith.constant dense<0.000000e+00> : vector<8x128xf32>
    %517 = tpu.matmul %515, %516, %cst_384 {dimension_numbers = #tpu.dot_dimension_numbers<[1], [0], [0], [1], [0, 0, 1, 1], [], []>} : vector<8x16xbf16>, vector<16x128xbf16>, vector<8x128xf32> -> vector<8x128xf32>
    %518 = arith.addf %512, %517 : vector<8x128xf32>
    %c145_385 = arith.constant 145 : index
    %c0_386 = arith.constant 0 : index
    %519 = tpu.strided_load %arg27[%c145_385, %c0_386] {strides = array<i32: 2, 1>} : memref<240x128xf32, #tpu.memory_space<vmem>>, vector<8x128xf32>
    %520 = vector.extract_strided_slice %519 {offsets = [0, 0], sizes = [8, 16], strides = [1, 1]} : vector<8x128xf32> to vector<8x16xf32>
    %521 = arith.truncf %520 : vector<8x16xf32> to vector<8x16xbf16>
    %c112_387 = arith.constant 112 : index
    %c0_388 = arith.constant 0 : index
    %522 = vector.load %arg9[%c112_387, %c0_388] : memref<144x128xbf16, #tpu.memory_space<vmem>>, vector<16x128xbf16>
    %cst_389 = arith.constant dense<0.000000e+00> : vector<8x128xf32>
    %523 = tpu.matmul %521, %522, %cst_389 {dimension_numbers = #tpu.dot_dimension_numbers<[1], [0], [0], [1], [0, 0, 1, 1], [], []>} : vector<8x16xbf16>, vector<16x128xbf16>, vector<8x128xf32> -> vector<8x128xf32>
    %524 = arith.addf %518, %523 : vector<8x128xf32>
    %c146 = arith.constant 146 : index
    %c0_390 = arith.constant 0 : index
    %525 = tpu.strided_load %arg27[%c146, %c0_390] {strides = array<i32: 2, 1>} : memref<240x128xf32, #tpu.memory_space<vmem>>, vector<8x128xf32>
    %526 = vector.extract_strided_slice %525 {offsets = [0, 0], sizes = [8, 16], strides = [1, 1]} : vector<8x128xf32> to vector<8x16xf32>
    %527 = arith.truncf %526 : vector<8x16xf32> to vector<8x16xbf16>
    %c128_391 = arith.constant 128 : index
    %c0_392 = arith.constant 0 : index
    %528 = vector.load %arg9[%c128_391, %c0_392] : memref<144x128xbf16, #tpu.memory_space<vmem>>, vector<16x128xbf16>
    %cst_393 = arith.constant dense<0.000000e+00> : vector<8x128xf32>
    %529 = tpu.matmul %527, %528, %cst_393 {dimension_numbers = #tpu.dot_dimension_numbers<[1], [0], [0], [1], [0, 0, 1, 1], [], []>} : vector<8x16xbf16>, vector<16x128xbf16>, vector<8x128xf32> -> vector<8x128xf32>
    %530 = arith.addf %524, %529 : vector<8x128xf32>
    %531 = vector.broadcast %355 : vector<1x128xf32> to vector<8x128xf32>
    %532 = arith.addf %530, %531 : vector<8x128xf32>
    %cst_394 = arith.constant 0.000000e+00 : f32
    %533 = vector.broadcast %cst_394 : f32 to vector<8x128xf32>
    %534 = arith.maximumf %532, %533 : vector<8x128xf32>
    %c49_395 = arith.constant 49 : index
    %c0_396 = arith.constant 0 : index
    %535 = vector.load %arg28[%c49_395, %c0_396] : memref<96x128xf32, #tpu.memory_space<vmem>>, vector<8x128xf32>
    tpu.vector_store %arg28[%c49_395, %c0_396], %534 {strides = array<i32>} : memref<96x128xf32, #tpu.memory_space<vmem>>, vector<8x128xf32>,
    %cst_397 = arith.constant 0.000000e+00 : f32
    %536 = vector.broadcast %cst_397 : f32 to vector<8x128xf32>
    %c144_398 = arith.constant 144 : index
    %c0_399 = arith.constant 0 : index
    %537 = tpu.strided_load %arg27[%c144_398, %c0_399] {strides = array<i32: 2, 1>} : memref<240x128xf32, #tpu.memory_space<vmem>>, vector<8x128xf32>
    %538 = vector.extract_strided_slice %537 {offsets = [0, 0], sizes = [8, 16], strides = [1, 1]} : vector<8x128xf32> to vector<8x16xf32>
    %539 = arith.truncf %538 : vector<8x16xf32> to vector<8x16xbf16>
    %c0_400 = arith.constant 0 : index
    %c0_401 = arith.constant 0 : index
    %540 = vector.load %arg9[%c0_400, %c0_401] : memref<144x128xbf16, #tpu.memory_space<vmem>>, vector<16x128xbf16>
    %cst_402 = arith.constant dense<0.000000e+00> : vector<8x128xf32>
    %541 = tpu.matmul %539, %540, %cst_402 {dimension_numbers = #tpu.dot_dimension_numbers<[1], [0], [0], [1], [0, 0, 1, 1], [], []>} : vector<8x16xbf16>, vector<16x128xbf16>, vector<8x128xf32> -> vector<8x128xf32>
    %542 = arith.addf %536, %541 : vector<8x128xf32>
    %c145_403 = arith.constant 145 : index
    %c0_404 = arith.constant 0 : index
    %543 = tpu.strided_load %arg27[%c145_403, %c0_404] {strides = array<i32: 2, 1>} : memref<240x128xf32, #tpu.memory_space<vmem>>, vector<8x128xf32>
    %544 = vector.extract_strided_slice %543 {offsets = [0, 0], sizes = [8, 16], strides = [1, 1]} : vector<8x128xf32> to vector<8x16xf32>
    %545 = arith.truncf %544 : vector<8x16xf32> to vector<8x16xbf16>
    %c16_405 = arith.constant 16 : index
    %c0_406 = arith.constant 0 : index
    %546 = vector.load %arg9[%c16_405, %c0_406] : memref<144x128xbf16, #tpu.memory_space<vmem>>, vector<16x128xbf16>
    %cst_407 = arith.constant dense<0.000000e+00> : vector<8x128xf32>
    %547 = tpu.matmul %545, %546, %cst_407 {dimension_numbers = #tpu.dot_dimension_numbers<[1], [0], [0], [1], [0, 0, 1, 1], [], []>} : vector<8x16xbf16>, vector<16x128xbf16>, vector<8x128xf32> -> vector<8x128xf32>
    %548 = arith.addf %542, %547 : vector<8x128xf32>
    %c146_408 = arith.constant 146 : index
    %c0_409 = arith.constant 0 : index
    %549 = tpu.strided_load %arg27[%c146_408, %c0_409] {strides = array<i32: 2, 1>} : memref<240x128xf32, #tpu.memory_space<vmem>>, vector<8x128xf32>
    %550 = vector.extract_strided_slice %549 {offsets = [0, 0], sizes = [8, 16], strides = [1, 1]} : vector<8x128xf32> to vector<8x16xf32>
    %551 = arith.truncf %550 : vector<8x16xf32> to vector<8x16xbf16>
    %c32_410 = arith.constant 32 : index
    %c0_411 = arith.constant 0 : index
    %552 = vector.load %arg9[%c32_410, %c0_411] : memref<144x128xbf16, #tpu.memory_space<vmem>>, vector<16x128xbf16>
    %cst_412 = arith.constant dense<0.000000e+00> : vector<8x128xf32>
    %553 = tpu.matmul %551, %552, %cst_412 {dimension_numbers = #tpu.dot_dimension_numbers<[1], [0], [0], [1], [0, 0, 1, 1], [], []>} : vector<8x16xbf16>, vector<16x128xbf16>, vector<8x128xf32> -> vector<8x128xf32>
    %554 = arith.addf %548, %553 : vector<8x128xf32>
    %c168 = arith.constant 168 : index
    %c0_413 = arith.constant 0 : index
    %555 = tpu.strided_load %arg27[%c168, %c0_413] {strides = array<i32: 2, 1>} : memref<240x128xf32, #tpu.memory_space<vmem>>, vector<8x128xf32>
    %556 = vector.extract_strided_slice %555 {offsets = [0, 0], sizes = [8, 16], strides = [1, 1]} : vector<8x128xf32> to vector<8x16xf32>
    %557 = arith.truncf %556 : vector<8x16xf32> to vector<8x16xbf16>
    %c48_414 = arith.constant 48 : index
    %c0_415 = arith.constant 0 : index
    %558 = vector.load %arg9[%c48_414, %c0_415] : memref<144x128xbf16, #tpu.memory_space<vmem>>, vector<16x128xbf16>
    %cst_416 = arith.constant dense<0.000000e+00> : vector<8x128xf32>
    %559 = tpu.matmul %557, %558, %cst_416 {dimension_numbers = #tpu.dot_dimension_numbers<[1], [0], [0], [1], [0, 0, 1, 1], [], []>} : vector<8x16xbf16>, vector<16x128xbf16>, vector<8x128xf32> -> vector<8x128xf32>
    %560 = arith.addf %554, %559 : vector<8x128xf32>
    %c169_417 = arith.constant 169 : index
    %c0_418 = arith.constant 0 : index
    %561 = tpu.strided_load %arg27[%c169_417, %c0_418] {strides = array<i32: 2, 1>} : memref<240x128xf32, #tpu.memory_space<vmem>>, vector<8x128xf32>
    %562 = vector.extract_strided_slice %561 {offsets = [0, 0], sizes = [8, 16], strides = [1, 1]} : vector<8x128xf32> to vector<8x16xf32>
    %563 = arith.truncf %562 : vector<8x16xf32> to vector<8x16xbf16>
    %c64_419 = arith.constant 64 : index
    %c0_420 = arith.constant 0 : index
    %564 = vector.load %arg9[%c64_419, %c0_420] : memref<144x128xbf16, #tpu.memory_space<vmem>>, vector<16x128xbf16>
    %cst_421 = arith.constant dense<0.000000e+00> : vector<8x128xf32>
    %565 = tpu.matmul %563, %564, %cst_421 {dimension_numbers = #tpu.dot_dimension_numbers<[1], [0], [0], [1], [0, 0, 1, 1], [], []>} : vector<8x16xbf16>, vector<16x128xbf16>, vector<8x128xf32> -> vector<8x128xf32>
    %566 = arith.addf %560, %565 : vector<8x128xf32>
    %c170 = arith.constant 170 : index
    %c0_422 = arith.constant 0 : index
    %567 = tpu.strided_load %arg27[%c170, %c0_422] {strides = array<i32: 2, 1>} : memref<240x128xf32, #tpu.memory_space<vmem>>, vector<8x128xf32>
    %568 = vector.extract_strided_slice %567 {offsets = [0, 0], sizes = [8, 16], strides = [1, 1]} : vector<8x128xf32> to vector<8x16xf32>
    %569 = arith.truncf %568 : vector<8x16xf32> to vector<8x16xbf16>
    %c80_423 = arith.constant 80 : index
    %c0_424 = arith.constant 0 : index
    %570 = vector.load %arg9[%c80_423, %c0_424] : memref<144x128xbf16, #tpu.memory_space<vmem>>, vector<16x128xbf16>
    %cst_425 = arith.constant dense<0.000000e+00> : vector<8x128xf32>
    %571 = tpu.matmul %569, %570, %cst_425 {dimension_numbers = #tpu.dot_dimension_numbers<[1], [0], [0], [1], [0, 0, 1, 1], [], []>} : vector<8x16xbf16>, vector<16x128xbf16>, vector<8x128xf32> -> vector<8x128xf32>
    %572 = arith.addf %566, %571 : vector<8x128xf32>
    %c192 = arith.constant 192 : index
    %c0_426 = arith.constant 0 : index
    %573 = tpu.strided_load %arg27[%c192, %c0_426] {strides = array<i32: 2, 1>} : memref<240x128xf32, #tpu.memory_space<vmem>>, vector<8x128xf32>
    %574 = vector.extract_strided_slice %573 {offsets = [0, 0], sizes = [8, 16], strides = [1, 1]} : vector<8x128xf32> to vector<8x16xf32>
    %575 = arith.truncf %574 : vector<8x16xf32> to vector<8x16xbf16>
    %c96_427 = arith.constant 96 : index
    %c0_428 = arith.constant 0 : index
    %576 = vector.load %arg9[%c96_427, %c0_428] : memref<144x128xbf16, #tpu.memory_space<vmem>>, vector<16x128xbf16>
    %cst_429 = arith.constant dense<0.000000e+00> : vector<8x128xf32>
    %577 = tpu.matmul %575, %576, %cst_429 {dimension_numbers = #tpu.dot_dimension_numbers<[1], [0], [0], [1], [0, 0, 1, 1], [], []>} : vector<8x16xbf16>, vector<16x128xbf16>, vector<8x128xf32> -> vector<8x128xf32>
    %578 = arith.addf %572, %577 : vector<8x128xf32>
    %c193_430 = arith.constant 193 : index
    %c0_431 = arith.constant 0 : index
    %579 = tpu.strided_load %arg27[%c193_430, %c0_431] {strides = array<i32: 2, 1>} : memref<240x128xf32, #tpu.memory_space<vmem>>, vector<8x128xf32>
    %580 = vector.extract_strided_slice %579 {offsets = [0, 0], sizes = [8, 16], strides = [1, 1]} : vector<8x128xf32> to vector<8x16xf32>
    %581 = arith.truncf %580 : vector<8x16xf32> to vector<8x16xbf16>
    %c112_432 = arith.constant 112 : index
    %c0_433 = arith.constant 0 : index
    %582 = vector.load %arg9[%c112_432, %c0_433] : memref<144x128xbf16, #tpu.memory_space<vmem>>, vector<16x128xbf16>
    %cst_434 = arith.constant dense<0.000000e+00> : vector<8x128xf32>
    %583 = tpu.matmul %581, %582, %cst_434 {dimension_numbers = #tpu.dot_dimension_numbers<[1], [0], [0], [1], [0, 0, 1, 1], [], []>} : vector<8x16xbf16>, vector<16x128xbf16>, vector<8x128xf32> -> vector<8x128xf32>
    %584 = arith.addf %578, %583 : vector<8x128xf32>
    %c194 = arith.constant 194 : index
    %c0_435 = arith.constant 0 : index
    %585 = tpu.strided_load %arg27[%c194, %c0_435] {strides = array<i32: 2, 1>} : memref<240x128xf32, #tpu.memory_space<vmem>>, vector<8x128xf32>
    %586 = vector.extract_strided_slice %585 {offsets = [0, 0], sizes = [8, 16], strides = [1, 1]} : vector<8x128xf32> to vector<8x16xf32>
    %587 = arith.truncf %586 : vector<8x16xf32> to vector<8x16xbf16>
    %c128_436 = arith.constant 128 : index
    %c0_437 = arith.constant 0 : index
    %588 = vector.load %arg9[%c128_436, %c0_437] : memref<144x128xbf16, #tpu.memory_space<vmem>>, vector<16x128xbf16>
    %cst_438 = arith.constant dense<0.000000e+00> : vector<8x128xf32>
    %589 = tpu.matmul %587, %588, %cst_438 {dimension_numbers = #tpu.dot_dimension_numbers<[1], [0], [0], [1], [0, 0, 1, 1], [], []>} : vector<8x16xbf16>, vector<16x128xbf16>, vector<8x128xf32> -> vector<8x128xf32>
    %590 = arith.addf %584, %589 : vector<8x128xf32>
    %591 = vector.broadcast %355 : vector<1x128xf32> to vector<8x128xf32>
    %592 = arith.addf %590, %591 : vector<8x128xf32>
    %cst_439 = arith.constant 0.000000e+00 : f32
    %593 = vector.broadcast %cst_439 : f32 to vector<8x128xf32>
    %594 = arith.maximumf %592, %593 : vector<8x128xf32>
    %c65 = arith.constant 65 : index
    %c0_440 = arith.constant 0 : index
    %595 = vector.load %arg28[%c65, %c0_440] : memref<96x128xf32, #tpu.memory_space<vmem>>, vector<8x128xf32>
    tpu.vector_store %arg28[%c65, %c0_440], %594 {strides = array<i32>} : memref<96x128xf32, #tpu.memory_space<vmem>>, vector<8x128xf32>,
    %cst_441 = arith.constant 0.000000e+00 : f32
    %596 = vector.broadcast %cst_441 : f32 to vector<56x128xf32>
    %c0_442 = arith.constant 0 : index
    %c0_443 = arith.constant 0 : index
    %597 = vector.load %arg28[%c0_442, %c0_443] : memref<96x128xf32, #tpu.memory_space<vmem>>, vector<56x128xf32>
    %598 = vector.extract_strided_slice %597 {offsets = [0, 0], sizes = [56, 32], strides = [1, 1]} : vector<56x128xf32> to vector<56x32xf32>
    %599 = arith.truncf %598 : vector<56x32xf32> to vector<56x32xbf16>
    %c0_444 = arith.constant 0 : index
    %c0_445 = arith.constant 0 : index
    %600 = vector.load %arg11[%c0_444, %c0_445] : memref<288x128xbf16, #tpu.memory_space<vmem>>, vector<32x128xbf16>
    %cst_446 = arith.constant dense<0.000000e+00> : vector<56x128xf32>
    %601 = tpu.matmul %599, %600, %cst_446 {dimension_numbers = #tpu.dot_dimension_numbers<[1], [0], [0], [1], [0, 0, 1, 1], [], []>} : vector<56x32xbf16>, vector<32x128xbf16>, vector<56x128xf32> -> vector<56x128xf32>
    %602 = arith.addf %596, %601 : vector<56x128xf32>
    %c1_447 = arith.constant 1 : index
    %c0_448 = arith.constant 0 : index
    %603 = vector.load %arg28[%c1_447, %c0_448] : memref<96x128xf32, #tpu.memory_space<vmem>>, vector<56x128xf32>
    %604 = vector.extract_strided_slice %603 {offsets = [0, 0], sizes = [56, 32], strides = [1, 1]} : vector<56x128xf32> to vector<56x32xf32>
    %605 = arith.truncf %604 : vector<56x32xf32> to vector<56x32xbf16>
    %c32_449 = arith.constant 32 : index
    %c0_450 = arith.constant 0 : index
    %606 = vector.load %arg11[%c32_449, %c0_450] : memref<288x128xbf16, #tpu.memory_space<vmem>>, vector<32x128xbf16>
    %cst_451 = arith.constant dense<0.000000e+00> : vector<56x128xf32>
    %607 = tpu.matmul %605, %606, %cst_451 {dimension_numbers = #tpu.dot_dimension_numbers<[1], [0], [0], [1], [0, 0, 1, 1], [], []>} : vector<56x32xbf16>, vector<32x128xbf16>, vector<56x128xf32> -> vector<56x128xf32>
    %608 = arith.addf %602, %607 : vector<56x128xf32>
    %c2_452 = arith.constant 2 : index
    %c0_453 = arith.constant 0 : index
    %609 = vector.load %arg28[%c2_452, %c0_453] : memref<96x128xf32, #tpu.memory_space<vmem>>, vector<56x128xf32>
    %610 = vector.extract_strided_slice %609 {offsets = [0, 0], sizes = [56, 32], strides = [1, 1]} : vector<56x128xf32> to vector<56x32xf32>
    %611 = arith.truncf %610 : vector<56x32xf32> to vector<56x32xbf16>
    %c64_454 = arith.constant 64 : index
    %c0_455 = arith.constant 0 : index
    %612 = vector.load %arg11[%c64_454, %c0_455] : memref<288x128xbf16, #tpu.memory_space<vmem>>, vector<32x128xbf16>
    %cst_456 = arith.constant dense<0.000000e+00> : vector<56x128xf32>
    %613 = tpu.matmul %611, %612, %cst_456 {dimension_numbers = #tpu.dot_dimension_numbers<[1], [0], [0], [1], [0, 0, 1, 1], [], []>} : vector<56x32xbf16>, vector<32x128xbf16>, vector<56x128xf32> -> vector<56x128xf32>
    %614 = arith.addf %608, %613 : vector<56x128xf32>
    %c16_457 = arith.constant 16 : index
    %c0_458 = arith.constant 0 : index
    %615 = vector.load %arg28[%c16_457, %c0_458] : memref<96x128xf32, #tpu.memory_space<vmem>>, vector<56x128xf32>
    %616 = vector.extract_strided_slice %615 {offsets = [0, 0], sizes = [56, 32], strides = [1, 1]} : vector<56x128xf32> to vector<56x32xf32>
    %617 = arith.truncf %616 : vector<56x32xf32> to vector<56x32xbf16>
    %c96_459 = arith.constant 96 : index
    %c0_460 = arith.constant 0 : index
    %618 = vector.load %arg11[%c96_459, %c0_460] : memref<288x128xbf16, #tpu.memory_space<vmem>>, vector<32x128xbf16>
    %cst_461 = arith.constant dense<0.000000e+00> : vector<56x128xf32>
    %619 = tpu.matmul %617, %618, %cst_461 {dimension_numbers = #tpu.dot_dimension_numbers<[1], [0], [0], [1], [0, 0, 1, 1], [], []>} : vector<56x32xbf16>, vector<32x128xbf16>, vector<56x128xf32> -> vector<56x128xf32>
    %620 = arith.addf %614, %619 : vector<56x128xf32>
    %c17_462 = arith.constant 17 : index
    %c0_463 = arith.constant 0 : index
    %621 = vector.load %arg28[%c17_462, %c0_463] : memref<96x128xf32, #tpu.memory_space<vmem>>, vector<56x128xf32>
    %622 = vector.extract_strided_slice %621 {offsets = [0, 0], sizes = [56, 32], strides = [1, 1]} : vector<56x128xf32> to vector<56x32xf32>
    %623 = arith.truncf %622 : vector<56x32xf32> to vector<56x32xbf16>
    %c128_464 = arith.constant 128 : index
    %c0_465 = arith.constant 0 : index
    %624 = vector.load %arg11[%c128_464, %c0_465] : memref<288x128xbf16, #tpu.memory_space<vmem>>, vector<32x128xbf16>
    %cst_466 = arith.constant dense<0.000000e+00> : vector<56x128xf32>
    %625 = tpu.matmul %623, %624, %cst_466 {dimension_numbers = #tpu.dot_dimension_numbers<[1], [0], [0], [1], [0, 0, 1, 1], [], []>} : vector<56x32xbf16>, vector<32x128xbf16>, vector<56x128xf32> -> vector<56x128xf32>
    %626 = arith.addf %620, %625 : vector<56x128xf32>
    %c18_467 = arith.constant 18 : index
    %c0_468 = arith.constant 0 : index
    %627 = vector.load %arg28[%c18_467, %c0_468] : memref<96x128xf32, #tpu.memory_space<vmem>>, vector<56x128xf32>
    %628 = vector.extract_strided_slice %627 {offsets = [0, 0], sizes = [56, 32], strides = [1, 1]} : vector<56x128xf32> to vector<56x32xf32>
    %629 = arith.truncf %628 : vector<56x32xf32> to vector<56x32xbf16>
    %c160 = arith.constant 160 : index
    %c0_469 = arith.constant 0 : index
    %630 = vector.load %arg11[%c160, %c0_469] : memref<288x128xbf16, #tpu.memory_space<vmem>>, vector<32x128xbf16>
    %cst_470 = arith.constant dense<0.000000e+00> : vector<56x128xf32>
    %631 = tpu.matmul %629, %630, %cst_470 {dimension_numbers = #tpu.dot_dimension_numbers<[1], [0], [0], [1], [0, 0, 1, 1], [], []>} : vector<56x32xbf16>, vector<32x128xbf16>, vector<56x128xf32> -> vector<56x128xf32>
    %632 = arith.addf %626, %631 : vector<56x128xf32>
    %c32_471 = arith.constant 32 : index
    %c0_472 = arith.constant 0 : index
    %633 = vector.load %arg28[%c32_471, %c0_472] : memref<96x128xf32, #tpu.memory_space<vmem>>, vector<56x128xf32>
    %634 = vector.extract_strided_slice %633 {offsets = [0, 0], sizes = [56, 32], strides = [1, 1]} : vector<56x128xf32> to vector<56x32xf32>
    %635 = arith.truncf %634 : vector<56x32xf32> to vector<56x32xbf16>
    %c192_473 = arith.constant 192 : index
    %c0_474 = arith.constant 0 : index
    %636 = vector.load %arg11[%c192_473, %c0_474] : memref<288x128xbf16, #tpu.memory_space<vmem>>, vector<32x128xbf16>
    %cst_475 = arith.constant dense<0.000000e+00> : vector<56x128xf32>
    %637 = tpu.matmul %635, %636, %cst_475 {dimension_numbers = #tpu.dot_dimension_numbers<[1], [0], [0], [1], [0, 0, 1, 1], [], []>} : vector<56x32xbf16>, vector<32x128xbf16>, vector<56x128xf32> -> vector<56x128xf32>
    %638 = arith.addf %632, %637 : vector<56x128xf32>
    %c33_476 = arith.constant 33 : index
    %c0_477 = arith.constant 0 : index
    %639 = vector.load %arg28[%c33_476, %c0_477] : memref<96x128xf32, #tpu.memory_space<vmem>>, vector<56x128xf32>
    %640 = vector.extract_strided_slice %639 {offsets = [0, 0], sizes = [56, 32], strides = [1, 1]} : vector<56x128xf32> to vector<56x32xf32>
    %641 = arith.truncf %640 : vector<56x32xf32> to vector<56x32xbf16>
    %c224 = arith.constant 224 : index
    %c0_478 = arith.constant 0 : index
    %642 = vector.load %arg11[%c224, %c0_478] : memref<288x128xbf16, #tpu.memory_space<vmem>>, vector<32x128xbf16>
    %cst_479 = arith.constant dense<0.000000e+00> : vector<56x128xf32>
    %643 = tpu.matmul %641, %642, %cst_479 {dimension_numbers = #tpu.dot_dimension_numbers<[1], [0], [0], [1], [0, 0, 1, 1], [], []>} : vector<56x32xbf16>, vector<32x128xbf16>, vector<56x128xf32> -> vector<56x128xf32>
    %644 = arith.addf %638, %643 : vector<56x128xf32>
    %c34_480 = arith.constant 34 : index
    %c0_481 = arith.constant 0 : index
    %645 = vector.load %arg28[%c34_480, %c0_481] : memref<96x128xf32, #tpu.memory_space<vmem>>, vector<56x128xf32>
    %646 = vector.extract_strided_slice %645 {offsets = [0, 0], sizes = [56, 32], strides = [1, 1]} : vector<56x128xf32> to vector<56x32xf32>
    %647 = arith.truncf %646 : vector<56x32xf32> to vector<56x32xbf16>
    %c256 = arith.constant 256 : index
    %c0_482 = arith.constant 0 : index
    %648 = vector.load %arg11[%c256, %c0_482] : memref<288x128xbf16, #tpu.memory_space<vmem>>, vector<32x128xbf16>
    %cst_483 = arith.constant dense<0.000000e+00> : vector<56x128xf32>
    %649 = tpu.matmul %647, %648, %cst_483 {dimension_numbers = #tpu.dot_dimension_numbers<[1], [0], [0], [1], [0, 0, 1, 1], [], []>} : vector<56x32xbf16>, vector<32x128xbf16>, vector<56x128xf32> -> vector<56x128xf32>
    %650 = arith.addf %644, %649 : vector<56x128xf32>
    %c0_484 = arith.constant 0 : index
    %c0_485 = arith.constant 0 : index
    %651 = vector.load %arg12[%c0_484, %c0_485] : memref<1x128xf32, #tpu.memory_space<vmem>>, vector<1x128xf32>
    %c0_486 = arith.constant 0 : index
    %c0_487 = arith.constant 0 : index
    %652 = vector.load %arg13[%c0_486, %c0_487] : memref<16x128xbf16, #tpu.memory_space<vmem>>, vector<16x128xbf16>
    %c0_488 = arith.constant 0 : index
    %c0_489 = arith.constant 0 : index
    %653 = vector.load %arg14[%c0_488, %c0_489] : memref<1x128xf32, #tpu.memory_space<vmem>>, vector<1x128xf32>
    %c25_490 = arith.constant 25 : index
    %c0_491 = arith.constant 0 : index
    %654 = tpu.strided_load %arg27[%c25_490, %c0_491] {strides = array<i32: 2, 1>} : memref<240x128xf32, #tpu.memory_space<vmem>>, vector<8x128xf32>
    %655 = vector.extract_strided_slice %654 {offsets = [0, 0], sizes = [8, 16], strides = [1, 1]} : vector<8x128xf32> to vector<8x16xf32>
    %656 = arith.truncf %655 : vector<8x16xf32> to vector<8x16xbf16>
    %cst_492 = arith.constant dense<0.000000e+00> : vector<8x128xf32>
    %657 = tpu.matmul %656, %652, %cst_492 {dimension_numbers = #tpu.dot_dimension_numbers<[1], [0], [0], [1], [0, 0, 1, 1], [], []>} : vector<8x16xbf16>, vector<16x128xbf16>, vector<8x128xf32> -> vector<8x128xf32>
    %658 = vector.broadcast %653 : vector<1x128xf32> to vector<8x128xf32>
    %659 = arith.addf %657, %658 : vector<8x128xf32>
    %660 = vector.extract_strided_slice %650 {offsets = [0, 0], sizes = [8, 128], strides = [1, 1]} : vector<56x128xf32> to vector<8x128xf32>
    %661 = vector.broadcast %651 : vector<1x128xf32> to vector<8x128xf32>
    %662 = arith.addf %660, %661 : vector<8x128xf32>
    %663 = arith.addf %662, %659 : vector<8x128xf32>
    %cst_493 = arith.constant 0.000000e+00 : f32
    %664 = vector.broadcast %cst_493 : f32 to vector<8x128xf32>
    %665 = arith.maximumf %663, %664 : vector<8x128xf32>
    %c17_494 = arith.constant 17 : index
    %c0_495 = arith.constant 0 : index
    %666 = vector.load %arg29[%c17_494, %c0_495] : memref<96x128xf32, #tpu.memory_space<vmem>>, vector<8x128xf32>
    tpu.vector_store %arg29[%c17_494, %c0_495], %665 {strides = array<i32>} : memref<96x128xf32, #tpu.memory_space<vmem>>, vector<8x128xf32>,
    %c73_496 = arith.constant 73 : index
    %c0_497 = arith.constant 0 : index
    %667 = tpu.strided_load %arg27[%c73_496, %c0_497] {strides = array<i32: 2, 1>} : memref<240x128xf32, #tpu.memory_space<vmem>>, vector<8x128xf32>
    %668 = vector.extract_strided_slice %667 {offsets = [0, 0], sizes = [8, 16], strides = [1, 1]} : vector<8x128xf32> to vector<8x16xf32>
    %669 = arith.truncf %668 : vector<8x16xf32> to vector<8x16xbf16>
    %cst_498 = arith.constant dense<0.000000e+00> : vector<8x128xf32>
    %670 = tpu.matmul %669, %652, %cst_498 {dimension_numbers = #tpu.dot_dimension_numbers<[1], [0], [0], [1], [0, 0, 1, 1], [], []>} : vector<8x16xbf16>, vector<16x128xbf16>, vector<8x128xf32> -> vector<8x128xf32>
    %671 = vector.broadcast %653 : vector<1x128xf32> to vector<8x128xf32>
    %672 = arith.addf %670, %671 : vector<8x128xf32>
    %673 = vector.extract_strided_slice %650 {offsets = [16, 0], sizes = [8, 128], strides = [1, 1]} : vector<56x128xf32> to vector<8x128xf32>
    %674 = vector.broadcast %651 : vector<1x128xf32> to vector<8x128xf32>
    %675 = arith.addf %673, %674 : vector<8x128xf32>
    %676 = arith.addf %675, %672 : vector<8x128xf32>
    %cst_499 = arith.constant 0.000000e+00 : f32
    %677 = vector.broadcast %cst_499 : f32 to vector<8x128xf32>
    %678 = arith.maximumf %676, %677 : vector<8x128xf32>
    %c33_500 = arith.constant 33 : index
    %c0_501 = arith.constant 0 : index
    %679 = vector.load %arg29[%c33_500, %c0_501] : memref<96x128xf32, #tpu.memory_space<vmem>>, vector<8x128xf32>
    tpu.vector_store %arg29[%c33_500, %c0_501], %678 {strides = array<i32>} : memref<96x128xf32, #tpu.memory_space<vmem>>, vector<8x128xf32>,
    %c121_502 = arith.constant 121 : index
    %c0_503 = arith.constant 0 : index
    %680 = tpu.strided_load %arg27[%c121_502, %c0_503] {strides = array<i32: 2, 1>} : memref<240x128xf32, #tpu.memory_space<vmem>>, vector<8x128xf32>
    %681 = vector.extract_strided_slice %680 {offsets = [0, 0], sizes = [8, 16], strides = [1, 1]} : vector<8x128xf32> to vector<8x16xf32>
    %682 = arith.truncf %681 : vector<8x16xf32> to vector<8x16xbf16>
    %cst_504 = arith.constant dense<0.000000e+00> : vector<8x128xf32>
    %683 = tpu.matmul %682, %652, %cst_504 {dimension_numbers = #tpu.dot_dimension_numbers<[1], [0], [0], [1], [0, 0, 1, 1], [], []>} : vector<8x16xbf16>, vector<16x128xbf16>, vector<8x128xf32> -> vector<8x128xf32>
    %684 = vector.broadcast %653 : vector<1x128xf32> to vector<8x128xf32>
    %685 = arith.addf %683, %684 : vector<8x128xf32>
    %686 = vector.extract_strided_slice %650 {offsets = [32, 0], sizes = [8, 128], strides = [1, 1]} : vector<56x128xf32> to vector<8x128xf32>
    %687 = vector.broadcast %651 : vector<1x128xf32> to vector<8x128xf32>
    %688 = arith.addf %686, %687 : vector<8x128xf32>
    %689 = arith.addf %688, %685 : vector<8x128xf32>
    %cst_505 = arith.constant 0.000000e+00 : f32
    %690 = vector.broadcast %cst_505 : f32 to vector<8x128xf32>
    %691 = arith.maximumf %689, %690 : vector<8x128xf32>
    %c49_506 = arith.constant 49 : index
    %c0_507 = arith.constant 0 : index
    %692 = vector.load %arg29[%c49_506, %c0_507] : memref<96x128xf32, #tpu.memory_space<vmem>>, vector<8x128xf32>
    tpu.vector_store %arg29[%c49_506, %c0_507], %691 {strides = array<i32>} : memref<96x128xf32, #tpu.memory_space<vmem>>, vector<8x128xf32>,
    %c169_508 = arith.constant 169 : index
    %c0_509 = arith.constant 0 : index
    %693 = tpu.strided_load %arg27[%c169_508, %c0_509] {strides = array<i32: 2, 1>} : memref<240x128xf32, #tpu.memory_space<vmem>>, vector<8x128xf32>
    %694 = vector.extract_strided_slice %693 {offsets = [0, 0], sizes = [8, 16], strides = [1, 1]} : vector<8x128xf32> to vector<8x16xf32>
    %695 = arith.truncf %694 : vector<8x16xf32> to vector<8x16xbf16>
    %cst_510 = arith.constant dense<0.000000e+00> : vector<8x128xf32>
    %696 = tpu.matmul %695, %652, %cst_510 {dimension_numbers = #tpu.dot_dimension_numbers<[1], [0], [0], [1], [0, 0, 1, 1], [], []>} : vector<8x16xbf16>, vector<16x128xbf16>, vector<8x128xf32> -> vector<8x128xf32>
    %697 = vector.broadcast %653 : vector<1x128xf32> to vector<8x128xf32>
    %698 = arith.addf %696, %697 : vector<8x128xf32>
    %699 = vector.extract_strided_slice %650 {offsets = [48, 0], sizes = [8, 128], strides = [1, 1]} : vector<56x128xf32> to vector<8x128xf32>
    %700 = vector.broadcast %651 : vector<1x128xf32> to vector<8x128xf32>
    %701 = arith.addf %699, %700 : vector<8x128xf32>
    %702 = arith.addf %701, %698 : vector<8x128xf32>
    %cst_511 = arith.constant 0.000000e+00 : f32
    %703 = vector.broadcast %cst_511 : f32 to vector<8x128xf32>
    %704 = arith.maximumf %702, %703 : vector<8x128xf32>
    %c65_512 = arith.constant 65 : index
    %c0_513 = arith.constant 0 : index
    %705 = vector.load %arg29[%c65_512, %c0_513] : memref<96x128xf32, #tpu.memory_space<vmem>>, vector<8x128xf32>
    tpu.vector_store %arg29[%c65_512, %c0_513], %704 {strides = array<i32>} : memref<96x128xf32, #tpu.memory_space<vmem>>, vector<8x128xf32>,
    %c0_514 = arith.constant 0 : index
    %c0_515 = arith.constant 0 : index
    %706 = vector.load %arg16[%c0_514, %c0_515] : memref<1x128xf32, #tpu.memory_space<vmem>>, vector<1x128xf32>
    %cst_516 = arith.constant 0.000000e+00 : f32
    %707 = vector.broadcast %cst_516 : f32 to vector<4x128xf32>
    %c0_517 = arith.constant 0 : index
    %c0_518 = arith.constant 0 : index
    %708 = tpu.strided_load %arg29[%c0_517, %c0_518] {strides = array<i32: 2, 1>} : memref<96x128xf32, #tpu.memory_space<vmem>>, vector<4x128xf32>
    %709 = vector.extract_strided_slice %708 {offsets = [0, 0], sizes = [4, 32], strides = [1, 1]} : vector<4x128xf32> to vector<4x32xf32>
    %710 = arith.truncf %709 : vector<4x32xf32> to vector<4x32xbf16>
    %c0_519 = arith.constant 0 : index
    %c0_520 = arith.constant 0 : index
    %711 = vector.load %arg15[%c0_519, %c0_520] : memref<288x128xbf16, #tpu.memory_space<vmem>>, vector<32x128xbf16>
    %cst_521 = arith.constant dense<0.000000e+00> : vector<4x128xf32>
    %712 = tpu.matmul %710, %711, %cst_521 {dimension_numbers = #tpu.dot_dimension_numbers<[1], [0], [0], [1], [0, 0, 1, 1], [], []>} : vector<4x32xbf16>, vector<32x128xbf16>, vector<4x128xf32> -> vector<4x128xf32>
    %713 = arith.addf %707, %712 : vector<4x128xf32>
    %c1_522 = arith.constant 1 : index
    %c0_523 = arith.constant 0 : index
    %714 = tpu.strided_load %arg29[%c1_522, %c0_523] {strides = array<i32: 2, 1>} : memref<96x128xf32, #tpu.memory_space<vmem>>, vector<4x128xf32>
    %715 = vector.extract_strided_slice %714 {offsets = [0, 0], sizes = [4, 32], strides = [1, 1]} : vector<4x128xf32> to vector<4x32xf32>
    %716 = arith.truncf %715 : vector<4x32xf32> to vector<4x32xbf16>
    %c32_524 = arith.constant 32 : index
    %c0_525 = arith.constant 0 : index
    %717 = vector.load %arg15[%c32_524, %c0_525] : memref<288x128xbf16, #tpu.memory_space<vmem>>, vector<32x128xbf16>
    %cst_526 = arith.constant dense<0.000000e+00> : vector<4x128xf32>
    %718 = tpu.matmul %716, %717, %cst_526 {dimension_numbers = #tpu.dot_dimension_numbers<[1], [0], [0], [1], [0, 0, 1, 1], [], []>} : vector<4x32xbf16>, vector<32x128xbf16>, vector<4x128xf32> -> vector<4x128xf32>
    %719 = arith.addf %713, %718 : vector<4x128xf32>
    %c2_527 = arith.constant 2 : index
    %c0_528 = arith.constant 0 : index
    %720 = tpu.strided_load %arg29[%c2_527, %c0_528] {strides = array<i32: 2, 1>} : memref<96x128xf32, #tpu.memory_space<vmem>>, vector<4x128xf32>
    %721 = vector.extract_strided_slice %720 {offsets = [0, 0], sizes = [4, 32], strides = [1, 1]} : vector<4x128xf32> to vector<4x32xf32>
    %722 = arith.truncf %721 : vector<4x32xf32> to vector<4x32xbf16>
    %c64_529 = arith.constant 64 : index
    %c0_530 = arith.constant 0 : index
    %723 = vector.load %arg15[%c64_529, %c0_530] : memref<288x128xbf16, #tpu.memory_space<vmem>>, vector<32x128xbf16>
    %cst_531 = arith.constant dense<0.000000e+00> : vector<4x128xf32>
    %724 = tpu.matmul %722, %723, %cst_531 {dimension_numbers = #tpu.dot_dimension_numbers<[1], [0], [0], [1], [0, 0, 1, 1], [], []>} : vector<4x32xbf16>, vector<32x128xbf16>, vector<4x128xf32> -> vector<4x128xf32>
    %725 = arith.addf %719, %724 : vector<4x128xf32>
    %c16_532 = arith.constant 16 : index
    %c0_533 = arith.constant 0 : index
    %726 = tpu.strided_load %arg29[%c16_532, %c0_533] {strides = array<i32: 2, 1>} : memref<96x128xf32, #tpu.memory_space<vmem>>, vector<4x128xf32>
    %727 = vector.extract_strided_slice %726 {offsets = [0, 0], sizes = [4, 32], strides = [1, 1]} : vector<4x128xf32> to vector<4x32xf32>
    %728 = arith.truncf %727 : vector<4x32xf32> to vector<4x32xbf16>
    %c96_534 = arith.constant 96 : index
    %c0_535 = arith.constant 0 : index
    %729 = vector.load %arg15[%c96_534, %c0_535] : memref<288x128xbf16, #tpu.memory_space<vmem>>, vector<32x128xbf16>
    %cst_536 = arith.constant dense<0.000000e+00> : vector<4x128xf32>
    %730 = tpu.matmul %728, %729, %cst_536 {dimension_numbers = #tpu.dot_dimension_numbers<[1], [0], [0], [1], [0, 0, 1, 1], [], []>} : vector<4x32xbf16>, vector<32x128xbf16>, vector<4x128xf32> -> vector<4x128xf32>
    %731 = arith.addf %725, %730 : vector<4x128xf32>
    %c17_537 = arith.constant 17 : index
    %c0_538 = arith.constant 0 : index
    %732 = tpu.strided_load %arg29[%c17_537, %c0_538] {strides = array<i32: 2, 1>} : memref<96x128xf32, #tpu.memory_space<vmem>>, vector<4x128xf32>
    %733 = vector.extract_strided_slice %732 {offsets = [0, 0], sizes = [4, 32], strides = [1, 1]} : vector<4x128xf32> to vector<4x32xf32>
    %734 = arith.truncf %733 : vector<4x32xf32> to vector<4x32xbf16>
    %c128_539 = arith.constant 128 : index
    %c0_540 = arith.constant 0 : index
    %735 = vector.load %arg15[%c128_539, %c0_540] : memref<288x128xbf16, #tpu.memory_space<vmem>>, vector<32x128xbf16>
    %cst_541 = arith.constant dense<0.000000e+00> : vector<4x128xf32>
    %736 = tpu.matmul %734, %735, %cst_541 {dimension_numbers = #tpu.dot_dimension_numbers<[1], [0], [0], [1], [0, 0, 1, 1], [], []>} : vector<4x32xbf16>, vector<32x128xbf16>, vector<4x128xf32> -> vector<4x128xf32>
    %737 = arith.addf %731, %736 : vector<4x128xf32>
    %c18_542 = arith.constant 18 : index
    %c0_543 = arith.constant 0 : index
    %738 = tpu.strided_load %arg29[%c18_542, %c0_543] {strides = array<i32: 2, 1>} : memref<96x128xf32, #tpu.memory_space<vmem>>, vector<4x128xf32>
    %739 = vector.extract_strided_slice %738 {offsets = [0, 0], sizes = [4, 32], strides = [1, 1]} : vector<4x128xf32> to vector<4x32xf32>
    %740 = arith.truncf %739 : vector<4x32xf32> to vector<4x32xbf16>
    %c160_544 = arith.constant 160 : index
    %c0_545 = arith.constant 0 : index
    %741 = vector.load %arg15[%c160_544, %c0_545] : memref<288x128xbf16, #tpu.memory_space<vmem>>, vector<32x128xbf16>
    %cst_546 = arith.constant dense<0.000000e+00> : vector<4x128xf32>
    %742 = tpu.matmul %740, %741, %cst_546 {dimension_numbers = #tpu.dot_dimension_numbers<[1], [0], [0], [1], [0, 0, 1, 1], [], []>} : vector<4x32xbf16>, vector<32x128xbf16>, vector<4x128xf32> -> vector<4x128xf32>
    %743 = arith.addf %737, %742 : vector<4x128xf32>
    %c32_547 = arith.constant 32 : index
    %c0_548 = arith.constant 0 : index
    %744 = tpu.strided_load %arg29[%c32_547, %c0_548] {strides = array<i32: 2, 1>} : memref<96x128xf32, #tpu.memory_space<vmem>>, vector<4x128xf32>
    %745 = vector.extract_strided_slice %744 {offsets = [0, 0], sizes = [4, 32], strides = [1, 1]} : vector<4x128xf32> to vector<4x32xf32>
    %746 = arith.truncf %745 : vector<4x32xf32> to vector<4x32xbf16>
    %c192_549 = arith.constant 192 : index
    %c0_550 = arith.constant 0 : index
    %747 = vector.load %arg15[%c192_549, %c0_550] : memref<288x128xbf16, #tpu.memory_space<vmem>>, vector<32x128xbf16>
    %cst_551 = arith.constant dense<0.000000e+00> : vector<4x128xf32>
    %748 = tpu.matmul %746, %747, %cst_551 {dimension_numbers = #tpu.dot_dimension_numbers<[1], [0], [0], [1], [0, 0, 1, 1], [], []>} : vector<4x32xbf16>, vector<32x128xbf16>, vector<4x128xf32> -> vector<4x128xf32>
    %749 = arith.addf %743, %748 : vector<4x128xf32>
    %c33_552 = arith.constant 33 : index
    %c0_553 = arith.constant 0 : index
    %750 = tpu.strided_load %arg29[%c33_552, %c0_553] {strides = array<i32: 2, 1>} : memref<96x128xf32, #tpu.memory_space<vmem>>, vector<4x128xf32>
    %751 = vector.extract_strided_slice %750 {offsets = [0, 0], sizes = [4, 32], strides = [1, 1]} : vector<4x128xf32> to vector<4x32xf32>
    %752 = arith.truncf %751 : vector<4x32xf32> to vector<4x32xbf16>
    %c224_554 = arith.constant 224 : index
    %c0_555 = arith.constant 0 : index
    %753 = vector.load %arg15[%c224_554, %c0_555] : memref<288x128xbf16, #tpu.memory_space<vmem>>, vector<32x128xbf16>
    %cst_556 = arith.constant dense<0.000000e+00> : vector<4x128xf32>
    %754 = tpu.matmul %752, %753, %cst_556 {dimension_numbers = #tpu.dot_dimension_numbers<[1], [0], [0], [1], [0, 0, 1, 1], [], []>} : vector<4x32xbf16>, vector<32x128xbf16>, vector<4x128xf32> -> vector<4x128xf32>
    %755 = arith.addf %749, %754 : vector<4x128xf32>
    %c34_557 = arith.constant 34 : index
    %c0_558 = arith.constant 0 : index
    %756 = tpu.strided_load %arg29[%c34_557, %c0_558] {strides = array<i32: 2, 1>} : memref<96x128xf32, #tpu.memory_space<vmem>>, vector<4x128xf32>
    %757 = vector.extract_strided_slice %756 {offsets = [0, 0], sizes = [4, 32], strides = [1, 1]} : vector<4x128xf32> to vector<4x32xf32>
    %758 = arith.truncf %757 : vector<4x32xf32> to vector<4x32xbf16>
    %c256_559 = arith.constant 256 : index
    %c0_560 = arith.constant 0 : index
    %759 = vector.load %arg15[%c256_559, %c0_560] : memref<288x128xbf16, #tpu.memory_space<vmem>>, vector<32x128xbf16>
    %cst_561 = arith.constant dense<0.000000e+00> : vector<4x128xf32>
    %760 = tpu.matmul %758, %759, %cst_561 {dimension_numbers = #tpu.dot_dimension_numbers<[1], [0], [0], [1], [0, 0, 1, 1], [], []>} : vector<4x32xbf16>, vector<32x128xbf16>, vector<4x128xf32> -> vector<4x128xf32>
    %761 = arith.addf %755, %760 : vector<4x128xf32>
    %762 = vector.broadcast %706 : vector<1x128xf32> to vector<4x128xf32>
    %763 = arith.addf %761, %762 : vector<4x128xf32>
    %cst_562 = arith.constant 0.000000e+00 : f32
    %764 = vector.broadcast %cst_562 : f32 to vector<4x128xf32>
    %765 = arith.maximumf %763, %764 : vector<4x128xf32>
    %c9_563 = arith.constant 9 : index
    %c0_564 = arith.constant 0 : index
    %766 = vector.load %arg30[%c9_563, %c0_564] : memref<32x128xf32, #tpu.memory_space<vmem>>, vector<4x128xf32>
    tpu.vector_store %arg30[%c9_563, %c0_564], %765 {strides = array<i32>} : memref<32x128xf32, #tpu.memory_space<vmem>>, vector<4x128xf32>,
    %cst_565 = arith.constant 0.000000e+00 : f32
    %767 = vector.broadcast %cst_565 : f32 to vector<4x128xf32>
    %c32_566 = arith.constant 32 : index
    %c0_567 = arith.constant 0 : index
    %768 = tpu.strided_load %arg29[%c32_566, %c0_567] {strides = array<i32: 2, 1>} : memref<96x128xf32, #tpu.memory_space<vmem>>, vector<4x128xf32>
    %769 = vector.extract_strided_slice %768 {offsets = [0, 0], sizes = [4, 32], strides = [1, 1]} : vector<4x128xf32> to vector<4x32xf32>
    %770 = arith.truncf %769 : vector<4x32xf32> to vector<4x32xbf16>
    %c0_568 = arith.constant 0 : index
    %c0_569 = arith.constant 0 : index
    %771 = vector.load %arg15[%c0_568, %c0_569] : memref<288x128xbf16, #tpu.memory_space<vmem>>, vector<32x128xbf16>
    %cst_570 = arith.constant dense<0.000000e+00> : vector<4x128xf32>
    %772 = tpu.matmul %770, %771, %cst_570 {dimension_numbers = #tpu.dot_dimension_numbers<[1], [0], [0], [1], [0, 0, 1, 1], [], []>} : vector<4x32xbf16>, vector<32x128xbf16>, vector<4x128xf32> -> vector<4x128xf32>
    %773 = arith.addf %767, %772 : vector<4x128xf32>
    %c33_571 = arith.constant 33 : index
    %c0_572 = arith.constant 0 : index
    %774 = tpu.strided_load %arg29[%c33_571, %c0_572] {strides = array<i32: 2, 1>} : memref<96x128xf32, #tpu.memory_space<vmem>>, vector<4x128xf32>
    %775 = vector.extract_strided_slice %774 {offsets = [0, 0], sizes = [4, 32], strides = [1, 1]} : vector<4x128xf32> to vector<4x32xf32>
    %776 = arith.truncf %775 : vector<4x32xf32> to vector<4x32xbf16>
    %c32_573 = arith.constant 32 : index
    %c0_574 = arith.constant 0 : index
    %777 = vector.load %arg15[%c32_573, %c0_574] : memref<288x128xbf16, #tpu.memory_space<vmem>>, vector<32x128xbf16>
    %cst_575 = arith.constant dense<0.000000e+00> : vector<4x128xf32>
    %778 = tpu.matmul %776, %777, %cst_575 {dimension_numbers = #tpu.dot_dimension_numbers<[1], [0], [0], [1], [0, 0, 1, 1], [], []>} : vector<4x32xbf16>, vector<32x128xbf16>, vector<4x128xf32> -> vector<4x128xf32>
    %779 = arith.addf %773, %778 : vector<4x128xf32>
    %c34_576 = arith.constant 34 : index
    %c0_577 = arith.constant 0 : index
    %780 = tpu.strided_load %arg29[%c34_576, %c0_577] {strides = array<i32: 2, 1>} : memref<96x128xf32, #tpu.memory_space<vmem>>, vector<4x128xf32>
    %781 = vector.extract_strided_slice %780 {offsets = [0, 0], sizes = [4, 32], strides = [1, 1]} : vector<4x128xf32> to vector<4x32xf32>
    %782 = arith.truncf %781 : vector<4x32xf32> to vector<4x32xbf16>
    %c64_578 = arith.constant 64 : index
    %c0_579 = arith.constant 0 : index
    %783 = vector.load %arg15[%c64_578, %c0_579] : memref<288x128xbf16, #tpu.memory_space<vmem>>, vector<32x128xbf16>
    %cst_580 = arith.constant dense<0.000000e+00> : vector<4x128xf32>
    %784 = tpu.matmul %782, %783, %cst_580 {dimension_numbers = #tpu.dot_dimension_numbers<[1], [0], [0], [1], [0, 0, 1, 1], [], []>} : vector<4x32xbf16>, vector<32x128xbf16>, vector<4x128xf32> -> vector<4x128xf32>
    %785 = arith.addf %779, %784 : vector<4x128xf32>
    %c48_581 = arith.constant 48 : index
    %c0_582 = arith.constant 0 : index
    %786 = tpu.strided_load %arg29[%c48_581, %c0_582] {strides = array<i32: 2, 1>} : memref<96x128xf32, #tpu.memory_space<vmem>>, vector<4x128xf32>
    %787 = vector.extract_strided_slice %786 {offsets = [0, 0], sizes = [4, 32], strides = [1, 1]} : vector<4x128xf32> to vector<4x32xf32>
    %788 = arith.truncf %787 : vector<4x32xf32> to vector<4x32xbf16>
    %c96_583 = arith.constant 96 : index
    %c0_584 = arith.constant 0 : index
    %789 = vector.load %arg15[%c96_583, %c0_584] : memref<288x128xbf16, #tpu.memory_space<vmem>>, vector<32x128xbf16>
    %cst_585 = arith.constant dense<0.000000e+00> : vector<4x128xf32>
    %790 = tpu.matmul %788, %789, %cst_585 {dimension_numbers = #tpu.dot_dimension_numbers<[1], [0], [0], [1], [0, 0, 1, 1], [], []>} : vector<4x32xbf16>, vector<32x128xbf16>, vector<4x128xf32> -> vector<4x128xf32>
    %791 = arith.addf %785, %790 : vector<4x128xf32>
    %c49_586 = arith.constant 49 : index
    %c0_587 = arith.constant 0 : index
    %792 = tpu.strided_load %arg29[%c49_586, %c0_587] {strides = array<i32: 2, 1>} : memref<96x128xf32, #tpu.memory_space<vmem>>, vector<4x128xf32>
    %793 = vector.extract_strided_slice %792 {offsets = [0, 0], sizes = [4, 32], strides = [1, 1]} : vector<4x128xf32> to vector<4x32xf32>
    %794 = arith.truncf %793 : vector<4x32xf32> to vector<4x32xbf16>
    %c128_588 = arith.constant 128 : index
    %c0_589 = arith.constant 0 : index
    %795 = vector.load %arg15[%c128_588, %c0_589] : memref<288x128xbf16, #tpu.memory_space<vmem>>, vector<32x128xbf16>
    %cst_590 = arith.constant dense<0.000000e+00> : vector<4x128xf32>
    %796 = tpu.matmul %794, %795, %cst_590 {dimension_numbers = #tpu.dot_dimension_numbers<[1], [0], [0], [1], [0, 0, 1, 1], [], []>} : vector<4x32xbf16>, vector<32x128xbf16>, vector<4x128xf32> -> vector<4x128xf32>
    %797 = arith.addf %791, %796 : vector<4x128xf32>
    %c50_591 = arith.constant 50 : index
    %c0_592 = arith.constant 0 : index
    %798 = tpu.strided_load %arg29[%c50_591, %c0_592] {strides = array<i32: 2, 1>} : memref<96x128xf32, #tpu.memory_space<vmem>>, vector<4x128xf32>
    %799 = vector.extract_strided_slice %798 {offsets = [0, 0], sizes = [4, 32], strides = [1, 1]} : vector<4x128xf32> to vector<4x32xf32>
    %800 = arith.truncf %799 : vector<4x32xf32> to vector<4x32xbf16>
    %c160_593 = arith.constant 160 : index
    %c0_594 = arith.constant 0 : index
    %801 = vector.load %arg15[%c160_593, %c0_594] : memref<288x128xbf16, #tpu.memory_space<vmem>>, vector<32x128xbf16>
    %cst_595 = arith.constant dense<0.000000e+00> : vector<4x128xf32>
    %802 = tpu.matmul %800, %801, %cst_595 {dimension_numbers = #tpu.dot_dimension_numbers<[1], [0], [0], [1], [0, 0, 1, 1], [], []>} : vector<4x32xbf16>, vector<32x128xbf16>, vector<4x128xf32> -> vector<4x128xf32>
    %803 = arith.addf %797, %802 : vector<4x128xf32>
    %c64_596 = arith.constant 64 : index
    %c0_597 = arith.constant 0 : index
    %804 = tpu.strided_load %arg29[%c64_596, %c0_597] {strides = array<i32: 2, 1>} : memref<96x128xf32, #tpu.memory_space<vmem>>, vector<4x128xf32>
    %805 = vector.extract_strided_slice %804 {offsets = [0, 0], sizes = [4, 32], strides = [1, 1]} : vector<4x128xf32> to vector<4x32xf32>
    %806 = arith.truncf %805 : vector<4x32xf32> to vector<4x32xbf16>
    %c192_598 = arith.constant 192 : index
    %c0_599 = arith.constant 0 : index
    %807 = vector.load %arg15[%c192_598, %c0_599] : memref<288x128xbf16, #tpu.memory_space<vmem>>, vector<32x128xbf16>
    %cst_600 = arith.constant dense<0.000000e+00> : vector<4x128xf32>
    %808 = tpu.matmul %806, %807, %cst_600 {dimension_numbers = #tpu.dot_dimension_numbers<[1], [0], [0], [1], [0, 0, 1, 1], [], []>} : vector<4x32xbf16>, vector<32x128xbf16>, vector<4x128xf32> -> vector<4x128xf32>
    %809 = arith.addf %803, %808 : vector<4x128xf32>
    %c65_601 = arith.constant 65 : index
    %c0_602 = arith.constant 0 : index
    %810 = tpu.strided_load %arg29[%c65_601, %c0_602] {strides = array<i32: 2, 1>} : memref<96x128xf32, #tpu.memory_space<vmem>>, vector<4x128xf32>
    %811 = vector.extract_strided_slice %810 {offsets = [0, 0], sizes = [4, 32], strides = [1, 1]} : vector<4x128xf32> to vector<4x32xf32>
    %812 = arith.truncf %811 : vector<4x32xf32> to vector<4x32xbf16>
    %c224_603 = arith.constant 224 : index
    %c0_604 = arith.constant 0 : index
    %813 = vector.load %arg15[%c224_603, %c0_604] : memref<288x128xbf16, #tpu.memory_space<vmem>>, vector<32x128xbf16>
    %cst_605 = arith.constant dense<0.000000e+00> : vector<4x128xf32>
    %814 = tpu.matmul %812, %813, %cst_605 {dimension_numbers = #tpu.dot_dimension_numbers<[1], [0], [0], [1], [0, 0, 1, 1], [], []>} : vector<4x32xbf16>, vector<32x128xbf16>, vector<4x128xf32> -> vector<4x128xf32>
    %815 = arith.addf %809, %814 : vector<4x128xf32>
    %c66 = arith.constant 66 : index
    %c0_606 = arith.constant 0 : index
    %816 = tpu.strided_load %arg29[%c66, %c0_606] {strides = array<i32: 2, 1>} : memref<96x128xf32, #tpu.memory_space<vmem>>, vector<4x128xf32>
    %817 = vector.extract_strided_slice %816 {offsets = [0, 0], sizes = [4, 32], strides = [1, 1]} : vector<4x128xf32> to vector<4x32xf32>
    %818 = arith.truncf %817 : vector<4x32xf32> to vector<4x32xbf16>
    %c256_607 = arith.constant 256 : index
    %c0_608 = arith.constant 0 : index
    %819 = vector.load %arg15[%c256_607, %c0_608] : memref<288x128xbf16, #tpu.memory_space<vmem>>, vector<32x128xbf16>
    %cst_609 = arith.constant dense<0.000000e+00> : vector<4x128xf32>
    %820 = tpu.matmul %818, %819, %cst_609 {dimension_numbers = #tpu.dot_dimension_numbers<[1], [0], [0], [1], [0, 0, 1, 1], [], []>} : vector<4x32xbf16>, vector<32x128xbf16>, vector<4x128xf32> -> vector<4x128xf32>
    %821 = arith.addf %815, %820 : vector<4x128xf32>
    %822 = vector.broadcast %706 : vector<1x128xf32> to vector<4x128xf32>
    %823 = arith.addf %821, %822 : vector<4x128xf32>
    %cst_610 = arith.constant 0.000000e+00 : f32
    %824 = vector.broadcast %cst_610 : f32 to vector<4x128xf32>
    %825 = arith.maximumf %823, %824 : vector<4x128xf32>
    %c17_611 = arith.constant 17 : index
    %c0_612 = arith.constant 0 : index
    %826 = vector.load %arg30[%c17_611, %c0_612] : memref<32x128xf32, #tpu.memory_space<vmem>>, vector<4x128xf32>
    tpu.vector_store %arg30[%c17_611, %c0_612], %825 {strides = array<i32>} : memref<32x128xf32, #tpu.memory_space<vmem>>, vector<4x128xf32>,
    %cst_613 = arith.constant 0.000000e+00 : f32
    %827 = vector.broadcast %cst_613 : f32 to vector<12x128xf32>
    %c0_614 = arith.constant 0 : index
    %c0_615 = arith.constant 0 : index
    %828 = vector.load %arg30[%c0_614, %c0_615] : memref<32x128xf32, #tpu.memory_space<vmem>>, vector<12x128xf32>
    %829 = vector.extract_strided_slice %828 {offsets = [0, 0], sizes = [12, 64], strides = [1, 1]} : vector<12x128xf32> to vector<12x64xf32>
    %830 = arith.truncf %829 : vector<12x64xf32> to vector<12x64xbf16>
    %c0_616 = arith.constant 0 : index
    %c0_617 = arith.constant 0 : index
    %831 = vector.load %arg17[%c0_616, %c0_617] : memref<576x128xbf16, #tpu.memory_space<vmem>>, vector<64x128xbf16>
    %cst_618 = arith.constant dense<0.000000e+00> : vector<12x128xf32>
    %832 = tpu.matmul %830, %831, %cst_618 {dimension_numbers = #tpu.dot_dimension_numbers<[1], [0], [0], [1], [0, 0, 1, 1], [], []>} : vector<12x64xbf16>, vector<64x128xbf16>, vector<12x128xf32> -> vector<12x128xf32>
    %833 = arith.addf %827, %832 : vector<12x128xf32>
    %c1_619 = arith.constant 1 : index
    %c0_620 = arith.constant 0 : index
    %834 = vector.load %arg30[%c1_619, %c0_620] : memref<32x128xf32, #tpu.memory_space<vmem>>, vector<12x128xf32>
    %835 = vector.extract_strided_slice %834 {offsets = [0, 0], sizes = [12, 64], strides = [1, 1]} : vector<12x128xf32> to vector<12x64xf32>
    %836 = arith.truncf %835 : vector<12x64xf32> to vector<12x64xbf16>
    %c64_621 = arith.constant 64 : index
    %c0_622 = arith.constant 0 : index
    %837 = vector.load %arg17[%c64_621, %c0_622] : memref<576x128xbf16, #tpu.memory_space<vmem>>, vector<64x128xbf16>
    %cst_623 = arith.constant dense<0.000000e+00> : vector<12x128xf32>
    %838 = tpu.matmul %836, %837, %cst_623 {dimension_numbers = #tpu.dot_dimension_numbers<[1], [0], [0], [1], [0, 0, 1, 1], [], []>} : vector<12x64xbf16>, vector<64x128xbf16>, vector<12x128xf32> -> vector<12x128xf32>
    %839 = arith.addf %833, %838 : vector<12x128xf32>
    %c2_624 = arith.constant 2 : index
    %c0_625 = arith.constant 0 : index
    %840 = vector.load %arg30[%c2_624, %c0_625] : memref<32x128xf32, #tpu.memory_space<vmem>>, vector<12x128xf32>
    %841 = vector.extract_strided_slice %840 {offsets = [0, 0], sizes = [12, 64], strides = [1, 1]} : vector<12x128xf32> to vector<12x64xf32>
    %842 = arith.truncf %841 : vector<12x64xf32> to vector<12x64xbf16>
    %c128_626 = arith.constant 128 : index
    %c0_627 = arith.constant 0 : index
    %843 = vector.load %arg17[%c128_626, %c0_627] : memref<576x128xbf16, #tpu.memory_space<vmem>>, vector<64x128xbf16>
    %cst_628 = arith.constant dense<0.000000e+00> : vector<12x128xf32>
    %844 = tpu.matmul %842, %843, %cst_628 {dimension_numbers = #tpu.dot_dimension_numbers<[1], [0], [0], [1], [0, 0, 1, 1], [], []>} : vector<12x64xbf16>, vector<64x128xbf16>, vector<12x128xf32> -> vector<12x128xf32>
    %845 = arith.addf %839, %844 : vector<12x128xf32>
    %c8_629 = arith.constant 8 : index
    %c0_630 = arith.constant 0 : index
    %846 = vector.load %arg30[%c8_629, %c0_630] : memref<32x128xf32, #tpu.memory_space<vmem>>, vector<12x128xf32>
    %847 = vector.extract_strided_slice %846 {offsets = [0, 0], sizes = [12, 64], strides = [1, 1]} : vector<12x128xf32> to vector<12x64xf32>
    %848 = arith.truncf %847 : vector<12x64xf32> to vector<12x64xbf16>
    %c192_631 = arith.constant 192 : index
    %c0_632 = arith.constant 0 : index
    %849 = vector.load %arg17[%c192_631, %c0_632] : memref<576x128xbf16, #tpu.memory_space<vmem>>, vector<64x128xbf16>
    %cst_633 = arith.constant dense<0.000000e+00> : vector<12x128xf32>
    %850 = tpu.matmul %848, %849, %cst_633 {dimension_numbers = #tpu.dot_dimension_numbers<[1], [0], [0], [1], [0, 0, 1, 1], [], []>} : vector<12x64xbf16>, vector<64x128xbf16>, vector<12x128xf32> -> vector<12x128xf32>
    %851 = arith.addf %845, %850 : vector<12x128xf32>
    %c9_634 = arith.constant 9 : index
    %c0_635 = arith.constant 0 : index
    %852 = vector.load %arg30[%c9_634, %c0_635] : memref<32x128xf32, #tpu.memory_space<vmem>>, vector<12x128xf32>
    %853 = vector.extract_strided_slice %852 {offsets = [0, 0], sizes = [12, 64], strides = [1, 1]} : vector<12x128xf32> to vector<12x64xf32>
    %854 = arith.truncf %853 : vector<12x64xf32> to vector<12x64xbf16>
    %c256_636 = arith.constant 256 : index
    %c0_637 = arith.constant 0 : index
    %855 = vector.load %arg17[%c256_636, %c0_637] : memref<576x128xbf16, #tpu.memory_space<vmem>>, vector<64x128xbf16>
    %cst_638 = arith.constant dense<0.000000e+00> : vector<12x128xf32>
    %856 = tpu.matmul %854, %855, %cst_638 {dimension_numbers = #tpu.dot_dimension_numbers<[1], [0], [0], [1], [0, 0, 1, 1], [], []>} : vector<12x64xbf16>, vector<64x128xbf16>, vector<12x128xf32> -> vector<12x128xf32>
    %857 = arith.addf %851, %856 : vector<12x128xf32>
    %c10 = arith.constant 10 : index
    %c0_639 = arith.constant 0 : index
    %858 = vector.load %arg30[%c10, %c0_639] : memref<32x128xf32, #tpu.memory_space<vmem>>, vector<12x128xf32>
    %859 = vector.extract_strided_slice %858 {offsets = [0, 0], sizes = [12, 64], strides = [1, 1]} : vector<12x128xf32> to vector<12x64xf32>
    %860 = arith.truncf %859 : vector<12x64xf32> to vector<12x64xbf16>
    %c320 = arith.constant 320 : index
    %c0_640 = arith.constant 0 : index
    %861 = vector.load %arg17[%c320, %c0_640] : memref<576x128xbf16, #tpu.memory_space<vmem>>, vector<64x128xbf16>
    %cst_641 = arith.constant dense<0.000000e+00> : vector<12x128xf32>
    %862 = tpu.matmul %860, %861, %cst_641 {dimension_numbers = #tpu.dot_dimension_numbers<[1], [0], [0], [1], [0, 0, 1, 1], [], []>} : vector<12x64xbf16>, vector<64x128xbf16>, vector<12x128xf32> -> vector<12x128xf32>
    %863 = arith.addf %857, %862 : vector<12x128xf32>
    %c16_642 = arith.constant 16 : index
    %c0_643 = arith.constant 0 : index
    %864 = vector.load %arg30[%c16_642, %c0_643] : memref<32x128xf32, #tpu.memory_space<vmem>>, vector<12x128xf32>
    %865 = vector.extract_strided_slice %864 {offsets = [0, 0], sizes = [12, 64], strides = [1, 1]} : vector<12x128xf32> to vector<12x64xf32>
    %866 = arith.truncf %865 : vector<12x64xf32> to vector<12x64xbf16>
    %c384 = arith.constant 384 : index
    %c0_644 = arith.constant 0 : index
    %867 = vector.load %arg17[%c384, %c0_644] : memref<576x128xbf16, #tpu.memory_space<vmem>>, vector<64x128xbf16>
    %cst_645 = arith.constant dense<0.000000e+00> : vector<12x128xf32>
    %868 = tpu.matmul %866, %867, %cst_645 {dimension_numbers = #tpu.dot_dimension_numbers<[1], [0], [0], [1], [0, 0, 1, 1], [], []>} : vector<12x64xbf16>, vector<64x128xbf16>, vector<12x128xf32> -> vector<12x128xf32>
    %869 = arith.addf %863, %868 : vector<12x128xf32>
    %c17_646 = arith.constant 17 : index
    %c0_647 = arith.constant 0 : index
    %870 = vector.load %arg30[%c17_646, %c0_647] : memref<32x128xf32, #tpu.memory_space<vmem>>, vector<12x128xf32>
    %871 = vector.extract_strided_slice %870 {offsets = [0, 0], sizes = [12, 64], strides = [1, 1]} : vector<12x128xf32> to vector<12x64xf32>
    %872 = arith.truncf %871 : vector<12x64xf32> to vector<12x64xbf16>
    %c448 = arith.constant 448 : index
    %c0_648 = arith.constant 0 : index
    %873 = vector.load %arg17[%c448, %c0_648] : memref<576x128xbf16, #tpu.memory_space<vmem>>, vector<64x128xbf16>
    %cst_649 = arith.constant dense<0.000000e+00> : vector<12x128xf32>
    %874 = tpu.matmul %872, %873, %cst_649 {dimension_numbers = #tpu.dot_dimension_numbers<[1], [0], [0], [1], [0, 0, 1, 1], [], []>} : vector<12x64xbf16>, vector<64x128xbf16>, vector<12x128xf32> -> vector<12x128xf32>
    %875 = arith.addf %869, %874 : vector<12x128xf32>
    %c18_650 = arith.constant 18 : index
    %c0_651 = arith.constant 0 : index
    %876 = vector.load %arg30[%c18_650, %c0_651] : memref<32x128xf32, #tpu.memory_space<vmem>>, vector<12x128xf32>
    %877 = vector.extract_strided_slice %876 {offsets = [0, 0], sizes = [12, 64], strides = [1, 1]} : vector<12x128xf32> to vector<12x64xf32>
    %878 = arith.truncf %877 : vector<12x64xf32> to vector<12x64xbf16>
    %c512 = arith.constant 512 : index
    %c0_652 = arith.constant 0 : index
    %879 = vector.load %arg17[%c512, %c0_652] : memref<576x128xbf16, #tpu.memory_space<vmem>>, vector<64x128xbf16>
    %cst_653 = arith.constant dense<0.000000e+00> : vector<12x128xf32>
    %880 = tpu.matmul %878, %879, %cst_653 {dimension_numbers = #tpu.dot_dimension_numbers<[1], [0], [0], [1], [0, 0, 1, 1], [], []>} : vector<12x64xbf16>, vector<64x128xbf16>, vector<12x128xf32> -> vector<12x128xf32>
    %881 = arith.addf %875, %880 : vector<12x128xf32>
    %c0_654 = arith.constant 0 : index
    %c0_655 = arith.constant 0 : index
    %882 = vector.load %arg18[%c0_654, %c0_655] : memref<1x128xf32, #tpu.memory_space<vmem>>, vector<1x128xf32>
    %c0_656 = arith.constant 0 : index
    %c0_657 = arith.constant 0 : index
    %883 = vector.load %arg19[%c0_656, %c0_657] : memref<32x128xbf16, #tpu.memory_space<vmem>>, vector<32x128xbf16>
    %c0_658 = arith.constant 0 : index
    %c0_659 = arith.constant 0 : index
    %884 = vector.load %arg20[%c0_658, %c0_659] : memref<1x128xf32, #tpu.memory_space<vmem>>, vector<1x128xf32>
    %cst_660 = arith.constant 0.000000e+00 : f32
    %885 = vector.broadcast %cst_660 : f32 to vector<1x128xf32>
    %c17_661 = arith.constant 17 : index
    %c0_662 = arith.constant 0 : index
    %886 = tpu.strided_load %arg29[%c17_661, %c0_662] {strides = array<i32: 2, 1>} : memref<96x128xf32, #tpu.memory_space<vmem>>, vector<4x128xf32>
    %887 = vector.extract_strided_slice %886 {offsets = [0, 0], sizes = [4, 32], strides = [1, 1]} : vector<4x128xf32> to vector<4x32xf32>
    %888 = arith.truncf %887 : vector<4x32xf32> to vector<4x32xbf16>
    %cst_663 = arith.constant dense<0.000000e+00> : vector<4x128xf32>
    %889 = tpu.matmul %888, %883, %cst_663 {dimension_numbers = #tpu.dot_dimension_numbers<[1], [0], [0], [1], [0, 0, 1, 1], [], []>} : vector<4x32xbf16>, vector<32x128xbf16>, vector<4x128xf32> -> vector<4x128xf32>
    %890 = vector.broadcast %884 : vector<1x128xf32> to vector<4x128xf32>
    %891 = arith.addf %889, %890 : vector<4x128xf32>
    %892 = vector.extract_strided_slice %881 {offsets = [0, 0], sizes = [4, 128], strides = [1, 1]} : vector<12x128xf32> to vector<4x128xf32>
    %893 = vector.broadcast %882 : vector<1x128xf32> to vector<4x128xf32>
    %894 = arith.addf %892, %893 : vector<4x128xf32>
    %895 = arith.addf %894, %891 : vector<4x128xf32>
    %cst_664 = arith.constant 0.000000e+00 : f32
    %896 = vector.broadcast %cst_664 : f32 to vector<4x128xf32>
    %897 = arith.maximumf %895, %896 : vector<4x128xf32>
    %cst_665 = arith.constant dense<0.000000e+00> : vector<128xf32>
    %898 = vector.multi_reduction <add>, %897, %cst_665 [0] : vector<4x128xf32> to vector<128xf32>
    %899 = vector.shape_cast %898 : vector<128xf32> to vector<1x128xf32>
    %900 = arith.addf %885, %899 : vector<1x128xf32>
    %c49_666 = arith.constant 49 : index
    %c0_667 = arith.constant 0 : index
    %901 = tpu.strided_load %arg29[%c49_666, %c0_667] {strides = array<i32: 2, 1>} : memref<96x128xf32, #tpu.memory_space<vmem>>, vector<4x128xf32>
    %902 = vector.extract_strided_slice %901 {offsets = [0, 0], sizes = [4, 32], strides = [1, 1]} : vector<4x128xf32> to vector<4x32xf32>
    %903 = arith.truncf %902 : vector<4x32xf32> to vector<4x32xbf16>
    %cst_668 = arith.constant dense<0.000000e+00> : vector<4x128xf32>
    %904 = tpu.matmul %903, %883, %cst_668 {dimension_numbers = #tpu.dot_dimension_numbers<[1], [0], [0], [1], [0, 0, 1, 1], [], []>} : vector<4x32xbf16>, vector<32x128xbf16>, vector<4x128xf32> -> vector<4x128xf32>
    %905 = vector.broadcast %884 : vector<1x128xf32> to vector<4x128xf32>
    %906 = arith.addf %904, %905 : vector<4x128xf32>
    %907 = vector.extract_strided_slice %881 {offsets = [8, 0], sizes = [4, 128], strides = [1, 1]} : vector<12x128xf32> to vector<4x128xf32>
    %908 = vector.broadcast %882 : vector<1x128xf32> to vector<4x128xf32>
    %909 = arith.addf %907, %908 : vector<4x128xf32>
    %910 = arith.addf %909, %906 : vector<4x128xf32>
    %cst_669 = arith.constant 0.000000e+00 : f32
    %911 = vector.broadcast %cst_669 : f32 to vector<4x128xf32>
    %912 = arith.maximumf %910, %911 : vector<4x128xf32>
    %cst_670 = arith.constant dense<0.000000e+00> : vector<128xf32>
    %913 = vector.multi_reduction <add>, %912, %cst_670 [0] : vector<4x128xf32> to vector<128xf32>
    %914 = vector.shape_cast %913 : vector<128xf32> to vector<1x128xf32>
    %915 = arith.addf %900, %914 : vector<1x128xf32>
    %cst_671 = arith.constant 1.250000e-01 : f32
    %916 = vector.broadcast %cst_671 : f32 to vector<1x128xf32>
    %917 = arith.mulf %915, %916 : vector<1x128xf32>
    %918 = vector.extract_strided_slice %917 {offsets = [0, 0], sizes = [1, 64], strides = [1, 1]} : vector<1x128xf32> to vector<1x64xf32>
    %c0_672 = arith.constant 0 : index
    %c0_673 = arith.constant 0 : index
    %919 = vector.load %arg21[%c0_672, %c0_673] : memref<64x128xf32, #tpu.memory_space<vmem>>, vector<64x128xf32>
    %cst_674 = arith.constant dense<0.000000e+00> : vector<1x128xf32>
    %920 = tpu.matmul %918, %919, %cst_674 {dimension_numbers = #tpu.dot_dimension_numbers<[1], [0], [0], [1], [0, 0, 1, 1], [], []>} : vector<1x64xf32>, vector<64x128xf32>, vector<1x128xf32> -> vector<1x128xf32>
    %c0_675 = arith.constant 0 : index
    %c0_676 = arith.constant 0 : index
    %921 = vector.load %arg22[%c0_675, %c0_676] : memref<1x128xf32, #tpu.memory_space<vmem>>, vector<1x128xf32>
    %922 = arith.addf %920, %921 : vector<1x128xf32>
    %923 = vector.shape_cast %922 : vector<1x128xf32> to vector<1x1x128xf32>
    %c0_677 = arith.constant 0 : index
    %c0_678 = arith.constant 0 : index
    %c0_679 = arith.constant 0 : index
    %924 = vector.load %arg23[%c0_677, %c0_678, %c0_679] : memref<1x1x128xf32, #tpu.memory_space<vmem>>, vector<1x1x128xf32>
    tpu.vector_store %arg23[%c0_677, %c0_678, %c0_679], %923 {strides = array<i32>} : memref<1x1x128xf32, #tpu.memory_space<vmem>>, vector<1x1x128xf32>,
    return
  }
  func.func @transform_0(%arg0: i32) -> (i32, i32) {
    %c0_i32 = arith.constant 0 : i32
    %c0_i32_0 = arith.constant 0 : i32
    return %arg0, %c0_i32 : i32, i32
  }
  func.func @transform_1(%arg0: i32) -> (i32, i32) {
    %c0_i32 = arith.constant 0 : i32
    %c0_i32_0 = arith.constant 0 : i32
    return %arg0, %c0_i32 : i32, i32
  }
  func.func @transform_2(%arg0: i32) -> (i32, i32) {
    %c0_i32 = arith.constant 0 : i32
    %c0_i32_0 = arith.constant 0 : i32
    %c0_i32_1 = arith.constant 0 : i32
    return %c0_i32, %c0_i32_0 : i32, i32
  }
  func.func @transform_3(%arg0: i32) -> (i32, i32) {
    %c0_i32 = arith.constant 0 : i32
    %c0_i32_0 = arith.constant 0 : i32
    %c0_i32_1 = arith.constant 0 : i32
    return %c0_i32, %c0_i32_0 : i32, i32
  }
  func.func @transform_4(%arg0: i32) -> (i32, i32) {
    %c0_i32 = arith.constant 0 : i32
    %c0_i32_0 = arith.constant 0 : i32
    %c0_i32_1 = arith.constant 0 : i32
    return %c0_i32, %c0_i32_0 : i32, i32
  }
  func.func @transform_5(%arg0: i32) -> (i32, i32) {
    %c0_i32 = arith.constant 0 : i32
    %c0_i32_0 = arith.constant 0 : i32
    %c0_i32_1 = arith.constant 0 : i32
    return %c0_i32, %c0_i32_0 : i32, i32
  }
  func.func @transform_6(%arg0: i32) -> (i32, i32) {
    %c0_i32 = arith.constant 0 : i32
    %c0_i32_0 = arith.constant 0 : i32
    %c0_i32_1 = arith.constant 0 : i32
    return %c0_i32, %c0_i32_0 : i32, i32
  }
  func.func @transform_7(%arg0: i32) -> (i32, i32) {
    %c0_i32 = arith.constant 0 : i32
    %c0_i32_0 = arith.constant 0 : i32
    %c0_i32_1 = arith.constant 0 : i32
    return %c0_i32, %c0_i32_0 : i32, i32
  }
  func.func @transform_8(%arg0: i32) -> (i32, i32) {
    %c0_i32 = arith.constant 0 : i32
    %c0_i32_0 = arith.constant 0 : i32
    %c0_i32_1 = arith.constant 0 : i32
    return %c0_i32, %c0_i32_0 : i32, i32
  }
  func.func @transform_9(%arg0: i32) -> (i32, i32) {
    %c0_i32 = arith.constant 0 : i32
    %c0_i32_0 = arith.constant 0 : i32
    %c0_i32_1 = arith.constant 0 : i32
    return %c0_i32, %c0_i32_0 : i32, i32
  }
  func.func @transform_10(%arg0: i32) -> (i32, i32) {
    %c0_i32 = arith.constant 0 : i32
    %c0_i32_0 = arith.constant 0 : i32
    %c0_i32_1 = arith.constant 0 : i32
    return %c0_i32, %c0_i32_0 : i32, i32
  }
  func.func @transform_11(%arg0: i32) -> (i32, i32) {
    %c0_i32 = arith.constant 0 : i32
    %c0_i32_0 = arith.constant 0 : i32
    %c0_i32_1 = arith.constant 0 : i32
    return %c0_i32, %c0_i32_0 : i32, i32
  }
  func.func @transform_12(%arg0: i32) -> (i32, i32) {
    %c0_i32 = arith.constant 0 : i32
    %c0_i32_0 = arith.constant 0 : i32
    %c0_i32_1 = arith.constant 0 : i32
    return %c0_i32, %c0_i32_0 : i32, i32
  }
  func.func @transform_13(%arg0: i32) -> (i32, i32) {
    %c0_i32 = arith.constant 0 : i32
    %c0_i32_0 = arith.constant 0 : i32
    %c0_i32_1 = arith.constant 0 : i32
    return %c0_i32, %c0_i32_0 : i32, i32
  }
  func.func @transform_14(%arg0: i32) -> (i32, i32) {
    %c0_i32 = arith.constant 0 : i32
    %c0_i32_0 = arith.constant 0 : i32
    %c0_i32_1 = arith.constant 0 : i32
    return %c0_i32, %c0_i32_0 : i32, i32
  }
  func.func @transform_15(%arg0: i32) -> (i32, i32) {
    %c0_i32 = arith.constant 0 : i32
    %c0_i32_0 = arith.constant 0 : i32
    %c0_i32_1 = arith.constant 0 : i32
    return %c0_i32, %c0_i32_0 : i32, i32
  }
  func.func @transform_16(%arg0: i32) -> (i32, i32) {
    %c0_i32 = arith.constant 0 : i32
    %c0_i32_0 = arith.constant 0 : i32
    %c0_i32_1 = arith.constant 0 : i32
    return %c0_i32, %c0_i32_0 : i32, i32
  }
  func.func @transform_17(%arg0: i32) -> (i32, i32) {
    %c0_i32 = arith.constant 0 : i32
    %c0_i32_0 = arith.constant 0 : i32
    %c0_i32_1 = arith.constant 0 : i32
    return %c0_i32, %c0_i32_0 : i32, i32
  }
  func.func @transform_18(%arg0: i32) -> (i32, i32) {
    %c0_i32 = arith.constant 0 : i32
    %c0_i32_0 = arith.constant 0 : i32
    %c0_i32_1 = arith.constant 0 : i32
    return %c0_i32, %c0_i32_0 : i32, i32
  }
  func.func @transform_19(%arg0: i32) -> (i32, i32) {
    %c0_i32 = arith.constant 0 : i32
    %c0_i32_0 = arith.constant 0 : i32
    %c0_i32_1 = arith.constant 0 : i32
    return %c0_i32, %c0_i32_0 : i32, i32
  }
  func.func @transform_20(%arg0: i32) -> (i32, i32) {
    %c0_i32 = arith.constant 0 : i32
    %c0_i32_0 = arith.constant 0 : i32
    %c0_i32_1 = arith.constant 0 : i32
    return %c0_i32, %c0_i32_0 : i32, i32
  }
  func.func @transform_21(%arg0: i32) -> (i32, i32) {
    %c0_i32 = arith.constant 0 : i32
    %c0_i32_0 = arith.constant 0 : i32
    %c0_i32_1 = arith.constant 0 : i32
    return %c0_i32, %c0_i32_0 : i32, i32
  }
  func.func @transform_22(%arg0: i32) -> (i32, i32, i32) {
    %c0_i32 = arith.constant 0 : i32
    %c0_i32_0 = arith.constant 0 : i32
    %c0_i32_1 = arith.constant 0 : i32
    return %arg0, %c0_i32, %c0_i32_0 : i32, i32, i32
  }
  func.func @transform_23(%arg0: i32) -> (i32, i32) {
    %c0_i32 = arith.constant 0 : i32
    %c0_i32_0 = arith.constant 0 : i32
    return %arg0, %c0_i32 : i32, i32
  }
}

</mosaic_0001>

<bundles_post_ra>
// kernel: resnet_server_forward.1
= control target key start
LH: loop header
LB: loop body
LE: loop exit
PB: predicated region body
PF: predicated region fallthrough
CT: control target
= control target key end

     0   :  { %s18220_s0 = inlined_call_operand.vmem [shape: f32[320,3], index: 0, kind: input, shape index: {}]   ;;  %s18221_s1 = inlined_call_operand.vmem [shape: f32[128,128], index: 1, kind: input, shape index: {}]   ;;  %s18222_s2 = inlined_call_operand.hbm [shape: bf16[27,128], index: 2, kind: input, shape index: {}]   ;;  %s18223_s3 = inlined_call_operand.vmem [shape: f32[1,128], index: 3, kind: input, shape index: {}]   ;;  %s18224_s4 = inlined_call_operand.vmem [shape: bf16[144,128], index: 4, kind: input, shape index: {}]   ;;  %s18225_s5 = inlined_call_operand.vmem [shape: f32[1,128], index: 5, kind: input, shape index: {}]   ;;  %s18226_s6 = inlined_call_operand.vmem [shape: bf16[144,128], index: 6, kind: input, shape index: {}]   ;;  %s18227_s7 = inlined_call_operand.vmem [shape: f32[1,128], index: 7, kind: input, shape index: {}]   ;;  %s18228_s8 = inlined_call_operand.vmem [shape: bf16[144,128], index: 8, kind: input, shape index: {}]   ;;  %s18229_s9 = inlined_call_operand.vmem [shape: f32[1,128], index: 9, kind: input, shape index: {}]   ;;  %s18230_s10 = inlined_call_operand.vmem [shape: bf16[288,128], index: 10, kind: input, shape index: {}]   ;;  %s18231_s11 = inlined_call_operand.hbm [shape: f32[1,128], index: 11, kind: input, shape index: {}]   ;;  %s18232_s12 = inlined_call_operand.hbm [shape: bf16[16,128], index: 12, kind: input, shape index: {}]   ;;  %s18233_s13 = inlined_call_operand.hbm [shape: f32[1,128], index: 13, kind: input, shape index: {}]   ;;  %s18234_s14 = inlined_call_operand.vmem [shape: bf16[288,128], index: 14, kind: input, shape index: {}]   ;;  %s18235_s15 = inlined_call_operand.hbm [shape: f32[1,128], index: 15, kind: input, shape index: {}]   ;;  %s18236_s16 = inlined_call_operand.vmem [shape: bf16[576,128], index: 16, kind: input, shape index: {}]   ;;  %s18237_s17 = inlined_call_operand.hbm [shape: f32[1,128], index: 17, kind: input, shape index: {}]   ;;  %s18238_s18 = inlined_call_operand.hbm [shape: bf16[32,128], index: 18, kind: input, shape index: {}]   ;;  %s18239_s19 = inlined_call_operand.hbm [shape: f32[1,128], index: 19, kind: input, shape index: {}]   ;;  %s18240_s20 = inlined_call_operand.hbm [shape: f32[64,128], index: 20, kind: input, shape index: {}]   ;;  %s18241_s21 = inlined_call_operand.hbm [shape: f32[1,128], index: 21, kind: input, shape index: {}]   ;;  %s18242_s22 = inlined_call_operand.hbm [shape: f32[2,1,128], index: 22, kind: output, shape index: {0}]   ;;  %s18243_s23 = inlined_call_operand.vmem [shape: f32[128,128], index: 23, kind: output, shape index: {1}]  }
   0x1   :  { %18311 = sst [smem:[#allocation67_spill]] %s18220_s0 }
   0x2   :  { %18312 = sst [smem:[#allocation68_spill]] %s18221_s1 }
   0x3   :  { %18313 = sst [smem:[#allocation69_spill]] %s18222_s2 }
   0x4   :  { %18314 = sst [smem:[#allocation70_spill]] %s18223_s3 }
   0x5   :  { %18315 = sst [smem:[#allocation71_spill]] %s18224_s4 }
   0x6   :  { %18316 = sst [smem:[#allocation72_spill]] %s18225_s5 }
   0x7   :  { %18317 = sst [smem:[#allocation73_spill]] %s18226_s6 }
   0x8   :  { %18318 = sst [smem:[#allocation74_spill]] %s18227_s7 }
   0x9   :  { %18319 = sst [smem:[#allocation75_spill]] %s18231_s11 }
   0xa   :  { %18320 = sst [smem:[#allocation76_spill]] %s18233_s13 }
   0xb   :  { %18321 = sst [smem:[#allocation77_spill]] %s18236_s16 }
   0xc   :  { %18322 = sst [smem:[#allocation78_spill]] %s18237_s17 }
   0xd   :  { %18323 = sst [smem:[#allocation79_spill]] %s18239_s19 }
   0xe   :  { %18324 = sst [smem:[#allocation80_spill]] %s18242_s22 }
   0xf   :  { %29 = vsyncpa [#allocation9], 0 }
  0x10   :  { %30 = vsyncpa [#allocation12], 0 }
  0x11   :  { %31 = vsyncpa [#allocation15], 0 }
  0x12   :  { %32 = vsyncpa [#allocation18], 0 }
  0x13   :  { %33 = vsyncpa [#allocation21], 0 }
  0x14   :  { %34 = vsyncpa [#allocation24], 0 }
  0x15   :  { %35 = vsyncpa [#allocation10], 0 }
  0x16   :  { %37 = vsyncpa [#allocation10 + $0x1], 0  ;;  %s15079_s4 = smov 0   ;;  %s15081_s30 = smov 0  }
  0x17   :  { %s15083_s24 = smov 0   ;;  %s15085_s25 = smov 0  }
  0x18 LB: > { %18325 = sst [smem:[#allocation33_spill]] %s14926_s4  ;;  %s15100_s5 = sadd.s32 4294967295, %s14938_s25   ;;  %s14938_s25 = sphi %s15085_s25, %s18486_s25   ;;  %s14934_s24 = sphi %s15083_s24, %s18489_s24   ;;  %s14930_s30 = sphi %s15081_s30, %s18488_s30   ;;  %s14926_s4 = sphi %s15079_s4, %s18487_s4  }
  0x19   : > { %18326 = sst [smem:[#allocation34_spill]] %s14930_s30  ;;  %s11835_s1 = sadd.s32 4294967294, %s14938_s25  }
  0x1a   : > { %18327 = sst [smem:[#allocation35_spill]] %s14934_s24  ;;  %s15104_s26 = sadd.s32 1, %s14938_s25  }
  0x1b   : > { %18328 = sst [smem:[#allocation36_spill]] %s14938_s25  ;;  %s522_s2 = sadd.s32 1, %s14934_s24 }
  0x1c   : > { %18329 = sst [smem:[#allocation37_spill]] %s15104_s26  ;;  %s519_s6 = ssub.s32 %s14938_s25, %s15104_s26 }
  0x1d   : > { %p532_p0 = scmp.ne.s32.totalorder %s14934_s24, %s14930_s30  ;;  %p520_p1 = scmp.eq.s32.totalorder %s519_s6, 0 }
  0x1e   : > { %p533_p2 = scmp.eq.s32.totalorder %s15100_s5, 1  ;;  %p538_p3 = scmp.ne.s32.totalorder %s14930_s30, %s14926_s4 }
  0x1f   : > { %p539_p4 = scmp.eq.s32.totalorder %s11835_s1, 1  ;;  %p11836_p7 = scmp.ge.s32.totalorder %s14938_s25, 1 }
  0x20   : > { %s15115_s27 = scalar_select %p520_p1, %s14934_s24, %s522_s2  }
  0x21   : > { %p15117_p5 = por %p533_p2, %p532_p0  ;;  %p15121_p6 = por %p539_p4, %p538_p3 }
  0x22   : > { %18330 = sst [smem:[#allocation38_spill]] %s15115_s27  ;;  %p572_p8 = scmp.lt.s32.totalorder %s14938_s25, 3 }
  0x23   : > { %s18331_s7 = scalar_select %p15117_p5, 1, 0 }
  0x24   : > { %s18333_s28 = scalar_select %p15121_p6, 1, 0 }
  0x25   : > { %18332 = sst [smem:[#allocation39_spill]] %s18331_s7  ;;  %p18254_p9 = scmp.eq.s32.totalorder %s15100_s5, 0 }
  0x26   : > { %18334 = sst [smem:[#allocation40_spill]] %s18333_s28  ;;  %p15128_p10 = pnand %p11836_p7, %p572_p8 }
  0x27   : > { %s14940_s3 = smov [#allocation11]   ;;  %s14941_s1 = smov [#allocation14]  }
  0x28   : > { %s18335_s29 = scalar_select %p15128_p10, 1, 0 }
  0x29   : > { %s622_s0 = sshll.u32 %s14940_s3, 4  ;;  %p14306_p11 = pneg %p15128_p10  ;;  %s623_s0 = int_to_ptr.vmem [resolvable:$true] %s622_s0 }
  0x2a   : > { %s646_s2 = sshll.u32 %s14941_s1, 4  ;;  %s14942_s27 = smov [#allocation17]   ;;  %s15140_s2 = int_to_ptr.vmem [resolvable:$true] %s646_s2 }
  0x2b   : > { %p15136_p12 = pnand %p18254_p9, %p14306_p11  ;;  %s674_s24 = sshll.u32 %s14942_s27, 4  ;;  %s15142_s24 = int_to_ptr.vmem [resolvable:$true] %s674_s24 }
  0x2c   : > { %s18337_s11 = sld [smem:[#allocation75_spill]] }
  0x2d   : > { %p15152_p0 = pneg %p15136_p12 }
  0x32   : > { %s14572_s3 = scalar_lea.hbm %s18337_s11, 16 }
  0x33   : > { %p14573_p13 = scmp.ne.s32.totalorder %s18337_s11, %s14572_s3  ;;  %p14579_p3 = scmp.lt.u32.totalorder %s14572_s3, %s18337_s11 }
  0x35   : > { %p14575_p1 = pnand %p15152_p0, %p14573_p13 }
  0x37   : > { %p14576_p2 = pneg %p14575_p1 }
  0x39   : > { %p14581_p4 = pnand %p14579_p3, %p14576_p2 }
  0x3b   : > { %14584 = shalt.err (!%p14581_p4)
}
  0x3c   : > { %s14585_s26 = scalar_lea.vmem %s623_s0, 16  ;;  %s14592_s4 = scalar_lea.vmem %s623_s0, 32 }
  0x3d   : > { %p14586_p7 = scmp.ne.s32.totalorder %s623_s0, %s14585_s26  ;;  %p14593_p9 = scmp.lt.s32.totalorder %s623_s0, %s623_s0 }
  0x3e   : > { %p14594_p6 = scmp.lt.s32.totalorder %s14592_s4, %s14585_s26 }
  0x3f   : > { %p14588_p8 = pnand %p14586_p7, %p15152_p0 }
  0x40   : > { %p14595_p5 = por %p14594_p6, %p14593_p9 }
  0x41   : > { %p14589_p11 = pneg %p14588_p8 }
  0x43   : > { %p14596_p10 = pnand %p14595_p5, %p14589_p11 }
  0x45   : > { %14599 = shalt.err (!%p14596_p10)
}
  0x46   : > { %14312 = dma.hbm_to_vmem [thread:$0]  (!%p15136_p12), %s18337_s11, 16, %s623_s0, [#allocation12]  }
  0x47   : > { %s18339_s13 = sld [smem:[#allocation76_spill]] }
  0x4d   : > { %s14600_s27 = scalar_lea.hbm %s18339_s13, 16 }
  0x4e   : > { %p14601_p13 = scmp.ne.s32.totalorder %s18339_s13, %s14600_s27  ;;  %p14607_p5 = scmp.lt.u32.totalorder %s14600_s27, %s18339_s13 }
  0x50   : > { %p14603_p1 = pnand %p14601_p13, %p15152_p0 }
  0x52   : > { %p14604_p6 = pneg %p14603_p1 }
  0x54   : > { %p14609_p9 = pnand %p14607_p5, %p14604_p6 }
  0x56   : > { %14612 = shalt.err (!%p14609_p9)
}
  0x57   : > { %s14613_s0 = scalar_lea.vmem %s15140_s2, 16  ;;  %s14620_s30 = scalar_lea.vmem %s15140_s2, 32 }
  0x58   : > { %p14614_p10 = scmp.ne.s32.totalorder %s15140_s2, %s14613_s0  ;;  %p14621_p4 = scmp.lt.s32.totalorder %s15140_s2, %s15140_s2 }
  0x59   : > { %p14622_p7 = scmp.lt.s32.totalorder %s14620_s30, %s14613_s0 }
  0x5a   : > { %p14616_p2 = pnand %p14614_p10, %p15152_p0 }
  0x5b   : > { %p14623_p8 = por %p14622_p7, %p14621_p4 }
  0x5c   : > { %p14617_p3 = pneg %p14616_p2 }
  0x5e   : > { %p14624_p11 = pnand %p14623_p8, %p14617_p3 }
  0x60   : > { %14627 = shalt.err (!%p14624_p11)
}
  0x61   : > { %14318 = dma.hbm_to_vmem [thread:$0]  (!%p15136_p12), %s18339_s13, 16, %s15140_s2, [#allocation15]  }
  0x62   : > { %s18340_s17 = sld [smem:[#allocation78_spill]] }
  0x68   : > { %s14628_s3 = scalar_lea.hbm %s18340_s17, 16 }
  0x69   : > { %p14629_p13 = scmp.ne.s32.totalorder %s18340_s17, %s14628_s3  ;;  %p14635_p5 = scmp.lt.u32.totalorder %s14628_s3, %s18340_s17 }
  0x6b   : > { %p14631_p1 = pnand %p14629_p13, %p15152_p0 }
  0x6d   : > { %p14632_p6 = pneg %p14631_p1 }
  0x6f   : > { %p14637_p9 = pnand %p14635_p5, %p14632_p6 }
  0x71   : > { %14640 = shalt.err (!%p14637_p9)
}
  0x72   : > { %s14641_s2 = scalar_lea.vmem %s15142_s24, 16  ;;  %s14648_s30 = scalar_lea.vmem %s15142_s24, 32 }
  0x73   : > { %p14642_p10 = scmp.ne.s32.totalorder %s15142_s24, %s14641_s2  ;;  %p14649_p4 = scmp.lt.s32.totalorder %s15142_s24, %s15142_s24 }
  0x74   : > { %p14650_p7 = scmp.lt.s32.totalorder %s14648_s30, %s14641_s2 }
  0x75   : > { %p14644_p2 = pnand %p14642_p10, %p15152_p0 }
  0x76   : > { %p14651_p8 = por %p14650_p7, %p14649_p4 }
  0x77   : > { %p14645_p3 = pneg %p14644_p2 }
  0x79   : > { %p14652_p11 = pnand %p14651_p8, %p14645_p3 }
  0x7b   : > { %14655 = shalt.err (!%p14652_p11)
}
  0x7c   : > { %14324 = dma.hbm_to_vmem [thread:$0]  (!%p15136_p12), %s18340_s17, 16, %s15142_s24, [#allocation18]  }
  0x7d   : > { %s14943_s28 = smov [#allocation20]   ;;  %s14944_s3 = smov [#allocation8]  }
  0x7e   : > { %s698_s22 = sshll.u32 %s14943_s28, 4  ;;  %s584_s27 = sshll.u32 %s14944_s3, 4  ;;  %s699_s22 = int_to_ptr.vmem [resolvable:$true] %s698_s22  ;;  %s585_s27 = int_to_ptr.vmem [resolvable:$true] %s584_s27 }
  0x7f   : > { %s18341_s19 = sld [smem:[#allocation79_spill]] }
  0x85   : > { %s14656_s0 = scalar_lea.hbm %s18341_s19, 16 }
  0x86   : > { %p14657_p13 = scmp.ne.s32.totalorder %s18341_s19, %s14656_s0  ;;  %p14663_p5 = scmp.lt.u32.totalorder %s14656_s0, %s18341_s19 }
  0x88   : > { %p14659_p1 = pnand %p14657_p13, %p15152_p0 }
  0x8a   : > { %p14660_p6 = pneg %p14659_p1 }
  0x8c   : > { %p14665_p9 = pnand %p14663_p5, %p14660_p6 }
  0x8e   : > { %14668 = shalt.err (!%p14665_p9)
}
  0x8f   : > { %s14669_s24 = scalar_lea.vmem %s699_s22, 16  ;;  %s14676_s25 = scalar_lea.vmem %s699_s22, 32 }
  0x90   : > { %p14670_p10 = scmp.ne.s32.totalorder %s699_s22, %s14669_s24  ;;  %p14677_p4 = scmp.lt.s32.totalorder %s699_s22, %s699_s22 }
  0x91   : > { %p14678_p7 = scmp.lt.s32.totalorder %s14676_s25, %s14669_s24 }
  0x92   : > { %p14672_p2 = pnand %p14670_p10, %p15152_p0 }
  0x93   : > { %p14679_p8 = por %p14678_p7, %p14677_p4 }
  0x94   : > { %p14673_p3 = pneg %p14672_p2 }
  0x96   : > { %p14680_p11 = pnand %p14679_p8, %p14673_p3 }
  0x98   : > { %14683 = shalt.err (!%p14680_p11)
}
  0x99   : > { %14330 = dma.hbm_to_vmem [thread:$0]  (!%p15136_p12), %s18341_s19, 16, %s699_s22, [#allocation21]  }
  0x9a   : > { %s18342_s4 = sld [smem:[#allocation69_spill]] }
  0xa0   : > { %s18343_s0 = smov %s18342_s4  ;;  %s14684_s2 = scalar_lea.hbm %s18342_s4, 256 }
  0xa1   : > { %p14685_p13 = scmp.ne.s32.totalorder %s18343_s0, %s14684_s2  ;;  %p14691_p5 = scmp.lt.u32.totalorder %s14684_s2, %s18343_s0 }
  0xa3   : > { %p14687_p1 = pnand %p14685_p13, %p15152_p0 }
  0xa5   : > { %p14688_p6 = pneg %p14687_p1 }
  0xa7   : > { %p14693_p9 = pnand %p14691_p5, %p14688_p6 }
  0xa9   : > { %14696 = shalt.err (!%p14693_p9)
}
  0xaa   : > { %s14697_s28 = scalar_lea.vmem %s585_s27, 256  ;;  %p14705_p4 = scmp.lt.s32.totalorder %s585_s27, %s585_s27 }
  0xab   : > { %p14698_p10 = scmp.ne.s32.totalorder %s585_s27, %s14697_s28  ;;  %p14706_p7 = scmp.lt.s32.totalorder %s14697_s28, %s14697_s28 }
  0xad   : > { %p14700_p2 = pnand %p14698_p10, %p15152_p0  ;;  %p14707_p8 = por %p14706_p7, %p14705_p4 }
  0xaf   : > { %p14701_p3 = pneg %p14700_p2 }
  0xb1   : > { %p14708_p11 = pnand %p14707_p8, %p14701_p3 }
  0xb3   : > { %14711 = shalt.err (!%p14708_p11)
}
  0xb4   : > { %s14945_s22 = smov 64   ;;  %s14946_s3 = smov 4  }
  0xb5   : > { %14309 = dma.hbm_to_vmem [thread:$0]  (!%p15136_p12), %s18343_s0, 256, %s585_s27, [#allocation9], %s14945_s22, %s14945_s22, %s14946_s3  }
  0xb6   : > { %s14947_s4 = smov [#allocation13]   ;;  %s14948_s30 = smov [#allocation16]  }
  0xb7   : > { %s632_s2 = sshll.u32 %s14947_s4, 4  ;;  %s660_s7 = sshll.u32 %s14948_s30, 4  ;;  %s633_s2 = int_to_ptr.vmem [resolvable:$true] %s632_s2  ;;  %s661_s7 = int_to_ptr.vmem [resolvable:$true] %s660_s7 }
  0xb8   : > { %s14712_s28 = scalar_lea.hbm %s18232_s12, 128 }
  0xb9   : > { %p14713_p13 = scmp.ne.s32.totalorder %s18232_s12, %s14712_s28  ;;  %p14719_p5 = scmp.lt.u32.totalorder %s14712_s28, %s18232_s12 }
  0xbb   : > { %p14715_p1 = pnand %p14713_p13, %p15152_p0 }
  0xbd   : > { %p14716_p6 = pneg %p14715_p1 }
  0xbf   : > { %p14721_p9 = pnand %p14719_p5, %p14716_p6 }
  0xc1   : > { %14724 = shalt.err (!%p14721_p9)
}
  0xc2   : > { %s14725_s27 = scalar_lea.vmem %s633_s2, 128  ;;  %p14733_p4 = scmp.lt.s32.totalorder %s633_s2, %s633_s2 }
  0xc3   : > { %p14726_p10 = scmp.ne.s32.totalorder %s633_s2, %s14725_s27  ;;  %p14734_p7 = scmp.lt.s32.totalorder %s14725_s27, %s14725_s27 }
  0xc5   : > { %p14728_p2 = pnand %p14726_p10, %p15152_p0  ;;  %p14735_p8 = por %p14734_p7, %p14733_p4 }
  0xc7   : > { %p14729_p3 = pneg %p14728_p2 }
  0xc9   : > { %p14736_p11 = pnand %p14735_p8, %p14729_p3 }
  0xcb   : > { %14739 = shalt.err (!%p14736_p11)
}
  0xcc   : > { %14315 = dma.hbm_to_vmem [thread:$0]  (!%p15136_p12), %s18232_s12, 128, %s633_s2, [#allocation12], %s14945_s22, %s14945_s22, %s14946_s3  }
  0xcd   : > { %s14740_s11 = scalar_lea.hbm %s18235_s15, 16 }
  0xce   : > { %p14741_p13 = scmp.ne.s32.totalorder %s18235_s15, %s14740_s11  ;;  %p14747_p5 = scmp.lt.u32.totalorder %s14740_s11, %s18235_s15 }
  0xd0   : > { %p14743_p1 = pnand %p14741_p13, %p15152_p0 }
  0xd2   : > { %p14744_p6 = pneg %p14743_p1 }
  0xd4   : > { %p14749_p9 = pnand %p14747_p5, %p14744_p6 }
  0xd6   : > { %14752 = shalt.err (!%p14749_p9)
}
  0xd7   : > { %s14753_s25 = scalar_lea.vmem %s661_s7, 16  ;;  %s14760_s2 = scalar_lea.vmem %s661_s7, 32 }
  0xd8   : > { %p14754_p10 = scmp.ne.s32.totalorder %s661_s7, %s14753_s25  ;;  %p14761_p4 = scmp.lt.s32.totalorder %s661_s7, %s661_s7 }
  0xd9   : > { %p14762_p7 = scmp.lt.s32.totalorder %s14760_s2, %s14753_s25 }
  0xda   : > { %p14756_p2 = pnand %p14754_p10, %p15152_p0 }
  0xdb   : > { %p14763_p8 = por %p14762_p7, %p14761_p4 }
  0xdc   : > { %p14757_p3 = pneg %p14756_p2 }
  0xde   : > { %p14764_p11 = pnand %p14763_p8, %p14757_p3 }
  0xe0   : > { %14767 = shalt.err (!%p14764_p11)
}
  0xe1   : > { %14321 = dma.hbm_to_vmem [thread:$0]  (!%p15136_p12), %s18235_s15, 16, %s661_s7, [#allocation15]  }
  0xe2   : > { %s14949_s13 = smov [#allocation19]   ;;  %s14950_s17 = smov [#allocation22]  }
  0xe3   : > { %s684_s16 = sshll.u32 %s14949_s13, 4  ;;  %s708_s19 = sshll.u32 %s14950_s17, 4  ;;  %s685_s16 = int_to_ptr.vmem [resolvable:$true] %s684_s16  ;;  %s709_s19 = int_to_ptr.vmem [resolvable:$true] %s708_s19 }
  0xe4   : > { %s14768_s4 = scalar_lea.hbm %s18238_s18, 256 }
  0xe5   : > { %p14769_p13 = scmp.ne.s32.totalorder %s18238_s18, %s14768_s4  ;;  %p14775_p5 = scmp.lt.u32.totalorder %s14768_s4, %s18238_s18 }
  0xe7   : > { %p14771_p1 = pnand %p14769_p13, %p15152_p0 }
  0xe9   : > { %p14772_p6 = pneg %p14771_p1 }
  0xeb   : > { %p14777_p9 = pnand %p14775_p5, %p14772_p6 }
  0xed   : > { %14780 = shalt.err (!%p14777_p9)
}
  0xee   : > { %s14781_s7 = scalar_lea.vmem %s685_s16, 256  ;;  %p14789_p4 = scmp.lt.s32.totalorder %s685_s16, %s685_s16 }
  0xef   : > { %p14782_p10 = scmp.ne.s32.totalorder %s685_s16, %s14781_s7  ;;  %p14790_p7 = scmp.lt.s32.totalorder %s14781_s7, %s14781_s7 }
  0xf1   : > { %p14784_p2 = pnand %p14782_p10, %p15152_p0  ;;  %p14791_p8 = por %p14790_p7, %p14789_p4 }
  0xf3   : > { %p14785_p3 = pneg %p14784_p2 }
  0xf5   : > { %p14792_p11 = pnand %p14791_p8, %p14785_p3 }
  0xf7   : > { %14795 = shalt.err (!%p14792_p11)
}
  0xf8   : > { %14327 = dma.hbm_to_vmem [thread:$0]  (!%p15136_p12), %s18238_s18, 256, %s685_s16, [#allocation18], %s14945_s22, %s14945_s22, %s14946_s3  }
  0xf9   : > { %s14796_s11 = scalar_lea.hbm %s18240_s20, 1024 }
  0xfa   : > { %p14797_p13 = scmp.ne.s32.totalorder %s18240_s20, %s14796_s11  ;;  %p14803_p5 = scmp.lt.u32.totalorder %s14796_s11, %s18240_s20 }
  0xfc   : > { %p14799_p1 = pnand %p14797_p13, %p15152_p0 }
  0xfe   : > { %p14800_p6 = pneg %p14799_p1 }
 0x100   : > { %p14805_p9 = pnand %p14803_p5, %p14800_p6 }
 0x102   : > { %14808 = shalt.err (!%p14805_p9)
}
 0x103   : > { %s14809_s25 = scalar_lea.vmem %s709_s19, 1024  ;;  %p14817_p4 = scmp.lt.s32.totalorder %s709_s19, %s709_s19 }
 0x104   : > { %p14810_p10 = scmp.ne.s32.totalorder %s709_s19, %s14809_s25  ;;  %p14818_p7 = scmp.lt.s32.totalorder %s14809_s25, %s14809_s25 }
 0x106   : > { %p14812_p2 = pnand %p14810_p10, %p15152_p0  ;;  %p14819_p8 = por %p14818_p7, %p14817_p4 }
 0x108   : > { %p14813_p3 = pneg %p14812_p2 }
 0x10a   : > { %p14820_p11 = pnand %p14819_p8, %p14813_p3 }
 0x10c   : > { %14823 = shalt.err (!%p14820_p11)
}
 0x10d   : > { %s14951_s22 = smov 128   ;;  %s14952_s3 = smov 8  }
 0x10e   : > { %14333 = dma.hbm_to_vmem [thread:$0]  (!%p15136_p12), %s18240_s20, 1024, %s709_s19, [#allocation21], %s14951_s22, %s14951_s22, %s14952_s3  }
 0x10f   : > { %s14953_s7 = smov [#allocation23]   ;;  %s14824_s17 = scalar_lea.hbm %s18241_s21, 16 }
 0x110   : > { %s722_s28 = sshll.u32 %s14953_s7, 4  ;;  %p14825_p13 = scmp.ne.s32.totalorder %s18241_s21, %s14824_s17  ;;  %s723_s28 = int_to_ptr.vmem [resolvable:$true] %s722_s28 }
 0x111   : > { %p14831_p5 = scmp.lt.u32.totalorder %s14824_s17, %s18241_s21 }
 0x112   : > { %p14827_p1 = pnand %p14825_p13, %p15152_p0 }
 0x114   : > { %p14828_p6 = pneg %p14827_p1 }
 0x116   : > { %p14833_p9 = pnand %p14831_p5, %p14828_p6 }
 0x118   : > { %14836 = shalt.err (!%p14833_p9)
}
 0x119   : > { %s14837_s19 = scalar_lea.vmem %s723_s28, 16  ;;  %s14844_s24 = scalar_lea.vmem %s723_s28, 32 }
 0x11a   : > { %p14838_p10 = scmp.ne.s32.totalorder %s723_s28, %s14837_s19  ;;  %p14845_p4 = scmp.lt.s32.totalorder %s723_s28, %s723_s28 }
 0x11b   : > { %p14846_p7 = scmp.lt.s32.totalorder %s14844_s24, %s14837_s19 }
 0x11c   : > { %p14840_p2 = pnand %p14838_p10, %p15152_p0 }
 0x11d   : > { %p14847_p8 = por %p14846_p7, %p14845_p4 }
 0x11e   : > { %p14841_p3 = pneg %p14840_p2 }
 0x120   : > { %p14848_p11 = pnand %p14847_p8, %p14841_p3 }
 0x122   : > { %14851 = shalt.err (!%p14848_p11)
}
 0x123   : > { %14336 = dma.hbm_to_vmem [thread:$0]  (!%p15136_p12), %s18241_s21, 16, %s723_s28, [#allocation24]  }
 0x124   : > { %p18344_p13 = scmp.ne.s32.totalorder %s18335_s29, 0 }
 0x126   : > { %753 = sbr.rel (%p18344_p13) target bundleno = 2971 (0xb9b), region = 108 }
 0x12d   : > { %p18345_p1 = scmp.eq.s32.totalorder %s15100_s5, 0 }
 0x12f   : > { %14897 = dma.done.wait (%p18345_p1), [#allocation9], 256   ;;  %p18346_p0 = pmov %p18345_p1 }
 0x131   : > { %14899 = vsyncadd (%p18346_p0), [#allocation9], 4294967040  ;;  %p18347_p6 = pmov %p18346_p0 }
 0x132   : > { %p18348_p5 = pmov %p18346_p0 }
 0x133   : > { %14901 = dma.done.wait (%p18347_p6), [#allocation12], 144  }
 0x134   : > { %14903 = vsyncadd (%p18348_p5), [#allocation12], 4294967152  ;;  %p18349_p9 = pmov %p18346_p0 }
 0x135   : > { %p18350_p12 = pmov %p18346_p0 }
 0x136   : > { %14905 = dma.done.wait (%p18349_p9), [#allocation15], 32  }
 0x137   : > { %14907 = vsyncadd (%p18350_p12), [#allocation15], 4294967264  ;;  %p18351_p10 = pmov %p18346_p0 }
 0x138   : > { %p18352_p2 = pmov %p18346_p0 }
 0x139   : > { %14909 = dma.done.wait (%p18351_p10), [#allocation18], 272  }
 0x13a   : > { %14911 = vsyncadd (%p18352_p2), [#allocation18], 4294967024  ;;  %p18353_p3 = pmov %p18346_p0 }
 0x13b   : > { %p18354_p4 = pmov %p18346_p0 }
 0x13c   : > { %14913 = dma.done.wait (%p18353_p3), [#allocation21], 1040  }
 0x13d   : > { %14915 = vsyncadd (%p18354_p4), [#allocation21], 4294966256  ;;  %p18355_p7 = pmov %p18346_p0 }
 0x13e   : > { %p18356_p8 = pmov %p18346_p0 }
 0x13f   : > { %14917 = dma.done.wait (%p18355_p7), [#allocation24], 16  }
 0x140   : > { %14919 = vsyncadd (%p18356_p8), [#allocation24], 4294967280  ;;  %vm1083_vm0 = vcmask 1040384   ;;  %v14954_v0 = vmov 0.0   ;;  %s862_s29 = smul.u32 20, %s15100_s5  ;;  %vm1084_vm1 = vcmask 1041408  }
 0x141   : > { %968 = vst [vmem:[#allocation4 + $0xd8] sm:$0xff] %v14954_v0  ;;  %881 = vst [vmem:[#allocation2] sm:$0xff] %v14954_v0  ;;  %v14955_v1 = vmov 65535   ;;  %v14412_v4 = vld [vmem:[#allocation8] ss:$0 sps:$4 sm:$0x66]  }
 0x142   : > { %882 = vst [vmem:[#allocation2 + $0x8] sm:$0xff] %v14954_v0  ;;  %883 = vst [vmem:[#allocation2 + $0x10] sm:$0xff] %v14954_v0  ;;  %v1085_v2 = vsel %vm1083_vm0, 4294967295, %v14955_v1  ;;  %p863_p11 = scmp.lt.s32.totalorder %s862_s29, 39  ;;  %v1022_v5 = vld [vmem:[#allocation8] sm:$0x3] }
 0x143   : > { %884 = vst [vmem:[#allocation2 + $0x18] sm:$0xff] %v14954_v0  ;;  %885 = vst [vmem:[#allocation2 + $0x20] sm:$0xff] %v14954_v0  ;;  %v15493_v3 = vsel %vm1084_vm1, %v1085_v2, 0  ;;  %s18357_s16 = sld [smem:[#allocation67_spill]]  ;;  %v1051_v6 = vshrl.u32 %v14412_v4, 16  ;;  %v1054_v7 = vshll.u32 %v14412_v4, 16 }
 0x144   : > { %886 = vst [vmem:[#allocation2 + $0x28] sm:$0xff] %v14954_v0  ;;  %887 = vst [vmem:[#allocation2 + $0x30] sm:$0xff] %v14954_v0  ;;  %s18491_s29 = smov (!%p863_p11, %s862_s29), 39  ;;  %v1204_v8 = vand.u32 %v15493_v3, %v1022_v5  ;;  %vm1058_vm2 = vcmask 23552   ;;  %v14413_v19 = vld [vmem:[#allocation8] sm:$0x18]  }
 0x145   : > { %888 = vst [vmem:[#allocation2 + $0x38] sm:$0xff] %v14954_v0  ;;  %889 = vst [vmem:[#allocation2 + $0x40] sm:$0xff] %v14954_v0  ;;  %s11859_s6 = sshll.u32 %s18491_s29, 3  ;;  %v1053_v14 = vrot.slane %v1051_v6, 1  ;;  %v1056_v15 = vrot.slane %v1054_v7, 2  ;;  %v1325_v23 = vrot.slane %v14413_v19, 3 }
 0x146   : > { %890 = vst [vmem:[#allocation2 + $0x48] sm:$0xff] %v14954_v0  ;;  %891 = vst [vmem:[#allocation2 + $0x50] sm:$0xff] %v14954_v0  ;;  %13005 = vmatprep.subr.bf16.mxu1 %v1204_v8  ;;  %v14414_v39 = vld [vmem:[#allocation8 + $0x4] ss:$0 sps:$4 sm:$0x33]   ;;  %s18358_s27 = sld [smem:[#allocation71_spill]] }
 0x147   : > { %892 = vst [vmem:[#allocation2 + $0x58] sm:$0xff] %v14954_v0  ;;  %893 = vst [vmem:[#allocation2 + $0x60] sm:$0xff] %v14954_v0  ;;  %13006 = vmatpush3.bf16.msra.mxu1 %v1204_v8  ;;  %v1057_v22 = vor.u32 %v1056_v15, %v1053_v14  ;;  %v1351_v29 = vand.u32 %v1325_v23, %v15493_v3  ;;  %v1478_v41 = vshrl.u32 %v14414_v39, 16  ;;  %v1480_v42 = vshll.u32 %v14414_v39, 16  ;;  %v14416_v60 = vld [vmem:[#allocation8 + $0x4] sm:$0x18]  }
 0x148   : > { %894 = vst [vmem:[#allocation2 + $0x68] sm:$0xff] %v14954_v0  ;;  %895 = vst [vmem:[#allocation2 + $0x70] sm:$0xff] %v14954_v0  ;;  %v14415_v45 = vld [vmem:[#allocation8 + $0x4] ss:$0 sps:$4 sm:$0xcc]   ;;  %v1791_v62 = vshrl.u32 %v14416_v60, 16 }
 0x149   : > { %896 = vst [vmem:[#allocation2 + $0x78] sm:$0xff] %v14954_v0  ;;  %897 = vst [vmem:[#allocation2 + $0x80] sm:$0xff] %v14954_v0  ;;  %s15498_s2 = scalar_lea.vmem %s18357_s16, %s11859_s6  ;;  %v1088_v28 = vand.u32 %v15493_v3, %v1057_v22  ;;  %v1482_v48 = vrot.slane %v1480_v42, 1  ;;  %v1635_v51 = vrot.slane %v14415_v45, 2  ;;  %v1794_v63 = vshll.u32 %v14416_v60, 16  ;;  %s11860_s13 = sshll.u32 %s15100_s5, 3 }
 0x14a   : > { %898 = vst [vmem:[#allocation2 + $0x88] sm:$0xff] %v14954_v0  ;;  %899 = vst [vmem:[#allocation2 + $0x90] sm:$0xff] %v14954_v0  ;;  %v1023_v9 = vld [vmem:[%s15498_s2 + $0x1] sm:$0xff]  ;;  %v1024_v10 = vld [vmem:[%s15498_s2 + $0x9] sm:$0xff]  ;;  %v1793_v7 = vrot.slane %v1791_v62, 3  ;;  %p869_p13 = scmp.lt.s32.totalorder %s11860_s13, 15 }
 0x14b   : > { %900 = vst [vmem:[#allocation2 + $0x98] sm:$0xff] %v14954_v0  ;;  %901 = vst [vmem:[#allocation2 + $0xa0] sm:$0xff] %v14954_v0  ;;  %v999_v11 = vld [vmem:[%s15498_s2] sm:$0xff]  ;;  %v1038_v12 = vpack.c.bf16 %v1024_v10, %v1023_v9  ;;  %v1000_v13 = vld [vmem:[%s15498_s2 + $0x8] sm:$0xff]  ;;  %12987 = vmatprep.subr.bf16.mxu0 %v1088_v28  ;;  %v1483_v55 = vor.u32 %v1482_v48, %v1478_v41  ;;  %v1661_v57 = vand.u32 %v1635_v51, %v15493_v3  ;;  %s18359_s4 = sld [smem:[#allocation68_spill]]  ;;  %vm2516_vm3 = vcmask 130048  }
 0x14c   : > { %902 = vst [vmem:[#allocation2 + $0xa8] sm:$0xff] %v14954_v0  ;;  %903 = vst [vmem:[#allocation2 + $0xb0] sm:$0xff] %v14954_v0  ;;  %v1014_v16 = vpack.c.bf16 %v1000_v13, %v999_v11  ;;  %v1001_v17 = vld [vmem:[%s15498_s2 + $0x10] sm:$0xff]  ;;  %v1002_v18 = vld [vmem:[%s15498_s2 + $0x18] sm:$0xff]  ;;  %12988 = vmatpush3.bf16.msra.mxu0 %v1088_v28  ;;  %v1796_v8 = vrot.slane %v1794_v63, 4  ;;  %s18493_s13 = smov (!%p869_p13, %s11860_s13), 15 }
 0x14d   : > { %904 = vst [vmem:[#allocation2 + $0xb8] sm:$0xff] %v14954_v0  ;;  %905 = vst [vmem:[#allocation2 + $0xc0] sm:$0xff] %v14954_v0  ;;  %12989 = vmatprep.mubr.msk.bf16.mxu0 %vm1058_vm2, %v1038_v12  ;;  %v15508_v20 = vpack.c.bf16 %v1002_v18, %v1001_v17  ;;  %v1003_v21 = vld [vmem:[%s15498_s2 + $0x20] sm:$0xff]  ;;  %v1004_v24 = vld [vmem:[%s15498_s2 + $0x28] sm:$0xff]  ;;  %13023 = vmatprep.subr.bf16.mxu0 %v1351_v29  ;;  %v1509_v59 = vand.u32 %v1483_v55, %v15493_v3  ;;  %s11861_s17 = sshll.u32 %s18493_s13, 3  ;;  %s18362_s11 = sld [smem:[#allocation70_spill]] }
 0x14e   : > { %906 = vst [vmem:[#allocation2 + $0xc8] sm:$0xff] %v14954_v0  ;;  %907 = vst [vmem:[#allocation2 + $0xd0] sm:$0xff] %v14954_v0  ;;  %13007 = vmatprep.mubr.msk.bf16.mxu1 %vm1058_vm2, %v1014_v16  ;;  %v1025_v25 = vld [vmem:[%s15498_s2 + $0x11] sm:$0xff]  ;;  %v1026_v26 = vld [vmem:[%s15498_s2 + $0x19] sm:$0xff]  ;;  %v15515_v27 = vpack.c.bf16 %v1004_v24, %v1003_v21  ;;  %v1797_v13 = vor.u32 %v1796_v8, %v1793_v7  ;;  %s18417_s1 = sld [smem:[#allocation73_spill]]  ;;  %vm14956_vm4 = vmmov 0  }
 0x14f   : > { %908 = vst [vmem:[#allocation2 + $0xd8] sm:$0xff] %v14954_v0  ;;  %909 = vst [vmem:[#allocation2 + $0xe0] sm:$0xff] %v14954_v0  ;;  %13008 = vmatmul.mubr.msk.bf16.vlgmr.msra.gmra.mrb[0].mxu1 %vm1058_vm2, %v15508_v20  ;;  %v1027_v30 = vld [vmem:[%s15498_s2 + $0x21] sm:$0xff]  ;;  %v1028_v31 = vld [vmem:[%s15498_s2 + $0x29] sm:$0xff]  ;;  %v15527_v34 = vpack.c.bf16 %v1026_v26, %v1025_v25  ;;  %13041 = vmatprep.subr.bf16.mxu1 %v1509_v59  ;;  %s18476_s22 = sld [smem:[#allocation74_spill]]  ;;  %vm8426_vm5 = vcmask 261120  }
 0x150   : > { %910 = vst [vmem:[#allocation2 + $0xe8] sm:$0xff] %v14954_v0  ;;  %911 = vst [vmem:[#allocation3] sm:$0xff] %v14954_v0  ;;  %13011 = vmatprep.mubr.msk.bf16.mxu1 %vm1058_vm2, %v15515_v27  ;;  %v1005_v32 = vld [vmem:[%s15498_s2 + $0x30] sm:$0xff]  ;;  %v1006_v33 = vld [vmem:[%s15498_s2 + $0x38] sm:$0xff]  ;;  %v15531_v37 = vpack.c.bf16 %v1028_v31, %v1027_v30  ;;  %13042 = vmatpush3.bf16.msra.mxu1 %v1509_v59  ;;  %v1823_v16 = vand.u32 %v1797_v13, %v15493_v3  ;;  %vm10716_vm6 = vcmask 523264   ;;  %vm11474_vm7 = vcmask 1043456  }
 0x151   : > { %912 = vst [vmem:[#allocation3 + $0x8] sm:$0xff] %v14954_v0  ;;  %913 = vst [vmem:[#allocation3 + $0x10] sm:$0xff] %v14954_v0  ;;  %v1007_v35 = vld [vmem:[%s15498_s2 + $0x40] sm:$0xff]  ;;  %v1008_v36 = vld [vmem:[%s15498_s2 + $0x48] sm:$0xff]  ;;  %v15533_v38 = vpack.c.bf16 %v1006_v33, %v1005_v32  ;;  %12990 = vmatmul.mubr.msk.bf16.vlgmr.msra.gmra.mrb[0].mxu0 %vm1058_vm2, %v15527_v34  ;;  %s15742_s30 = scalar_lea.vmem %s18359_s4, %s11861_s17  ;;  %s18478_s13 = sld [smem:[#allocation34_spill]] }
 0x152   : > { %914 = vst [vmem:[#allocation3 + $0x18] sm:$0xff] %v14954_v0  ;;  %915 = vst [vmem:[#allocation3 + $0x20] sm:$0xff] %v14954_v0  ;;  %v15535_v40 = vpack.c.bf16 %v1008_v36, %v1007_v35  ;;  %13024 = vmatpush3.bf16.msra.mxu0 %v1351_v29  ;;  %12993 = vmatprep.mubr.msk.bf16.mxu0 %vm1058_vm2, %v15531_v37  ;;  %v1029_v43 = vld [vmem:[%s15498_s2 + $0x31] sm:$0xff]  ;;  %v1030_v44 = vld [vmem:[%s15498_s2 + $0x39] sm:$0xff]  ;;  %s12421_s24 = sshll.u32 %s15100_s5, 4  ;;  %s18480_s3 = sld [smem:[#allocation80_spill]] }
 0x153   : > { %916 = vst [vmem:[#allocation3 + $0x28] sm:$0xff] %v14954_v0  ;;  %917 = vst [vmem:[#allocation3 + $0x30] sm:$0xff] %v14954_v0  ;;  %v1031_v46 = vld [vmem:[%s15498_s2 + $0x41] sm:$0xff]  ;;  %v1032_v47 = vld [vmem:[%s15498_s2 + $0x49] sm:$0xff]  ;;  %v15551_v52 = vpack.c.bf16 %v1030_v44, %v1029_v43  ;;  %13059 = vmatprep.subr.bf16.mxu0 %v1661_v57  ;;  %13077 = vmatprep.subr.bf16.mxu1 %v1823_v16  ;;  %s14958_s5 = smov [#allocation25]  }
 0x154   : > { %918 = vst [vmem:[#allocation3 + $0x38] sm:$0xff] %v14954_v0  ;;  %919 = vst [vmem:[#allocation3 + $0x40] sm:$0xff] %v14954_v0  ;;  %v1009_v49 = vld [vmem:[%s15498_s2 + $0x50] sm:$0xff]  ;;  %v1010_v50 = vld [vmem:[%s15498_s2 + $0x58] sm:$0xff]  ;;  %v15555_v56 = vpack.c.bf16 %v1032_v47, %v1031_v46 }
 0x155   : > { %920 = vst [vmem:[#allocation3 + $0x48] sm:$0xff] %v14954_v0  ;;  %921 = vst [vmem:[#allocation3 + $0x50] sm:$0xff] %v14954_v0  ;;  %v1011_v53 = vld [vmem:[%s15498_s2 + $0x60] sm:$0xff]  ;;  %v1012_v54 = vld [vmem:[%s15498_s2 + $0x68] sm:$0xff]  ;;  %v15558_v58 = vpack.c.bf16 %v1010_v50, %v1009_v49 }
 0x156   : > { %922 = vst [vmem:[#allocation3 + $0x58] sm:$0xff] %v14954_v0  ;;  %923 = vst [vmem:[#allocation3 + $0x60] sm:$0xff] %v14954_v0  ;;  %v15561_v61 = vpack.c.bf16 %v1012_v54, %v1011_v53  ;;  %v1034_v1 = vld [vmem:[%s15498_s2 + $0x59] sm:$0xff]  ;;  %v14418_v2 = vld [vmem:[#allocation8 + $0x8] ss:$0 sps:$4 sm:$0xcc]  }
 0x157   : > { %924 = vst [vmem:[#allocation3 + $0x68] sm:$0xff] %v14954_v0  ;;  %925 = vst [vmem:[#allocation3 + $0x70] sm:$0xff] %v14954_v0  ;;  %13012 = vmatmul.mubr.msk.bf16.gmra.mrb[4].mxu1 %vm1058_vm2, %v15533_v38  ;;  %v1035_v4 = vld [vmem:[%s15498_s2 + $0x61] sm:$0xff]  ;;  %v1036_v5 = vld [vmem:[%s15498_s2 + $0x69] sm:$0xff]  ;;  %v2102_v10 = vshrl.u32 %v14418_v2, 16  ;;  %v2105_v11 = vshll.u32 %v14418_v2, 16 }
 0x158   : > { %926 = vst [vmem:[#allocation3 + $0x78] sm:$0xff] %v14954_v0  ;;  %927 = vst [vmem:[#allocation3 + $0x80] sm:$0xff] %v14954_v0  ;;  %13015 = vmatprep.mubr.msk.bf16.mxu1 %vm1058_vm2, %v15535_v40  ;;  %v1013_v6 = vld [vmem:[%s15498_s2 + $0x70] sm:$0xff]  ;;  %v14417_v9 = vld [vmem:[#allocation8 + $0x8] ss:$0 sps:$4 sm:$0x66]   ;;  %v15578_v14 = vpack.c.bf16 %v1036_v5, %v1035_v4  ;;  %s18178_s16 = scalar_lea.hbm %s18480_s3, %s12421_s24 }
 0x159   : > { %928 = vst [vmem:[#allocation3 + $0x88] sm:$0xff] %v14954_v0  ;;  %929 = vst [vmem:[#allocation3 + $0x90] sm:$0xff] %v14954_v0  ;;  %12994 = vmatmul.mubr.msk.bf16.gmra.mrb[4].mxu0 %vm1058_vm2, %v15551_v52  ;;  %v1021_v15 = vpack.c.bf16 %v1013_v6, %v1013_v6  ;;  %v15582_v17 = vld [vmem:[%s15498_s2 + $0x71] sm:$0xff]  ;;  %v1295_v18 = vld [vmem:[%s15498_s2 + $0x2] sm:$0xff]  ;;  %v2104_v19 = vrot.slane %v2102_v10, 2  ;;  %v2107_v21 = vrot.slane %v2105_v11, 3 }
 0x15a   : > { %930 = vst [vmem:[#allocation3 + $0x98] sm:$0xff] %v14954_v0  ;;  %931 = vst [vmem:[#allocation3 + $0xa0] sm:$0xff] %v14954_v0  ;;  %12997 = vmatprep.mubr.msk.bf16.mxu0 %vm1058_vm2, %v15555_v56  ;;  %v1296_v22 = vld [vmem:[%s15498_s2 + $0xa] sm:$0xff]  ;;  %v1949_v23 = vrot.slane %v14417_v9, 1  ;;  %v1045_v24 = vpack.c.bf16 %v15582_v17, %v15582_v17  ;;  %v1297_v28 = vld [vmem:[%s15498_s2 + $0x12] sm:$0xff]  ;;  %s853_s19 = sand.u32 1, %s18478_s13  }
 0x15b   : > { %932 = vst [vmem:[#allocation3 + $0xa8] sm:$0xff] %v14954_v0  ;;  %933 = vst [vmem:[#allocation3 + $0xb0] sm:$0xff] %v14954_v0  ;;  %v2108_v25 = vor.u32 %v2107_v21, %v2104_v19  ;;  %v1310_v26 = vpack.c.bf16 %v1296_v22, %v1295_v18  ;;  %v1298_v29 = vld [vmem:[%s15498_s2 + $0x1a] sm:$0xff]  ;;  %v1299_v30 = vld [vmem:[%s15498_s2 + $0x22] sm:$0xff]  ;;  %s854_s25 = scalar_lea.vmem [#allocation25], %s853_s19  ;;  %s11624_s7 = scalar_lea.sflag [#allocation10], %s853_s19 }
 0x15c   : > { %934 = vst [vmem:[#allocation3 + $0xb8] sm:$0xff] %v14954_v0  ;;  %935 = vst [vmem:[#allocation3 + $0xc0] sm:$0xff] %v14954_v0  ;;  %v1300_v31 = vld [vmem:[%s15498_s2 + $0x2a] sm:$0xff]  ;;  %v1975_v35 = vand.u32 %v1949_v23, %v15493_v3  ;;  %v1301_v36 = vld [vmem:[%s15498_s2 + $0x32] sm:$0xff] }
 0x15d   : > { %936 = vst [vmem:[#allocation3 + $0xc8] sm:$0xff] %v14954_v0  ;;  %937 = vst [vmem:[#allocation3 + $0xd0] sm:$0xff] %v14954_v0  ;;  %v2134_v32 = vand.u32 %v2108_v25, %v15493_v3  ;;  %v15606_v33 = vpack.c.bf16 %v1300_v31, %v1299_v30  ;;  %v1302_v39 = vld [vmem:[%s15498_s2 + $0x3a] sm:$0xff]  ;;  %v1303_v41 = vld [vmem:[%s15498_s2 + $0x42] sm:$0xff] }
 0x15e   : > { %938 = vst [vmem:[#allocation3 + $0xd8] sm:$0xff] %v14954_v0  ;;  %939 = vst [vmem:[#allocation3 + $0xe0] sm:$0xff] %v14954_v0  ;;  %v1304_v42 = vld [vmem:[%s15498_s2 + $0x4a] sm:$0xff]  ;;  %v1463_v43 = vld [vmem:[%s15498_s2 + $0x78] sm:$0xff]  ;;  %v15621_v44 = vpack.c.bf16 %v1302_v39, %v1301_v36 }
 0x15f   : > { %940 = vst [vmem:[#allocation3 + $0xe8] sm:$0xff] %v14954_v0  ;;  %941 = vst [vmem:[#allocation4] sm:$0xff] %v14954_v0  ;;  %13016 = vmatmul.mubr.msk.bf16.gmra.mrb[8].mxu1 %vm1058_vm2, %v15558_v58  ;;  %v15623_v45 = vpack.c.bf16 %v1304_v42, %v1303_v41  ;;  %v1305_v46 = vld [vmem:[%s15498_s2 + $0x52] sm:$0xff]  ;;  %v1306_v47 = vld [vmem:[%s15498_s2 + $0x5a] sm:$0xff]  ;;  %v15627_v48 = vpack.c.bf16 %v1463_v43, %v1013_v6 }
 0x160   : > { %942 = vst [vmem:[#allocation4 + $0x8] sm:$0xff] %v14954_v0  ;;  %943 = vst [vmem:[#allocation4 + $0x10] sm:$0xff] %v14954_v0  ;;  %13019 = vmatprep.mubr.msk.bf16.mxu1 %vm1058_vm2, %v15561_v61  ;;  %v1307_v49 = vld [vmem:[%s15498_s2 + $0x62] sm:$0xff]  ;;  %v1308_v50 = vld [vmem:[%s15498_s2 + $0x6a] sm:$0xff]  ;;  %v15640_v53 = vpack.c.bf16 %v1306_v47, %v1305_v46 }
 0x161   : > { %944 = vst [vmem:[#allocation4 + $0x18] sm:$0xff] %v14954_v0  ;;  %945 = vst [vmem:[#allocation4 + $0x20] sm:$0xff] %v14954_v0  ;;  %v1464_v51 = vld [vmem:[%s15498_s2 + $0x80] sm:$0xff]  ;;  %v15642_v54 = vpack.c.bf16 %v1308_v50, %v1307_v49  ;;  %v2256_v60 = vld [vmem:[#allocation8 + $0xc] sm:$0x3] }
 0x162   : > { %946 = vst [vmem:[#allocation4 + $0x28] sm:$0xff] %v14954_v0  ;;  %947 = vst [vmem:[#allocation4 + $0x30] sm:$0xff] %v14954_v0  ;;  %v1472_v55 = vpack.c.bf16 %v1464_v51, %v1464_v51  ;;  %v2282_v62 = vand.u32 %v2256_v60, %v15493_v3  ;;  %v1621_v3 = vld [vmem:[%s15498_s2 + $0x79] sm:$0xff]  ;;  %v1622_v4 = vld [vmem:[%s15498_s2 + $0x81] sm:$0xff] }
 0x163   : > { %948 = vst [vmem:[#allocation4 + $0x38] sm:$0xff] %v14954_v0  ;;  %949 = vst [vmem:[#allocation4 + $0x40] sm:$0xff] %v14954_v0  ;;  %v1630_v5 = vpack.c.bf16 %v1622_v4, %v1622_v4  ;;  %v1936_v6 = vld [vmem:[%s15498_s2 + $0x90] sm:$0xff]  ;;  %v14419_v10 = vld [vmem:[%s18358_s27 + $0x8] sm:$0xff]  }
 0x164   : > { %950 = vst [vmem:[#allocation4 + $0x48] sm:$0xff] %v14954_v0  ;;  %951 = vst [vmem:[#allocation4 + $0x50] sm:$0xff] %v14954_v0  ;;  %v2247_v8 = vld [vmem:[%s15498_s2 + $0x92] sm:$0xff]  ;;  %v15745_v11 = vld [vmem:[%s15742_s30] sm:$0xff] }
 0x165   : > { %952 = vst [vmem:[#allocation4 + $0x58] sm:$0xff] %v14954_v0  ;;  %953 = vst [vmem:[#allocation4 + $0x60] sm:$0xff] %v14954_v0  ;;  %v2255_v9 = vpack.c.bf16 %v2247_v8, %v2247_v8  ;;  %v14420_v13 = vld [vmem:[%s18358_s27] sm:$0xff]   ;;  %v15751_v21 = vld [vmem:[#allocation4 + $0xd8] sm:$0xff] }
 0x166   : > { %954 = vst [vmem:[#allocation4 + $0x68] sm:$0xff] %v14954_v0  ;;  %955 = vst [vmem:[#allocation4 + $0x70] sm:$0xff] %v14954_v0  ;;  %v15755_v22 = vpack.c.bf16 %v15751_v21, %v15751_v21  ;;  %v2475_v23 = vld [vmem:[#allocation2 + $0x11] sm:$0xff]  ;;  %v15768_v41 = vld [vmem:[%s15742_s30 + $0x8] sm:$0xff] }
 0x167   : > { %956 = vst [vmem:[#allocation4 + $0x78] sm:$0xff] %v14954_v0  ;;  %957 = vst [vmem:[#allocation4 + $0x80] sm:$0xff] %v14954_v0  ;;  %13020 = vmatmul.mubr.msk.bf16.gmra.mrb[12].mxu1 %vm1058_vm2, %v1021_v15  ;;  %v2497_v25 = vpack.c.bf16 %v15745_v11, %v2475_v23  ;;  %v15771_v42 = vld [vmem:[%s15742_s30 + $0x10] sm:$0xff] }
 0x168   : > { %958 = vst [vmem:[#allocation4 + $0x88] sm:$0xff] %v14954_v0  ;;  %959 = vst [vmem:[#allocation4 + $0x90] sm:$0xff] %v14954_v0  ;;  %13043 = vmatprep.mubr.msk.bf16.mxu1 %vm1058_vm2, %v15508_v20  ;;  %v1311_v20 = vpack.c.bf16 %v1298_v29, %v1297_v28 }
 0x169   : > { %960 = vst [vmem:[#allocation4 + $0x98] sm:$0xff] %v14954_v0  ;;  %961 = vst [vmem:[#allocation4 + $0xa0] sm:$0xff] %v14954_v0 }
 0x16a   : > { %962 = vst [vmem:[#allocation4 + $0xa8] sm:$0xff] %v14954_v0  ;;  %963 = vst [vmem:[#allocation4 + $0xb0] sm:$0xff] %v14954_v0 }
 0x16b   : > { %964 = vst [vmem:[#allocation4 + $0xb8] sm:$0xff] %v14954_v0  ;;  %965 = vst [vmem:[#allocation4 + $0xc0] sm:$0xff] %v14954_v0 }
 0x16c   : > { %966 = vst [vmem:[#allocation4 + $0xc8] sm:$0xff] %v14954_v0  ;;  %967 = vst [vmem:[#allocation4 + $0xd0] sm:$0xff] %v14954_v0 }
 0x16d   : > { %971 = vst [vmem:[#allocation5] sm:$0xff] %v14954_v0  ;;  %972 = vst [vmem:[#allocation5 + $0x8] sm:$0xff] %v14954_v0 }
 0x16e   : > { %973 = vst [vmem:[#allocation5 + $0x10] sm:$0xff] %v14954_v0  ;;  %974 = vst [vmem:[#allocation5 + $0x18] sm:$0xff] %v14954_v0 }
 0x16f   : > { %975 = vst [vmem:[#allocation5 + $0x20] sm:$0xff] %v14954_v0  ;;  %976 = vst [vmem:[#allocation5 + $0x28] sm:$0xff] %v14954_v0  ;;  %13044 = vmatmul.mubr.msk.bf16.vlgmr.msra.gmra.mrb[16].mxu1 %vm1058_vm2, %v15515_v27 }
 0x170   : > { %977 = vst [vmem:[#allocation5 + $0x30] sm:$0xff] %v14954_v0  ;;  %978 = vst [vmem:[#allocation5 + $0x38] sm:$0xff] %v14954_v0  ;;  %13047 = vmatprep.mubr.msk.bf16.mxu1 %vm1058_vm2, %v15533_v38  ;;  %13078 = vmatpush3.bf16.msra.mxu1 %v1823_v16  ;;  %v2473_v16 = vld [vmem:[#allocation2 + $0x1] sm:$0xff] }
 0x171   : > { %979 = vst [vmem:[#allocation5 + $0x40] sm:$0xff] %v14954_v0  ;;  %980 = vst [vmem:[#allocation5 + $0x48] sm:$0xff] %v14954_v0  ;;  %13113 = vmatprep.subr.bf16.mxu1 %v2134_v32 }
 0x172   : > { %981 = vst [vmem:[#allocation5 + $0x50] sm:$0xff] %v14954_v0  ;;  %982 = vst [vmem:[#allocation5 + $0x58] sm:$0xff] %v14954_v0 }
 0x173   : > { %983 = vst [vmem:[#allocation6] sm:$0xff] %v14954_v0  ;;  %984 = vst [vmem:[#allocation6 + $0x8] sm:$0xff] %v14954_v0 }
 0x174   : > { %985 = vst [vmem:[#allocation6 + $0x10] sm:$0xff] %v14954_v0  ;;  %986 = vst [vmem:[#allocation6 + $0x18] sm:$0xff] %v14954_v0 }
 0x175   : > { %987 = vst [vmem:[#allocation6 + $0x20] sm:$0xff] %v14954_v0  ;;  %988 = vst [vmem:[#allocation6 + $0x28] sm:$0xff] %v14954_v0 }
 0x176   : > { %989 = vst [vmem:[#allocation6 + $0x30] sm:$0xff] %v14954_v0  ;;  %990 = vst [vmem:[#allocation6 + $0x38] sm:$0xff] %v14954_v0 }
 0x177   : > { %991 = vst [vmem:[#allocation6 + $0x40] sm:$0xff] %v14954_v0  ;;  %992 = vst [vmem:[#allocation6 + $0x48] sm:$0xff] %v14954_v0  ;;  %13048 = vmatmul.mubr.msk.bf16.gmra.mrb[20].mxu1 %vm1058_vm2, %v15535_v40 }
 0x178   : > { %995 = vst [vmem:[#allocation7] sm:$0xff] %v14954_v0  ;;  %996 = vst [vmem:[#allocation7 + $0x8] sm:$0xff] %v14954_v0  ;;  %13051 = vmatprep.mubr.msk.bf16.mxu1 %vm1058_vm2, %v15558_v58 }
 0x179   : > { %997 = vst [vmem:[#allocation7 + $0x10] sm:$0xff] %v14954_v0  ;;  %998 = vst [vmem:[#allocation7 + $0x18] sm:$0xff] %v14954_v0  ;;  %v1033_v0 = vld [vmem:[%s15498_s2 + $0x51] sm:$0xff] }
 0x17a   : > { %v15576_v12 = vpack.c.bf16 %v1034_v1, %v1033_v0  ;;  %v1774_v0 = vld [vmem:[%s15498_s2 + $0x82] sm:$0xff]  ;;  %v1629_v1 = vpack.c.bf16 %v1621_v3, %v15582_v17  ;;  %2393 = vst [vmem:[#allocation2 + $0x19] sm:$0xff] %v15745_v11  ;;  %18360 = vst [vmem:[#allocation41_spill] sm:$0xff] %v15751_v21 }
 0x17b   : > { %v1782_v2 = vpack.c.bf16 %v1774_v0, %v1774_v0  ;;  %v2474_v17 = vld [vmem:[#allocation2 + $0x9] sm:$0xff]  ;;  %18361 = vst [vmem:[#allocation42_spill] sm:$0xff] %v15755_v22  ;;  %2399 = vst [vmem:[#allocation2 + $0x31] sm:$0xff] %v15768_v41 }
 0x17c   : > { %12998 = vmatmul.mubr.msk.bf16.gmra.mrb[8].mxu0 %vm1058_vm2, %v15576_v12  ;;  %v2496_v19 = vpack.c.bf16 %v2474_v17, %v2473_v16  ;;  %2405 = vst [vmem:[#allocation2 + $0x49] sm:$0xff] %v15771_v42 }
 0x17d   : > { %13001 = vmatprep.mubr.msk.bf16.mxu0 %vm1058_vm2, %v15578_v14 }
 0x17f   : > { %13052 = vmatmul.mubr.msk.bf16.gmra.mrb[24].mxu1 %vm1058_vm2, %v15561_v61 }
 0x180   : > { %13055 = vmatprep.mubr.msk.bf16.mxu1 %vm1058_vm2, %v15627_v48 }
 0x184   : > { %13002 = vmatmul.mubr.msk.bf16.gmra.mrb[12].mxu0 %vm1058_vm2, %v1045_v24  ;;  %v15757_v24 = vld [vmem:[#allocation2 + $0x18] sm:$0xff] }
 0x185   : > { %13025 = vmatprep.mubr.msk.bf16.mxu0 %vm1058_vm2, %v1310_v26  ;;  %v2460_v26 = vpack.c.bf16 %v15757_v24, %v15751_v21 }
 0x187   : > { %13056 = vmatmul.mubr.msk.bf16.gmra.mrb[28].mxu1 %vm1058_vm2, %v1472_v55  ;;  %v15779_v55 = vld [vmem:[%s15742_s30 + $0x20] sm:$0xff] }
 0x188   : > { %13079 = vmatprep.mubr.msk.bf16.mxu1 %vm1058_vm2, %v1311_v20  ;;  %2417 = vst [vmem:[#allocation2 + $0x79] sm:$0xff] %v15779_v55 }
 0x18c   : > { %13026 = vmatmul.mubr.msk.bf16.vlgmr.msra.gmra.mrb[16].mxu0 %vm1058_vm2, %v1311_v20 }
 0x18d   : > { %13060 = vmatpush3.bf16.msra.mxu0 %v1661_v57  ;;  %13029 = vmatprep.mubr.msk.bf16.mxu0 %vm1058_vm2, %v15606_v33  ;;  %v1309_v57 = vld [vmem:[%s15498_s2 + $0x72] sm:$0xff] }
 0x18e   : > { %13095 = vmatprep.subr.bf16.mxu0 %v1975_v35  ;;  %v1317_v59 = vpack.c.bf16 %v1309_v57, %v1309_v57 }
 0x18f   : > { %13080 = vmatmul.mubr.msk.bf16.vlgmr.msra.gmra.mrb[32].mxu1 %vm1058_vm2, %v15606_v33 }
 0x190   : > { %13083 = vmatprep.mubr.msk.bf16.mxu1 %vm1058_vm2, %v15621_v44  ;;  %13114 = vmatpush3.bf16.msra.mxu1 %v2134_v32 }
 0x191   : > { %13149 = vmatprep.subr.bf16.mxu1 %v14419_v10 }
 0x194   : > { %13030 = vmatmul.mubr.msk.bf16.gmra.mrb[20].mxu0 %vm1058_vm2, %v15621_v44 }
 0x195   : > { %13033 = vmatprep.mubr.msk.bf16.mxu0 %vm1058_vm2, %v15623_v45 }
 0x197   : > { %13084 = vmatmul.mubr.msk.bf16.gmra.mrb[36].mxu1 %vm1058_vm2, %v15623_v45 }
 0x198   : > { %13087 = vmatprep.mubr.msk.bf16.mxu1 %vm1058_vm2, %v15640_v53 }
 0x19c   : > { %13034 = vmatmul.mubr.msk.bf16.gmra.mrb[24].mxu0 %vm1058_vm2, %v15640_v53 }
 0x19d   : > { %13037 = vmatprep.mubr.msk.bf16.mxu0 %vm1058_vm2, %v15642_v54 }
 0x19f   : > { %13088 = vmatmul.mubr.msk.bf16.gmra.mrb[40].mxu1 %vm1058_vm2, %v15642_v54 }
 0x1a4   : > { %13038 = vmatmul.mubr.msk.bf16.gmra.mrb[28].mxu0 %vm1058_vm2, %v1317_v59  ;;  %v14421_v59 = vld [vmem:[%s18358_s27 + $0x10] sm:$0xff]  }
 0x1a5   : > { %13061 = vmatprep.mubr.msk.bf16.mxu0 %vm1058_vm2, %v15527_v34  ;;  %v1773_v34 = vld [vmem:[%s15498_s2 + $0x7a] sm:$0xff] }
 0x1a6   : > { %v1781_v63 = vpack.c.bf16 %v1773_v34, %v1309_v57 }
 0x1a8   : > { %13091 = vmatprep.mubr.msk.bf16.mxu1 %vm1058_vm2, %v1781_v63 }
 0x1a9   : > { %13092 = vmatmul.mubr.msk.bf16.gmra.mrb[44].mxu1 %vm1058_vm2, %v1782_v2 }
 0x1aa   : > { %13115 = vmatprep.mubr.msk.bf16.mxu1 %vm1058_vm2, %v15531_v37 }
 0x1ac   : > { %13062 = vmatmul.mubr.msk.bf16.vlgmr.msra.gmra.mrb[32].mxu0 %vm1058_vm2, %v15531_v37  ;;  %v2087_v37 = vld [vmem:[%s15498_s2 + $0x89] sm:$0xff] }
 0x1ad   : > { %13096 = vmatpush3.bf16.msra.mxu0 %v1975_v35  ;;  %13065 = vmatprep.mubr.msk.bf16.mxu0 %vm1058_vm2, %v15551_v52 }
 0x1ae   : > { %13131 = vmatprep.subr.bf16.mxu0 %v2282_v62 }
 0x1b1   : > { %13116 = vmatmul.mubr.msk.bf16.vlgmr.msra.gmra.mrb[48].mxu1 %vm1058_vm2, %v15551_v52  ;;  %v1935_v52 = vld [vmem:[%s15498_s2 + $0x88] sm:$0xff] }
 0x1b2   : > { %13119 = vmatprep.mubr.msk.bf16.mxu1 %vm1058_vm2, %v15555_v56  ;;  %13150 = vmatpush3.bf16.msra.mxu1 %v14419_v10 }
 0x1b3   : > { %13201 = vmatprep.subr.bf16.mxu1 %v14421_v59 }
 0x1b4   : > { %13066 = vmatmul.mubr.msk.bf16.gmra.mrb[36].mxu0 %vm1058_vm2, %v15555_v56 }
 0x1b5   : > { %13069 = vmatprep.mubr.msk.bf16.mxu0 %vm1058_vm2, %v15576_v12 }
 0x1b9   : > { %13120 = vmatmul.mubr.msk.bf16.gmra.mrb[52].mxu1 %vm1058_vm2, %v15576_v12 }
 0x1ba   : > { %13123 = vmatprep.mubr.msk.bf16.mxu1 %vm1058_vm2, %v15578_v14 }
 0x1bc   : > { %13070 = vmatmul.mubr.msk.bf16.gmra.mrb[40].mxu0 %vm1058_vm2, %v15578_v14 }
 0x1bd   : > { %13073 = vmatprep.mubr.msk.bf16.mxu0 %vm1058_vm2, %v1629_v1 }
 0x1c1   : > { %13124 = vmatmul.mubr.msk.bf16.gmra.mrb[56].mxu1 %vm1058_vm2, %v1629_v1 }
 0x1c4   : > { %13074 = vmatmul.mubr.msk.bf16.gmra.mrb[44].mxu0 %vm1058_vm2, %v1630_v5  ;;  %v15787_v5 = vld [vmem:[%s15742_s30 + $0x28] sm:$0xff] }
 0x1c5   : > { %13097 = vmatprep.mubr.msk.bf16.mxu0 %vm1058_vm2, %v15515_v27  ;;  %v2095_v27 = vpack.c.bf16 %v2087_v37, %v1622_v4  ;;  %v15790_v37 = vld [vmem:[%s15742_s30 + $0x30] sm:$0xff]  ;;  %2423 = vst [vmem:[#allocation2 + $0x91] sm:$0xff] %v15787_v5 }
 0x1c6   : > { %2429 = vst [vmem:[#allocation2 + $0xa9] sm:$0xff] %v15790_v37 }
 0x1c7   : > { %13127 = vmatprep.mubr.msk.bf16.mxu1 %vm1058_vm2, %v2095_v27 }
 0x1cc   : > { %13098 = vmatmul.mubr.msk.bf16.vlgmr.msra.gmra.mrb[48].mxu0 %vm1058_vm2, %v15533_v38  ;;  %v2088_v38 = vld [vmem:[%s15498_s2 + $0x91] sm:$0xff] }
 0x1cd   : > { %13132 = vmatpush3.bf16.msra.mxu0 %v2282_v62  ;;  %13101 = vmatprep.mubr.msk.bf16.mxu0 %vm1058_vm2, %v15535_v40  ;;  %v1943_v40 = vpack.c.bf16 %v1935_v52, %v1464_v51  ;;  %v2096_v56 = vpack.c.bf16 %v2088_v38, %v2088_v38 }
 0x1ce   : > { %13175 = vmatprep.subr.bf16.mxu0 %v14420_v13 }
 0x1cf   : > { %13128 = vmatmul.mubr.msk.bf16.gmra.mrb[60].mxu1 %vm1058_vm2, %v2096_v56 }
 0x1d0   : > { %13151 = vmatprep.mubr.msk.bf16.mxu1 %vm2516_vm3, %v2496_v19 }
 0x1d4   : > { %13102 = vmatmul.mubr.msk.bf16.gmra.mrb[52].mxu0 %vm1058_vm2, %v15558_v58  ;;  %v1944_v58 = vpack.c.bf16 %v1936_v6, %v1936_v6 }
 0x1d5   : > { %13105 = vmatprep.mubr.msk.bf16.mxu0 %vm1058_vm2, %v15561_v61  ;;  %v2246_v61 = vld [vmem:[%s15498_s2 + $0x8a] sm:$0xff]  ;;  %s18477_s2 = sld [smem:[#allocation77_spill]] }
 0x1d6   : > { %v2254_v7 = vpack.c.bf16 %v2246_v61, %v1774_v0 }
 0x1d7   : > { %13152 = vmatmul.mubr.msk.bf16.vlgmr.msra.gmra.mrb[64].mxu1 %vm2516_vm3, %v2497_v25 }
 0x1d8   : > { %13202 = vmatpush3.bf16.msra.mxu1 %v14421_v59 }
 0x1dc   : > { %13106 = vmatmul.mubr.msk.bf16.gmra.mrb[56].mxu0 %vm1058_vm2, %v15627_v48 }
 0x1dd   : > { %13109 = vmatprep.mubr.msk.bf16.mxu0 %vm1058_vm2, %v1943_v40 }
 0x1e4   : > { %13110 = vmatmul.mubr.msk.bf16.gmra.mrb[60].mxu0 %vm1058_vm2, %v1944_v58 }
 0x1e5   : > { %13133 = vmatprep.mubr.msk.bf16.mxu0 %vm1058_vm2, %v15606_v33 }
 0x1ec   : > { %13134 = vmatmul.mubr.msk.bf16.vlgmr.msra.gmra.mrb[64].mxu0 %vm1058_vm2, %v15621_v44 }
 0x1ed   : > { %13137 = vmatprep.mubr.msk.bf16.mxu0 %vm1058_vm2, %v15623_v45  ;;  %13176 = vmatpush3.bf16.msra.mxu0 %v14420_v13 }
 0x1f4   : > { %13138 = vmatmul.mubr.msk.bf16.gmra.mrb[68].mxu0 %vm1058_vm2, %v15640_v53 }
 0x1f5   : > { %13141 = vmatprep.mubr.msk.bf16.mxu0 %vm1058_vm2, %v15642_v54  ;;  %v15776_v54 = vld [vmem:[%s15742_s30 + $0x18] sm:$0xff] }
 0x1f6   : > { %2411 = vst [vmem:[#allocation2 + $0x61] sm:$0xff] %v15776_v54 }
 0x1fc   : > { %13142 = vmatmul.mubr.msk.bf16.gmra.mrb[72].mxu0 %vm1058_vm2, %v1781_v63 }
 0x1fd   : > { %13145 = vmatprep.mubr.msk.bf16.mxu0 %vm1058_vm2, %v2254_v7 }
 0x204   : > { %13146 = vmatmul.mubr.msk.bf16.gmra.mrb[76].mxu0 %vm1058_vm2, %v2255_v9  ;;  %v15795_v9 = vld [vmem:[%s15742_s30 + $0x38] sm:$0xff]  ;;  %s15828_s30 = scalar_lea.vmem %s18243_s23, %s11861_s17  ;;  %s18479_s17 = sld [smem:[#allocation39_spill]] }
 0x205   : > { %13177 = vmatprep.mubr.msk.bf16.mxu0 %vm2516_vm3, %v15755_v22  ;;  %2435 = vst [vmem:[#allocation2 + $0xc1] sm:$0xff] %v15795_v9 }
 0x20a   : > { %p18481_p0 = scmp.ne.s32.totalorder %s18479_s17, 0 }
 0x20c   : > { %13178 = vmatmul.mubr.msk.bf16.vlgmr.msra.gmra.mrb[80].mxu0 %vm2516_vm3, %v2460_v26 }
 0x222   : > { %v13009_v12 = vpop.f32.mrb[0].mxu1 }
 0x223   : > { %v1240_v14 = vpop.f32.mrb[1].mxu1 }
 0x224   : > { %v13010_v15 = vpop.f32.mrb[2].mxu1  ;;  %v12991_v28 = vpop.f32.mrb[0].mxu0 }
 0x225   : > { %v1243_v18 = vpop.f32.mrb[3].mxu1  ;;  %v1248_v29 = vadd.f32 %v13009_v12, %v12991_v28  ;;  %v1124_v30 = vpop.f32.mrb[1].mxu0 }
 0x226   : > { %v1241_v31 = vadd.f32 %v1240_v14, %v1124_v30  ;;  %v12992_v32 = vpop.f32.mrb[2].mxu0 }
 0x227   : > { %v1127_v33 = vpop.f32.mrb[3].mxu0 }
 0x22a   : > { %v13013_v20 = vpop.f32.mrb[4].mxu1 }
 0x22b   : > { %v1254_v35 = vpop.f32.mrb[5].mxu1 }
 0x22c   : > { %v13014_v36 = vpop.f32.mrb[6].mxu1  ;;  %v12995_v43 = vpop.f32.mrb[4].mxu0 }
 0x22d   : > { %v1257_v39 = vpop.f32.mrb[7].mxu1  ;;  %v1262_v44 = vadd.f32 %v13013_v20, %v12995_v43  ;;  %v1138_v45 = vpop.f32.mrb[5].mxu0 }
 0x22e   : > { %v1255_v46 = vadd.f32 %v1254_v35, %v1138_v45  ;;  %v12996_v47 = vpop.f32.mrb[6].mxu0 }
 0x22f   : > { %v1141_v49 = vpop.f32.mrb[7].mxu0 }
 0x232   : > { %v13017_v48 = vpop.f32.mrb[8].mxu1 }
 0x233   : > { %v1268_v50 = vpop.f32.mrb[9].mxu1 }
 0x234   : > { %v13018_v51 = vpop.f32.mrb[10].mxu1 }
 0x235   : > { %v1271_v53 = vpop.f32.mrb[11].mxu1 }
 0x23a   : > { %v13021_v3 = vpop.f32.mrb[12].mxu1 }
 0x23b   : > { %v1282_v1 = vpop.f32.mrb[13].mxu1 }
 0x23c   : > { %v13022_v2 = vpop.f32.mrb[14].mxu1 }
 0x23d   : > { %v1285_v4 = vpop.f32.mrb[15].mxu1 }
 0x242   : > { %v13045_v6 = vpop.f32.mrb[16].mxu1 }
 0x243   : > { %v1545_v61 = vpop.f32.mrb[17].mxu1 }
 0x244   : > { %v13046_v7 = vpop.f32.mrb[18].mxu1 }
 0x245   : > { %v1548_v8 = vpop.f32.mrb[19].mxu1 }
 0x24a   : > { %v13049_v16 = vpop.f32.mrb[20].mxu1 }
 0x24b   : > { %v1559_v19 = vpop.f32.mrb[21].mxu1 }
 0x24c   : > { %v13050_v25 = vpop.f32.mrb[22].mxu1 }
 0x24d   : > { %v1562_v26 = vpop.f32.mrb[23].mxu1 }
 0x24f   : > { %v12999_v57 = vpop.f32.mrb[8].mxu0 }
 0x250   : > { %v1276_v60 = vadd.f32 %v13017_v48, %v12999_v57  ;;  %v1152_v62 = vpop.f32.mrb[9].mxu0 }
 0x251   : > { %v1269_v34 = vadd.f32 %v1268_v50, %v1152_v62  ;;  %v13000_v63 = vpop.f32.mrb[10].mxu0 }
 0x252   : > { %v1155_v0 = vpop.f32.mrb[11].mxu0  ;;  %v13053_v35 = vpop.f32.mrb[24].mxu1 }
 0x253   : > { %v1573_v43 = vpop.f32.mrb[25].mxu1 }
 0x254   : > { %v13054_v45 = vpop.f32.mrb[26].mxu1 }
 0x257   : > { %v13003_v27 = vpop.f32.mrb[12].mxu0 }
 0x258   : > { %v1290_v52 = vadd.f32 %v13021_v3, %v13003_v27  ;;  %v1166_v38 = vpop.f32.mrb[13].mxu0 }
 0x259   : > { %v1283_v40 = vadd.f32 %v1282_v1, %v1166_v38  ;;  %v13004_v56 = vpop.f32.mrb[14].mxu0 }
 0x25a   : > { %v1169_v58 = vpop.f32.mrb[15].mxu0 }
 0x25f   : > { %v13027_v10 = vpop.f32.mrb[16].mxu0 }
 0x260   : > { %v1443_v12 = vadd.f32 %v13027_v10, %v1248_v29  ;;  %v1387_v13 = vpop.f32.mrb[17].mxu0 }
 0x261   : > { %v1442_v14 = vadd.f32 %v1387_v13, %v1241_v31  ;;  %v13028_v15 = vpop.f32.mrb[18].mxu0  ;;  %v1576_v31 = vpop.f32.mrb[27].mxu1 }
 0x262   : > { %v1601_v17 = vadd.f32 %v13045_v6, %v1443_v12  ;;  %v1390_v18 = vpop.f32.mrb[19].mxu0  ;;  %v13057_v53 = vpop.f32.mrb[28].mxu1  ;;  %v15804_v6 = vld [vmem:[%s18358_s27 + $0x20] sm:$0xff]  }
 0x263   : > { %v1600_v23 = vadd.f32 %v1545_v61, %v1442_v14  ;;  %v1587_v62 = vpop.f32.mrb[29].mxu1  ;;  %13253 = vmatprep.subr.bf16.mxu1 %v15804_v6 }
 0x264   : > { %v13058_v63 = vpop.f32.mrb[30].mxu1 }
 0x265   : > { %v1590_v3 = vpop.f32.mrb[31].mxu1 }
 0x267   : > { %v13031_v28 = vpop.f32.mrb[20].mxu0 }
 0x268   : > { %v1445_v30 = vadd.f32 %v13031_v28, %v1262_v44  ;;  %v1401_v32 = vpop.f32.mrb[21].mxu0 }
 0x269   : > { %v1444_v20 = vadd.f32 %v1401_v32, %v1255_v46  ;;  %v13032_v33 = vpop.f32.mrb[22].mxu0  ;;  %v14422_v46 = vld [vmem:[%s18358_s27 + $0x18] sm:$0xff]  }
 0x26a   : > { %v1603_v36 = vadd.f32 %v13049_v16, %v1445_v30  ;;  %v1404_v39 = vpop.f32.mrb[23].mxu0  ;;  %13227 = vmatprep.subr.bf16.mxu0 %v14422_v46 }
 0x26b   : > { %v1602_v29 = vadd.f32 %v1559_v19, %v1444_v20  ;;  %13228 = vmatpush3.bf16.msra.mxu0 %v14422_v46 }
 0x26f   : > { %v13035_v47 = vpop.f32.mrb[24].mxu0 }
 0x270   : > { %v1447_v48 = vadd.f32 %v13035_v47, %v1276_v60  ;;  %v1415_v49 = vpop.f32.mrb[25].mxu0 }
 0x271   : > { %v1446_v50 = vadd.f32 %v1415_v49, %v1269_v34  ;;  %v13036_v51 = vpop.f32.mrb[26].mxu0  ;;  %v13081_v34 = vpop.f32.mrb[32].mxu1 }
 0x272   : > { %v1605_v57 = vadd.f32 %v13053_v35, %v1447_v48  ;;  %v1418_v59 = vpop.f32.mrb[27].mxu0  ;;  %v1859_v56 = vpop.f32.mrb[33].mxu1 }
 0x273   : > { %v1604_v44 = vadd.f32 %v1573_v43, %v1446_v50  ;;  %v13082_v61 = vpop.f32.mrb[34].mxu1 }
 0x274   : > { %v1862_v7 = vpop.f32.mrb[35].mxu1 }
 0x275   : > { %v13085_v13 = vpop.f32.mrb[36].mxu1 }
 0x276   : > { %v1873_v16 = vpop.f32.mrb[37].mxu1 }
 0x277   : > { %v13039_v0 = vpop.f32.mrb[28].mxu0  ;;  %v13086_v19 = vpop.f32.mrb[38].mxu1 }
 0x278   : > { %v1449_v1 = vadd.f32 %v13039_v0, %v1290_v52  ;;  %v1429_v2 = vpop.f32.mrb[29].mxu0  ;;  %v1876_v25 = vpop.f32.mrb[39].mxu1 }
 0x279   : > { %v1448_v60 = vadd.f32 %v1429_v2, %v1283_v40  ;;  %v13040_v4 = vpop.f32.mrb[30].mxu0  ;;  %v13089_v33 = vpop.f32.mrb[40].mxu1 }
 0x27a   : > { %v1607_v27 = vadd.f32 %v13057_v53, %v1449_v1  ;;  %v1432_v38 = vpop.f32.mrb[31].mxu0  ;;  %v1887_v43 = vpop.f32.mrb[41].mxu1 }
 0x27b   : > { %v1606_v58 = vadd.f32 %v1587_v62, %v1448_v60  ;;  %v13090_v45 = vpop.f32.mrb[42].mxu1 }
 0x27f   : > { %v13063_v8 = vpop.f32.mrb[32].mxu0 }
 0x280   : > { %v1753_v10 = vadd.f32 %v13063_v8, %v1601_v17  ;;  %v1697_v52 = vpop.f32.mrb[33].mxu0 }
 0x281   : > { %v1752_v12 = vadd.f32 %v1697_v52, %v1600_v23  ;;  %v13064_v40 = vpop.f32.mrb[34].mxu0  ;;  %v1890_v23 = vpop.f32.mrb[43].mxu1 }
 0x282   : > { %v1915_v14 = vadd.f32 %v13081_v34, %v1753_v10  ;;  %v1700_v15 = vpop.f32.mrb[35].mxu0  ;;  %v13093_v51 = vpop.f32.mrb[44].mxu1 }
 0x283   : > { %v1914_v18 = vadd.f32 %v1859_v56, %v1752_v12  ;;  %v1901_v62 = vpop.f32.mrb[45].mxu1 }
 0x284   : > { %v13094_v63 = vpop.f32.mrb[46].mxu1 }
 0x287   : > { %v13067_v26 = vpop.f32.mrb[36].mxu0 }
 0x288   : > { %v1755_v28 = vadd.f32 %v13067_v26, %v1603_v36  ;;  %v1711_v30 = vpop.f32.mrb[37].mxu0 }
 0x289   : > { %v1754_v32 = vadd.f32 %v1711_v30, %v1602_v29  ;;  %v13068_v20 = vpop.f32.mrb[38].mxu0  ;;  %v1904_v29 = vpop.f32.mrb[47].mxu1 }
 0x28a   : > { %v1917_v35 = vadd.f32 %v13085_v13, %v1755_v28  ;;  %v1714_v39 = vpop.f32.mrb[39].mxu0  ;;  %v13117_v60 = vpop.f32.mrb[48].mxu1 }
 0x28b   : > { %v1916_v17 = vadd.f32 %v1873_v16, %v1754_v32  ;;  %v2170_v38 = vpop.f32.mrb[49].mxu1 }
 0x28c   : > { %v13118_v56 = vpop.f32.mrb[50].mxu1 }
 0x28f   : > { %v13071_v31 = vpop.f32.mrb[40].mxu0 }
 0x290   : > { %v1757_v47 = vadd.f32 %v13071_v31, %v1605_v57  ;;  %v1725_v48 = vpop.f32.mrb[41].mxu0 }
 0x291   : > { %v1756_v49 = vadd.f32 %v1725_v48, %v1604_v44  ;;  %v13072_v50 = vpop.f32.mrb[42].mxu0  ;;  %v2173_v44 = vpop.f32.mrb[51].mxu1 }
 0x292   : > { %v1919_v53 = vadd.f32 %v13089_v33, %v1757_v47  ;;  %v1728_v59 = vpop.f32.mrb[43].mxu0  ;;  %v13121_v12 = vpop.f32.mrb[52].mxu1 }
 0x293   : > { %v1918_v36 = vadd.f32 %v1887_v43, %v1756_v49  ;;  %v2184_v15 = vpop.f32.mrb[53].mxu1 }
 0x294   : > { %v13122_v16 = vpop.f32.mrb[54].mxu1 }
 0x295   : > { %v2187_v19 = vpop.f32.mrb[55].mxu1 }
 0x296   : > { %v13125_v30 = vpop.f32.mrb[56].mxu1 }
 0x297   : > { %v13075_v46 = vpop.f32.mrb[44].mxu0  ;;  %v2198_v33 = vpop.f32.mrb[57].mxu1 }
 0x298   : > { %v1759_v3 = vadd.f32 %v13075_v46, %v1607_v27  ;;  %v1739_v0 = vpop.f32.mrb[45].mxu0  ;;  %v13126_v43 = vpop.f32.mrb[58].mxu1 }
 0x299   : > { %v1758_v1 = vadd.f32 %v1739_v0, %v1606_v58  ;;  %v13076_v2 = vpop.f32.mrb[46].mxu0  ;;  %v15810_v58 = vld [vmem:[%s18358_s27 + $0x28] sm:$0xff]   ;;  %v2201_v45 = vpop.f32.mrb[59].mxu1 }
 0x29a   : > { %v1921_v4 = vadd.f32 %v13093_v51, %v1759_v3  ;;  %v1742_v34 = vpop.f32.mrb[47].mxu0  ;;  %13279 = vmatprep.subr.bf16.mxu0 %v15810_v58  ;;  %v15872_v43 = vld [vmem:[#allocation2 + $0x48] sm:$0xff] }
 0x29b   : > { %v1920_v57 = vadd.f32 %v1901_v62, %v1758_v1  ;;  %v15820_v34 = vld [vmem:[%s18362_s11] ss:$0 sm:$0xff]  ;;  %s14856_s11 = sshll.u32 %s14958_s5, 4  ;;  %s14857_s11 = int_to_ptr.vmem [resolvable:$false] %s14856_s11 }
 0x29c   : > { %s14858_s26 = scalar_lea.vmem %s14857_s11, 32 }
 0x29f   : > { %v13099_v61 = vpop.f32.mrb[48].mxu0 }
 0x2a0   : > { %v2067_v7 = vadd.f32 %v13099_v61, %v1915_v14  ;;  %v2011_v8 = vpop.f32.mrb[49].mxu0 }
 0x2a1   : > { %v2066_v10 = vadd.f32 %v2011_v8, %v1914_v18  ;;  %v13100_v52 = vpop.f32.mrb[50].mxu0 }
 0x2a2   : > { %v2226_v40 = vadd.f32 %v13117_v60, %v2067_v7  ;;  %v2014_v13 = vpop.f32.mrb[51].mxu0  ;;  %v13129_v50 = vpop.f32.mrb[60].mxu1 }
 0x2a3   : > { %v2225_v27 = vadd.f32 %v2170_v38, %v2066_v10  ;;  %v2212_v62 = vpop.f32.mrb[61].mxu1  ;;  %v15833_v10 = vld [vmem:[#allocation2 + $0x29] sm:$0xff] }
 0x2a4   : > { %v13130_v63 = vpop.f32.mrb[62].mxu1 }
 0x2a7   : > { %v13103_v25 = vpop.f32.mrb[52].mxu0 }
 0x2a8   : > { %v2069_v26 = vadd.f32 %v13103_v25, %v1917_v35  ;;  %v2025_v14 = vpop.f32.mrb[53].mxu0 }
 0x2a9   : > { %v2068_v28 = vadd.f32 %v2025_v14, %v1916_v17  ;;  %v13104_v18 = vpop.f32.mrb[54].mxu0  ;;  %v2215_v17 = vpop.f32.mrb[63].mxu1 }
 0x2aa   : > { %v2228_v32 = vadd.f32 %v13121_v12, %v2069_v26  ;;  %v2028_v20 = vpop.f32.mrb[55].mxu0  ;;  %v15840_v12 = vld [vmem:[#allocation2 + $0x41] sm:$0xff] }
 0x2ab   : > { %v2227_v39 = vadd.f32 %v2184_v15, %v2068_v28  ;;  %v15849_v15 = vpack.c.bf16 %v15771_v42, %v15840_v12 }
 0x2ad   : > { %18363 = vst [vmem:[#allocation43_spill] sm:$0xff] %v15849_v15 }
 0x2af   : > { %v13107_v23 = vpop.f32.mrb[56].mxu0 }
 0x2b0   : > { %v2071_v31 = vadd.f32 %v13107_v23, %v1919_v53  ;;  %v2039_v47 = vpop.f32.mrb[57].mxu0 }
 0x2b1   : > { %v2070_v48 = vadd.f32 %v2039_v47, %v1918_v36  ;;  %v13108_v49 = vpop.f32.mrb[58].mxu0 }
 0x2b2   : > { %v2230_v51 = vadd.f32 %v13125_v30, %v2071_v31  ;;  %v2042_v59 = vpop.f32.mrb[59].mxu0 }
 0x2b3   : > { %v2229_v35 = vadd.f32 %v2198_v33, %v2070_v48  ;;  %v15868_v33 = vld [vmem:[#allocation2 + $0x30] sm:$0xff] }
 0x2b7   : > { %v13111_v29 = vpop.f32.mrb[60].mxu0 }
 0x2b8   : > { %v2073_v46 = vadd.f32 %v13111_v29, %v1921_v4  ;;  %v2053_v3 = vpop.f32.mrb[61].mxu0 }
 0x2b9   : > { %v2072_v0 = vadd.f32 %v2053_v3, %v1920_v57  ;;  %v13112_v1 = vpop.f32.mrb[62].mxu0 }
 0x2ba   : > { %v15813_v2 = vadd.f32 %v13129_v50, %v2073_v46  ;;  %v2056_v60 = vpop.f32.mrb[63].mxu0 }
 0x2bb   : > { %v15815_v53 = vadd.f32 %v2212_v62, %v2072_v0  ;;  %v15919_v60 = vld [vmem:[#allocation2 + $0x60] sm:$0xff] }
 0x2bf   : > { %v13135_v36 = vpop.f32.mrb[64].mxu0 }
 0x2c0   : > { %v2374_v38 = vadd.f32 %v13135_v36, %v2226_v40  ;;  %v2318_v56 = vpop.f32.mrb[65].mxu0  ;;  %v15921_v36 = vld [vmem:[#allocation2 + $0x71] sm:$0xff] }
 0x2c1   : > { %v2373_v44 = vadd.f32 %v2318_v56, %v2225_v27  ;;  %v13136_v61 = vpop.f32.mrb[66].mxu0 }
 0x2c2   : > { %v2394_v4 = vadd.f32 %v15820_v34, %v2374_v38  ;;  %v2321_v7 = vpop.f32.mrb[67].mxu0  ;;  %v15923_v38 = vld [vmem:[#allocation2 + $0x89] sm:$0xff] }
 0x2c3   : > { %v2388_v57 = vadd.f32 %v15820_v34, %v2373_v44 }
 0x2c4   : > { %v15831_v8 = vmax.f32 %v2394_v4, 0.0  ;;  %v15936_v4 = vpack.c.bf16 %v15779_v55, %v15921_v36 }
 0x2c5   : > { %v15835_v52 = vmax.f32 %v2388_v57, 0.0 }
 0x2c6   : > { %2396 = vst [vmem:[%s15828_s30 + $0x8] sm:$0xff] %v15831_v8  ;;  %2397 = vst [vmem:[#allocation2 + $0x39] sm:$0xff] %v15831_v8  ;;  %v15853_v19 = vpack.c.bf16 %v15831_v8, %v15768_v41 }
 0x2c7   : > { %2390 = vst [vmem:[%s15828_s30] sm:$0xff] %v15835_v52  ;;  %2391 = vst [vmem:[#allocation2 + $0x21] sm:$0xff] %v15835_v52  ;;  %v13139_v40 = vpop.f32.mrb[68].mxu0  ;;  %v2498_v13 = vpack.c.bf16 %v15833_v10, %v15835_v52 }
 0x2c8   : > { %v2376_v27 = vadd.f32 %v13139_v40, %v2228_v32  ;;  %v2332_v16 = vpop.f32.mrb[69].mxu0  ;;  %18364 = vst [vmem:[#allocation44_spill] sm:$0xff] %v15853_v19  ;;  %v15864_v32 = vld [vmem:[#allocation2 + $0x59] sm:$0xff]  ;;  %18369 = vst [vmem:[#allocation49_spill] sm:$0xff] %v15936_v4 }
 0x2c9   : > { %v2375_v25 = vadd.f32 %v2332_v16, %v2227_v39  ;;  %v13140_v26 = vpop.f32.mrb[70].mxu0  ;;  %13155 = vmatprep.mubr.msk.bf16.mxu1 %vm2516_vm3, %v2498_v13 }
 0x2ca   : > { %v2406_v14 = vadd.f32 %v15820_v34, %v2376_v27  ;;  %v2335_v28 = vpop.f32.mrb[71].mxu0  ;;  %13156 = vmatmul.mubr.msk.bf16.gmra.mrb[68].mxu1 %vm2516_vm3, %v15853_v19 }
 0x2cb   : > { %v2400_v18 = vadd.f32 %v15820_v34, %v2375_v25  ;;  %13159 = vmatprep.mubr.msk.bf16.mxu1 %vm2516_vm3, %v15849_v15 }
 0x2cc   : > { %v15862_v30 = vmax.f32 %v2406_v14, 0.0 }
 0x2cd   : > { %v15866_v20 = vmax.f32 %v2400_v18, 0.0  ;;  %v15870_v39 = vld [vmem:[#allocation2 + $0x38] sm:$0xff]  ;;  %v15881_v31 = vld [vmem:[#allocation2 + $0x40] sm:$0xff] }
 0x2ce   : > { %2408 = vst [vmem:[%s15828_s30 + $0x18] sm:$0xff] %v15862_v30  ;;  %2409 = vst [vmem:[#allocation2 + $0x69] sm:$0xff] %v15862_v30  ;;  %v15877_v45 = vld [vmem:[#allocation2 + $0x20] sm:$0xff]  ;;  %v15879_v23 = vld [vmem:[#allocation2 + $0x28] sm:$0xff]  ;;  %v15894_v62 = vpack.c.bf16 %v15870_v39, %v15868_v33  ;;  %v15899_v17 = vpack.c.bf16 %v15872_v43, %v15881_v31  ;;  %v15903_v46 = vpack.c.bf16 %v15862_v30, %v15776_v54 }
 0x2cf   : > { %2402 = vst [vmem:[%s15828_s30 + $0x10] sm:$0xff] %v15866_v20  ;;  %2403 = vst [vmem:[#allocation2 + $0x51] sm:$0xff] %v15866_v20  ;;  %v13143_v47 = vpop.f32.mrb[72].mxu0  ;;  %v2461_v48 = vpack.c.bf16 %v15879_v23, %v15877_v45  ;;  %v15890_v49 = vpack.c.bf16 %v15864_v32, %v15866_v20  ;;  %v16059_v15 = vld [vmem:[#allocation2 + $0x22] sm:$0xff] }
 0x2d0   : > { %v2378_v50 = vadd.f32 %v13143_v47, %v2230_v51  ;;  %v2346_v59 = vpop.f32.mrb[73].mxu0  ;;  %18366 = vst [vmem:[#allocation46_spill] sm:$0xff] %v15894_v62  ;;  %18367 = vst [vmem:[#allocation47_spill] sm:$0xff] %v15899_v17 }
 0x2d1   : > { %18365 = vst [vmem:[#allocation45_spill] sm:$0xff] %v15890_v49  ;;  %v2377_v63 = vadd.f32 %v2346_v59, %v2229_v35  ;;  %13181 = vmatprep.mubr.msk.bf16.mxu0 %vm2516_vm3, %v2461_v48  ;;  %v13144_v29 = vpop.f32.mrb[74].mxu0  ;;  %18368 = vst [vmem:[#allocation48_spill] sm:$0xff] %v15903_v46  ;;  %v15971_v48 = vld [vmem:[#allocation2 + $0x78] sm:$0xff]  ;;  %v15980_v59 = vld [vmem:[#allocation2 + $0xa1] sm:$0xff] }
 0x2d2   : > { %v2418_v51 = vadd.f32 %v15820_v34, %v2378_v50  ;;  %13182 = vmatmul.mubr.msk.bf16.gmra.mrb[84].mxu0 %vm2516_vm3, %v15894_v62  ;;  %v2349_v3 = vpop.f32.mrb[75].mxu0  ;;  %13160 = vmatmul.mubr.msk.bf16.gmra.mrb[72].mxu1 %vm2516_vm3, %v15890_v49  ;;  %v16057_v49 = vld [vmem:[#allocation2 + $0x1a] sm:$0xff] }
 0x2d3   : > { %v2412_v35 = vadd.f32 %v15820_v34, %v2377_v63  ;;  %13185 = vmatprep.mubr.msk.bf16.mxu0 %vm2516_vm3, %v15899_v17  ;;  %13163 = vmatprep.mubr.msk.bf16.mxu1 %vm2516_vm3, %v15903_v46  ;;  %v15987_v63 = vpack.c.bf16 %v15790_v37, %v15980_v59 }
 0x2d4   : > { %v15915_v0 = vmax.f32 %v2418_v51, 0.0 }
 0x2d5   : > { %v15917_v1 = vmax.f32 %v2412_v35, 0.0  ;;  %v15932_v61 = vld [vmem:[#allocation2 + $0x68] sm:$0xff]  ;;  %v15969_v47 = vld [vmem:[#allocation2 + $0x70] sm:$0xff]  ;;  %18373 = vst [vmem:[#allocation53_spill] sm:$0xff] %v15987_v63 }
 0x2d6   : > { %2420 = vst [vmem:[%s15828_s30 + $0x28] sm:$0xff] %v15915_v0  ;;  %2421 = vst [vmem:[#allocation2 + $0x99] sm:$0xff] %v15915_v0  ;;  %v15928_v56 = vld [vmem:[#allocation2 + $0x50] sm:$0xff]  ;;  %v15930_v44 = vld [vmem:[#allocation2 + $0x58] sm:$0xff]  ;;  %v15949_v16 = vpack.c.bf16 %v15932_v61, %v15919_v60  ;;  %v15991_v29 = vpack.c.bf16 %v15971_v48, %v15969_v47  ;;  %v15995_v51 = vpack.c.bf16 %v15915_v0, %v15787_v5 }
 0x2d7   : > { %2414 = vst [vmem:[%s15828_s30 + $0x20] sm:$0xff] %v15917_v1  ;;  %2415 = vst [vmem:[#allocation2 + $0x81] sm:$0xff] %v15917_v1  ;;  %v13147_v7 = vpop.f32.mrb[76].mxu0  ;;  %v15943_v57 = vpack.c.bf16 %v15930_v44, %v15928_v56  ;;  %v15953_v26 = vpack.c.bf16 %v15923_v38, %v15917_v1  ;;  %v16007_v35 = vld [vmem:[#allocation2 + $0x90] sm:$0xff] }
 0x2d8   : > { %v2380_v40 = vadd.f32 %v13147_v7, %v15813_v2  ;;  %v2360_v13 = vpop.f32.mrb[77].mxu0  ;;  %18371 = vst [vmem:[#allocation51_spill] sm:$0xff] %v15949_v16  ;;  %18374 = vst [vmem:[#allocation54_spill] sm:$0xff] %v15991_v29  ;;  %v16011_v7 = vld [vmem:[#allocation2 + $0xc0] sm:$0xff] }
 0x2d9   : > { %18370 = vst [vmem:[#allocation50_spill] sm:$0xff] %v15943_v57  ;;  %v2379_v27 = vadd.f32 %v2360_v13, %v15815_v53  ;;  %v13148_v25 = vpop.f32.mrb[78].mxu0  ;;  %18372 = vst [vmem:[#allocation52_spill] sm:$0xff] %v15953_v26  ;;  %v16015_v13 = vld [vmem:[#allocation2 + $0xa8] sm:$0xff] }
 0x2da   : > { %v2430_v14 = vadd.f32 %v15820_v34, %v2380_v40  ;;  %13186 = vmatmul.mubr.msk.bf16.gmra.mrb[88].mxu0 %vm2516_vm3, %v15943_v57  ;;  %v2363_v2 = vpop.f32.mrb[79].mxu0  ;;  %13164 = vmatmul.mubr.msk.bf16.gmra.mrb[76].mxu1 %vm2516_vm3, %v15936_v4  ;;  %18375 = vst [vmem:[#allocation55_spill] sm:$0xff] %v15995_v51  ;;  %v2838_v25 = vld [vmem:[#allocation2 + $0xa] sm:$0xff] }
 0x2db   : > { %v2424_v53 = vadd.f32 %v15820_v34, %v2379_v27  ;;  %13189 = vmatprep.mubr.msk.bf16.mxu0 %vm2516_vm3, %v15949_v16  ;;  %13167 = vmatprep.mubr.msk.bf16.mxu1 %vm2516_vm3, %v15953_v26  ;;  %v2837_v27 = vld [vmem:[#allocation2 + $0x2] sm:$0xff]  ;;  %v16061_v57 = vld [vmem:[#allocation2 + $0x2a] sm:$0xff] }
 0x2dc   : > { %v15965_v28 = vmax.f32 %v2430_v14, 0.0  ;;  %v16017_v14 = vld [vmem:[#allocation2 + $0xba] sm:$0xff]  ;;  %v2860_v4 = vpack.c.bf16 %v2838_v25, %v2837_v27  ;;  %v2839_v25 = vld [vmem:[#allocation2 + $0x12] sm:$0xff] }
 0x2dd   : > { %v15967_v18 = vmax.f32 %v2424_v53, 0.0  ;;  %v16013_v40 = vld [vmem:[#allocation2 + $0x98] sm:$0xff]  ;;  %v16019_v2 = vld [vmem:[#allocation2 + $0xa0] sm:$0xff]  ;;  %v2861_v26 = vpack.c.bf16 %v16057_v49, %v2839_v25 }
 0x2de   : > { %2432 = vst [vmem:[%s15828_s30 + $0x38] sm:$0xff] %v15965_v28  ;;  %2433 = vst [vmem:[#allocation2 + $0xc9] sm:$0xff] %v15965_v28  ;;  %v15976_v50 = vld [vmem:[#allocation2 + $0x80] sm:$0xff]  ;;  %v15978_v34 = vld [vmem:[#allocation2 + $0x88] sm:$0xff]  ;;  %v16037_v46 = vpack.c.bf16 %v16013_v40, %v16007_v35  ;;  %v16045_v16 = vpack.c.bf16 %v16015_v13, %v16019_v2 }
 0x2df   : > { %2426 = vst [vmem:[%s15828_s30 + $0x30] sm:$0xff] %v15967_v18  ;;  %2427 = vst [vmem:[#allocation2 + $0xb1] sm:$0xff] %v15967_v18  ;;  %v15999_v3 = vpack.c.bf16 %v15978_v34, %v15976_v50  ;;  %v16080_v25 = vld [vmem:[#allocation2 + $0x32] sm:$0xff]  ;;  %s18419_s30 = sld [smem:[#allocation72_spill]] }
 0x2e0   : > { %18379 = vst [vmem:[#allocation59_spill] sm:$0xff] %v16037_v46  ;;  %18380 = vst [vmem:[#allocation60_spill] sm:$0xff] %v16045_v16 }
 0x2e1   : > { %18376 = vst [vmem:[#allocation56_spill] sm:$0xff] %v15999_v3 }
 0x2e2   : > { %13190 = vmatmul.mubr.msk.bf16.gmra.mrb[92].mxu0 %vm2516_vm3, %v15991_v29  ;;  %13168 = vmatmul.mubr.msk.bf16.gmra.mrb[80].mxu1 %vm2516_vm3, %v15995_v51  ;;  %v2507_v29 = vpack.c.bf16 %v15967_v18, %v15967_v18 }
 0x2e3   : > { %13193 = vmatprep.mubr.msk.bf16.mxu0 %vm2516_vm3, %v15999_v3  ;;  %13171 = vmatprep.mubr.msk.bf16.mxu1 %vm2516_vm3, %v15987_v63 }
 0x2e5   : > { %v16021_v53 = vld [vmem:[#allocation2 + $0xc8] sm:$0xff] }
 0x2e6   : > { %v16023_v22 = vld [vmem:[#allocation2 + $0xc2] sm:$0xff]  ;;  %v16025_v21 = vld [vmem:[#allocation2 + $0xb0] sm:$0xff]  ;;  %v16027_v51 = vld [vmem:[#allocation2 + $0xb8] sm:$0xff] }
 0x2e7   : > { %18377 = vst [vmem:[#allocation57_spill] sm:$0xff] %v16023_v22  ;;  %v16029_v63 = vld [vmem:[#allocation2 + $0xca] sm:$0xff]  ;;  %v16033_v3 = vld [vmem:[#allocation2 + $0xb2] sm:$0xff]  ;;  %v2470_v27 = vpack.c.bf16 %v16025_v21, %v16025_v21 }
 0x2e8   : > { %18378 = vst [vmem:[#allocation58_spill] sm:$0xff] %v16029_v63 }
 0x2ea   : > { %13194 = vmatmul.mubr.msk.bf16.gmra.mrb[96].mxu0 %vm2516_vm3, %v16037_v46  ;;  %13172 = vmatmul.mubr.msk.bf16.gmra.mrb[84].mxu1 %vm2516_vm3, %v2507_v29  ;;  %v3076_v29 = vpack.c.bf16 %v15877_v45, %v15757_v24  ;;  %v16082_v24 = vld [vmem:[#allocation2 + $0x3a] sm:$0xff]  ;;  %v16085_v45 = vld [vmem:[#allocation2 + $0x4a] sm:$0xff]  ;;  %v3077_v46 = vpack.c.bf16 %v15868_v33, %v15879_v23  ;;  %v16113_v33 = vld [vmem:[#allocation2 + $0x52] sm:$0xff] }
 0x2eb   : > { %13197 = vmatprep.mubr.msk.bf16.mxu0 %vm2516_vm3, %v16045_v16  ;;  %13203 = vmatprep.mubr.msk.bf16.mxu1 %vm2516_vm3, %v2860_v4  ;;  %v2862_v16 = vpack.c.bf16 %v16061_v57, %v16059_v15  ;;  %v16073_v4 = vld [vmem:[%s18358_s27 + $0x30] sm:$0xff]   ;;  %v16118_v23 = vld [vmem:[#allocation2 + $0x62] sm:$0xff] }
 0x2f2   : > { %13198 = vmatmul.mubr.msk.bf16.gmra.mrb[100].mxu0 %vm2516_vm3, %v2470_v27  ;;  %13204 = vmatmul.mubr.msk.bf16.vlgmr.msra.gmra.mrb[88].mxu1 %vm2516_vm3, %v2861_v26  ;;  %v16091_v26 = vpack.c.bf16 %v16082_v24, %v16080_v25  ;;  %v16093_v27 = vld [vmem:[#allocation2 + $0x42] sm:$0xff] }
 0x2f3   : > { %13229 = vmatprep.mubr.msk.bf16.mxu0 %vm2516_vm3, %v3076_v29  ;;  %13207 = vmatprep.mubr.msk.bf16.mxu1 %vm2516_vm3, %v2862_v16  ;;  %v16099_v16 = vpack.c.bf16 %v16085_v45, %v16093_v27  ;;  %v16104_v29 = vld [vmem:[%s18358_s27 + $0x38] sm:$0xff]  }
 0x2f4   : > { %13254 = vmatpush3.bf16.msra.mxu1 %v15804_v6  ;;  %18381 = vst [vmem:[#allocation61_spill] sm:$0xff] %v16091_v26  ;;  %v3078_v6 = vpack.c.bf16 %v15881_v31, %v15870_v39  ;;  %v16115_v39 = vld [vmem:[#allocation2 + $0x5a] sm:$0xff]  ;;  %v16120_v31 = vld [vmem:[#allocation2 + $0x6a] sm:$0xff] }
 0x2f5   : > { %13305 = vmatprep.subr.bf16.mxu1 %v16073_v4  ;;  %18382 = vst [vmem:[#allocation62_spill] sm:$0xff] %v16099_v16 }
 0x2fa   : > { %13230 = vmatmul.mubr.msk.bf16.vlgmr.msra.gmra.mrb[104].mxu0 %vm2516_vm3, %v3077_v46  ;;  %13208 = vmatmul.mubr.msk.bf16.gmra.mrb[92].mxu1 %vm2516_vm3, %v16091_v26  ;;  %v3079_v46 = vpack.c.bf16 %v15928_v56, %v15872_v43  ;;  %v16140_v43 = vld [vmem:[#allocation2 + $0x7a] sm:$0xff]  ;;  %v16142_v56 = vld [vmem:[#allocation2 + $0x82] sm:$0xff]  ;;  %v16144_v26 = vld [vmem:[#allocation2 + $0x8a] sm:$0xff] }
 0x2fb   : > { %13233 = vmatprep.mubr.msk.bf16.mxu0 %vm2516_vm3, %v3078_v6  ;;  %13211 = vmatprep.mubr.msk.bf16.mxu1 %vm2516_vm3, %v16099_v16  ;;  %v16126_v6 = vpack.c.bf16 %v16115_v39, %v16113_v33  ;;  %v16132_v16 = vpack.c.bf16 %v16120_v31, %v16118_v23 }
 0x2fc   : > { %13280 = vmatpush3.bf16.msra.mxu0 %v15810_v58  ;;  %v3080_v58 = vpack.c.bf16 %v15919_v60, %v15930_v44  ;;  %v16146_v60 = vld [vmem:[#allocation2 + $0x72] sm:$0xff]  ;;  %v3081_v44 = vpack.c.bf16 %v15969_v47, %v15932_v61  ;;  %v16168_v47 = vld [vmem:[#allocation2 + $0x9a] sm:$0xff] }
 0x2fd   : > { %13331 = vmatprep.subr.bf16.mxu0 %v16104_v29  ;;  %18383 = vst [vmem:[#allocation63_spill] sm:$0xff] %v16126_v6  ;;  %18384 = vst [vmem:[#allocation64_spill] sm:$0xff] %v16132_v16  ;;  %v16166_v61 = vld [vmem:[#allocation2 + $0x92] sm:$0xff] }
 0x302   : > { %13234 = vmatmul.mubr.msk.bf16.gmra.mrb[108].mxu0 %vm2516_vm3, %v3079_v46  ;;  %13212 = vmatmul.mubr.msk.bf16.gmra.mrb[96].mxu1 %vm2516_vm3, %v16126_v6  ;;  %v16152_v46 = vpack.c.bf16 %v16140_v43, %v16146_v60  ;;  %v16170_v6 = vld [vmem:[#allocation2 + $0xaa] sm:$0xff] }
 0x303   : > { %13237 = vmatprep.mubr.msk.bf16.mxu0 %vm2516_vm3, %v3080_v58  ;;  %13215 = vmatprep.mubr.msk.bf16.mxu1 %vm2516_vm3, %v16132_v16  ;;  %v3082_v58 = vpack.c.bf16 %v15976_v50, %v15971_v48  ;;  %v16158_v16 = vpack.c.bf16 %v16144_v26, %v16142_v56  ;;  %v3083_v48 = vpack.c.bf16 %v16007_v35, %v15978_v34  ;;  %v13179_v34 = vpop.f32.mrb[80].mxu0 }
 0x304   : > { %18385 = vst [vmem:[#allocation65_spill] sm:$0xff] %v16152_v46  ;;  %v16176_v50 = vpack.c.bf16 %v16168_v47, %v16166_v61  ;;  %v2750_v19 = vpop.f32.mrb[81].mxu0  ;;  %v3086_v34 = vpack.c.bf16 %v16011_v7, %v16027_v51 }
 0x305   : > { %18386 = vst [vmem:[#allocation66_spill] sm:$0xff] %v16158_v16 }
 0x30a   : > { %13238 = vmatmul.mubr.msk.bf16.gmra.mrb[112].mxu0 %vm2516_vm3, %v3081_v44  ;;  %13216 = vmatmul.mubr.msk.bf16.gmra.mrb[100].mxu1 %vm2516_vm3, %v16152_v46  ;;  %v16178_v44 = vld [vmem:[#allocation2 + $0xa2] sm:$0xff]  ;;  %v13153_v46 = vpop.f32.mrb[64].mxu1 }
 0x30b   : > { %13241 = vmatprep.mubr.msk.bf16.mxu0 %vm2516_vm3, %v3082_v58  ;;  %13219 = vmatprep.mubr.msk.bf16.mxu1 %vm2516_vm3, %v16158_v16  ;;  %v3084_v58 = vpack.c.bf16 %v16019_v2, %v16013_v40  ;;  %v16184_v16 = vpack.c.bf16 %v16170_v6, %v16178_v44  ;;  %v2587_v35 = vpop.f32.mrb[65].mxu1  ;;  %v13180_v2 = vpop.f32.mrb[82].mxu0  ;;  %v3085_v46 = vpack.c.bf16 %v16025_v21, %v16015_v13 }
 0x30c   : > { %v16192_v17 = vadd.f32 %v2750_v19, %v2587_v35  ;;  %v13154_v40 = vpop.f32.mrb[66].mxu1  ;;  %v3292_v19 = vpack.c.bf16 %v15835_v52, %v15745_v11  ;;  %v3087_v13 = vpack.c.bf16 %v16021_v53, %v16021_v53  ;;  %v3508_v35 = vpack.c.bf16 %v16059_v15, %v16057_v49  ;;  %v14427_v52 = vld [vmem:[%s18358_s27 + $0x40] sm:$0xff]  }
 0x30d   : > { %v16194_v63 = vadd.f32 %v13180_v2, %v13154_v40  ;;  %v2590_v62 = vpop.f32.mrb[67].mxu1  ;;  %v3294_v11 = vpack.c.bf16 %v15840_v12, %v15831_v8  ;;  %v3509_v8 = vpack.c.bf16 %v16080_v25, %v16061_v57  ;;  %v3510_v12 = vpack.c.bf16 %v16093_v27, %v16082_v24  ;;  %v18388_v25 = vld [vmem:[#allocation46_spill] sm:$0xff]  ;;  %v18391_v27 = vld [vmem:[#allocation44_spill] sm:$0xff] }
 0x30e   : > { %v3297_v15 = vpack.c.bf16 %v15921_v36, %v15862_v30  ;;  %v3513_v30 = vpack.c.bf16 %v16146_v60, %v16120_v31  ;;  %v3514_v49 = vpack.c.bf16 %v16142_v56, %v16140_v43  ;;  %v3515_v36 = vpack.c.bf16 %v16166_v61, %v16144_v26  ;;  %v18389_v24 = vld [vmem:[#allocation58_spill] sm:$0xff]  ;;  %v18390_v26 = vld [vmem:[#allocation47_spill] sm:$0xff]  ;;  %v18398_v43 = vld [vmem:[#allocation56_spill] sm:$0xff] }
 0x30f   : > { %v3517_v57 = vpack.c.bf16 %v16033_v3, %v16170_v6  ;;  %v18396_v31 = vld [vmem:[#allocation54_spill] sm:$0xff]  ;;  %v18397_v6 = vld [vmem:[#allocation48_spill] sm:$0xff]  ;;  %v18399_v56 = vld [vmem:[#allocation49_spill] sm:$0xff]  ;;  %v18404_v40 = vpack.c.bf16 %v16027_v51, %v16025_v21 }
 0x310   : > { %v18400_v60 = vld [vmem:[#allocation59_spill] sm:$0xff]  ;;  %v18401_v61 = vld [vmem:[#allocation52_spill] sm:$0xff] }
 0x311   : > { %v3721_v2 = vld [vmem:[#allocation2 + $0xd0] sm:$0xff]  ;;  %v3938_v51 = vld [vmem:[#allocation2 + $0xd9] sm:$0xff] }
 0x312   : > { %13242 = vmatmul.mubr.msk.bf16.gmra.mrb[116].mxu0 %vm2516_vm3, %v3083_v48  ;;  %13220 = vmatmul.mubr.msk.bf16.gmra.mrb[104].mxu1 %vm2516_vm3, %v16176_v50  ;;  %v2753_v48 = vpop.f32.mrb[83].mxu0  ;;  %v3937_v21 = vld [vmem:[#allocation2 + $0xd1] sm:$0xff] }
 0x313   : > { %13245 = vmatprep.mubr.msk.bf16.mxu0 %vm2516_vm3, %v3084_v58  ;;  %13223 = vmatprep.mubr.msk.bf16.mxu1 %vm2516_vm3, %v16184_v16  ;;  %v16196_v22 = vadd.f32 %v2753_v48, %v2590_v62  ;;  %v2871_v58 = vpack.c.bf16 %v16033_v3, %v16033_v3  ;;  %v3293_v62 = vpack.c.bf16 %v15768_v41, %v15833_v10 }
 0x314   : > { %v3296_v41 = vpack.c.bf16 %v15776_v54, %v15864_v32  ;;  %v3295_v10 = vpack.c.bf16 %v15866_v20, %v15771_v42  ;;  %v3511_v54 = vpack.c.bf16 %v16113_v33, %v16085_v45  ;;  %v3512_v42 = vpack.c.bf16 %v16118_v23, %v16115_v39  ;;  %v18393_v33 = vld [vmem:[#allocation43_spill] sm:$0xff]  ;;  %v18395_v23 = vld [vmem:[#allocation45_spill] sm:$0xff] }
 0x315   : > { %v3298_v32 = vpack.c.bf16 %v15917_v1, %v15779_v55  ;;  %v3299_v20 = vpack.c.bf16 %v15787_v5, %v15923_v38  ;;  %v3300_v55 = vpack.c.bf16 %v15980_v59, %v15915_v0  ;;  %v3289_v1 = vld [vmem:[#allocation2 + $0xb9] sm:$0xff]  ;;  %v3301_v38 = vpack.c.bf16 %v15967_v18, %v15790_v37 }
 0x316   : > { %v3302_v5 = vpack.c.bf16 %v15795_v9, %v3289_v1  ;;  %v3516_v0 = vpack.c.bf16 %v16178_v44, %v16168_v47  ;;  %v3303_v59 = vpack.c.bf16 %v15965_v28, %v15965_v28  ;;  %v3519_v45 = vpack.c.bf16 %v18389_v24, %v18389_v24  ;;  %v18394_v39 = vld [vmem:[#allocation51_spill] sm:$0xff]  ;;  %v18402_v47 = vld [vmem:[#allocation60_spill] sm:$0xff] }
 0x317   : > { %v18403_v44 = vld [vmem:[#allocation55_spill] sm:$0xff]  ;;  %v3948_v48 = vpack.c.bf16 %v3289_v1, %v15967_v18  ;;  %v3949_v18 = vpack.c.bf16 %v15965_v28, %v15795_v9  ;;  %v18412_v9 = vld [vmem:[#allocation64_spill] sm:$0xff]  ;;  %v18413_v28 = vld [vmem:[#allocation65_spill] sm:$0xff] }
 0x31a   : > { %13246 = vmatmul.mubr.msk.bf16.gmra.mrb[120].mxu0 %vm2516_vm3, %v3085_v46  ;;  %13224 = vmatmul.mubr.msk.bf16.gmra.mrb[108].mxu1 %vm2516_vm3, %v2871_v58  ;;  %v18405_v46 = vld [vmem:[#allocation41_spill] sm:$0xff] }
 0x31b   : > { %13249 = vmatprep.mubr.msk.bf16.mxu0 %vm2516_vm3, %v3086_v34  ;;  %13255 = vmatprep.mubr.msk.bf16.mxu1 %vm2516_vm3, %v3292_v19  ;;  %v3734_v58 = vpack.c.bf16 %v18405_v46, %v3721_v2  ;;  %v18406_v34 = vld [vmem:[#allocation53_spill] sm:$0xff]  ;;  %v18407_v19 = vpack.c.bf16 %v16021_v53, %v16011_v7 }
 0x31c   : > { %v18409_v7 = vld [vmem:[#allocation61_spill] sm:$0xff] }
 0x31d   : > { %v3939_v53 = vld [vmem:[#allocation2 + $0xe1] sm:$0xff] }
 0x322   : > { %13250 = vmatmul.mubr.msk.bf16.gmra.mrb[124].mxu0 %vm2516_vm3, %v3087_v13  ;;  %13256 = vmatmul.mubr.msk.bf16.vlgmr.msra.gmra.mrb[112].mxu1 %vm2516_vm3, %v3293_v62  ;;  %v3950_v62 = vpack.c.bf16 %v3938_v51, %v3937_v21  ;;  %v18408_v13 = vld [vmem:[#allocation42_spill] sm:$0xff] }
 0x323   : > { %13281 = vmatprep.mubr.msk.bf16.mxu0 %vm2516_vm3, %v3508_v35  ;;  %13259 = vmatprep.mubr.msk.bf16.mxu1 %vm2516_vm3, %v3294_v11  ;;  %v3951_v35 = vpack.c.bf16 %v3939_v53, %v3939_v53  ;;  %v18410_v11 = vld [vmem:[#allocation62_spill] sm:$0xff] }
 0x324   : > { %13306 = vmatpush3.bf16.msra.mxu1 %v16073_v4  ;;  %v18387_v4 = vld [vmem:[#allocation57_spill] sm:$0xff] }
 0x325   : > { %13357 = vmatprep.subr.bf16.mxu1 %v14427_v52  ;;  %v3518_v37 = vpack.c.bf16 %v18387_v4, %v16017_v14 }
 0x32a   : > { %13282 = vmatmul.mubr.msk.bf16.vlgmr.msra.gmra.mrb[128].mxu0 %vm2516_vm3, %v3509_v8  ;;  %13260 = vmatmul.mubr.msk.bf16.gmra.mrb[116].mxu1 %vm2516_vm3, %v3295_v10  ;;  %v18415_v8 = vpack.c.bf16 %v16017_v14, %v16033_v3  ;;  %v4153_v10 = vld [vmem:[#allocation2 + $0xd2] sm:$0xff] }
 0x32b   : > { %13285 = vmatprep.mubr.msk.bf16.mxu0 %vm2516_vm3, %v3510_v12  ;;  %13263 = vmatprep.mubr.msk.bf16.mxu1 %vm2516_vm3, %v3296_v41  ;;  %v18414_v41 = vld [vmem:[#allocation66_spill] sm:$0xff]  ;;  %v4154_v12 = vld [vmem:[#allocation2 + $0xda] sm:$0xff] }
 0x32c   : > { %13332 = vmatpush3.bf16.msra.mxu0 %v16104_v29  ;;  %v18392_v29 = vld [vmem:[#allocation50_spill] sm:$0xff] }
 0x332   : > { %13286 = vmatmul.mubr.msk.bf16.gmra.mrb[132].mxu0 %vm2516_vm3, %v3511_v54  ;;  %13264 = vmatmul.mubr.msk.bf16.gmra.mrb[120].mxu1 %vm2516_vm3, %v3297_v15 }
 0x333   : > { %13289 = vmatprep.mubr.msk.bf16.mxu0 %vm2516_vm3, %v3512_v42  ;;  %13267 = vmatprep.mubr.msk.bf16.mxu1 %vm2516_vm3, %v3298_v32  ;;  %v4166_v32 = vpack.c.bf16 %v4154_v12, %v4153_v10 }
 0x33a   : > { %13290 = vmatmul.mubr.msk.bf16.gmra.mrb[136].mxu0 %vm2516_vm3, %v3513_v30  ;;  %13268 = vmatmul.mubr.msk.bf16.gmra.mrb[124].mxu1 %vm2516_vm3, %v3299_v20  ;;  %v18416_v30 = vpack.c.bf16 %v18389_v24, %v18387_v4 }
 0x33b   : > { %13293 = vmatprep.mubr.msk.bf16.mxu0 %vm2516_vm3, %v3514_v49  ;;  %13271 = vmatprep.mubr.msk.bf16.mxu1 %vm2516_vm3, %v3300_v55 }
 0x342   : > { %13294 = vmatmul.mubr.msk.bf16.gmra.mrb[140].mxu0 %vm2516_vm3, %v3515_v36  ;;  %13272 = vmatmul.mubr.msk.bf16.gmra.mrb[128].mxu1 %vm2516_vm3, %v3301_v38 }
 0x343   : > { %13297 = vmatprep.mubr.msk.bf16.mxu0 %vm2516_vm3, %v3516_v0  ;;  %13275 = vmatprep.mubr.msk.bf16.mxu1 %vm2516_vm3, %v3302_v5 }
 0x34a   : > { %13298 = vmatmul.mubr.msk.bf16.gmra.mrb[144].mxu0 %vm2516_vm3, %v3517_v57  ;;  %13276 = vmatmul.mubr.msk.bf16.gmra.mrb[132].mxu1 %vm2516_vm3, %v3303_v59 }
 0x34b   : > { %13301 = vmatprep.mubr.msk.bf16.mxu0 %vm2516_vm3, %v3518_v37  ;;  %13307 = vmatprep.mubr.msk.bf16.mxu1 %vm2516_vm3, %v18388_v25 }
 0x352   : > { %13302 = vmatmul.mubr.msk.bf16.gmra.mrb[148].mxu0 %vm2516_vm3, %v3519_v45  ;;  %13308 = vmatmul.mubr.msk.bf16.vlgmr.msra.gmra.mrb[136].mxu1 %vm2516_vm3, %v18390_v26 }
 0x353   : > { %13333 = vmatprep.mubr.msk.bf16.mxu0 %vm2516_vm3, %v18391_v27  ;;  %13311 = vmatprep.mubr.msk.bf16.mxu1 %vm2516_vm3, %v18392_v29 }
 0x354   : > { %13358 = vmatpush3.bf16.msra.mxu1 %v14427_v52  ;;  %v18411_v52 = vld [vmem:[#allocation63_spill] sm:$0xff] }
 0x35a   : > { %13334 = vmatmul.mubr.msk.bf16.vlgmr.msra.gmra.mrb[152].mxu0 %vm2516_vm3, %v18393_v33  ;;  %13312 = vmatmul.mubr.msk.bf16.gmra.mrb[140].mxu1 %vm2516_vm3, %v18394_v39 }
 0x35b   : > { %13337 = vmatprep.mubr.msk.bf16.mxu0 %vm2516_vm3, %v18395_v23  ;;  %13315 = vmatprep.mubr.msk.bf16.mxu1 %vm2516_vm3, %v18396_v31 }
 0x362   : > { %13338 = vmatmul.mubr.msk.bf16.gmra.mrb[156].mxu0 %vm2516_vm3, %v18397_v6  ;;  %13316 = vmatmul.mubr.msk.bf16.gmra.mrb[144].mxu1 %vm2516_vm3, %v18398_v43 }
 0x363   : > { %13341 = vmatprep.mubr.msk.bf16.mxu0 %vm2516_vm3, %v18399_v56  ;;  %13319 = vmatprep.mubr.msk.bf16.mxu1 %vm2516_vm3, %v18400_v60 }
 0x36a   : > { %13342 = vmatmul.mubr.msk.bf16.gmra.mrb[160].mxu0 %vm2516_vm3, %v18401_v61  ;;  %13320 = vmatmul.mubr.msk.bf16.gmra.mrb[148].mxu1 %vm2516_vm3, %v18402_v47 }
 0x36b   : > { %13345 = vmatprep.mubr.msk.bf16.mxu0 %vm2516_vm3, %v18403_v44  ;;  %13323 = vmatprep.mubr.msk.bf16.mxu1 %vm2516_vm3, %v18404_v40 }
 0x372   : > { %13346 = vmatmul.mubr.msk.bf16.gmra.mrb[164].mxu0 %vm2516_vm3, %v18406_v34  ;;  %13324 = vmatmul.mubr.msk.bf16.gmra.mrb[152].mxu1 %vm2516_vm3, %v18407_v19 }
 0x373   : > { %13349 = vmatprep.mubr.msk.bf16.mxu0 %vm2516_vm3, %v3948_v48  ;;  %13327 = vmatprep.mubr.msk.bf16.mxu1 %vm2516_vm3, %v3734_v58 }
 0x37a   : > { %13350 = vmatmul.mubr.msk.bf16.gmra.mrb[168].mxu0 %vm2516_vm3, %v3949_v18  ;;  %13328 = vmatmul.mubr.msk.bf16.gmra.mrb[156].mxu1 %vm2516_vm3, %v18408_v13  ;;  %v14428_v18 = vld [vmem:[%s18417_s1 + $0x8] sm:$0xff]  }
 0x37b   : > { %13353 = vmatprep.mubr.msk.bf16.mxu0 %vm2516_vm3, %v3950_v62  ;;  %13359 = vmatprep.mubr.msk.bf16.mxu1 %vm2516_vm3, %v18409_v7 }
 0x37c   : > { %13383 = vmatprep.subr.bf16.mxu0 %v14428_v18 }
 0x37d   : > { %13384 = vmatpush3.bf16.msra.mxu0 %v14428_v18 }
 0x382   : > { %13354 = vmatmul.mubr.msk.bf16.gmra.mrb[172].mxu0 %vm2516_vm3, %v3951_v35  ;;  %13360 = vmatmul.mubr.msk.bf16.vlgmr.msra.gmra.mrb[160].mxu1 %vm2516_vm3, %v18410_v11 }
 0x383   : > { %13363 = vmatprep.mubr.msk.bf16.mxu1 %vm2516_vm3, %v18411_v52 }
 0x38a   : > { %13364 = vmatmul.mubr.msk.bf16.gmra.mrb[164].mxu1 %vm2516_vm3, %v18412_v9 }
 0x38b   : > { %13367 = vmatprep.mubr.msk.bf16.mxu1 %vm2516_vm3, %v18413_v28 }
 0x392   : > { %13368 = vmatmul.mubr.msk.bf16.gmra.mrb[168].mxu1 %vm2516_vm3, %v18414_v41 }
 0x393   : > { %13371 = vmatprep.mubr.msk.bf16.mxu1 %vm2516_vm3, %v16176_v50 }
 0x39a   : > { %13372 = vmatmul.mubr.msk.bf16.gmra.mrb[172].mxu1 %vm2516_vm3, %v16184_v16  ;;  %v4155_v16 = vld [vmem:[#allocation2 + $0xe2] sm:$0xff] }
 0x39b   : > { %13375 = vmatprep.mubr.msk.bf16.mxu1 %vm2516_vm3, %v18415_v8  ;;  %v4167_v1 = vpack.c.bf16 %v4155_v16, %v4155_v16 }
 0x39d   : > { %v13157_v54 = vpop.f32.mrb[68].mxu1 }
 0x39e   : > { %v2602_v15 = vpop.f32.mrb[69].mxu1 }
 0x39f   : > { %v13158_v42 = vpop.f32.mrb[70].mxu1 }
 0x3a0   : > { %v2605_v20 = vpop.f32.mrb[71].mxu1 }
 0x3a2   : > { %13376 = vmatmul.mubr.msk.bf16.gmra.mrb[176].mxu1 %vm2516_vm3, %v18416_v30 }
 0x3a3   : > { %13379 = vmatprep.mubr.msk.bf16.mxu1 %vm2516_vm3, %v4166_v32 }
 0x3a5   : > { %v13183_v50 = vpop.f32.mrb[84].mxu0  ;;  %v13161_v49 = vpop.f32.mrb[72].mxu1 }
 0x3a6   : > { %v2773_v3 = vadd.f32 %v13183_v50, %v13157_v54  ;;  %v2765_v14 = vpop.f32.mrb[85].mxu0  ;;  %v2617_v55 = vpop.f32.mrb[73].mxu1 }
 0x3a7   : > { %v2766_v5 = vadd.f32 %v2765_v14, %v2602_v15  ;;  %v13184_v36 = vpop.f32.mrb[86].mxu0  ;;  %v13162_v38 = vpop.f32.mrb[74].mxu1 }
 0x3a8   : > { %v16362_v0 = vadd.f32 %v13184_v36, %v13158_v42  ;;  %v2768_v57 = vpop.f32.mrb[87].mxu0  ;;  %v2619_v59 = vpop.f32.mrb[75].mxu1 }
 0x3aa   : > { %13380 = vmatmul.mubr.msk.bf16.gmra.mrb[180].mxu1 %vm2516_vm3, %v4167_v1 }
 0x3ad   : > { %v13187_v4 = vpop.f32.mrb[88].mxu0  ;;  %v13165_v37 = vpop.f32.mrb[76].mxu1 }
 0x3ae   : > { %v16365_v25 = vadd.f32 %v13187_v4, %v13161_v49  ;;  %v2780_v24 = vpop.f32.mrb[89].mxu0  ;;  %v2631_v45 = vpop.f32.mrb[77].mxu1 }
 0x3af   : > { %v13188_v26 = vpop.f32.mrb[90].mxu0  ;;  %v13166_v27 = vpop.f32.mrb[78].mxu1 }
 0x3b0   : > { %v2782_v29 = vpop.f32.mrb[91].mxu0  ;;  %v2634_v33 = vpop.f32.mrb[79].mxu1 }
 0x3b1   : > { %v16367_v39 = vadd.f32 %v2782_v29, %v2619_v59 }
 0x3b5   : > { %v13191_v23 = vpop.f32.mrb[92].mxu0  ;;  %v13169_v31 = vpop.f32.mrb[80].mxu1 }
 0x3b6   : > { %v2794_v6 = vpop.f32.mrb[93].mxu0  ;;  %v2646_v43 = vpop.f32.mrb[81].mxu1 }
 0x3b7   : > { %v16369_v56 = vadd.f32 %v2794_v6, %v2631_v45  ;;  %v13192_v60 = vpop.f32.mrb[94].mxu0  ;;  %v13170_v61 = vpop.f32.mrb[82].mxu1 }
 0x3b8   : > { %v16371_v47 = vadd.f32 %v13192_v60, %v13166_v27  ;;  %v2797_v44 = vpop.f32.mrb[95].mxu0  ;;  %v2649_v40 = vpop.f32.mrb[83].mxu1 }
 0x3b9   : > { %v16373_v2 = vadd.f32 %v2797_v44, %v2634_v33 }
 0x3bd   : > { %v13195_v48 = vpop.f32.mrb[96].mxu0  ;;  %v13173_v46 = vpop.f32.mrb[84].mxu1 }
 0x3be   : > { %v16375_v58 = vadd.f32 %v13195_v48, %v13169_v31  ;;  %v2809_v34 = vpop.f32.mrb[97].mxu0  ;;  %v2661_v19 = vpop.f32.mrb[85].mxu1  ;;  %v4441_v48 = vld [vmem:[#allocation3 + $0x1] sm:$0xff] }
 0x3bf   : > { %v16377_v21 = vadd.f32 %v2809_v34, %v2646_v43  ;;  %v13196_v51 = vpop.f32.mrb[98].mxu0  ;;  %v13174_v62 = vpop.f32.mrb[86].mxu1 }
 0x3c0   : > { %v16382_v13 = vadd.f32 %v13196_v51, %v13170_v61  ;;  %v2812_v7 = vpop.f32.mrb[99].mxu0  ;;  %v2663_v53 = vpop.f32.mrb[87].mxu1 }
 0x3c5   : > { %v13199_v35 = vpop.f32.mrb[100].mxu0  ;;  %v13205_v11 = vpop.f32.mrb[88].mxu1 }
 0x3c6   : > { %v16384_v52 = vadd.f32 %v13199_v35, %v13173_v46  ;;  %v2824_v9 = vpop.f32.mrb[101].mxu0  ;;  %v2950_v28 = vpop.f32.mrb[89].mxu1  ;;  %v4442_v46 = vld [vmem:[#allocation3 + $0x9] sm:$0xff] }
 0x3c7   : > { %v13200_v41 = vpop.f32.mrb[102].mxu0  ;;  %v3037_v8 = vadd.f32 %v2950_v28, %v16192_v17  ;;  %v13206_v10 = vpop.f32.mrb[90].mxu1  ;;  %v4464_v62 = vpack.c.bf16 %v4442_v46, %v4441_v48 }
 0x3c8   : > { %v2826_v12 = vpop.f32.mrb[103].mxu0  ;;  %v3039_v54 = vadd.f32 %v13206_v10, %v16194_v63  ;;  %v2953_v15 = vpop.f32.mrb[91].mxu1 }
 0x3c9   : > { %v16388_v42 = vadd.f32 %v2826_v12, %v2663_v53  ;;  %v3038_v32 = vadd.f32 %v2953_v15, %v16196_v22  ;;  %13385 = vmatprep.mubr.msk.bf16.mxu0 %vm2516_vm3, %v4464_v62  ;;  %v16424_v15 = vld [vmem:[#allocation4 + $0xd8] sm:$0xff] }
 0x3cd   : > { %v13231_v20 = vpop.f32.mrb[104].mxu0  ;;  %v13209_v30 = vpop.f32.mrb[92].mxu1 }
 0x3ce   : > { %v3166_v16 = vpop.f32.mrb[105].mxu0  ;;  %v3041_v50 = vadd.f32 %v13209_v30, %v2773_v3  ;;  %v2965_v49 = vpop.f32.mrb[93].mxu1 }
 0x3cf   : > { %v16391_v14 = vadd.f32 %v3166_v16, %v3037_v8  ;;  %v13232_v55 = vpop.f32.mrb[106].mxu0  ;;  %v3040_v1 = vadd.f32 %v2965_v49, %v2766_v5  ;;  %v13210_v36 = vpop.f32.mrb[94].mxu1  ;;  %v16440_v49 = vld [vmem:[%s18417_s1 + $0x10] sm:$0xff]  }
 0x3d0   : > { %v16393_v17 = vadd.f32 %v13232_v55, %v3039_v54  ;;  %v3169_v38 = vpop.f32.mrb[107].mxu0  ;;  %v3042_v63 = vadd.f32 %v13210_v36, %v16362_v0  ;;  %v2968_v57 = vpop.f32.mrb[95].mxu1  ;;  %13435 = vmatprep.subr.bf16.mxu0 %v16440_v49 }
 0x3d1   : > { %v16396_v59 = vadd.f32 %v3169_v38, %v3038_v32 }
 0x3d5   : > { %v13235_v4 = vpop.f32.mrb[108].mxu0  ;;  %v13213_v22 = vpop.f32.mrb[96].mxu1 }
 0x3d6   : > { %v16398_v37 = vadd.f32 %v13235_v4, %v3041_v50  ;;  %v3181_v24 = vpop.f32.mrb[109].mxu0  ;;  %v3044_v3 = vadd.f32 %v13213_v22, %v16365_v25  ;;  %v2980_v45 = vpop.f32.mrb[97].mxu1 }
 0x3d7   : > { %v16401_v26 = vadd.f32 %v3181_v24, %v3040_v1  ;;  %v13236_v5 = vpop.f32.mrb[110].mxu0  ;;  %v13214_v27 = vpop.f32.mrb[98].mxu1 }
 0x3d8   : > { %v16403_v29 = vadd.f32 %v13236_v5, %v3042_v63  ;;  %v3184_v33 = vpop.f32.mrb[111].mxu0  ;;  %v2982_v23 = vpop.f32.mrb[99].mxu1 }
 0x3d9   : > { %v3043_v0 = vadd.f32 %v2982_v23, %v16367_v39 }
 0x3dd   : > { %v13239_v31 = vpop.f32.mrb[112].mxu0  ;;  %v13217_v6 = vpop.f32.mrb[100].mxu1 }
 0x3de   : > { %v16406_v43 = vadd.f32 %v13239_v31, %v3044_v3  ;;  %v3196_v60 = vpop.f32.mrb[113].mxu0  ;;  %v2994_v61 = vpop.f32.mrb[101].mxu1 }
 0x3df   : > { %v13240_v44 = vpop.f32.mrb[114].mxu0  ;;  %v3045_v25 = vadd.f32 %v2994_v61, %v16369_v56  ;;  %v13218_v40 = vpop.f32.mrb[102].mxu1  ;;  %v14429_v56 = vld [vmem:[%s18417_s1] sm:$0xff]  }
 0x3e0   : > { %v3198_v34 = vpop.f32.mrb[115].mxu0  ;;  %v3047_v19 = vadd.f32 %v13218_v40, %v16371_v47  ;;  %v2997_v51 = vpop.f32.mrb[103].mxu1  ;;  %13409 = vmatprep.subr.bf16.mxu1 %v14429_v56 }
 0x3e1   : > { %v16410_v18 = vadd.f32 %v3198_v34, %v3043_v0  ;;  %v3046_v39 = vadd.f32 %v2997_v51, %v16373_v2  ;;  %13410 = vmatpush3.bf16.msra.mxu1 %v14429_v56 }
 0x3e5   : > { %v13243_v7 = vpop.f32.mrb[116].mxu0  ;;  %v13221_v53 = vpop.f32.mrb[104].mxu1 }
 0x3e6   : > { %v3210_v35 = vpop.f32.mrb[117].mxu0  ;;  %v3049_v11 = vadd.f32 %v13221_v53, %v16375_v58  ;;  %v3009_v9 = vpop.f32.mrb[105].mxu1  ;;  %v16428_v58 = vpack.c.bf16 %v16424_v15, %v16424_v15 }
 0x3e7   : > { %v16418_v28 = vadd.f32 %v3210_v35, %v3045_v25  ;;  %v13244_v47 = vpop.f32.mrb[118].mxu0  ;;  %v3048_v41 = vadd.f32 %v3009_v9, %v16377_v21  ;;  %v13222_v8 = vpop.f32.mrb[106].mxu1 }
 0x3e8   : > { %v16421_v2 = vadd.f32 %v13244_v47, %v3047_v19  ;;  %v3213_v10 = vpop.f32.mrb[119].mxu0  ;;  %v3050_v12 = vadd.f32 %v13222_v8, %v16382_v13  ;;  %v3012_v54 = vpop.f32.mrb[107].mxu1  ;;  %18418 = vst [vmem:[#allocation57_spill] sm:$0xff] %v16428_v58  ;;  %13411 = vmatprep.mubr.msk.bf16.mxu1 %vm2516_vm3, %v16428_v58 }
 0x3e9   : > { %v16430_v32 = vadd.f32 %v3213_v10, %v3046_v39 }
 0x3ed   : > { %v13247_v21 = vpop.f32.mrb[120].mxu0  ;;  %v13225_v20 = vpop.f32.mrb[108].mxu1 }
 0x3ee   : > { %v16434_v30 = vadd.f32 %v13247_v21, %v3049_v11  ;;  %v3225_v16 = vpop.f32.mrb[121].mxu0  ;;  %v3052_v13 = vadd.f32 %v13225_v20, %v16384_v52  ;;  %v3024_v50 = vpop.f32.mrb[109].mxu1 }
 0x3ef   : > { %v16442_v55 = vadd.f32 %v3225_v16, %v3048_v41  ;;  %v13248_v1 = vpop.f32.mrb[122].mxu0  ;;  %v13226_v36 = vpop.f32.mrb[110].mxu1 }
 0x3f0   : > { %v16444_v38 = vadd.f32 %v13248_v1, %v3050_v12  ;;  %v3228_v63 = vpop.f32.mrb[123].mxu0  ;;  %v3026_v57 = vpop.f32.mrb[111].mxu1 }
 0x3f1   : > { %v3051_v4 = vadd.f32 %v3026_v57, %v16388_v42  ;;  %v16479_v63 = vld [vmem:[%s18417_s1 + $0x18] sm:$0xff]  }
 0x3f2   : > { %13461 = vmatprep.subr.bf16.mxu1 %v16479_v63 }
 0x3f5   : > { %v13251_v22 = vpop.f32.mrb[124].mxu0  ;;  %v13257_v52 = vpop.f32.mrb[112].mxu1 }
 0x3f6   : > { %v16448_v24 = vadd.f32 %v13251_v22, %v3052_v13  ;;  %v3240_v3 = vpop.f32.mrb[125].mxu0  ;;  %v3382_v45 = vpop.f32.mrb[113].mxu1 }
 0x3f7   : > { %v13252_v5 = vpop.f32.mrb[126].mxu0  ;;  %v3469_v27 = vadd.f32 %v3382_v45, %v16391_v14  ;;  %v13258_v33 = vpop.f32.mrb[114].mxu1 }
 0x3f8   : > { %v3242_v23 = vpop.f32.mrb[127].mxu0  ;;  %v3471_v0 = vadd.f32 %v13258_v33, %v16393_v17  ;;  %v3385_v31 = vpop.f32.mrb[115].mxu1 }
 0x3f9   : > { %v16452_v6 = vadd.f32 %v3242_v23, %v3051_v4  ;;  %v3470_v60 = vadd.f32 %v3385_v31, %v16396_v59 }
 0x3fd   : > { %v13283_v61 = vpop.f32.mrb[128].mxu0  ;;  %v13261_v42 = vpop.f32.mrb[116].mxu1 }
 0x3fe   : > { %v3598_v44 = vpop.f32.mrb[129].mxu0  ;;  %v3473_v25 = vadd.f32 %v13261_v42, %v16398_v37  ;;  %v3397_v40 = vpop.f32.mrb[117].mxu1 }
 0x3ff   : > { %v16456_v48 = vadd.f32 %v3598_v44, %v3469_v27  ;;  %v13284_v46 = vpop.f32.mrb[130].mxu0  ;;  %v3472_v14 = vadd.f32 %v3397_v40, %v16401_v26  ;;  %v13262_v34 = vpop.f32.mrb[118].mxu1 }
 0x400   : > { %v16459_v19 = vadd.f32 %v13284_v46, %v3471_v0  ;;  %v3601_v17 = vpop.f32.mrb[131].mxu0  ;;  %v3474_v51 = vadd.f32 %v13262_v34, %v16403_v29  ;;  %v3400_v62 = vpop.f32.mrb[119].mxu1 }
 0x401   : > { %v16462_v39 = vadd.f32 %v3601_v17, %v3470_v60 }
 0x405   : > { %v13287_v59 = vpop.f32.mrb[132].mxu0  ;;  %v13265_v7 = vpop.f32.mrb[120].mxu1 }
 0x406   : > { %v16464_v53 = vadd.f32 %v13287_v59, %v3473_v25  ;;  %v3613_v37 = vpop.f32.mrb[133].mxu0  ;;  %v3476_v56 = vadd.f32 %v13265_v7, %v16406_v43  ;;  %v3412_v35 = vpop.f32.mrb[121].mxu1 }
 0x407   : > { %v16467_v11 = vadd.f32 %v3613_v37, %v3472_v14  ;;  %v13288_v26 = vpop.f32.mrb[134].mxu0  ;;  %v13266_v9 = vpop.f32.mrb[122].mxu1 }
 0x408   : > { %v16469_v47 = vadd.f32 %v13288_v26, %v3474_v51  ;;  %v3616_v41 = vpop.f32.mrb[135].mxu0  ;;  %v3414_v8 = vpop.f32.mrb[123].mxu1 }
 0x409   : > { %v3475_v29 = vadd.f32 %v3414_v8, %v16410_v18 }
 0x40d   : > { %v13291_v10 = vpop.f32.mrb[136].mxu0  ;;  %v13269_v12 = vpop.f32.mrb[124].mxu1 }
 0x40e   : > { %v16472_v54 = vadd.f32 %v13291_v10, %v3476_v56  ;;  %v3628_v21 = vpop.f32.mrb[137].mxu0  ;;  %v3426_v20 = vpop.f32.mrb[125].mxu1 }
 0x40f   : > { %v13292_v16 = vpop.f32.mrb[138].mxu0  ;;  %v3477_v43 = vadd.f32 %v3426_v20, %v16418_v28  ;;  %v13270_v13 = vpop.f32.mrb[126].mxu1 }
 0x410   : > { %v3630_v50 = vpop.f32.mrb[139].mxu0  ;;  %v3479_v1 = vadd.f32 %v13270_v13, %v16421_v2  ;;  %v3429_v36 = vpop.f32.mrb[127].mxu1 }
 0x411   : > { %v16481_v18 = vadd.f32 %v3630_v50, %v3475_v29  ;;  %v3478_v57 = vadd.f32 %v3429_v36, %v16430_v32 }
 0x415   : > { %v13295_v4 = vpop.f32.mrb[140].mxu0  ;;  %v13273_v22 = vpop.f32.mrb[128].mxu1 }
 0x416   : > { %v3642_v52 = vpop.f32.mrb[141].mxu0  ;;  %v3481_v28 = vadd.f32 %v13273_v22, %v16434_v30  ;;  %v3441_v3 = vpop.f32.mrb[129].mxu1 }
 0x417   : > { %v16486_v45 = vadd.f32 %v3642_v52, %v3477_v43  ;;  %v13296_v2 = vpop.f32.mrb[142].mxu0  ;;  %v3480_v5 = vadd.f32 %v3441_v3, %v16442_v55  ;;  %v13274_v27 = vpop.f32.mrb[130].mxu1 }
 0x418   : > { %v16489_v33 = vadd.f32 %v13296_v2, %v3479_v1  ;;  %v3645_v23 = vpop.f32.mrb[143].mxu0  ;;  %v3482_v0 = vadd.f32 %v13274_v27, %v16444_v38  ;;  %v3444_v32 = vpop.f32.mrb[131].mxu1 }
 0x419   : > { %v16492_v31 = vadd.f32 %v3645_v23, %v3478_v57 }
 0x41d   : > { %v13299_v60 = vpop.f32.mrb[144].mxu0  ;;  %v13277_v61 = vpop.f32.mrb[132].mxu1 }
 0x41e   : > { %v16494_v42 = vadd.f32 %v13299_v60, %v3481_v28  ;;  %v3657_v30 = vpop.f32.mrb[145].mxu0  ;;  %v3484_v44 = vadd.f32 %v13277_v61, %v16448_v24  ;;  %v3456_v25 = vpop.f32.mrb[133].mxu1 }
 0x41f   : > { %v16497_v40 = vadd.f32 %v3657_v30, %v3480_v5  ;;  %v13300_v55 = vpop.f32.mrb[146].mxu0  ;;  %v13278_v46 = vpop.f32.mrb[134].mxu1 }
 0x420   : > { %v16499_v14 = vadd.f32 %v13300_v55, %v3482_v0  ;;  %v3660_v34 = vpop.f32.mrb[147].mxu0  ;;  %v3458_v17 = vpop.f32.mrb[135].mxu1 }
 0x421   : > { %v3483_v38 = vadd.f32 %v3458_v17, %v16452_v6 }
 0x425   : > { %v13303_v51 = vpop.f32.mrb[148].mxu0  ;;  %v13309_v62 = vpop.f32.mrb[136].mxu1 }
 0x426   : > { %v16502_v59 = vadd.f32 %v13303_v51, %v3484_v44  ;;  %v3672_v7 = vpop.f32.mrb[149].mxu0  ;;  %v3814_v37 = vpop.f32.mrb[137].mxu1 }
 0x427   : > { %v13304_v56 = vpop.f32.mrb[150].mxu0  ;;  %v3901_v24 = vadd.f32 %v3814_v37, %v16456_v48  ;;  %v13310_v35 = vpop.f32.mrb[138].mxu1 }
 0x428   : > { %v3674_v26 = vpop.f32.mrb[151].mxu0  ;;  %v3903_v9 = vadd.f32 %v13310_v35, %v16459_v19  ;;  %v3817_v41 = vpop.f32.mrb[139].mxu1 }
 0x429   : > { %v16506_v8 = vadd.f32 %v3674_v26, %v3483_v38  ;;  %v3902_v29 = vadd.f32 %v3817_v41, %v16462_v39 }
 0x42d   : > { %v13335_v10 = vpop.f32.mrb[152].mxu0  ;;  %v13313_v6 = vpop.f32.mrb[140].mxu1 }
 0x42e   : > { %v4030_v12 = vpop.f32.mrb[153].mxu0  ;;  %v3905_v21 = vadd.f32 %v13313_v6, %v16464_v53  ;;  %v3829_v20 = vpop.f32.mrb[141].mxu1 }
 0x42f   : > { %v16510_v16 = vadd.f32 %v4030_v12, %v3901_v24  ;;  %v13336_v43 = vpop.f32.mrb[154].mxu0  ;;  %v3904_v48 = vadd.f32 %v3829_v20, %v16467_v11  ;;  %v13314_v13 = vpop.f32.mrb[142].mxu1 }
 0x430   : > { %v16513_v50 = vadd.f32 %v13336_v43, %v3903_v9  ;;  %v4033_v19 = vpop.f32.mrb[155].mxu0  ;;  %v3906_v1 = vadd.f32 %v13314_v13, %v16469_v47  ;;  %v3832_v36 = vpop.f32.mrb[143].mxu1 }
 0x431   : > { %v16516_v57 = vadd.f32 %v4033_v19, %v3902_v29 }
 0x435   : > { %v13339_v39 = vpop.f32.mrb[156].mxu0  ;;  %v13317_v4 = vpop.f32.mrb[144].mxu1 }
 0x436   : > { %v16518_v22 = vadd.f32 %v13339_v39, %v3905_v21  ;;  %v4045_v53 = vpop.f32.mrb[157].mxu0  ;;  %v3908_v52 = vadd.f32 %v13317_v4, %v16472_v54  ;;  %v3844_v28 = vpop.f32.mrb[145].mxu1 }
 0x437   : > { %v16521_v3 = vadd.f32 %v4045_v53, %v3904_v48  ;;  %v13340_v11 = vpop.f32.mrb[158].mxu0  ;;  %v13318_v2 = vpop.f32.mrb[146].mxu1 }
 0x438   : > { %v16523_v5 = vadd.f32 %v13340_v11, %v3906_v1  ;;  %v4048_v27 = vpop.f32.mrb[159].mxu0  ;;  %v3846_v23 = vpop.f32.mrb[147].mxu1 }
 0x439   : > { %v3907_v47 = vadd.f32 %v3846_v23, %v16481_v18 }
 0x43d   : > { %v13343_v0 = vpop.f32.mrb[160].mxu0  ;;  %v13321_v32 = vpop.f32.mrb[148].mxu1 }
 0x43e   : > { %v16526_v60 = vadd.f32 %v13343_v0, %v3908_v52  ;;  %v4060_v61 = vpop.f32.mrb[161].mxu0  ;;  %v3858_v30 = vpop.f32.mrb[149].mxu1 }
 0x43f   : > { %v13344_v44 = vpop.f32.mrb[162].mxu0  ;;  %v3909_v54 = vadd.f32 %v3858_v30, %v16486_v45  ;;  %v13322_v25 = vpop.f32.mrb[150].mxu1  ;;  %v4443_v61 = vld [vmem:[#allocation3 + $0x11] sm:$0xff] }
 0x440   : > { %v4062_v55 = vpop.f32.mrb[163].mxu0  ;;  %v3911_v46 = vadd.f32 %v13322_v25, %v16489_v33  ;;  %v3861_v34 = vpop.f32.mrb[151].mxu1 }
 0x441   : > { %v16530_v17 = vadd.f32 %v4062_v55, %v3907_v47  ;;  %v3910_v38 = vadd.f32 %v3861_v34, %v16492_v31 }
 0x445   : > { %v13347_v51 = vpop.f32.mrb[164].mxu0  ;;  %v13325_v18 = vpop.f32.mrb[152].mxu1 }
 0x446   : > { %v4074_v62 = vpop.f32.mrb[165].mxu0  ;;  %v3913_v7 = vadd.f32 %v13325_v18, %v16494_v42  ;;  %v3873_v37 = vpop.f32.mrb[153].mxu1 }
 0x447   : > { %v16534_v56 = vadd.f32 %v4074_v62, %v3909_v54  ;;  %v13348_v24 = vpop.f32.mrb[166].mxu0  ;;  %v3912_v45 = vadd.f32 %v3873_v37, %v16497_v40  ;;  %v13326_v35 = vpop.f32.mrb[154].mxu1  ;;  %v16567_v54 = vld [vmem:[#allocation3 + $0x29] sm:$0xff] }
 0x448   : > { %v16537_v26 = vadd.f32 %v13348_v24, %v3911_v46  ;;  %v4077_v33 = vpop.f32.mrb[167].mxu0  ;;  %v3914_v9 = vadd.f32 %v13326_v35, %v16499_v14  ;;  %v3876_v41 = vpop.f32.mrb[155].mxu1  ;;  %v16599_v35 = vld [vmem:[#allocation3 + $0x41] sm:$0xff] }
 0x449   : > { %v16540_v29 = vadd.f32 %v4077_v33, %v3910_v38 }
 0x44d   : > { %v13351_v31 = vpop.f32.mrb[168].mxu0  ;;  %v13329_v10 = vpop.f32.mrb[156].mxu1 }
 0x44e   : > { %v16542_v6 = vadd.f32 %v13351_v31, %v3913_v7  ;;  %v4089_v42 = vpop.f32.mrb[169].mxu0  ;;  %v3916_v12 = vadd.f32 %v13329_v10, %v16502_v59  ;;  %v3888_v21 = vpop.f32.mrb[157].mxu1  ;;  %v16555_v59 = vld [vmem:[%s18419_s30] ss:$0 sm:$0xff] }
 0x44f   : > { %v16545_v20 = vadd.f32 %v4089_v42, %v3912_v45  ;;  %v13352_v40 = vpop.f32.mrb[170].mxu0  ;;  %v13330_v43 = vpop.f32.mrb[158].mxu1  ;;  %v16619_v42 = vld [vmem:[%s18417_s1 + $0x28] sm:$0xff]  }
 0x450   : > { %v16547_v48 = vadd.f32 %v13352_v40, %v3914_v9  ;;  %v4092_v13 = vpop.f32.mrb[171].mxu0  ;;  %v3890_v19 = vpop.f32.mrb[159].mxu1 }
 0x451   : > { %v3915_v14 = vadd.f32 %v3890_v19, %v16506_v8 }
 0x455   : > { %v13355_v1 = vpop.f32.mrb[172].mxu0  ;;  %v13361_v36 = vpop.f32.mrb[160].mxu1 }
 0x456   : > { %v16550_v39 = vadd.f32 %v13355_v1, %v3916_v12  ;;  %v4104_v4 = vpop.f32.mrb[173].mxu0  ;;  %v4246_v53 = vpop.f32.mrb[161].mxu1 }
 0x457   : > { %v13356_v52 = vpop.f32.mrb[174].mxu0  ;;  %v4333_v28 = vadd.f32 %v4246_v53, %v16510_v16  ;;  %v13362_v11 = vpop.f32.mrb[162].mxu1 }
 0x458   : > { %v4106_v2 = vpop.f32.mrb[175].mxu0  ;;  %v4335_v27 = vadd.f32 %v13362_v11, %v16513_v50  ;;  %v4249_v23 = vpop.f32.mrb[163].mxu1  ;;  %v16646_v52 = vld [vmem:[#allocation3 + $0x71] sm:$0xff]  ;;  %v16651_v11 = vld [vmem:[#allocation3 + $0x59] sm:$0xff] }
 0x459   : > { %v16559_v8 = vadd.f32 %v4106_v2, %v3915_v14  ;;  %v4356_v47 = vadd.f32 %v16555_v59, %v4333_v28  ;;  %v4334_v0 = vadd.f32 %v4249_v23, %v16516_v57  ;;  %v16578_v57 = vld [vmem:[%s18417_s1 + $0x20] sm:$0xff]  }
 0x45a   : > { %v4362_v32 = vadd.f32 %v16555_v59, %v4335_v27 }
 0x45b   : > { %v16564_v30 = vmax.f32 %v4356_v47, 0.0  ;;  %v4357_v44 = vadd.f32 %v16555_v59, %v4334_v0 }
 0x45c   : > { %v16569_v16 = vmax.f32 %v4362_v32, 0.0 }
 0x45d   : > { %4360 = vst [vmem:[#allocation3 + $0x19] sm:$0xff] %v16564_v30  ;;  %v16572_v50 = vmax.f32 %v4357_v44, 0.0  ;;  %v13365_v25 = vpop.f32.mrb[164].mxu1  ;;  %v4465_v55 = vpack.c.bf16 %v16564_v30, %v4443_v61 }
 0x45e   : > { %4366 = vst [vmem:[#allocation3 + $0x31] sm:$0xff] %v16569_v16  ;;  %v4337_v46 = vadd.f32 %v13365_v25, %v16518_v22  ;;  %v4261_v34 = vpop.f32.mrb[165].mxu1 }
 0x45f   : > { %4361 = vst [vmem:[#allocation3 + $0x21] sm:$0xff] %v16572_v50  ;;  %v4336_v51 = vadd.f32 %v4261_v34, %v16521_v3  ;;  %v13366_v18 = vpop.f32.mrb[166].mxu1  ;;  %13386 = vmatmul.mubr.msk.bf16.vlgmr.msra.gmra.mrb[176].mxu0 %vm2516_vm3, %v4465_v55  ;;  %v4466_v62 = vpack.c.bf16 %v16567_v54, %v16572_v50 }
 0x460   : > { %v4368_v37 = vadd.f32 %v16555_v59, %v4337_v46  ;;  %v4338_v22 = vadd.f32 %v13366_v18, %v16523_v5  ;;  %v4264_v24 = vpop.f32.mrb[167].mxu1  ;;  %13436 = vmatpush3.bf16.msra.mxu0 %v16440_v49 }
 0x461   : > { %v4363_v45 = vadd.f32 %v16555_v59, %v4336_v51  ;;  %13389 = vmatprep.mubr.msk.bf16.mxu0 %vm2516_vm3, %v4466_v62  ;;  %13487 = vmatprep.subr.bf16.mxu0 %v16578_v57 }
 0x462   : > { %v16597_v3 = vmax.f32 %v4368_v37, 0.0  ;;  %v4369_v33 = vadd.f32 %v16555_v59, %v4338_v22 }
 0x463   : > { %v16602_v9 = vmax.f32 %v4363_v45, 0.0 }
 0x464   : > { %4372 = vst [vmem:[#allocation3 + $0x49] sm:$0xff] %v16597_v3  ;;  %v16605_v5 = vmax.f32 %v4369_v33, 0.0  ;;  %v16607_v41 = vld [vmem:[#allocation3 + $0x18] sm:$0xff]  ;;  %v16625_v21 = vpack.c.bf16 %v16597_v3, %v16599_v35 }
 0x465   : > { %4367 = vst [vmem:[#allocation3 + $0x39] sm:$0xff] %v16602_v9  ;;  %v13369_v49 = vpop.f32.mrb[168].mxu1  ;;  %v4428_v31 = vpack.c.bf16 %v16607_v41, %v16424_v15  ;;  %v16614_v10 = vpack.c.bf16 %v16602_v9, %v16569_v16  ;;  %v16657_v23 = vld [vmem:[#allocation3 + $0x30] sm:$0xff] }
 0x466   : > { %18421 = vst [vmem:[#allocation58_spill] sm:$0xff] %v16625_v21  ;;  %4373 = vst [vmem:[#allocation3 + $0x51] sm:$0xff] %v16605_v5  ;;  %v4340_v40 = vadd.f32 %v13369_v49, %v16526_v60  ;;  %v4276_v43 = vpop.f32.mrb[169].mxu1  ;;  %v16629_v13 = vld [vmem:[#allocation3 + $0x20] sm:$0xff]  ;;  %v16631_v19 = vld [vmem:[#allocation3 + $0x28] sm:$0xff]  ;;  %v16677_v25 = vpack.c.bf16 %v16651_v11, %v16605_v5 }
 0x467   : > { %18420 = vst [vmem:[#allocation46_spill] sm:$0xff] %v16614_v10  ;;  %v13370_v1 = vpop.f32.mrb[170].mxu1  ;;  %13412 = vmatmul.mubr.msk.bf16.vlgmr.msra.gmra.mrb[184].mxu1 %vm2516_vm3, %v4428_v31  ;;  %v4429_v36 = vpack.c.bf16 %v16631_v19, %v16629_v13  ;;  %13390 = vmatmul.mubr.msk.bf16.gmra.mrb[180].mxu0 %vm2516_vm3, %v16614_v10  ;;  %v16706_v31 = vld [vmem:[#allocation3 + $0x89] sm:$0xff] }
 0x468   : > { %v4375_v4 = vadd.f32 %v16555_v59, %v4340_v40  ;;  %v4278_v60 = vpop.f32.mrb[171].mxu1  ;;  %13393 = vmatprep.mubr.msk.bf16.mxu0 %vm2516_vm3, %v16625_v21  ;;  %13462 = vmatpush3.bf16.msra.mxu1 %v16479_v63  ;;  %18423 = vst [vmem:[#allocation44_spill] sm:$0xff] %v16677_v25 }
 0x469   : > { %v4339_v53 = vadd.f32 %v4278_v60, %v16530_v17  ;;  %13415 = vmatprep.mubr.msk.bf16.mxu1 %vm2516_vm3, %v4429_v36  ;;  %13513 = vmatprep.subr.bf16.mxu1 %v16619_v42 }
 0x46a   : > { %v16649_v28 = vmax.f32 %v4375_v4, 0.0 }
 0x46b   : > { %v4374_v2 = vadd.f32 %v16555_v59, %v4339_v53  ;;  %v16654_v27 = vld [vmem:[#allocation3 + $0x48] sm:$0xff] }
 0x46c   : > { %4379 = vst [vmem:[#allocation3 + $0x69] sm:$0xff] %v16649_v28  ;;  %v16659_v63 = vld [vmem:[#allocation3 + $0x38] sm:$0xff]  ;;  %v16661_v17 = vld [vmem:[#allocation3 + $0x40] sm:$0xff] }
 0x46d   : > { %v16665_v0 = vmax.f32 %v4374_v2, 0.0  ;;  %v13373_v32 = vpop.f32.mrb[172].mxu1  ;;  %v16669_v61 = vpack.c.bf16 %v16659_v63, %v16657_v23  ;;  %v16673_v44 = vpack.c.bf16 %v16654_v27, %v16661_v17  ;;  %v16699_v45 = vld [vmem:[#allocation3 + $0x50] sm:$0xff]  ;;  %v16701_v33 = vld [vmem:[#allocation3 + $0x58] sm:$0xff] }
 0x46e   : > { %v4290_v55 = vpop.f32.mrb[173].mxu1  ;;  %v16715_v1 = vpack.c.bf16 %v16701_v33, %v16699_v45  ;;  %v16888_v10 = vld [vmem:[#allocation3 + $0x4a] sm:$0xff] }
 0x46f   : > { %18422 = vst [vmem:[#allocation47_spill] sm:$0xff] %v16673_v44  ;;  %4378 = vst [vmem:[#allocation3 + $0x61] sm:$0xff] %v16665_v0  ;;  %v4341_v46 = vadd.f32 %v4290_v55, %v16534_v56  ;;  %v13374_v34 = vpop.f32.mrb[174].mxu1  ;;  %13416 = vmatmul.mubr.msk.bf16.gmra.mrb[188].mxu1 %vm2516_vm3, %v16669_v61  ;;  %13394 = vmatmul.mubr.msk.bf16.gmra.mrb[184].mxu0 %vm2516_vm3, %v16677_v25  ;;  %v16687_v51 = vpack.c.bf16 %v16649_v28, %v16665_v0  ;;  %v4805_v56 = vld [vmem:[#allocation3 + $0xa] sm:$0xff] }
 0x470   : > { %v4343_v18 = vadd.f32 %v13374_v34, %v16537_v26  ;;  %v4293_v62 = vpop.f32.mrb[175].mxu1  ;;  %13419 = vmatprep.mubr.msk.bf16.mxu1 %vm2516_vm3, %v16673_v44  ;;  %18425 = vst [vmem:[#allocation43_spill] sm:$0xff] %v16715_v1 }
 0x471   : > { %18424 = vst [vmem:[#allocation50_spill] sm:$0xff] %v16687_v51  ;;  %v4380_v37 = vadd.f32 %v16555_v59, %v4341_v46  ;;  %v4342_v22 = vadd.f32 %v4293_v62, %v16540_v29  ;;  %13397 = vmatprep.mubr.msk.bf16.mxu0 %vm2516_vm3, %v16687_v51 }
 0x472   : > { %v4386_v24 = vadd.f32 %v16555_v59, %v4343_v18 }
 0x473   : > { %v16703_v26 = vmax.f32 %v4380_v37, 0.0  ;;  %v4381_v49 = vadd.f32 %v16555_v59, %v4342_v22 }
 0x474   : > { %v16708_v40 = vmax.f32 %v4386_v24, 0.0 }
 0x475   : > { %4384 = vst [vmem:[#allocation3 + $0x79] sm:$0xff] %v16703_v26  ;;  %v16711_v29 = vmax.f32 %v4381_v49, 0.0  ;;  %v13377_v43 = vpop.f32.mrb[176].mxu1  ;;  %v16719_v36 = vpack.c.bf16 %v16703_v26, %v16646_v52  ;;  %v16753_v49 = vld [vmem:[#allocation3 + $0xa1] sm:$0xff] }
 0x476   : > { %4390 = vst [vmem:[#allocation3 + $0x91] sm:$0xff] %v16708_v40  ;;  %v4345_v4 = vadd.f32 %v13377_v43, %v16542_v6  ;;  %v4305_v60 = vpop.f32.mrb[177].mxu1  ;;  %v16723_v53 = vld [vmem:[#allocation3 + $0x60] sm:$0xff]  ;;  %v16725_v2 = vld [vmem:[#allocation3 + $0x68] sm:$0xff] }
 0x477   : > { %18426 = vst [vmem:[#allocation51_spill] sm:$0xff] %v16719_v36  ;;  %4385 = vst [vmem:[#allocation3 + $0x81] sm:$0xff] %v16711_v29  ;;  %v4344_v55 = vadd.f32 %v4305_v60, %v16545_v20  ;;  %v13378_v46 = vpop.f32.mrb[178].mxu1  ;;  %13420 = vmatmul.mubr.msk.bf16.gmra.mrb[192].mxu1 %vm2516_vm3, %v16715_v1  ;;  %v16735_v34 = vpack.c.bf16 %v16725_v2, %v16723_v53  ;;  %13398 = vmatmul.mubr.msk.bf16.gmra.mrb[188].mxu0 %vm2516_vm3, %v16719_v36  ;;  %v16762_v60 = vld [vmem:[#allocation3 + $0x70] sm:$0xff]  ;;  %v16844_v36 = vld [vmem:[#allocation3 + $0x22] sm:$0xff] }
 0x478   : > { %v16741_v6 = vpack.c.bf16 %v16706_v31, %v16711_v29  ;;  %v4392_v18 = vadd.f32 %v16555_v59, %v4345_v4  ;;  %v4346_v62 = vadd.f32 %v13378_v46, %v16547_v48  ;;  %v4308_v20 = vpop.f32.mrb[179].mxu1  ;;  %v16885_v1 = vld [vmem:[#allocation3 + $0x3a] sm:$0xff] }
 0x479   : > { %18427 = vst [vmem:[#allocation45_spill] sm:$0xff] %v16735_v34  ;;  %v4387_v37 = vadd.f32 %v16555_v59, %v4344_v55  ;;  %13423 = vmatprep.mubr.msk.bf16.mxu1 %vm2516_vm3, %v16735_v34 }
 0x47a   : > { %18428 = vst [vmem:[#allocation54_spill] sm:$0xff] %v16741_v6  ;;  %13401 = vmatprep.mubr.msk.bf16.mxu0 %vm2516_vm3, %v16741_v6  ;;  %v16750_v22 = vmax.f32 %v4392_v18, 0.0  ;;  %v4393_v24 = vadd.f32 %v16555_v59, %v4346_v62 }
 0x47b   : > { %v16757_v4 = vmax.f32 %v4387_v37, 0.0 }
 0x47c   : > { %4396 = vst [vmem:[#allocation3 + $0xa9] sm:$0xff] %v16750_v22  ;;  %v16760_v48 = vmax.f32 %v4393_v24, 0.0  ;;  %v16764_v55 = vld [vmem:[#allocation3 + $0x78] sm:$0xff]  ;;  %v16785_v47 = vpack.c.bf16 %v16750_v22, %v16753_v49 }
 0x47d   : > { %4391 = vst [vmem:[#allocation3 + $0x99] sm:$0xff] %v16757_v4  ;;  %v13381_v46 = vpop.f32.mrb[180].mxu1  ;;  %v16769_v18 = vpack.c.bf16 %v16764_v55, %v16762_v60  ;;  %v16773_v62 = vpack.c.bf16 %v16757_v4, %v16708_v40  ;;  %v4818_v44 = vld [vmem:[#allocation3 + $0x72] sm:$0xff] }
 0x47e   : > { %4397 = vst [vmem:[#allocation3 + $0xb1] sm:$0xff] %v16760_v48  ;;  %v4348_v37 = vadd.f32 %v13381_v46, %v16550_v39  ;;  %v4320_v24 = vpop.f32.mrb[181].mxu1  ;;  %v16779_v32 = vld [vmem:[#allocation3 + $0x80] sm:$0xff]  ;;  %v16781_v43 = vld [vmem:[#allocation3 + $0x88] sm:$0xff]  ;;  %18431 = vst [vmem:[#allocation49_spill] sm:$0xff] %v16785_v47 }
 0x47f   : > { %18429 = vst [vmem:[#allocation48_spill] sm:$0xff] %v16769_v18  ;;  %18430 = vst [vmem:[#allocation56_spill] sm:$0xff] %v16773_v62  ;;  %v13382_v14 = vpop.f32.mrb[182].mxu1  ;;  %13424 = vmatmul.mubr.msk.bf16.gmra.mrb[196].mxu1 %vm2516_vm3, %v16769_v18  ;;  %v16793_v20 = vpack.c.bf16 %v16781_v43, %v16779_v32  ;;  %13402 = vmatmul.mubr.msk.bf16.gmra.mrb[192].mxu0 %vm2516_vm3, %v16773_v62 }
 0x480   : > { %v4399_v39 = vadd.f32 %v16555_v59, %v4348_v37  ;;  %v4322_v46 = vpop.f32.mrb[183].mxu1  ;;  %13405 = vmatprep.mubr.msk.bf16.mxu0 %vm2516_vm3, %v16785_v47  ;;  %v4804_v14 = vld [vmem:[#allocation3 + $0x2] sm:$0xff]  ;;  %v16809_v37 = vld [vmem:[#allocation3 + $0x90] sm:$0xff] }
 0x481   : > { %18432 = vst [vmem:[#allocation59_spill] sm:$0xff] %v16793_v20  ;;  %v4347_v24 = vadd.f32 %v4322_v46, %v16559_v8  ;;  %13427 = vmatprep.mubr.msk.bf16.mxu1 %vm2516_vm3, %v16793_v20  ;;  %v4827_v8 = vpack.c.bf16 %v4805_v56, %v4804_v14  ;;  %v16842_v14 = vld [vmem:[#allocation3 + $0x1a] sm:$0xff]  ;;  %v16846_v20 = vld [vmem:[#allocation3 + $0x2a] sm:$0xff]  ;;  %v5043_v56 = vpack.c.bf16 %v16629_v13, %v16607_v41  ;;  %v16890_v41 = vld [vmem:[#allocation3 + $0x42] sm:$0xff] }
 0x482   : > { %v16803_v12 = vmax.f32 %v4399_v39, 0.0  ;;  %v4475_v39 = vpack.c.bf16 %v16760_v48, %v16760_v48  ;;  %v16907_v13 = vld [vmem:[%s18417_s1 + $0x38] sm:$0xff]  }
 0x483   : > { %v4398_v38 = vadd.f32 %v16555_v59, %v4347_v24  ;;  %v16806_v7 = vld [vmem:[#allocation3 + $0xa8] sm:$0xff] }
 0x484   : > { %4403 = vst [vmem:[#allocation3 + $0xc9] sm:$0xff] %v16803_v12  ;;  %v16811_v58 = vld [vmem:[#allocation3 + $0x98] sm:$0xff]  ;;  %v16813_v47 = vld [vmem:[#allocation3 + $0xa0] sm:$0xff] }
 0x485   : > { %v16815_v46 = vmax.f32 %v4398_v38, 0.0  ;;  %v16819_v62 = vpack.c.bf16 %v16811_v58, %v16809_v37  ;;  %v16823_v59 = vpack.c.bf16 %v16806_v7, %v16813_v47  ;;  %v16827_v24 = vld [vmem:[#allocation3 + $0xb0] sm:$0xff]  ;;  %v16829_v6 = vld [vmem:[#allocation3 + $0xb8] sm:$0xff]  ;;  %v4829_v38 = vpack.c.bf16 %v16846_v20, %v16844_v36 }
 0x487   : > { %18433 = vst [vmem:[#allocation52_spill] sm:$0xff] %v16819_v62  ;;  %18434 = vst [vmem:[#allocation60_spill] sm:$0xff] %v16823_v59  ;;  %13428 = vmatmul.mubr.msk.bf16.gmra.mrb[200].mxu1 %vm2516_vm3, %v16819_v62  ;;  %13406 = vmatmul.mubr.msk.bf16.gmra.mrb[196].mxu0 %vm2516_vm3, %v4475_v39  ;;  %v4806_v62 = vld [vmem:[#allocation3 + $0x12] sm:$0xff]  ;;  %v4438_v39 = vpack.c.bf16 %v16827_v24, %v16827_v24 }
 0x488   : > { %4402 = vst [vmem:[#allocation3 + $0xc1] sm:$0xff] %v16815_v46  ;;  %13431 = vmatprep.mubr.msk.bf16.mxu1 %vm2516_vm3, %v16823_v59  ;;  %13437 = vmatprep.mubr.msk.bf16.mxu0 %vm2516_vm3, %v4827_v8  ;;  %v4828_v59 = vpack.c.bf16 %v16842_v14, %v4806_v62  ;;  %v16854_v8 = vld [vmem:[%s18417_s1 + $0x30] sm:$0xff]   ;;  %v16868_v62 = vld [vmem:[#allocation3 + $0xb2] sm:$0xff] }
 0x48b   : > { %v16872_v21 = vld [vmem:[#allocation3 + $0xca] sm:$0xff] }
 0x48c   : > { %18435 = vst [vmem:[#allocation55_spill] sm:$0xff] %v16872_v21 }
 0x48f   : > { %v16860_v51 = vld [vmem:[#allocation3 + $0xc0] sm:$0xff]  ;;  %v16862_v18 = vld [vmem:[#allocation3 + $0xc8] sm:$0xff]  ;;  %13432 = vmatmul.mubr.msk.bf16.gmra.mrb[204].mxu1 %vm2516_vm3, %v4438_v39  ;;  %13438 = vmatmul.mubr.msk.bf16.vlgmr.msra.gmra.mrb[200].mxu0 %vm2516_vm3, %v4828_v59  ;;  %v16883_v59 = vld [vmem:[#allocation3 + $0x32] sm:$0xff]  ;;  %v5045_v39 = vpack.c.bf16 %v16661_v17, %v16659_v63  ;;  %v5046_v17 = vpack.c.bf16 %v16699_v45, %v16654_v27 }
 0x490   : > { %v16864_v25 = vld [vmem:[#allocation3 + $0xba] sm:$0xff]  ;;  %v16870_v34 = vld [vmem:[#allocation3 + $0xc2] sm:$0xff]  ;;  %13463 = vmatprep.mubr.msk.bf16.mxu1 %vm2516_vm3, %v5043_v56  ;;  %13441 = vmatprep.mubr.msk.bf16.mxu0 %vm2516_vm3, %v4829_v38  ;;  %v5044_v38 = vpack.c.bf16 %v16657_v23, %v16631_v19  ;;  %v16896_v56 = vpack.c.bf16 %v16885_v1, %v16883_v59  ;;  %v4814_v63 = vld [vmem:[#allocation3 + $0x52] sm:$0xff] }
 0x491   : > { %13488 = vmatpush3.bf16.msra.mxu0 %v16578_v57  ;;  %v16900_v57 = vpack.c.bf16 %v16888_v10, %v16890_v41  ;;  %v16916_v19 = vld [vmem:[#allocation3 + $0x5a] sm:$0xff]  ;;  %v16919_v23 = vld [vmem:[#allocation3 + $0x62] sm:$0xff] }
 0x492   : > { %13539 = vmatprep.subr.bf16.mxu0 %v16854_v8  ;;  %18436 = vst [vmem:[#allocation41_spill] sm:$0xff] %v16896_v56  ;;  %v4819_v27 = vld [vmem:[#allocation3 + $0x7a] sm:$0xff]  ;;  %v4820_v45 = vld [vmem:[#allocation3 + $0x82] sm:$0xff] }
 0x493   : > { %18437 = vst [vmem:[#allocation53_spill] sm:$0xff] %v16900_v57 }
 0x497   : > { %13464 = vmatmul.mubr.msk.bf16.vlgmr.msra.gmra.mrb[208].mxu1 %vm2516_vm3, %v5044_v38  ;;  %13442 = vmatmul.mubr.msk.bf16.gmra.mrb[204].mxu0 %vm2516_vm3, %v16896_v56  ;;  %v16924_v38 = vpack.c.bf16 %v16916_v19, %v4814_v63  ;;  %v16926_v56 = vld [vmem:[#allocation3 + $0x6a] sm:$0xff] }
 0x498   : > { %13467 = vmatprep.mubr.msk.bf16.mxu1 %vm2516_vm3, %v5045_v39  ;;  %13445 = vmatprep.mubr.msk.bf16.mxu0 %vm2516_vm3, %v16900_v57  ;;  %v5047_v39 = vpack.c.bf16 %v16723_v53, %v16701_v33  ;;  %v16940_v57 = vld [vmem:[#allocation3 + $0x8a] sm:$0xff]  ;;  %v5048_v33 = vpack.c.bf16 %v16762_v60, %v16725_v2  ;;  %v16944_v53 = vpack.c.bf16 %v4819_v27, %v4818_v44  ;;  %v4823_v2 = vld [vmem:[#allocation3 + $0x9a] sm:$0xff] }
 0x499   : > { %13514 = vmatpush3.bf16.msra.mxu1 %v16619_v42  ;;  %18438 = vst [vmem:[#allocation42_spill] sm:$0xff] %v16924_v38  ;;  %v16932_v42 = vpack.c.bf16 %v16926_v56, %v16919_v23  ;;  %v4825_v60 = vld [vmem:[#allocation3 + $0xaa] sm:$0xff] }
 0x49a   : > { %13565 = vmatprep.subr.bf16.mxu1 %v16907_v13 }
 0x49b   : > { %18439 = vst [vmem:[#allocation61_spill] sm:$0xff] %v16932_v42 }
 0x49f   : > { %13468 = vmatmul.mubr.msk.bf16.gmra.mrb[212].mxu1 %vm2516_vm3, %v5046_v17  ;;  %13446 = vmatmul.mubr.msk.bf16.gmra.mrb[208].mxu0 %vm2516_vm3, %v16924_v38  ;;  %v5049_v17 = vpack.c.bf16 %v16779_v32, %v16764_v55  ;;  %v16949_v38 = vpack.c.bf16 %v16940_v57, %v4820_v45  ;;  %v4824_v55 = vld [vmem:[#allocation3 + $0xa2] sm:$0xff] }
 0x4a0   : > { %13471 = vmatprep.mubr.msk.bf16.mxu1 %vm2516_vm3, %v5047_v39  ;;  %13449 = vmatprep.mubr.msk.bf16.mxu0 %vm2516_vm3, %v16932_v42  ;;  %v4822_v39 = vld [vmem:[#allocation3 + $0x92] sm:$0xff]  ;;  %v5050_v42 = vpack.c.bf16 %v16809_v37, %v16781_v43  ;;  %v16963_v21 = vpack.c.bf16 %v4825_v60, %v4824_v55  ;;  %v5052_v43 = vpack.c.bf16 %v16827_v24, %v16806_v7 }
 0x4a1   : > { %v16959_v32 = vpack.c.bf16 %v4823_v2, %v4822_v39  ;;  %v4838_v37 = vpack.c.bf16 %v16868_v62, %v16868_v62  ;;  %v5054_v7 = vpack.c.bf16 %v16862_v18, %v16862_v18 }
 0x4a7   : > { %13472 = vmatmul.mubr.msk.bf16.gmra.mrb[216].mxu1 %vm2516_vm3, %v5048_v33  ;;  %13450 = vmatmul.mubr.msk.bf16.gmra.mrb[212].mxu0 %vm2516_vm3, %v16944_v53  ;;  %v5051_v33 = vpack.c.bf16 %v16813_v47, %v16811_v58  ;;  %v5053_v58 = vpack.c.bf16 %v16860_v51, %v16829_v6  ;;  %v18440_v47 = vpack.c.bf16 %v16572_v50, %v16564_v30 }
 0x4a8   : > { %13475 = vmatprep.mubr.msk.bf16.mxu1 %vm2516_vm3, %v5049_v17  ;;  %13453 = vmatprep.mubr.msk.bf16.mxu0 %vm2516_vm3, %v16949_v38  ;;  %v14436_v17 = vld [vmem:[%s18417_s1 + $0x40] sm:$0xff]   ;;  %v18442_v30 = vpack.c.bf16 %v16599_v35, %v16602_v9  ;;  %v5476_v50 = vpack.c.bf16 %v16883_v59, %v16846_v20  ;;  %v5478_v35 = vpack.c.bf16 %v4814_v63, %v16888_v10  ;;  %v18451_v20 = vld [vmem:[#allocation47_spill] sm:$0xff] }
 0x4a9   : > { %v5479_v9 = vpack.c.bf16 %v16919_v23, %v16916_v19  ;;  %v5481_v10 = vpack.c.bf16 %v4820_v45, %v4819_v27  ;;  %v18457_v59 = vld [vmem:[#allocation48_spill] sm:$0xff]  ;;  %v18460_v19 = vld [vmem:[#allocation51_spill] sm:$0xff]  ;;  %v18462_v23 = vld [vmem:[#allocation54_spill] sm:$0xff]  ;;  %v18465_v45 = vpack.c.bf16 %v16829_v6, %v16827_v24 }
 0x4aa   : > { %v18463_v63 = vld [vmem:[#allocation60_spill] sm:$0xff]  ;;  %v5905_v24 = vld [vmem:[#allocation3 + $0xd9] sm:$0xff] }
 0x4ab   : > { %v18464_v27 = vld [vmem:[#allocation56_spill] sm:$0xff] }
 0x4ac   : > { %v5904_v6 = vld [vmem:[#allocation3 + $0xd1] sm:$0xff] }
 0x4af   : > { %13476 = vmatmul.mubr.msk.bf16.gmra.mrb[220].mxu1 %vm2516_vm3, %v5050_v42  ;;  %13454 = vmatmul.mubr.msk.bf16.gmra.mrb[216].mxu0 %vm2516_vm3, %v16959_v32  ;;  %v5475_v42 = vpack.c.bf16 %v16844_v36, %v16842_v14  ;;  %v5477_v36 = vpack.c.bf16 %v16890_v41, %v16885_v1  ;;  %v5270_v1 = vpack.c.bf16 %v16803_v12, %v16803_v12  ;;  %v18452_v14 = vld [vmem:[#allocation46_spill] sm:$0xff] }
 0x4b0   : > { %13479 = vmatprep.mubr.msk.bf16.mxu1 %vm2516_vm3, %v5051_v33  ;;  %13457 = vmatprep.mubr.msk.bf16.mxu0 %vm2516_vm3, %v16963_v21  ;;  %v18441_v33 = vpack.c.bf16 %v16569_v16, %v16567_v54  ;;  %v18443_v54 = vpack.c.bf16 %v16605_v5, %v16597_v3  ;;  %v18444_v16 = vpack.c.bf16 %v16665_v0, %v16651_v11  ;;  %v18454_v41 = vld [vmem:[#allocation58_spill] sm:$0xff] }
 0x4b1   : > { %v18445_v3 = vpack.c.bf16 %v16646_v52, %v16649_v28  ;;  %v18446_v5 = vpack.c.bf16 %v16711_v29, %v16703_v26  ;;  %v5480_v11 = vpack.c.bf16 %v4818_v44, %v16926_v56  ;;  %v18447_v0 = vpack.c.bf16 %v16708_v40, %v16706_v31  ;;  %v5256_v26 = vld [vmem:[#allocation3 + $0xb9] sm:$0xff] }
 0x4b2   : > { %v18448_v52 = vpack.c.bf16 %v16753_v49, %v16757_v4  ;;  %v5482_v28 = vpack.c.bf16 %v4822_v39, %v16940_v57  ;;  %v5483_v29 = vpack.c.bf16 %v4824_v55, %v4823_v2  ;;  %v5269_v44 = vpack.c.bf16 %v16815_v46, %v5256_v26  ;;  %v18458_v56 = vld [vmem:[#allocation50_spill] sm:$0xff]  ;;  %v18459_v57 = vld [vmem:[#allocation59_spill] sm:$0xff]  ;;  %v5688_v39 = vld [vmem:[#allocation3 + $0xd0] sm:$0xff] }
 0x4b3   : > { %v18449_v31 = vpack.c.bf16 %v16760_v48, %v16750_v22  ;;  %v5484_v40 = vpack.c.bf16 %v16868_v62, %v4825_v60  ;;  %v5485_v49 = vpack.c.bf16 %v16870_v34, %v16864_v25  ;;  %v18450_v22 = vld [vmem:[#allocation55_spill] sm:$0xff]  ;;  %v5915_v2 = vpack.c.bf16 %v5256_v26, %v16760_v48 }
 0x4b4   : > { %v5486_v4 = vpack.c.bf16 %v18450_v22, %v18450_v22  ;;  %v17098_v60 = vld [vmem:[#allocation4 + $0xd8] sm:$0xff]  ;;  %v18468_v48 = vpack.c.bf16 %v16803_v12, %v16815_v46  ;;  %v18473_v12 = vld [vmem:[#allocation61_spill] sm:$0xff] }
 0x4b5   : > { %v5701_v55 = vpack.c.bf16 %v17098_v60, %v5688_v39 }
 0x4b7   : > { %13480 = vmatmul.mubr.msk.bf16.gmra.mrb[224].mxu1 %vm2516_vm3, %v5052_v43  ;;  %13458 = vmatmul.mubr.msk.bf16.gmra.mrb[220].mxu0 %vm2516_vm3, %v4838_v37  ;;  %v18466_v43 = vld [vmem:[#allocation49_spill] sm:$0xff]  ;;  %v18467_v37 = vpack.c.bf16 %v16862_v18, %v16860_v51  ;;  %v5906_v18 = vld [vmem:[#allocation3 + $0xe1] sm:$0xff] }
 0x4b8   : > { %13483 = vmatprep.mubr.msk.bf16.mxu1 %vm2516_vm3, %v5053_v58  ;;  %13489 = vmatprep.mubr.msk.bf16.mxu0 %vm2516_vm3, %v18440_v47  ;;  %v5917_v58 = vpack.c.bf16 %v5905_v24, %v5904_v6  ;;  %v18469_v47 = vld [vmem:[#allocation57_spill] sm:$0xff] }
 0x4b9   : > { %v18470_v51 = vld [vmem:[#allocation41_spill] sm:$0xff] }
 0x4bf   : > { %13484 = vmatmul.mubr.msk.bf16.gmra.mrb[228].mxu1 %vm2516_vm3, %v5054_v7  ;;  %13490 = vmatmul.mubr.msk.bf16.vlgmr.msra.gmra.mrb[224].mxu0 %vm2516_vm3, %v18441_v33  ;;  %v5918_v7 = vpack.c.bf16 %v5906_v18, %v5906_v18 }
 0x4c0   : > { %13515 = vmatprep.mubr.msk.bf16.mxu1 %vm2516_vm3, %v5475_v42  ;;  %13493 = vmatprep.mubr.msk.bf16.mxu0 %vm2516_vm3, %v18442_v30  ;;  %v18471_v42 = vld [vmem:[#allocation53_spill] sm:$0xff] }
 0x4c1   : > { %13540 = vmatpush3.bf16.msra.mxu0 %v16854_v8  ;;  %v18453_v8 = vld [vmem:[#allocation43_spill] sm:$0xff] }
 0x4c2   : > { %13591 = vmatprep.subr.bf16.mxu0 %v14436_v17 }
 0x4c7   : > { %13516 = vmatmul.mubr.msk.bf16.vlgmr.msra.gmra.mrb[232].mxu1 %vm2516_vm3, %v5476_v50  ;;  %13494 = vmatmul.mubr.msk.bf16.gmra.mrb[228].mxu0 %vm2516_vm3, %v18443_v54  ;;  %v6120_v54 = vld [vmem:[#allocation3 + $0xd2] sm:$0xff] }
 0x4c8   : > { %13519 = vmatprep.mubr.msk.bf16.mxu1 %vm2516_vm3, %v5477_v36  ;;  %13497 = vmatprep.mubr.msk.bf16.mxu0 %vm2516_vm3, %v18444_v16  ;;  %v18474_v36 = vpack.c.bf16 %v16864_v25, %v16868_v62  ;;  %v18475_v25 = vpack.c.bf16 %v18450_v22, %v16870_v34  ;;  %v6122_v62 = vld [vmem:[#allocation3 + $0xe2] sm:$0xff]  ;;  %v14437_v34 = vld [vmem:[%s18228_s8 + $0x8] sm:$0xff]  }
 0x4c9   : > { %13566 = vmatpush3.bf16.msra.mxu1 %v16907_v13  ;;  %v18456_v13 = vld [vmem:[#allocation44_spill] sm:$0xff] }
 0x4ca   : > { %13617 = vmatprep.subr.bf16.mxu1 %v16424_v15 }
 0x4cf   : > { %13520 = vmatmul.mubr.msk.bf16.gmra.mrb[236].mxu1 %vm2516_vm3, %v5478_v35  ;;  %13498 = vmatmul.mubr.msk.bf16.gmra.mrb[232].mxu0 %vm2516_vm3, %v18445_v3 }
 0x4d0   : > { %13523 = vmatprep.mubr.msk.bf16.mxu1 %vm2516_vm3, %v5479_v9  ;;  %13501 = vmatprep.mubr.msk.bf16.mxu0 %vm2516_vm3, %v18446_v5 }
 0x4d7   : > { %13524 = vmatmul.mubr.msk.bf16.gmra.mrb[240].mxu1 %vm2516_vm3, %v5480_v11  ;;  %13502 = vmatmul.mubr.msk.bf16.gmra.mrb[236].mxu0 %vm2516_vm3, %v18447_v0 }
 0x4d8   : > { %13527 = vmatprep.mubr.msk.bf16.mxu1 %vm2516_vm3, %v5481_v10  ;;  %13505 = vmatprep.mubr.msk.bf16.mxu0 %vm2516_vm3, %v18448_v52 }
 0x4df   : > { %13528 = vmatmul.mubr.msk.bf16.gmra.mrb[244].mxu1 %vm2516_vm3, %v5482_v28  ;;  %13506 = vmatmul.mubr.msk.bf16.gmra.mrb[240].mxu0 %vm2516_vm3, %v18449_v31  ;;  %v6134_v31 = vpack.c.bf16 %v6122_v62, %v6122_v62 }
 0x4e0   : > { %13531 = vmatprep.mubr.msk.bf16.mxu1 %vm2516_vm3, %v5483_v29  ;;  %13509 = vmatprep.mubr.msk.bf16.mxu0 %vm2516_vm3, %v5269_v44 }
 0x4e7   : > { %13532 = vmatmul.mubr.msk.bf16.gmra.mrb[248].mxu1 %vm2516_vm3, %v5484_v40  ;;  %13510 = vmatmul.mubr.msk.bf16.gmra.mrb[244].mxu0 %vm2516_vm3, %v5270_v1 }
 0x4e8   : > { %13535 = vmatprep.mubr.msk.bf16.mxu1 %vm2516_vm3, %v5485_v49  ;;  %13541 = vmatprep.mubr.msk.bf16.mxu0 %vm2516_vm3, %v16669_v61  ;;  %v18455_v61 = vld [vmem:[#allocation45_spill] sm:$0xff] }
 0x4ef   : > { %13536 = vmatmul.mubr.msk.bf16.gmra.mrb[252].mxu1 %vm2516_vm3, %v5486_v4  ;;  %13542 = vmatmul.mubr.msk.bf16.vlgmr.msra.gmra.mrb[248].mxu0 %vm2516_vm3, %v18451_v20 }
 0x4f0   : > { %13567 = vmatprep.mubr.msk.bf16.mxu1 %vm2516_vm3, %v18452_v14  ;;  %13545 = vmatprep.mubr.msk.bf16.mxu0 %vm2516_vm3, %v18453_v8 }
 0x4f1   : > { %13592 = vmatpush3.bf16.msra.mxu0 %v14436_v17  ;;  %v18472_v17 = vld [vmem:[#allocation42_spill] sm:$0xff] }
 0x4f2   : > { %13653 = vmatprep.subr.bf16.mxu0 %v16424_v15  ;;  %v18461_v15 = vld [vmem:[#allocation52_spill] sm:$0xff] }
 0x4f7   : > { %13568 = vmatmul.mubr.msk.bf16.vlgmr.msra.gmra.mrb[0].mxu1 %vm2516_vm3, %v18454_v41  ;;  %13546 = vmatmul.mubr.msk.bf16.gmra.mrb[252].mxu0 %vm2516_vm3, %v18455_v61 }
 0x4f8   : > { %13571 = vmatprep.mubr.msk.bf16.mxu1 %vm2516_vm3, %v18456_v13  ;;  %13549 = vmatprep.mubr.msk.bf16.mxu0 %vm2516_vm3, %v18457_v59 }
 0x4f9   : > { %13618 = vmatpush3.bf16.msra.mxu1 %v14437_v34 }
 0x4fa   : > { %13623 = vmatprep.subr.bf16.mxu1 %v17098_v60 }
 0x4ff   : > { %13572 = vmatmul.mubr.msk.bf16.gmra.mrb[4].mxu1 %vm2516_vm3, %v18458_v56  ;;  %13550 = vmatmul.mubr.msk.bf16.gmra.mrb[0].mxu0 %vm2516_vm3, %v18459_v57 }
 0x500   : > { %13575 = vmatprep.mubr.msk.bf16.mxu1 %vm2516_vm3, %v18460_v19  ;;  %13553 = vmatprep.mubr.msk.bf16.mxu0 %vm2516_vm3, %v18461_v15 }
 0x507   : > { %13576 = vmatmul.mubr.msk.bf16.gmra.mrb[8].mxu1 %vm2516_vm3, %v18462_v23  ;;  %13554 = vmatmul.mubr.msk.bf16.gmra.mrb[4].mxu0 %vm2516_vm3, %v18463_v63 }
 0x508   : > { %13579 = vmatprep.mubr.msk.bf16.mxu1 %vm2516_vm3, %v18464_v27  ;;  %13557 = vmatprep.mubr.msk.bf16.mxu0 %vm2516_vm3, %v18465_v45 }
 0x50f   : > { %13580 = vmatmul.mubr.msk.bf16.gmra.mrb[12].mxu1 %vm2516_vm3, %v18466_v43  ;;  %13558 = vmatmul.mubr.msk.bf16.gmra.mrb[8].mxu0 %vm2516_vm3, %v18467_v37 }
 0x510   : > { %13583 = vmatprep.mubr.msk.bf16.mxu1 %vm2516_vm3, %v5915_v2  ;;  %13561 = vmatprep.mubr.msk.bf16.mxu0 %vm2516_vm3, %v5701_v55 }
 0x517   : > { %13584 = vmatmul.mubr.msk.bf16.gmra.mrb[16].mxu1 %vm2516_vm3, %v18468_v48  ;;  %13562 = vmatmul.mubr.msk.bf16.gmra.mrb[12].mxu0 %vm2516_vm3, %v18469_v47 }
 0x518   : > { %13587 = vmatprep.mubr.msk.bf16.mxu1 %vm2516_vm3, %v5917_v58  ;;  %13593 = vmatprep.mubr.msk.bf16.mxu0 %vm2516_vm3, %v18470_v51 }
 0x51f   : > { %13588 = vmatmul.mubr.msk.bf16.gmra.mrb[20].mxu1 %vm2516_vm3, %v5918_v7  ;;  %13594 = vmatmul.mubr.msk.bf16.vlgmr.msra.gmra.mrb[16].mxu0 %vm2516_vm3, %v18471_v42 }
 0x520   : > { %13597 = vmatprep.mubr.msk.bf16.mxu0 %vm2516_vm3, %v18472_v17  ;;  %13619 = vmatprep.mubr.msk.bf16.mxu1 %vm14956_vm4, %v17098_v60 }
 0x527   : > { %13598 = vmatmul.mubr.msk.bf16.gmra.mrb[20].mxu0 %vm2516_vm3, %v18473_v12 }
 0x528   : > { %13601 = vmatprep.mubr.msk.bf16.mxu0 %vm2516_vm3, %v16944_v53  ;;  %v6121_v53 = vld [vmem:[#allocation3 + $0xda] sm:$0xff] }
 0x529   : > { %v6133_v11 = vpack.c.bf16 %v6121_v53, %v6120_v54 }
 0x52f   : > { %13602 = vmatmul.mubr.msk.bf16.gmra.mrb[24].mxu0 %vm2516_vm3, %v16949_v38 }
 0x530   : > { %13605 = vmatprep.mubr.msk.bf16.mxu0 %vm2516_vm3, %v16959_v32 }
 0x532   : > { %v13387_v46 = vpop.f32.mrb[176].mxu0 }
 0x533   : > { %v4554_v33 = vpop.f32.mrb[177].mxu0 }
 0x534   : > { %v13388_v30 = vpop.f32.mrb[178].mxu0 }
 0x535   : > { %v4557_v50 = vpop.f32.mrb[179].mxu0 }
 0x537   : > { %13606 = vmatmul.mubr.msk.bf16.gmra.mrb[28].mxu0 %vm2516_vm3, %v16963_v21 }
 0x538   : > { %13609 = vmatprep.mubr.msk.bf16.mxu0 %vm2516_vm3, %v18474_v36 }
 0x53a   : > { %v13413_v16 = vpop.f32.mrb[184].mxu1  ;;  %v13391_v35 = vpop.f32.mrb[180].mxu0 }
 0x53b   : > { %v4717_v38 = vpop.f32.mrb[185].mxu1  ;;  %v4569_v9 = vpop.f32.mrb[181].mxu0 }
 0x53c   : > { %v17137_v3 = vadd.f32 %v4717_v38, %v4554_v33  ;;  %v13414_v32 = vpop.f32.mrb[186].mxu1  ;;  %v13392_v5 = vpop.f32.mrb[182].mxu0 }
 0x53d   : > { %v4720_v10 = vpop.f32.mrb[187].mxu1  ;;  %v4572_v0 = vpop.f32.mrb[183].mxu0  ;;  %v17139_v52 = vadd.f32 %v13414_v32, %v13388_v30 }
 0x53e   : > { %v17141_v21 = vadd.f32 %v4720_v10, %v4557_v50 }
 0x53f   : > { %13610 = vmatmul.mubr.msk.bf16.gmra.mrb[32].mxu0 %vm2516_vm3, %v18475_v25 }
 0x540   : > { %13613 = vmatprep.mubr.msk.bf16.mxu0 %vm2516_vm3, %v6133_v11 }
 0x542   : > { %v13417_v28 = vpop.f32.mrb[188].mxu1  ;;  %v13395_v26 = vpop.f32.mrb[184].mxu0 }
 0x543   : > { %v4732_v29 = vpop.f32.mrb[189].mxu1  ;;  %v4584_v44 = vpop.f32.mrb[185].mxu0  ;;  %v17148_v40 = vadd.f32 %v13417_v28, %v13391_v35  ;;  %v6409_v35 = vld [vmem:[#allocation4 + $0x1] ss:$2 sm:$0xff] }
 0x544   : > { %v13418_v1 = vpop.f32.mrb[190].mxu1  ;;  %v13396_v49 = vpop.f32.mrb[186].mxu0  ;;  %v17150_v4 = vadd.f32 %v4732_v29, %v4569_v9 }
 0x545   : > { %v4735_v20 = vpop.f32.mrb[191].mxu1  ;;  %v4586_v14 = vpop.f32.mrb[187].mxu0  ;;  %v17152_v8 = vadd.f32 %v13418_v1, %v13392_v5  ;;  %v6410_v5 = vpack.c.bf16 %v6409_v35, %v6409_v35 }
 0x547   : > { %13614 = vmatmul.mubr.msk.bf16.gmra.mrb[36].mxu0 %vm2516_vm3, %v6134_v31  ;;  %13620 = vmatmul.mubr.msk.bf16.vlgmr.msra.gmra.mrb[24].mxu1 %vm2516_vm3, %v6410_v5  ;;  %v6404_v31 = vld [vmem:[#allocation4] ss:$2 sm:$0xff] }
 0x548   : > { %13655 = vmatprep.mubr.msk.bf16.mxu0 %vm14956_vm4, %v17098_v60  ;;  %13625 = vmatprep.mubr.msk.bf16.mxu1 %vm14956_vm4, %v17098_v60 }
 0x54a   : > { %v13421_v22 = vpop.f32.mrb[192].mxu1  ;;  %v13399_v41 = vpop.f32.mrb[188].mxu0 }
 0x54b   : > { %v4747_v61 = vpop.f32.mrb[193].mxu1  ;;  %v4598_v13 = vpop.f32.mrb[189].mxu0  ;;  %v17159_v59 = vadd.f32 %v13421_v22, %v13395_v26 }
 0x54c   : > { %v13422_v56 = vpop.f32.mrb[194].mxu1  ;;  %v13400_v57 = vpop.f32.mrb[190].mxu0 }
 0x54d   : > { %v4749_v19 = vpop.f32.mrb[195].mxu1  ;;  %v4601_v15 = vpop.f32.mrb[191].mxu0 }
 0x54e   : > { %v17161_v23 = vadd.f32 %v4749_v19, %v4586_v14  ;;  %v6405_v14 = vpack.c.bf16 %v6404_v31, %v6404_v31 }
 0x552   : > { %v13425_v63 = vpop.f32.mrb[196].mxu1  ;;  %v13403_v27 = vpop.f32.mrb[192].mxu0 }
 0x553   : > { %v4761_v45 = vpop.f32.mrb[197].mxu1  ;;  %v4613_v39 = vpop.f32.mrb[193].mxu0  ;;  %v6512_v63 = vld [vmem:[#allocation4 + $0x2] ss:$2 sm:$0xff] }
 0x554   : > { %v13426_v2 = vpop.f32.mrb[198].mxu1  ;;  %v13404_v55 = vpop.f32.mrb[194].mxu0  ;;  %v17163_v43 = vadd.f32 %v4761_v45, %v4598_v13 }
 0x555   : > { %v4764_v37 = vpop.f32.mrb[199].mxu1  ;;  %v4616_v6 = vpop.f32.mrb[195].mxu0  ;;  %v17165_v24 = vadd.f32 %v13426_v2, %v13400_v57  ;;  %v6513_v2 = vpack.c.bf16 %v6512_v63, %v6512_v63 }
 0x556   : > { %v17167_v58 = vadd.f32 %v4764_v37, %v4601_v15 }
 0x55a   : > { %v13429_v48 = vpop.f32.mrb[200].mxu1  ;;  %v13407_v47 = vpop.f32.mrb[196].mxu0 }
 0x55b   : > { %v4776_v51 = vpop.f32.mrb[201].mxu1  ;;  %v4628_v18 = vpop.f32.mrb[197].mxu0  ;;  %v17169_v7 = vadd.f32 %v13429_v48, %v13403_v27 }
 0x55c   : > { %v13430_v42 = vpop.f32.mrb[202].mxu1  ;;  %v13408_v17 = vpop.f32.mrb[198].mxu0  ;;  %v17171_v12 = vadd.f32 %v4776_v51, %v4613_v39 }
 0x55d   : > { %v4779_v46 = vpop.f32.mrb[203].mxu1  ;;  %v4630_v33 = vpop.f32.mrb[199].mxu0  ;;  %v17173_v30 = vadd.f32 %v13430_v42, %v13404_v55 }
 0x562   : > { %v13433_v50 = vpop.f32.mrb[204].mxu1  ;;  %v13439_v36 = vpop.f32.mrb[200].mxu0 }
 0x563   : > { %v4791_v54 = vpop.f32.mrb[205].mxu1  ;;  %v4917_v53 = vpop.f32.mrb[201].mxu0  ;;  %v17175_v16 = vadd.f32 %v13433_v50, %v13407_v47 }
 0x564   : > { %v13434_v38 = vpop.f32.mrb[206].mxu1  ;;  %v5004_v9 = vadd.f32 %v4917_v53, %v17137_v3  ;;  %v13440_v32 = vpop.f32.mrb[202].mxu0  ;;  %v14438_v3 = vld [vmem:[%s18228_s8] sm:$0xff]  }
 0x565   : > { %v4793_v11 = vpop.f32.mrb[207].mxu1  ;;  %v5006_v10 = vadd.f32 %v13440_v32, %v17139_v52  ;;  %v4920_v0 = vpop.f32.mrb[203].mxu0  ;;  %13624 = vmatpush3.bf16.msra.mxu1 %v14438_v3 }
 0x566   : > { %v5005_v25 = vadd.f32 %v4920_v0, %v17141_v21  ;;  %v17184_v62 = vadd.f32 %v4793_v11, %v4630_v33  ;;  %13629 = vmatprep.subr.bf16.mxu1 %v17098_v60 }
 0x568   : > { %13626 = vmatmul.mubr.msk.bf16.vlgmr.msra.gmra.mrb[28].mxu1 %vm2516_vm3, %v6405_v14 }
 0x569   : > { %13631 = vmatprep.mubr.msk.bf16.mxu1 %vm14956_vm4, %v17098_v60 }
 0x56a   : > { %v13465_v52 = vpop.f32.mrb[208].mxu1  ;;  %v13443_v28 = vpop.f32.mrb[204].mxu0 }
 0x56b   : > { %v5133_v26 = vpop.f32.mrb[209].mxu1  ;;  %v5008_v29 = vadd.f32 %v13443_v28, %v17148_v40  ;;  %v4932_v44 = vpop.f32.mrb[205].mxu0  ;;  %v14439_v40 = vld [vmem:[%s18228_s8 + $0x10] sm:$0xff]  }
 0x56c   : > { %v13466_v21 = vpop.f32.mrb[210].mxu1  ;;  %v5007_v1 = vadd.f32 %v4932_v44, %v17150_v4  ;;  %v13444_v49 = vpop.f32.mrb[206].mxu0  ;;  %v17194_v20 = vadd.f32 %v5133_v26, %v5004_v9  ;;  %13630 = vmatpush3.bf16.msra.mxu1 %v14439_v40 }
 0x56d   : > { %v5136_v34 = vpop.f32.mrb[211].mxu1  ;;  %v5009_v22 = vadd.f32 %v13444_v49, %v17152_v8  ;;  %v4935_v41 = vpop.f32.mrb[207].mxu0  ;;  %v17198_v61 = vadd.f32 %v13466_v21, %v5006_v10  ;;  %13635 = vmatprep.subr.bf16.mxu1 %v17098_v60 }
 0x56e   : > { %v17200_v13 = vadd.f32 %v5136_v34, %v5005_v25 }
 0x570   : > { %13632 = vmatmul.mubr.msk.bf16.vlgmr.msra.gmra.mrb[32].mxu1 %vm2516_vm3, %v6513_v2 }
 0x571   : > { %13637 = vmatprep.mubr.msk.bf16.mxu1 %vm14956_vm4, %v17098_v60 }
 0x572   : > { %v13469_v4 = vpop.f32.mrb[212].mxu1  ;;  %v13447_v56 = vpop.f32.mrb[208].mxu0 }
 0x573   : > { %v17208_v57 = vadd.f32 %v13469_v4, %v5008_v29  ;;  %v5148_v19 = vpop.f32.mrb[213].mxu1  ;;  %v5011_v8 = vadd.f32 %v13447_v56, %v17159_v59  ;;  %v4947_v15 = vpop.f32.mrb[209].mxu0  ;;  %v14440_v59 = vld [vmem:[%s18228_s8 + $0x30] sm:$0xff]  }
 0x574   : > { %v17211_v27 = vadd.f32 %v5148_v19, %v5007_v1  ;;  %v13470_v45 = vpop.f32.mrb[214].mxu1  ;;  %v13448_v39 = vpop.f32.mrb[210].mxu0  ;;  %13654 = vmatpush3.bf16.msra.mxu0 %v14440_v59 }
 0x575   : > { %v17214_v55 = vadd.f32 %v13470_v45, %v5009_v22  ;;  %v5151_v37 = vpop.f32.mrb[215].mxu1  ;;  %v4949_v6 = vpop.f32.mrb[211].mxu0  ;;  %13665 = vmatprep.subr.bf16.mxu0 %v17098_v60 }
 0x576   : > { %v5010_v48 = vadd.f32 %v4949_v6, %v17161_v23 }
 0x57a   : > { %v13473_v47 = vpop.f32.mrb[216].mxu1  ;;  %v13451_v51 = vpop.f32.mrb[212].mxu0 }
 0x57b   : > { %v17224_v18 = vadd.f32 %v13473_v47, %v5011_v8  ;;  %v5163_v42 = vpop.f32.mrb[217].mxu1  ;;  %v4961_v17 = vpop.f32.mrb[213].mxu0 }
 0x57c   : > { %v13474_v46 = vpop.f32.mrb[218].mxu1  ;;  %v5012_v23 = vadd.f32 %v4961_v17, %v17163_v43  ;;  %v13452_v33 = vpop.f32.mrb[214].mxu0 }
 0x57d   : > { %v5165_v50 = vpop.f32.mrb[219].mxu1  ;;  %v5014_v36 = vadd.f32 %v13452_v33, %v17165_v24  ;;  %v4964_v54 = vpop.f32.mrb[215].mxu0 }
 0x57e   : > { %v17228_v53 = vadd.f32 %v5165_v50, %v5010_v48  ;;  %v5013_v35 = vadd.f32 %v4964_v54, %v17167_v58  ;;  %v14441_v58 = vld [vmem:[%s18228_s8 + $0x18] sm:$0xff]  }
 0x57f   : > { %13636 = vmatpush3.bf16.msra.mxu1 %v14441_v58 }
 0x580   : > { %13641 = vmatprep.subr.bf16.mxu1 %v17098_v60 }
 0x582   : > { %v13477_v38 = vpop.f32.mrb[220].mxu1  ;;  %v13455_v9 = vpop.f32.mrb[216].mxu0 }
 0x583   : > { %v5177_v32 = vpop.f32.mrb[221].mxu1  ;;  %v5016_v5 = vadd.f32 %v13455_v9, %v17169_v7  ;;  %v4976_v11 = vpop.f32.mrb[217].mxu0 }
 0x584   : > { %v17232_v10 = vadd.f32 %v5177_v32, %v5012_v23  ;;  %v13478_v0 = vpop.f32.mrb[222].mxu1  ;;  %v5015_v43 = vadd.f32 %v4976_v11, %v17171_v12  ;;  %v13456_v25 = vpop.f32.mrb[218].mxu0 }
 0x585   : > { %v17235_v3 = vadd.f32 %v13478_v0, %v5014_v36  ;;  %v5180_v24 = vpop.f32.mrb[223].mxu1  ;;  %v5017_v52 = vadd.f32 %v13456_v25, %v17173_v30  ;;  %v4979_v28 = vpop.f32.mrb[219].mxu0 }
 0x586   : > { %v17238_v26 = vadd.f32 %v5180_v24, %v5013_v35 }
 0x58a   : > { %v13481_v7 = vpop.f32.mrb[224].mxu1  ;;  %v13459_v29 = vpop.f32.mrb[220].mxu0 }
 0x58b   : > { %v17244_v44 = vadd.f32 %v13481_v7, %v5016_v5  ;;  %v5192_v12 = vpop.f32.mrb[225].mxu1  ;;  %v5019_v31 = vadd.f32 %v13459_v29, %v17175_v16  ;;  %v4991_v21 = vpop.f32.mrb[221].mxu0 }
 0x58c   : > { %v17247_v1 = vadd.f32 %v5192_v12, %v5015_v43  ;;  %v13482_v30 = vpop.f32.mrb[226].mxu1  ;;  %v13460_v49 = vpop.f32.mrb[222].mxu0 }
 0x58d   : > { %v17249_v14 = vadd.f32 %v13482_v30, %v5017_v52  ;;  %v5195_v34 = vpop.f32.mrb[227].mxu1  ;;  %v4993_v22 = vpop.f32.mrb[223].mxu0 }
 0x58e   : > { %v5018_v41 = vadd.f32 %v4993_v22, %v17184_v62 }
 0x592   : > { %v13485_v40 = vpop.f32.mrb[228].mxu1  ;;  %v13491_v4 = vpop.f32.mrb[224].mxu0 }
 0x593   : > { %v17252_v56 = vadd.f32 %v13485_v40, %v5019_v31  ;;  %v5207_v19 = vpop.f32.mrb[229].mxu1  ;;  %v5349_v8 = vpop.f32.mrb[225].mxu0 }
 0x594   : > { %v13486_v15 = vpop.f32.mrb[230].mxu1  ;;  %v5436_v16 = vadd.f32 %v5349_v8, %v17194_v20  ;;  %v13492_v63 = vpop.f32.mrb[226].mxu0 }
 0x595   : > { %v5209_v45 = vpop.f32.mrb[231].mxu1  ;;  %v5438_v39 = vadd.f32 %v13492_v63, %v17198_v61  ;;  %v5352_v2 = vpop.f32.mrb[227].mxu0 }
 0x596   : > { %v17256_v37 = vadd.f32 %v5209_v45, %v5018_v41  ;;  %v5437_v6 = vadd.f32 %v5352_v2, %v17200_v13 }
 0x59a   : > { %v13517_v48 = vpop.f32.mrb[232].mxu1  ;;  %v13495_v62 = vpop.f32.mrb[228].mxu0 }
 0x59b   : > { %v5565_v59 = vpop.f32.mrb[233].mxu1  ;;  %v5440_v47 = vadd.f32 %v13495_v62, %v17208_v57  ;;  %v5364_v51 = vpop.f32.mrb[229].mxu0 }
 0x59c   : > { %v17260_v42 = vadd.f32 %v5565_v59, %v5436_v16  ;;  %v13518_v17 = vpop.f32.mrb[234].mxu1  ;;  %v5439_v20 = vadd.f32 %v5364_v51, %v17211_v27  ;;  %v13496_v46 = vpop.f32.mrb[230].mxu0 }
 0x59d   : > { %v17263_v23 = vadd.f32 %v13518_v17, %v5438_v39  ;;  %v5568_v61 = vpop.f32.mrb[235].mxu1  ;;  %v5441_v33 = vadd.f32 %v13496_v46, %v17214_v55  ;;  %v5367_v50 = vpop.f32.mrb[231].mxu0 }
 0x59e   : > { %v17266_v36 = vadd.f32 %v5568_v61, %v5437_v6 }
 0x5a2   : > { %v13521_v13 = vpop.f32.mrb[236].mxu1  ;;  %v13499_v54 = vpop.f32.mrb[232].mxu0 }
 0x5a3   : > { %v17268_v35 = vadd.f32 %v13521_v13, %v5440_v47  ;;  %v5580_v57 = vpop.f32.mrb[237].mxu1  ;;  %v5443_v38 = vadd.f32 %v13499_v54, %v17224_v18  ;;  %v5379_v9 = vpop.f32.mrb[233].mxu0 }
 0x5a4   : > { %v17271_v32 = vadd.f32 %v5580_v57, %v5439_v20  ;;  %v13522_v27 = vpop.f32.mrb[238].mxu1  ;;  %v13500_v5 = vpop.f32.mrb[234].mxu0 }
 0x5a5   : > { %v17273_v11 = vadd.f32 %v13522_v27, %v5441_v33  ;;  %v5583_v0 = vpop.f32.mrb[239].mxu1  ;;  %v5381_v43 = vpop.f32.mrb[235].mxu0 }
 0x5a6   : > { %v5442_v55 = vadd.f32 %v5381_v43, %v17228_v53 }
 0x5aa   : > { %v13525_v25 = vpop.f32.mrb[240].mxu1  ;;  %v13503_v24 = vpop.f32.mrb[236].mxu0 }
 0x5ab   : > { %v17276_v52 = vadd.f32 %v13525_v25, %v5443_v38  ;;  %v5595_v28 = vpop.f32.mrb[241].mxu1  ;;  %v5393_v58 = vpop.f32.mrb[237].mxu0 }
 0x5ac   : > { %v13526_v7 = vpop.f32.mrb[242].mxu1  ;;  %v5444_v18 = vadd.f32 %v5393_v58, %v17232_v10  ;;  %v13504_v29 = vpop.f32.mrb[238].mxu0 }
 0x5ad   : > { %v5597_v12 = vpop.f32.mrb[243].mxu1  ;;  %v5446_v31 = vadd.f32 %v13504_v29, %v17235_v3  ;;  %v5396_v21 = vpop.f32.mrb[239].mxu0 }
 0x5ae   : > { %v17280_v30 = vadd.f32 %v5597_v12, %v5442_v55  ;;  %v5445_v49 = vadd.f32 %v5396_v21, %v17238_v26 }
 0x5b2   : > { %v13529_v34 = vpop.f32.mrb[244].mxu1  ;;  %v13507_v53 = vpop.f32.mrb[240].mxu0 }
 0x5b3   : > { %v5609_v22 = vpop.f32.mrb[245].mxu1  ;;  %v5448_v41 = vadd.f32 %v13507_v53, %v17244_v44  ;;  %v5408_v40 = vpop.f32.mrb[241].mxu0 }
 0x5b4   : > { %v17284_v4 = vadd.f32 %v5609_v22, %v5444_v18  ;;  %v13530_v19 = vpop.f32.mrb[246].mxu1  ;;  %v5447_v10 = vadd.f32 %v5408_v40, %v17247_v1  ;;  %v13508_v8 = vpop.f32.mrb[242].mxu0 }
 0x5b5   : > { %v17287_v15 = vadd.f32 %v13530_v19, %v5446_v31  ;;  %v5612_v3 = vpop.f32.mrb[247].mxu1  ;;  %v5449_v16 = vadd.f32 %v13508_v8, %v17249_v14  ;;  %v5411_v63 = vpop.f32.mrb[243].mxu0 }
 0x5b6   : > { %v17290_v45 = vadd.f32 %v5612_v3, %v5445_v49 }
 0x5ba   : > { %v13533_v26 = vpop.f32.mrb[248].mxu1  ;;  %v13511_v39 = vpop.f32.mrb[244].mxu0 }
 0x5bb   : > { %v17292_v2 = vadd.f32 %v13533_v26, %v5448_v41  ;;  %v5624_v44 = vpop.f32.mrb[249].mxu1  ;;  %v5451_v6 = vadd.f32 %v13511_v39, %v17252_v56  ;;  %v5423_v48 = vpop.f32.mrb[245].mxu0 }
 0x5bc   : > { %v17295_v62 = vadd.f32 %v5624_v44, %v5447_v10  ;;  %v13534_v1 = vpop.f32.mrb[250].mxu1  ;;  %v13512_v59 = vpop.f32.mrb[246].mxu0 }
 0x5bd   : > { %v17297_v47 = vadd.f32 %v13534_v1, %v5449_v16  ;;  %v5627_v51 = vpop.f32.mrb[251].mxu1  ;;  %v5425_v17 = vpop.f32.mrb[247].mxu0 }
 0x5be   : > { %v5450_v14 = vadd.f32 %v5425_v17, %v17256_v37 }
 0x5c2   : > { %v13537_v20 = vpop.f32.mrb[252].mxu1  ;;  %v13543_v46 = vpop.f32.mrb[248].mxu0 }
 0x5c3   : > { %v17300_v61 = vadd.f32 %v13537_v20, %v5451_v6  ;;  %v5639_v33 = vpop.f32.mrb[253].mxu1  ;;  %v5781_v50 = vpop.f32.mrb[249].mxu0 }
 0x5c4   : > { %v13538_v13 = vpop.f32.mrb[254].mxu1  ;;  %v5868_v56 = vadd.f32 %v5781_v50, %v17260_v42  ;;  %v13544_v54 = vpop.f32.mrb[250].mxu0 }
 0x5c5   : > { %v5641_v57 = vpop.f32.mrb[255].mxu1  ;;  %v5870_v38 = vadd.f32 %v13544_v54, %v17263_v23  ;;  %v5784_v9 = vpop.f32.mrb[251].mxu0 }
 0x5c6   : > { %v17304_v27 = vadd.f32 %v5641_v57, %v5450_v14  ;;  %v5869_v5 = vadd.f32 %v5784_v9, %v17266_v36 }
 0x5ca   : > { %v13569_v0 = vpop.f32.mrb[0].mxu1  ;;  %v13547_v37 = vpop.f32.mrb[252].mxu0 }
 0x5cb   : > { %v5997_v43 = vpop.f32.mrb[1].mxu1  ;;  %v5872_v55 = vadd.f32 %v13547_v37, %v17268_v35  ;;  %v5796_v25 = vpop.f32.mrb[253].mxu0 }
 0x5cc   : > { %v17308_v24 = vadd.f32 %v5997_v43, %v5868_v56  ;;  %v13570_v28 = vpop.f32.mrb[2].mxu1  ;;  %v5871_v42 = vadd.f32 %v5796_v25, %v17271_v32  ;;  %v13548_v58 = vpop.f32.mrb[254].mxu0 }
 0x5cd   : > { %v17311_v7 = vadd.f32 %v13570_v28, %v5870_v38  ;;  %v6000_v23 = vpop.f32.mrb[3].mxu1  ;;  %v5873_v18 = vadd.f32 %v13548_v58, %v17273_v11  ;;  %v5799_v29 = vpop.f32.mrb[255].mxu0 }
 0x5ce   : > { %v17314_v12 = vadd.f32 %v6000_v23, %v5869_v5 }
 0x5d2   : > { %v13573_v36 = vpop.f32.mrb[4].mxu1  ;;  %v13551_v31 = vpop.f32.mrb[0].mxu0 }
 0x5d3   : > { %v17316_v21 = vadd.f32 %v13573_v36, %v5872_v55  ;;  %v6012_v35 = vpop.f32.mrb[5].mxu1  ;;  %v5875_v49 = vadd.f32 %v13551_v31, %v17276_v52  ;;  %v5811_v34 = vpop.f32.mrb[1].mxu0 }
 0x5d4   : > { %v17319_v53 = vadd.f32 %v6012_v35, %v5871_v42  ;;  %v13574_v32 = vpop.f32.mrb[6].mxu1  ;;  %v13552_v22 = vpop.f32.mrb[2].mxu0  ;;  %v6317_v34 = vld [vmem:[#allocation2 + $0x19] sm:$0xff] }
 0x5d5   : > { %v17321_v41 = vadd.f32 %v13574_v32, %v5873_v18  ;;  %v6015_v40 = vpop.f32.mrb[7].mxu1  ;;  %v5813_v19 = vpop.f32.mrb[3].mxu0 }
 0x5d6   : > { %v5874_v11 = vadd.f32 %v5813_v19, %v17280_v30  ;;  %v6333_v19 = vld [vmem:[#allocation2 + $0x31] sm:$0xff] }
 0x5da   : > { %v13577_v10 = vpop.f32.mrb[8].mxu1  ;;  %v13555_v8 = vpop.f32.mrb[4].mxu0 }
 0x5db   : > { %v17324_v3 = vadd.f32 %v13577_v10, %v5875_v49  ;;  %v6027_v16 = vpop.f32.mrb[9].mxu1  ;;  %v5825_v63 = vpop.f32.mrb[5].mxu0 }
 0x5dc   : > { %v13578_v26 = vpop.f32.mrb[10].mxu1  ;;  %v5876_v52 = vadd.f32 %v5825_v63, %v17284_v4  ;;  %v13556_v39 = vpop.f32.mrb[6].mxu0 }
 0x5dd   : > { %v6029_v44 = vpop.f32.mrb[11].mxu1  ;;  %v5878_v6 = vadd.f32 %v13556_v39, %v17287_v15  ;;  %v5828_v48 = vpop.f32.mrb[7].mxu0 }
 0x5de   : > { %v17328_v1 = vadd.f32 %v6029_v44, %v5874_v11  ;;  %v5877_v59 = vadd.f32 %v5828_v48, %v17290_v45 }
 0x5e2   : > { %v13581_v51 = vpop.f32.mrb[12].mxu1  ;;  %v13559_v30 = vpop.f32.mrb[8].mxu0 }
 0x5e3   : > { %v6041_v17 = vpop.f32.mrb[13].mxu1  ;;  %v5880_v14 = vadd.f32 %v13559_v30, %v17292_v2  ;;  %v5840_v20 = vpop.f32.mrb[9].mxu0 }
 0x5e4   : > { %v17332_v46 = vadd.f32 %v6041_v17, %v5876_v52  ;;  %v13582_v33 = vpop.f32.mrb[14].mxu1  ;;  %v5879_v4 = vadd.f32 %v5840_v20, %v17295_v62  ;;  %v13560_v50 = vpop.f32.mrb[10].mxu0 }
 0x5e5   : > { %v17335_v13 = vadd.f32 %v13582_v33, %v5878_v6  ;;  %v6044_v15 = vpop.f32.mrb[15].mxu1  ;;  %v5881_v56 = vadd.f32 %v13560_v50, %v17297_v47  ;;  %v5843_v54 = vpop.f32.mrb[11].mxu0 }
 0x5e6   : > { %v17338_v57 = vadd.f32 %v6044_v15, %v5877_v59  ;;  %v6343_v59 = vld [vmem:[#allocation2 + $0x49] sm:$0xff]  ;;  %v6344_v15 = vld [vmem:[#allocation2 + $0x51] sm:$0xff] }
 0x5ea   : > { %v13585_v45 = vpop.f32.mrb[16].mxu1  ;;  %v13563_v38 = vpop.f32.mrb[12].mxu0 }
 0x5eb   : > { %v17340_v9 = vadd.f32 %v13585_v45, %v5880_v14  ;;  %v6056_v2 = vpop.f32.mrb[17].mxu1  ;;  %v5883_v5 = vadd.f32 %v13563_v38, %v17300_v61  ;;  %v5855_v0 = vpop.f32.mrb[13].mxu0  ;;  %v17353_v61 = vld [vmem:[%s18476_s22] ss:$0 sm:$0xff]  ;;  %s11641_s22 = sshll.u32 %s854_s25, 4  ;;  %s18180_s22 = int_to_ptr.vmem [resolvable:$true] %s11641_s22 }
 0x5ec   : > { %v17343_v37 = vadd.f32 %v6056_v2, %v5879_v4  ;;  %v13586_v62 = vpop.f32.mrb[18].mxu1  ;;  %v13564_v43 = vpop.f32.mrb[14].mxu0  ;;  %v6334_v4 = vld [vmem:[#allocation2 + $0x39] sm:$0xff]  ;;  %s14852_s28 = scalar_lea.vmem %s18180_s22, 16  ;;  %p14859_p9 = scmp.lt.s32.totalorder %s18180_s22, %s14857_s11 }
 0x5ed   : > { %v17345_v55 = vadd.f32 %v13586_v62, %v5881_v56  ;;  %v6059_v25 = vpop.f32.mrb[19].mxu1  ;;  %v5857_v28 = vpop.f32.mrb[15].mxu0  ;;  %p14853_p1 = scmp.ne.s32.totalorder %s18180_s22, %s14852_s28  ;;  %p14860_p12 = scmp.lt.s32.totalorder %s14858_s26, %s14852_s28 }
 0x5ee   : > { %v5882_v47 = vadd.f32 %v5857_v28, %v17304_v27  ;;  %v14442_v25 = vld [vmem:[%s18228_s8 + $0x20] sm:$0xff]   ;;  %v6354_v28 = vld [vmem:[#allocation2 + $0x69] sm:$0xff] }
 0x5ef   : > { %p14854_p6 = pnand %p14853_p1, %p18481_p0  ;;  %p14861_p10 = por %p14860_p12, %p14859_p9 }
 0x5f1   : > { %p14855_p5 = pneg %p14854_p6 }
 0x5f2   : > { %v13589_v42 = vpop.f32.mrb[20].mxu1  ;;  %v13595_v58 = vpop.f32.mrb[16].mxu0 }
 0x5f3   : > { %v17348_v23 = vadd.f32 %v13589_v42, %v5883_v5  ;;  %v6071_v18 = vpop.f32.mrb[21].mxu1  ;;  %v6213_v29 = vpop.f32.mrb[17].mxu0  ;;  %p14862_p2 = pnand %p14861_p10, %p14855_p5 }
 0x5f4   : > { %v13590_v36 = vpop.f32.mrb[22].mxu1  ;;  %v6300_v31 = vadd.f32 %v6213_v29, %v17308_v24  ;;  %v13596_v35 = vpop.f32.mrb[18].mxu0  ;;  %v6318_v24 = vld [vmem:[#allocation2 + $0x21] sm:$0xff] }
 0x5f5   : > { %v6073_v49 = vpop.f32.mrb[23].mxu1  ;;  %v6302_v32 = vadd.f32 %v13596_v35, %v17311_v7  ;;  %v6216_v27 = vpop.f32.mrb[19].mxu0  ;;  %v6353_v18 = vld [vmem:[#allocation2 + $0x61] sm:$0xff] }
 0x5f6   : > { %v17357_v22 = vadd.f32 %v6073_v49, %v5882_v47  ;;  %v6325_v40 = vadd.f32 %v17353_v61, %v6300_v31  ;;  %v6301_v11 = vadd.f32 %v6216_v27, %v17314_v12 }
 0x5f7   : > { %v6335_v10 = vadd.f32 %v17353_v61, %v6302_v32 }
 0x5f8   : > { %v6327_v8 = vadd.f32 %v6325_v40, %v6317_v34  ;;  %v6326_v16 = vadd.f32 %v17353_v61, %v6301_v11  ;;  %v14444_v34 = vld [vmem:[%s18228_s8 + $0x40] sm:$0xff]  }
 0x5f9   : > { %v6337_v63 = vadd.f32 %v6335_v10, %v6333_v19  ;;  %v6363_v11 = vld [vmem:[#allocation2 + $0x79] sm:$0xff] }
 0x5fa   : > { %v6329_v26 = vmax.f32 %v6327_v8, 0.0  ;;  %v6328_v52 = vadd.f32 %v6326_v16, %v6318_v24  ;;  %v13599_v39 = vpop.f32.mrb[20].mxu0  ;;  %v14443_v16 = vld [vmem:[%s18228_s8 + $0x28] sm:$0xff]   ;;  %v6373_v24 = vld [vmem:[#allocation2 + $0x91] sm:$0xff] }
 0x5fb   : > { %v6339_v44 = vmax.f32 %v6337_v63, 0.0  ;;  %v6304_v7 = vadd.f32 %v13599_v39, %v17316_v21  ;;  %v6228_v6 = vpop.f32.mrb[21].mxu0 }
 0x5fc   : > { %6331 = vst [vmem:[#allocation4 + $0x19] sm:$0xff] %v6329_v26  ;;  %v6330_v48 = vmax.f32 %v6328_v52, 0.0  ;;  %v6303_v51 = vadd.f32 %v6228_v6, %v17319_v53  ;;  %v13600_v12 = vpop.f32.mrb[22].mxu0 }
 0x5fd   : > { %6341 = vst [vmem:[#allocation4 + $0x31] sm:$0xff] %v6339_v44  ;;  %v6345_v30 = vadd.f32 %v17353_v61, %v6304_v7  ;;  %v6305_v17 = vadd.f32 %v13600_v12, %v17321_v41  ;;  %v6231_v14 = vpop.f32.mrb[23].mxu0  ;;  %v6364_v7 = vld [vmem:[#allocation2 + $0x81] sm:$0xff] }
 0x5fe   : > { %6332 = vst [vmem:[#allocation4 + $0x21] sm:$0xff] %v6330_v48  ;;  %v6336_v20 = vadd.f32 %v17353_v61, %v6303_v51  ;;  %v14446_v14 = vld [vmem:[%s18228_s8] sm:$0xff]  }
 0x5ff   : > { %v6347_v33 = vadd.f32 %v6345_v30, %v6343_v59  ;;  %v6346_v21 = vadd.f32 %v17353_v61, %v6305_v17 }
 0x600   : > { %v6338_v50 = vadd.f32 %v6336_v20, %v6334_v4 }
 0x601   : > { %v6349_v56 = vmax.f32 %v6347_v33, 0.0  ;;  %v6348_v54 = vadd.f32 %v6346_v21, %v6344_v15  ;;  %v6383_v33 = vld [vmem:[#allocation2 + $0xa9] sm:$0xff] }
 0x602   : > { %v6340_v45 = vmax.f32 %v6338_v50, 0.0  ;;  %v13603_v53 = vpop.f32.mrb[24].mxu0 }
 0x603   : > { %6351 = vst [vmem:[#allocation4 + $0x49] sm:$0xff] %v6349_v56  ;;  %v6350_v38 = vmax.f32 %v6348_v54, 0.0  ;;  %v6307_v2 = vadd.f32 %v13603_v53, %v17324_v3  ;;  %v6243_v5 = vpop.f32.mrb[25].mxu0 }
 0x604   : > { %6342 = vst [vmem:[#allocation4 + $0x39] sm:$0xff] %v6340_v45  ;;  %v13604_v41 = vpop.f32.mrb[26].mxu0  ;;  %v6384_v5 = vld [vmem:[#allocation2 + $0xb1] sm:$0xff] }
 0x605   : > { %6352 = vst [vmem:[#allocation4 + $0x51] sm:$0xff] %v6350_v38  ;;  %v6356_v0 = vadd.f32 %v17353_v61, %v6307_v2  ;;  %v6245_v62 = vpop.f32.mrb[27].mxu0  ;;  %v6567_v43 = vld [vmem:[#allocation4 + $0x18] ss:$2 sm:$0xff] }
 0x606   : > { %v6306_v47 = vadd.f32 %v6245_v62, %v17328_v1  ;;  %v6568_v42 = vpack.c.bf16 %v6567_v43, %v6567_v43  ;;  %v6622_v1 = vld [vmem:[#allocation4 + $0x19] ss:$2 sm:$0xff]  ;;  %v6677_v17 = vld [vmem:[#allocation4 + $0x1a] ss:$2 sm:$0xff] }
 0x607   : > { %v6358_v58 = vadd.f32 %v6356_v0, %v6354_v28  ;;  %v6623_v52 = vpack.c.bf16 %v6622_v1, %v6622_v1  ;;  %v6678_v53 = vpack.c.bf16 %v6677_v17, %v6677_v17 }
 0x608   : > { %v6355_v3 = vadd.f32 %v17353_v61, %v6306_v47  ;;  %13638 = vmatmul.mubr.msk.bf16.vlgmr.msra.gmra.mrb[36].mxu1 %vm2516_vm3, %v6568_v42 }
 0x609   : > { %v6360_v29 = vmax.f32 %v6358_v58, 0.0  ;;  %13642 = vmatpush3.bf16.msra.mxu1 %v14442_v25  ;;  %13643 = vmatprep.mubr.msk.bf16.mxu1 %vm14956_vm4, %v17098_v60 }
 0x60a   : > { %v6357_v36 = vadd.f32 %v6355_v3, %v6353_v18  ;;  %v13607_v31 = vpop.f32.mrb[28].mxu0  ;;  %13647 = vmatprep.subr.bf16.mxu1 %v17098_v60  ;;  %v14448_v18 = vld [vmem:[%s18228_s8 + $0x18] sm:$0xff]  }
 0x60b   : > { %v6732_v35 = vld [vmem:[#allocation4 + $0x30] ss:$2 sm:$0xff]  ;;  %6362 = vst [vmem:[#allocation4 + $0x69] sm:$0xff] %v6360_v29  ;;  %v6257_v49 = vpop.f32.mrb[29].mxu0  ;;  %v6787_v58 = vld [vmem:[#allocation4 + $0x31] ss:$2 sm:$0xff] }
 0x60c   : > { %v6733_v32 = vpack.c.bf16 %v6732_v35, %v6732_v35  ;;  %v6359_v27 = vmax.f32 %v6357_v36, 0.0  ;;  %v6308_v40 = vadd.f32 %v6257_v49, %v17332_v46  ;;  %v13608_v19 = vpop.f32.mrb[30].mxu0  ;;  %v6905_v62 = vld [vmem:[#allocation4 + $0x30] ss:$2 sm:$0xff]  ;;  %v6788_v49 = vpack.c.bf16 %v6787_v58, %v6787_v58 }
 0x60d   : > { %v6310_v10 = vadd.f32 %v13608_v19, %v17335_v13  ;;  %v6260_v8 = vpop.f32.mrb[31].mxu0  ;;  %v6906_v29 = vpack.c.bf16 %v6905_v62, %v6905_v62  ;;  %v6394_v35 = vld [vmem:[#allocation2 + $0xc9] sm:$0xff] }
 0x60e   : > { %6361 = vst [vmem:[#allocation4 + $0x61] sm:$0xff] %v6359_v27  ;;  %v6365_v63 = vadd.f32 %v17353_v61, %v6308_v40  ;;  %v6309_v26 = vadd.f32 %v6260_v8, %v17338_v57  ;;  %13656 = vmatmul.mubr.msk.bf16.vlgmr.msra.gmra.mrb[40].mxu0 %vm2516_vm3, %v6733_v32  ;;  %v6842_v57 = vld [vmem:[#allocation4 + $0x32] ss:$2 sm:$0xff] }
 0x60f   : > { %v6375_v46 = vadd.f32 %v17353_v61, %v6310_v10  ;;  %13666 = vmatpush3.bf16.msra.mxu0 %v14444_v34  ;;  %13667 = vmatprep.mubr.msk.bf16.mxu0 %vm14956_vm4, %v17098_v60  ;;  %v6843_v50 = vpack.c.bf16 %v6842_v57, %v6842_v57  ;;  %v6393_v34 = vld [vmem:[#allocation2 + $0xc1] sm:$0xff]  ;;  %v17430_v32 = vld [vmem:[#allocation4 + $0xd8] sm:$0xff] }
 0x610   : > { %v6367_v13 = vadd.f32 %v6365_v63, %v6363_v11  ;;  %v6366_v39 = vadd.f32 %v17353_v61, %v6309_v26  ;;  %13644 = vmatmul.mubr.msk.bf16.vlgmr.msra.gmra.mrb[40].mxu1 %vm2516_vm3, %v6623_v52  ;;  %13677 = vmatprep.subr.bf16.mxu0 %v17098_v60  ;;  %v6909_v11 = vld [vmem:[#allocation4 + $0x31] ss:$2 sm:$0xff]  ;;  %v14450_v10 = vld [vmem:[%s18228_s8 + $0x28] sm:$0xff]   ;;  %v7011_v26 = vld [vmem:[#allocation4 + $0x32] ss:$2 sm:$0xff] }
 0x611   : > { %v6377_v44 = vadd.f32 %v6375_v46, %v6373_v24  ;;  %13648 = vmatpush3.bf16.msra.mxu1 %v14443_v16  ;;  %13649 = vmatprep.mubr.msk.bf16.mxu1 %vm14956_vm4, %v17098_v60  ;;  %v14449_v16 = vld [vmem:[%s18228_s8 + $0x10] sm:$0xff]   ;;  %v6910_v63 = vpack.c.bf16 %v6909_v11, %v6909_v11  ;;  %v14452_v52 = vld [vmem:[%s18228_s8 + $0x38] sm:$0xff]   ;;  %v14454_v57 = vld [vmem:[%s18228_s8 + $0x8] sm:$0xff]  }
 0x612   : > { %v6369_v6 = vmax.f32 %v6367_v13, 0.0  ;;  %v6368_v48 = vadd.f32 %v6366_v39, %v6364_v7  ;;  %v13611_v59 = vpop.f32.mrb[32].mxu0  ;;  %13659 = vmatprep.subr.bf16.mxu1 %v17098_v60  ;;  %v7176_v24 = vld [vmem:[#allocation4 + $0x4a] ss:$2 sm:$0xff]  ;;  %v14451_v13 = vld [vmem:[%s18228_s8 + $0x20] sm:$0xff]   ;;  %v7012_v39 = vpack.c.bf16 %v7011_v26, %v7011_v26 }
 0x613   : > { %v6379_v51 = vmax.f32 %v6377_v44, 0.0  ;;  %v6312_v12 = vadd.f32 %v13611_v59, %v17340_v9  ;;  %v6272_v30 = vpop.f32.mrb[33].mxu0  ;;  %v14445_v9 = vld [vmem:[%s18228_s8 + $0x38] sm:$0xff]   ;;  %v7177_v46 = vpack.c.bf16 %v7176_v24, %v7176_v24  ;;  %v7121_v7 = vld [vmem:[#allocation4 + $0x49] ss:$2 sm:$0xff] }
 0x614   : > { %6371 = vst [vmem:[#allocation4 + $0x79] sm:$0xff] %v6369_v6  ;;  %v6370_v20 = vmax.f32 %v6368_v48, 0.0  ;;  %v6311_v4 = vadd.f32 %v6272_v30, %v17343_v37  ;;  %v13612_v21 = vpop.f32.mrb[34].mxu0  ;;  %v6374_v37 = vld [vmem:[#allocation2 + $0x99] sm:$0xff]  ;;  %v14453_v48 = vld [vmem:[%s18228_s8 + $0x30] sm:$0xff]   ;;  %v7122_v59 = vpack.c.bf16 %v7121_v7, %v7121_v7  ;;  %v14468_v26 = vld [vmem:[%s18228_s8 + $0x28] sm:$0xff]  }
 0x615   : > { %6381 = vst [vmem:[#allocation4 + $0x91] sm:$0xff] %v6379_v51  ;;  %v6385_v15 = vadd.f32 %v17353_v61, %v6312_v12  ;;  %v6313_v56 = vadd.f32 %v13612_v21, %v17345_v55  ;;  %v6275_v54 = vpop.f32.mrb[35].mxu0  ;;  %v7286_v44 = vld [vmem:[#allocation4 + $0x61] ss:$2 sm:$0xff]  ;;  %v7231_v17 = vld [vmem:[#allocation4 + $0x60] ss:$2 sm:$0xff] }
 0x616   : > { %6372 = vst [vmem:[#allocation4 + $0x81] sm:$0xff] %v6370_v20  ;;  %v6376_v45 = vadd.f32 %v17353_v61, %v6311_v4  ;;  %13668 = vmatmul.mubr.msk.bf16.vlgmr.msra.gmra.mrb[44].mxu0 %vm2516_vm3, %v6843_v50  ;;  %v7287_v6 = vpack.c.bf16 %v7286_v44, %v7286_v44  ;;  %v7402_v51 = vld [vmem:[#allocation4 + $0x61] ss:$2 sm:$0xff]  ;;  %v7232_v50 = vpack.c.bf16 %v7231_v17, %v7231_v17  ;;  %v14470_v7 = vld [vmem:[%s18228_s8 + $0x38] sm:$0xff]  }
 0x617   : > { %v6387_v38 = vadd.f32 %v6385_v15, %v6383_v33  ;;  %v6386_v2 = vadd.f32 %v17353_v61, %v6313_v56  ;;  %13678 = vmatpush3.bf16.msra.mxu0 %v14446_v14  ;;  %13679 = vmatprep.mubr.msk.bf16.mxu0 %vm14956_vm4, %v17098_v60  ;;  %v14456_v14 = vld [vmem:[%s18228_s8 + $0x10] sm:$0xff]   ;;  %v7403_v33 = vpack.c.bf16 %v7402_v51, %v7402_v51  ;;  %v14455_v21 = vld [vmem:[%s18228_s8 + $0x40] sm:$0xff]   ;;  %v14475_v17 = vld [vmem:[%s18230_s10 + $0x18] sm:$0xff]  }
 0x618   : > { %v6378_v55 = vadd.f32 %v6376_v45, %v6374_v37  ;;  %13650 = vmatmul.mubr.msk.bf16.vlgmr.msra.gmra.mrb[44].mxu1 %vm2516_vm3, %v6678_v53  ;;  %13689 = vmatprep.subr.bf16.mxu0 %v17098_v60  ;;  %v7504_v15 = vld [vmem:[#allocation4 + $0x62] ss:$2 sm:$0xff] }
 0x619   : > { %v6389_v41 = vmax.f32 %v6387_v38, 0.0  ;;  %v6388_v0 = vadd.f32 %v6386_v2, %v6384_v5  ;;  %13660 = vmatpush3.bf16.msra.mxu1 %v14445_v9  ;;  %13661 = vmatprep.mubr.msk.bf16.mxu1 %vm14956_vm4, %v17098_v60  ;;  %v7341_v45 = vld [vmem:[#allocation4 + $0x62] ss:$2 sm:$0xff]  ;;  %v7505_v37 = vpack.c.bf16 %v7504_v15, %v7504_v15 }
 0x61a   : > { %v6380_v43 = vmax.f32 %v6378_v55, 0.0  ;;  %v13615_v25 = vpop.f32.mrb[36].mxu0  ;;  %13671 = vmatprep.subr.bf16.mxu1 %v17098_v60  ;;  %v14447_v60 = vld [vmem:[%s18228_s8 + $0x8] sm:$0xff]   ;;  %v6456_v12 = vpop.f32.mrb[24].mxu1  ;;  %v14458_v53 = vld [vmem:[%s18228_s8 + $0x20] sm:$0xff]   ;;  %v7342_v5 = vpack.c.bf16 %v7341_v45, %v7341_v45  ;;  %v17621_v45 = vpack.c.bf16 %v17430_v32, %v17430_v32 }
 0x61b   : > { %6391 = vst [vmem:[#allocation4 + $0xa9] sm:$0xff] %v6389_v41  ;;  %v6390_v28 = vmax.f32 %v6388_v0, 0.0  ;;  %v6315_v47 = vadd.f32 %v13615_v25, %v17348_v23  ;;  %v6287_v42 = vpop.f32.mrb[37].mxu0  ;;  %v13621_v30 = vpop.f32.mrb[25].mxu1  ;;  %v14457_v55 = vld [vmem:[%s18228_s8] sm:$0xff]  }
 0x61c   : > { %6382 = vst [vmem:[#allocation4 + $0x99] sm:$0xff] %v6380_v43  ;;  %v13616_v3 = vpop.f32.mrb[38].mxu0  ;;  %v6459_v20 = vpop.f32.mrb[26].mxu1  ;;  %v7398_v25 = vld [vmem:[#allocation4 + $0x60] ss:$2 sm:$0xff] }
 0x61d   : > { %6392 = vst [vmem:[#allocation4 + $0xb1] sm:$0xff] %v6390_v28  ;;  %v6396_v36 = vadd.f32 %v17353_v61, %v6315_v47  ;;  %v6289_v31 = vpop.f32.mrb[39].mxu0  ;;  %v13622_v4 = vpop.f32.mrb[27].mxu1  ;;  %v7614_v41 = vld [vmem:[#allocation4 + $0x79] ss:$2 sm:$0xff]  ;;  %v14460_v28 = vld [vmem:[%s18228_s8 + $0x30] sm:$0xff]   ;;  %v7399_v3 = vpack.c.bf16 %v7398_v25, %v7398_v25 }
 0x61e   : > { %v6314_v23 = vadd.f32 %v6289_v31, %v17357_v22  ;;  %13680 = vmatmul.mubr.msk.bf16.vlgmr.msra.gmra.mrb[48].mxu0 %vm2516_vm3, %v6906_v29  ;;  %v7066_v22 = vld [vmem:[#allocation4 + $0x48] ss:$2 sm:$0xff]  ;;  %v7615_v42 = vpack.c.bf16 %v7614_v41, %v7614_v41  ;;  %v14462_v31 = vld [vmem:[%s18228_s8 + $0x40] sm:$0xff]  }
 0x61f   : > { %v6398_v1 = vadd.f32 %v6396_v36, %v6394_v35  ;;  %13690 = vmatpush3.bf16.msra.mxu0 %v14448_v18  ;;  %13691 = vmatprep.mubr.msk.bf16.mxu0 %vm14956_vm4, %v17430_v32  ;;  %v7067_v8 = vpack.c.bf16 %v7066_v22, %v7066_v22  ;;  %v14459_v18 = vld [vmem:[%s18228_s8 + $0x18] sm:$0xff]   ;;  %v14461_v35 = vld [vmem:[%s18228_s8 + $0x28] sm:$0xff]   ;;  %v14472_v15 = vld [vmem:[%s18228_s8 + $0x40] sm:$0xff]  }
 0x620   : > { %v6395_v27 = vadd.f32 %v17353_v61, %v6314_v23  ;;  %13662 = vmatmul.mubr.msk.bf16.vlgmr.msra.gmra.mrb[48].mxu1 %vm2516_vm3, %v6788_v49  ;;  %13701 = vmatprep.subr.bf16.mxu0 %v17430_v32  ;;  %v7559_v36 = vld [vmem:[#allocation4 + $0x78] ss:$2 sm:$0xff] }
 0x621   : > { %v6400_v40 = vmax.f32 %v6398_v1, 0.0  ;;  %13672 = vmatpush3.bf16.msra.mxu1 %v14447_v60  ;;  %13673 = vmatprep.mubr.msk.bf16.mxu1 %vm14956_vm4, %v17430_v32  ;;  %v7560_v23 = vpack.c.bf16 %v7559_v36, %v7559_v36  ;;  %v7669_v1 = vld [vmem:[#allocation4 + $0x7a] ss:$2 sm:$0xff] }
 0x622   : > { %v6397_v19 = vadd.f32 %v6395_v27, %v6393_v34  ;;  %13683 = vmatprep.subr.bf16.mxu1 %v17430_v32  ;;  %v14464_v34 = vld [vmem:[%s18228_s8] sm:$0xff]   ;;  %v7670_v22 = vpack.c.bf16 %v7669_v1, %v7669_v1 }
 0x623   : > { %6402 = vst [vmem:[#allocation4 + $0xc9] sm:$0xff] %v6400_v40  ;;  %v7724_v29 = vld [vmem:[#allocation4 + $0x90] ss:$2 sm:$0xff]  ;;  %v7779_v11 = vld [vmem:[#allocation4 + $0x91] ss:$2 sm:$0xff] }
 0x624   : > { %v6399_v61 = vmax.f32 %v6397_v19, 0.0  ;;  %v7725_v60 = vpack.c.bf16 %v7724_v29, %v7724_v29  ;;  %v7834_v49 = vld [vmem:[#allocation4 + $0x92] ss:$2 sm:$0xff]  ;;  %v7895_v24 = vld [vmem:[#allocation4 + $0x91] ss:$2 sm:$0xff] }
 0x625   : > { %v7835_v27 = vpack.c.bf16 %v7834_v49, %v7834_v49  ;;  %v14463_v40 = vld [vmem:[%s18228_s8 + $0x38] sm:$0xff]  }
 0x626   : > { %6401 = vst [vmem:[#allocation4 + $0xc1] sm:$0xff] %v6399_v61  ;;  %13692 = vmatmul.mubr.msk.bf16.vlgmr.msra.gmra.mrb[52].mxu0 %vm2516_vm3, %v7067_v8  ;;  %v7891_v19 = vld [vmem:[#allocation4 + $0x90] ss:$2 sm:$0xff]  ;;  %v14465_v8 = vld [vmem:[%s18228_s8 + $0x8] sm:$0xff]  }
 0x627   : > { %13702 = vmatpush3.bf16.msra.mxu0 %v14450_v10  ;;  %13703 = vmatprep.mubr.msk.bf16.mxu0 %vm14956_vm4, %v17430_v32  ;;  %v14466_v10 = vld [vmem:[%s18228_s8 + $0x18] sm:$0xff]   ;;  %v7892_v61 = vpack.c.bf16 %v7891_v19, %v7891_v19 }
 0x628   : > { %13674 = vmatmul.mubr.msk.bf16.vlgmr.msra.gmra.mrb[52].mxu1 %vm2516_vm3, %v6910_v63  ;;  %13713 = vmatprep.subr.bf16.mxu0 %v17430_v32  ;;  %v8052_v63 = vld [vmem:[#allocation4 + $0xa8] ss:$2 sm:$0xff]  ;;  %v8400_v4 = vld [vmem:[#allocation5 + $0x9] sm:$0xff] }
 0x629   : > { %13684 = vmatpush3.bf16.msra.mxu1 %v14449_v16  ;;  %13685 = vmatprep.mubr.msk.bf16.mxu1 %vm14956_vm4, %v17430_v32  ;;  %v7780_v16 = vpack.c.bf16 %v7779_v11, %v7779_v11  ;;  %v7997_v44 = vld [vmem:[#allocation4 + $0x92] ss:$2 sm:$0xff] }
 0x62a   : > { %13695 = vmatprep.subr.bf16.mxu1 %v17430_v32 }
 0x62d   : > { %v8272_v51 = vld [vmem:[#allocation4 + $0xc1] ss:$2 sm:$0xff] }
 0x62e   : > { %13704 = vmatmul.mubr.msk.bf16.vlgmr.msra.gmra.mrb[56].mxu0 %vm2516_vm3, %v7177_v46  ;;  %v14467_v46 = vld [vmem:[%s18228_s8 + $0x10] sm:$0xff]   ;;  %v8273_v30 = vpack.c.bf16 %v8272_v51, %v8272_v51 }
 0x62f   : > { %13714 = vmatpush3.bf16.msra.mxu0 %v14452_v52  ;;  %13715 = vmatprep.mubr.msk.bf16.mxu0 %vm14956_vm4, %v17430_v32  ;;  %v8053_v52 = vpack.c.bf16 %v8052_v63, %v8052_v63  ;;  %v17642_v63 = vld [vmem:[%s18229_s9] ss:$0 sm:$0xff] }
 0x630   : > { %13686 = vmatmul.mubr.msk.bf16.vlgmr.msra.gmra.mrb[56].mxu1 %vm2516_vm3, %v7012_v39  ;;  %13725 = vmatprep.subr.bf16.mxu0 %v17430_v32  ;;  %v8162_v39 = vld [vmem:[#allocation4 + $0xaa] ss:$2 sm:$0xff] }
 0x631   : > { %13696 = vmatpush3.bf16.msra.mxu1 %v14451_v13  ;;  %13697 = vmatprep.mubr.msk.bf16.mxu1 %vm14956_vm4, %v17430_v32  ;;  %v7896_v13 = vpack.c.bf16 %v7895_v24, %v7895_v24 }
 0x632   : > { %13707 = vmatprep.subr.bf16.mxu1 %v17430_v32 }
 0x636   : > { %13716 = vmatmul.mubr.msk.bf16.vlgmr.msra.gmra.mrb[60].mxu0 %vm2516_vm3, %v7287_v6  ;;  %v14469_v6 = vld [vmem:[%s18228_s8 + $0x20] sm:$0xff]  }
 0x637   : > { %13726 = vmatpush3.bf16.msra.mxu0 %v14454_v57  ;;  %13727 = vmatprep.mubr.msk.bf16.mxu0 %vm14956_vm4, %v17430_v32  ;;  %v8163_v57 = vpack.c.bf16 %v8162_v39, %v8162_v39  ;;  %v8402_v39 = vld [vmem:[#allocation5 + $0x19] sm:$0xff] }
 0x638   : > { %13698 = vmatmul.mubr.msk.bf16.vlgmr.msra.gmra.mrb[60].mxu1 %vm2516_vm3, %v7122_v59  ;;  %13737 = vmatprep.subr.bf16.mxu0 %v17430_v32  ;;  %v14473_v59 = vld [vmem:[%s18230_s10 + $0x10] sm:$0xff]  }
 0x639   : > { %13708 = vmatpush3.bf16.msra.mxu1 %v14453_v48  ;;  %13709 = vmatprep.mubr.msk.bf16.mxu1 %vm14956_vm4, %v17430_v32  ;;  %v7998_v48 = vpack.c.bf16 %v7997_v44, %v7997_v44 }
 0x63a   : > { %13719 = vmatprep.subr.bf16.mxu1 %v17430_v32 }
 0x63b   : > { %v6505_v56 = vpop.f32.mrb[28].mxu1 }
 0x63c   : > { %v6506_v54 = vadd.f32 %v6505_v56, %v6456_v12  ;;  %v13627_v9 = vpop.f32.mrb[29].mxu1  ;;  %v8107_v12 = vld [vmem:[#allocation4 + $0xa9] ss:$2 sm:$0xff] }
 0x63d   : > { %v6508_v38 = vpop.f32.mrb[30].mxu1  ;;  %v8108_v20 = vpack.c.bf16 %v8107_v12, %v8107_v12  ;;  %v8327_v9 = vld [vmem:[#allocation4 + $0xc2] ss:$2 sm:$0xff] }
 0x63e   : > { %13728 = vmatmul.mubr.msk.bf16.vlgmr.msra.gmra.mrb[64].mxu0 %vm2516_vm3, %v7403_v33  ;;  %v13628_v2 = vpop.f32.mrb[31].mxu1  ;;  %v8399_v33 = vld [vmem:[#allocation5 + $0x1] sm:$0xff]  ;;  %v14476_v38 = vld [vmem:[%s18230_s10 + $0x8] sm:$0xff]  }
 0x63f   : > { %13738 = vmatpush3.bf16.msra.mxu0 %v14456_v14  ;;  %13739 = vmatprep.mubr.msk.bf16.mxu0 %vm14956_vm4, %v17430_v32  ;;  %v14471_v14 = vld [vmem:[%s18228_s8 + $0x30] sm:$0xff]  }
 0x640   : > { %13710 = vmatmul.mubr.msk.bf16.vlgmr.msra.gmra.mrb[64].mxu1 %vm2516_vm3, %v7232_v50  ;;  %13749 = vmatprep.subr.bf16.mxu0 %v17430_v32  ;;  %v8217_v50 = vld [vmem:[#allocation4 + $0xc0] ss:$2 sm:$0xff]  ;;  %v17635_v2 = vld [vmem:[%s18230_s10 + $0x30] sm:$0xff]  }
 0x641   : > { %13720 = vmatpush3.bf16.msra.mxu1 %v14455_v21  ;;  %13721 = vmatprep.mubr.msk.bf16.mxu1 %vm14956_vm4, %v17430_v32  ;;  %v8406_v21 = vpack.c.bf16 %v8400_v4, %v8399_v33  ;;  %v8218_v56 = vpack.c.bf16 %v8217_v50, %v8217_v50 }
 0x642   : > { %13731 = vmatprep.subr.bf16.mxu1 %v17430_v32 }
 0x643   : > { %v6559_v0 = vpop.f32.mrb[32].mxu1 }
 0x644   : > { %v17510_v62 = vadd.f32 %v6559_v0, %v6506_v54  ;;  %v13633_v43 = vpop.f32.mrb[33].mxu1  ;;  %v14474_v54 = vld [vmem:[%s18230_s10] sm:$0xff]  }
 0x645   : > { %v6562_v47 = vpop.f32.mrb[34].mxu1 }
 0x646   : > { %13740 = vmatmul.mubr.msk.bf16.vlgmr.msra.gmra.mrb[68].mxu0 %vm2516_vm3, %v7505_v37  ;;  %v13634_v58 = vpop.f32.mrb[35].mxu1  ;;  %v14477_v37 = vld [vmem:[%s18230_s10 + $0x20] sm:$0xff]  }
 0x647   : > { %13750 = vmatpush3.bf16.msra.mxu0 %v14458_v53  ;;  %13751 = vmatprep.mubr.msk.bf16.mxu0 %vm14956_vm4, %v17430_v32  ;;  %v8328_v53 = vpack.c.bf16 %v8327_v9, %v8327_v9 }
 0x648   : > { %13722 = vmatmul.mubr.msk.bf16.vlgmr.msra.gmra.mrb[68].mxu1 %vm2516_vm3, %v7342_v5  ;;  %13761 = vmatprep.subr.bf16.mxu0 %v17430_v32 }
 0x649   : > { %13732 = vmatpush3.bf16.msra.mxu1 %v14457_v55  ;;  %13733 = vmatprep.mubr.msk.bf16.mxu1 %vm14956_vm4, %v17430_v32 }
 0x64a   : > { %13743 = vmatprep.subr.bf16.mxu1 %v17430_v32 }
 0x64e   : > { %13752 = vmatmul.mubr.msk.bf16.vlgmr.msra.gmra.mrb[72].mxu0 %vm2516_vm3, %v7615_v42 }
 0x64f   : > { %13762 = vmatpush3.bf16.msra.mxu0 %v14460_v28  ;;  %13763 = vmatprep.mubr.msk.bf16.mxu0 %vm14956_vm4, %v17430_v32 }
 0x650   : > { %13734 = vmatmul.mubr.msk.bf16.vlgmr.msra.gmra.mrb[72].mxu1 %vm2516_vm3, %v7399_v3  ;;  %13773 = vmatprep.subr.bf16.mxu0 %v17430_v32 }
 0x651   : > { %13744 = vmatpush3.bf16.msra.mxu1 %v14459_v18  ;;  %13745 = vmatprep.mubr.msk.bf16.mxu1 %vm14956_vm4, %v17430_v32 }
 0x652   : > { %13755 = vmatprep.subr.bf16.mxu1 %v17430_v32 }
 0x656   : > { %13764 = vmatmul.mubr.msk.bf16.vlgmr.msra.gmra.mrb[76].mxu0 %vm2516_vm3, %v7725_v60 }
 0x657   : > { %13774 = vmatpush3.bf16.msra.mxu0 %v14462_v31  ;;  %13775 = vmatprep.mubr.msk.bf16.mxu0 %vm14956_vm4, %v17430_v32 }
 0x658   : > { %13746 = vmatmul.mubr.msk.bf16.vlgmr.msra.gmra.mrb[76].mxu1 %vm2516_vm3, %v7560_v23  ;;  %13785 = vmatprep.subr.bf16.mxu0 %v17430_v32 }
 0x659   : > { %13756 = vmatpush3.bf16.msra.mxu1 %v14461_v35  ;;  %13757 = vmatprep.mubr.msk.bf16.mxu1 %vm14956_vm4, %v17430_v32 }
 0x65a   : > { %13767 = vmatprep.subr.bf16.mxu1 %v17430_v32 }
 0x65e   : > { %13776 = vmatmul.mubr.msk.bf16.vlgmr.msra.gmra.mrb[80].mxu0 %vm2516_vm3, %v7835_v27 }
 0x65f   : > { %13786 = vmatpush3.bf16.msra.mxu0 %v14464_v34  ;;  %13787 = vmatprep.mubr.msk.bf16.mxu0 %vm14956_vm4, %v17430_v32 }
 0x660   : > { %13758 = vmatmul.mubr.msk.bf16.vlgmr.msra.gmra.mrb[80].mxu1 %vm2516_vm3, %v7670_v22  ;;  %13797 = vmatprep.subr.bf16.mxu0 %v17430_v32 }
 0x661   : > { %13768 = vmatpush3.bf16.msra.mxu1 %v14463_v40  ;;  %13769 = vmatprep.mubr.msk.bf16.mxu1 %vm14956_vm4, %v17430_v32 }
 0x662   : > { %13779 = vmatprep.subr.bf16.mxu1 %v17430_v32 }
 0x666   : > { %13788 = vmatmul.mubr.msk.bf16.vlgmr.msra.gmra.mrb[84].mxu0 %vm2516_vm3, %v7892_v61 }
 0x667   : > { %13798 = vmatpush3.bf16.msra.mxu0 %v14466_v10  ;;  %13799 = vmatprep.mubr.msk.bf16.mxu0 %vm14956_vm4, %v17430_v32 }
 0x668   : > { %13770 = vmatmul.mubr.msk.bf16.vlgmr.msra.gmra.mrb[84].mxu1 %vm2516_vm3, %v7780_v16  ;;  %13809 = vmatprep.subr.bf16.mxu0 %v17430_v32 }
 0x669   : > { %13780 = vmatpush3.bf16.msra.mxu1 %v14465_v8  ;;  %13781 = vmatprep.mubr.msk.bf16.mxu1 %vm14956_vm4, %v17430_v32 }
 0x66a   : > { %13791 = vmatprep.subr.bf16.mxu1 %v17430_v32 }
 0x66e   : > { %13800 = vmatmul.mubr.msk.bf16.vlgmr.msra.gmra.mrb[88].mxu0 %vm2516_vm3, %v8053_v52 }
 0x66f   : > { %13810 = vmatpush3.bf16.msra.mxu0 %v14468_v26  ;;  %13811 = vmatprep.mubr.msk.bf16.mxu0 %vm14956_vm4, %v17430_v32 }
 0x670   : > { %13782 = vmatmul.mubr.msk.bf16.vlgmr.msra.gmra.mrb[88].mxu1 %vm2516_vm3, %v7896_v13  ;;  %13821 = vmatprep.subr.bf16.mxu0 %v17430_v32 }
 0x671   : > { %13792 = vmatpush3.bf16.msra.mxu1 %v14467_v46  ;;  %13793 = vmatprep.mubr.msk.bf16.mxu1 %vm14956_vm4, %v17430_v32 }
 0x672   : > { %13803 = vmatprep.subr.bf16.mxu1 %v17430_v32 }
 0x676   : > { %13812 = vmatmul.mubr.msk.bf16.vlgmr.msra.gmra.mrb[92].mxu0 %vm2516_vm3, %v8163_v57 }
 0x677   : > { %13822 = vmatpush3.bf16.msra.mxu0 %v14470_v7  ;;  %13823 = vmatprep.mubr.msk.bf16.mxu0 %vm14956_vm4, %v17430_v32 }
 0x678   : > { %13794 = vmatmul.mubr.msk.bf16.vlgmr.msra.gmra.mrb[92].mxu1 %vm2516_vm3, %v7998_v48  ;;  %13833 = vmatprep.subr.bf16.mxu0 %v14473_v59 }
 0x679   : > { %13804 = vmatpush3.bf16.msra.mxu1 %v14469_v6  ;;  %13805 = vmatprep.mubr.msk.bf16.mxu1 %vm14956_vm4, %v17430_v32 }
 0x67a   : > { %13815 = vmatprep.subr.bf16.mxu1 %v17430_v32 }
 0x67e   : > { %13824 = vmatmul.mubr.msk.bf16.vlgmr.msra.gmra.mrb[96].mxu0 %vm2516_vm3, %v8273_v30  ;;  %v14479_v30 = vld [vmem:[%s18230_s10 + $0x28] sm:$0xff]  }
 0x67f   : > { %13834 = vmatpush3.bf16.msra.mxu0 %v14473_v59  ;;  %13837 = vmatprep.mubr.msk.bf16.mxu0 %vm8426_vm5, %v8406_v21 }
 0x680   : > { %13806 = vmatmul.mubr.msk.bf16.vlgmr.msra.gmra.mrb[96].mxu1 %vm2516_vm3, %v8108_v20  ;;  %13835 = vmatprep.subr.bf16.mxu0 %v14475_v17  ;;  %v17655_v20 = vld [vmem:[%s18230_s10 + $0x40] sm:$0xff]  }
 0x681   : > { %13816 = vmatpush3.bf16.msra.mxu1 %v14471_v14  ;;  %13817 = vmatprep.mubr.msk.bf16.mxu1 %vm14956_vm4, %v17430_v32 }
 0x682   : > { %13827 = vmatprep.subr.bf16.mxu1 %v17430_v32 }
 0x683   : > { %13836 = vmatpush3.bf16.msra.mxu0 %v14475_v17 }
 0x684   : > { %13857 = vmatprep.subr.bf16.mxu0 %v14477_v37 }
 0x688   : > { %13818 = vmatmul.mubr.msk.bf16.vlgmr.msra.gmra.mrb[100].mxu1 %vm2516_vm3, %v8218_v56 }
 0x689   : > { %13828 = vmatpush3.bf16.msra.mxu1 %v14472_v15  ;;  %13829 = vmatprep.mubr.msk.bf16.mxu1 %vm14956_vm4, %v17430_v32 }
 0x68a   : > { %13845 = vmatprep.subr.bf16.mxu1 %v14474_v54 }
 0x690   : > { %13830 = vmatmul.mubr.msk.bf16.vlgmr.msra.gmra.mrb[104].mxu1 %vm2516_vm3, %v8328_v53 }
 0x691   : > { %13846 = vmatpush3.bf16.msra.mxu1 %v14474_v54  ;;  %13849 = vmatprep.mubr.msk.bf16.mxu1 %vm8426_vm5, %v17621_v45 }
 0x692   : > { %13847 = vmatprep.subr.bf16.mxu1 %v14476_v38 }
 0x695   : > { %13848 = vmatpush3.bf16.msra.mxu1 %v14476_v38 }
 0x696   : > { %13869 = vmatprep.subr.bf16.mxu1 %v17635_v2 }
 0x6db   : > { %v6614_v55 = vpop.f32.mrb[36].mxu1 }
 0x6dc   : > { %v6620_v5 = vadd.f32 %v6614_v55, %v17510_v62  ;;  %v13639_v41 = vpop.f32.mrb[37].mxu1 }
 0x6dd   : > { %v6617_v0 = vpop.f32.mrb[38].mxu1 }
 0x6de   : > { %v13640_v43 = vpop.f32.mrb[39].mxu1  ;;  %v17669_v0 = vld [vmem:[%s18230_s10 + $0x50] sm:$0xff]  }
 0x6e1   : > { %v6779_v25 = vpop.f32.mrb[40].mxu0 }
 0x6e2   : > { %v13657_v28 = vpop.f32.mrb[41].mxu0 }
 0x6e3   : > { %v6669_v47 = vpop.f32.mrb[40].mxu1  ;;  %v6782_v42 = vpop.f32.mrb[42].mxu0 }
 0x6e4   : > { %v6675_v58 = vadd.f32 %v6669_v47, %v6620_v5  ;;  %v13645_v18 = vpop.f32.mrb[41].mxu1  ;;  %v13658_v3 = vpop.f32.mrb[43].mxu0 }
 0x6e5   : > { %v6672_v29 = vpop.f32.mrb[42].mxu1 }
 0x6e6   : > { %v13646_v36 = vpop.f32.mrb[43].mxu1 }
 0x6e9   : > { %v6889_v31 = vpop.f32.mrb[44].mxu0 }
 0x6ea   : > { %v13669_v60 = vpop.f32.mrb[45].mxu0 }
 0x6eb   : > { %v6724_v35 = vpop.f32.mrb[44].mxu1  ;;  %v6892_v23 = vpop.f32.mrb[46].mxu0 }
 0x6ec   : > { %v6730_v49 = vadd.f32 %v6724_v35, %v6675_v58  ;;  %v13651_v1 = vpop.f32.mrb[45].mxu1  ;;  %v13670_v34 = vpop.f32.mrb[47].mxu0 }
 0x6ed   : > { %v6727_v62 = vpop.f32.mrb[46].mxu1 }
 0x6ee   : > { %v13652_v27 = vpop.f32.mrb[47].mxu1  ;;  %v6785_v40 = vadd.f32 %v6779_v25, %v6730_v49 }
 0x6f1   : > { %v7005_v22 = vpop.f32.mrb[48].mxu0 }
 0x6f2   : > { %v13681_v19 = vpop.f32.mrb[49].mxu0 }
 0x6f3   : > { %v6834_v11 = vpop.f32.mrb[48].mxu1  ;;  %v7008_v10 = vpop.f32.mrb[50].mxu0 }
 0x6f4   : > { %v6840_v61 = vadd.f32 %v6834_v11, %v6785_v40  ;;  %v13663_v8 = vpop.f32.mrb[49].mxu1  ;;  %v13682_v16 = vpop.f32.mrb[51].mxu0 }
 0x6f5   : > { %v6837_v24 = vpop.f32.mrb[50].mxu1 }
 0x6f6   : > { %v6895_v26 = vadd.f32 %v6889_v31, %v6840_v61  ;;  %v13664_v52 = vpop.f32.mrb[51].mxu1 }
 0x6f7   : > { %v8404_v52 = vld [vmem:[#allocation5 + $0x29] sm:$0xff] }
 0x6f8   : > { %v6902_v46 = vadd.f32 %v17642_v63, %v6895_v26 }
 0x6f9   : > { %v7113_v13 = vpop.f32.mrb[52].mxu0 }
 0x6fa   : > { %v6903_v44 = vmax.f32 %v6902_v46, 0.0  ;;  %v13693_v7 = vpop.f32.mrb[53].mxu0 }
 0x6fb   : > { %v6956_v57 = vpop.f32.mrb[52].mxu1  ;;  %v7116_v6 = vpop.f32.mrb[54].mxu0 }
 0x6fc   : > { %6904 = vst [vmem:[#allocation5 + $0x11] sm:$0xff] %v6903_v44  ;;  %v7006_v48 = vadd.f32 %v7005_v22, %v6956_v57  ;;  %v13675_v59 = vpop.f32.mrb[53].mxu1  ;;  %v13694_v51 = vpop.f32.mrb[55].mxu0  ;;  %v17645_v12 = vpack.c.bf16 %v8402_v39, %v6903_v44 }
 0x6fd   : > { %v6959_v17 = vpop.f32.mrb[54].mxu1 }
 0x6fe   : > { %v13676_v14 = vpop.f32.mrb[55].mxu1  ;;  %13838 = vmatmul.mubr.msk.bf16.vlgmr.msra.gmra.mrb[100].mxu0 %vm8426_vm5, %v17645_v12 }
 0x6ff   : > { %13858 = vmatpush3.bf16.msra.mxu0 %v14477_v37  ;;  %v14480_v37 = vld [vmem:[%s18230_s10 + $0x38] sm:$0xff]  }
 0x700   : > { %13859 = vmatprep.subr.bf16.mxu0 %v14479_v30 }
 0x701   : > { %v7223_v33 = vpop.f32.mrb[56].mxu0 }
 0x702   : > { %v13705_v4 = vpop.f32.mrb[57].mxu0 }
 0x703   : > { %v7058_v21 = vpop.f32.mrb[56].mxu1  ;;  %v7226_v50 = vpop.f32.mrb[58].mxu0  ;;  %v8386_v15 = vld [vmem:[#allocation5 + $0x10] sm:$0xff]  ;;  %v8387_v56 = vld [vmem:[#allocation5 + $0x18] sm:$0xff]  ;;  %13860 = vmatpush3.bf16.msra.mxu0 %v14479_v30 }
 0x704   : > { %v7064_v54 = vadd.f32 %v7058_v21, %v7006_v48  ;;  %v13687_v9 = vpop.f32.mrb[57].mxu1  ;;  %v13706_v53 = vpop.f32.mrb[59].mxu0  ;;  %v17657_v38 = vpack.c.bf16 %v8387_v56, %v8386_v15  ;;  %13881 = vmatprep.subr.bf16.mxu0 %v17655_v20 }
 0x705   : > { %v7061_v55 = vpop.f32.mrb[58].mxu1 }
 0x706   : > { %v13688_v5 = vpop.f32.mrb[59].mxu1  ;;  %13850 = vmatmul.mubr.msk.bf16.vlgmr.msra.gmra.mrb[108].mxu1 %vm8426_vm5, %v17657_v38  ;;  %v7119_v41 = vadd.f32 %v7113_v13, %v7064_v54 }
 0x707   : > { %13870 = vmatpush3.bf16.msra.mxu1 %v17635_v2 }
 0x708   : > { %13871 = vmatprep.subr.bf16.mxu1 %v14480_v37 }
 0x709   : > { %v7333_v43 = vpop.f32.mrb[60].mxu0 }
 0x70a   : > { %v13717_v25 = vpop.f32.mrb[61].mxu0 }
 0x70b   : > { %v7168_v28 = vpop.f32.mrb[60].mxu1  ;;  %v7336_v47 = vpop.f32.mrb[62].mxu0  ;;  %13872 = vmatpush3.bf16.msra.mxu1 %v14480_v37 }
 0x70c   : > { %v7174_v42 = vadd.f32 %v7168_v28, %v7119_v41  ;;  %v13699_v58 = vpop.f32.mrb[61].mxu1  ;;  %v13718_v18 = vpop.f32.mrb[63].mxu0  ;;  %13893 = vmatprep.subr.bf16.mxu1 %v17669_v0 }
 0x70d   : > { %v7171_v3 = vpop.f32.mrb[62].mxu1 }
 0x70e   : > { %v13700_v29 = vpop.f32.mrb[63].mxu1  ;;  %v7229_v36 = vadd.f32 %v7223_v33, %v7174_v42 }
 0x711   : > { %v7449_v2 = vpop.f32.mrb[64].mxu0 }
 0x712   : > { %v13729_v31 = vpop.f32.mrb[65].mxu0 }
 0x713   : > { %v7278_v60 = vpop.f32.mrb[64].mxu1  ;;  %v7452_v35 = vpop.f32.mrb[66].mxu0 }
 0x714   : > { %v7284_v23 = vadd.f32 %v7278_v60, %v7229_v36  ;;  %v13711_v49 = vpop.f32.mrb[65].mxu1  ;;  %v13730_v1 = vpop.f32.mrb[67].mxu0 }
 0x715   : > { %v7281_v34 = vpop.f32.mrb[66].mxu1 }
 0x716   : > { %v13712_v62 = vpop.f32.mrb[67].mxu1  ;;  %v7339_v27 = vadd.f32 %v7333_v43, %v7284_v23 }
 0x719   : > { %v7551_v40 = vpop.f32.mrb[68].mxu0 }
 0x71a   : > { %v13741_v22 = vpop.f32.mrb[69].mxu0 }
 0x71b   : > { %v7388_v19 = vpop.f32.mrb[68].mxu1  ;;  %v7554_v11 = vpop.f32.mrb[70].mxu0 }
 0x71c   : > { %v7394_v10 = vadd.f32 %v7388_v19, %v7339_v27  ;;  %v13723_v61 = vpop.f32.mrb[69].mxu1  ;;  %v13742_v8 = vpop.f32.mrb[71].mxu0  ;;  %v8585_v11 = vld [vmem:[#allocation5 + $0x2] sm:$0xff] }
 0x71d   : > { %v7391_v16 = vpop.f32.mrb[70].mxu1 }
 0x71e   : > { %v7395_v24 = vadd.f32 %v17642_v63, %v7394_v10  ;;  %v13724_v26 = vpop.f32.mrb[71].mxu1  ;;  %v8586_v10 = vld [vmem:[#allocation5 + $0xa] sm:$0xff] }
 0x720   : > { %v7396_v46 = vmax.f32 %v7395_v24, 0.0 }
 0x721   : > { %v7661_v13 = vpop.f32.mrb[72].mxu0 }
 0x722   : > { %7397 = vst [vmem:[#allocation5 + $0x21] sm:$0xff] %v7396_v46  ;;  %v13753_v39 = vpop.f32.mrb[73].mxu0  ;;  %v17673_v44 = vpack.c.bf16 %v8404_v52, %v7396_v46 }
 0x723   : > { %v7498_v7 = vpop.f32.mrb[72].mxu1  ;;  %v7664_v57 = vpop.f32.mrb[74].mxu0 }
 0x724   : > { %v7499_v6 = vadd.f32 %v7498_v7, %v7449_v2  ;;  %v13735_v48 = vpop.f32.mrb[73].mxu1  ;;  %v13754_v59 = vpop.f32.mrb[75].mxu0  ;;  %13841 = vmatprep.mubr.msk.bf16.mxu0 %vm8426_vm5, %v17673_v44 }
 0x725   : > { %v7501_v51 = vpop.f32.mrb[74].mxu1 }
 0x726   : > { %v13736_v30 = vpop.f32.mrb[75].mxu1  ;;  %v7557_v17 = vadd.f32 %v7551_v40, %v7499_v6  ;;  %v8587_v6 = vld [vmem:[#allocation5 + $0x12] sm:$0xff] }
 0x729   : > { %v8691_v14 = vld [vmem:[#allocation5 + $0x20] sm:$0xff]  ;;  %v8692_v33 = vld [vmem:[#allocation5 + $0x28] sm:$0xff]  ;;  %v7771_v4 = vpop.f32.mrb[76].mxu0 }
 0x72a   : > { %v17677_v21 = vpack.c.bf16 %v8692_v33, %v8691_v14  ;;  %v13765_v50 = vpop.f32.mrb[77].mxu0  ;;  %v8588_v7 = vld [vmem:[#allocation5 + $0x1a] sm:$0xff]  ;;  %v8899_v59 = vld [vmem:[#allocation5 + $0x22] sm:$0xff] }
 0x72b   : > { %v7606_v15 = vpop.f32.mrb[76].mxu1  ;;  %v7774_v56 = vpop.f32.mrb[78].mxu0  ;;  %v17689_v33 = vpack.c.bf16 %v8588_v7, %v8587_v6  ;;  %v9214_v6 = vld [vmem:[#allocation5 + $0x4a] sm:$0xff] }
 0x72c   : > { %v7612_v54 = vadd.f32 %v7606_v15, %v7557_v17  ;;  %v13747_v9 = vpop.f32.mrb[77].mxu1  ;;  %v13766_v53 = vpop.f32.mrb[79].mxu0  ;;  %13853 = vmatprep.mubr.msk.bf16.mxu1 %vm8426_vm5, %v17677_v21 }
 0x72d   : > { %v7609_v37 = vpop.f32.mrb[78].mxu1  ;;  %v14482_v53 = vld [vmem:[%s18230_s10 + $0x48] sm:$0xff]  }
 0x72e   : > { %v13748_v55 = vpop.f32.mrb[79].mxu1  ;;  %v7667_v5 = vadd.f32 %v7661_v13, %v7612_v54  ;;  %v8592_v13 = vpack.c.bf16 %v8586_v10, %v8585_v11 }
 0x731   : > { %v7881_v41 = vpop.f32.mrb[80].mxu0 }
 0x732   : > { %v13777_v43 = vpop.f32.mrb[81].mxu0 }
 0x733   : > { %v7716_v25 = vpop.f32.mrb[80].mxu1  ;;  %v7884_v28 = vpop.f32.mrb[82].mxu0  ;;  %v14485_v43 = vld [vmem:[%s18230_s10 + $0x60] sm:$0xff]  }
 0x734   : > { %v7722_v47 = vadd.f32 %v7716_v25, %v7667_v5  ;;  %v13759_v42 = vpop.f32.mrb[81].mxu1  ;;  %v13778_v58 = vpop.f32.mrb[83].mxu0 }
 0x735   : > { %v7719_v18 = vpop.f32.mrb[82].mxu1 }
 0x736   : > { %v13760_v3 = vpop.f32.mrb[83].mxu1  ;;  %v7777_v29 = vadd.f32 %v7771_v4, %v7722_v47 }
 0x739   : > { %v7991_v36 = vpop.f32.mrb[84].mxu0 }
 0x73a   : > { %v13789_v2 = vpop.f32.mrb[85].mxu0 }
 0x73b   : > { %v7826_v31 = vpop.f32.mrb[84].mxu1  ;;  %v7994_v60 = vpop.f32.mrb[86].mxu0 }
 0x73c   : > { %v7832_v35 = vadd.f32 %v7826_v31, %v7777_v29  ;;  %v13771_v23 = vpop.f32.mrb[85].mxu1  ;;  %v13790_v49 = vpop.f32.mrb[87].mxu0  ;;  %v14487_v60 = vld [vmem:[%s18230_s10 + $0x70] sm:$0xff]  }
 0x73d   : > { %v7829_v1 = vpop.f32.mrb[86].mxu1 }
 0x73e   : > { %v7887_v34 = vadd.f32 %v7881_v41, %v7832_v35  ;;  %v13772_v62 = vpop.f32.mrb[87].mxu1  ;;  %v8798_v35 = vld [vmem:[#allocation5 + $0x39] sm:$0xff] }
 0x740   : > { %v7888_v27 = vadd.f32 %v17642_v63, %v7887_v34  ;;  %v14486_v34 = vld [vmem:[%s18230_s10 + $0x68] sm:$0xff]  }
 0x741   : > { %v8099_v40 = vpop.f32.mrb[88].mxu0 }
 0x742   : > { %v17682_v22 = vmax.f32 %v7888_v27, 0.0  ;;  %v13801_v19 = vpop.f32.mrb[89].mxu0 }
 0x743   : > { %v7942_v61 = vpop.f32.mrb[88].mxu1  ;;  %v8102_v8 = vpop.f32.mrb[90].mxu0 }
 0x744   : > { %7890 = vst [vmem:[#allocation5 + $0x31] sm:$0xff] %v17682_v22  ;;  %v7992_v16 = vadd.f32 %v7991_v36, %v7942_v61  ;;  %v13783_v24 = vpop.f32.mrb[89].mxu1  ;;  %v13802_v26 = vpop.f32.mrb[91].mxu0  ;;  %v8409_v52 = vpack.c.bf16 %v17682_v22, %v17682_v22  ;;  %v14484_v36 = vld [vmem:[%s18230_s10 + $0x58] sm:$0xff]   ;;  %v8802_v27 = vpack.c.bf16 %v8798_v35, %v17682_v22  ;;  %v14497_v35 = vld [vmem:[%s18234_s14 + $0x28] sm:$0xff]  }
 0x745   : > { %v7945_v46 = vpop.f32.mrb[90].mxu1 }
 0x746   : > { %v13784_v39 = vpop.f32.mrb[91].mxu1  ;;  %13842 = vmatmul.mubr.msk.bf16.gmra.mrb[104].mxu0 %vm8426_vm5, %v8409_v52 }
 0x747   : > { %13861 = vmatprep.mubr.msk.bf16.mxu0 %vm8426_vm5, %v8592_v13  ;;  %v14490_v39 = vld [vmem:[%s18230_s10 + $0x88] sm:$0xff]  }
 0x749   : > { %v8209_v57 = vpop.f32.mrb[92].mxu0 }
 0x74a   : > { %v13813_v48 = vpop.f32.mrb[93].mxu0 }
 0x74b   : > { %v8900_v51 = vld [vmem:[#allocation5 + $0x2a] sm:$0xff]  ;;  %v8044_v17 = vpop.f32.mrb[92].mxu1  ;;  %v8212_v14 = vpop.f32.mrb[94].mxu0  ;;  %v17704_v41 = vld [vmem:[#allocation5 + $0x32] sm:$0xff] }
 0x74c   : > { %v9003_v30 = vld [vmem:[#allocation5 + $0x30] sm:$0xff]  ;;  %v17691_v4 = vpack.c.bf16 %v8900_v51, %v8899_v59  ;;  %v8050_v50 = vadd.f32 %v8044_v17, %v7992_v16  ;;  %v13795_v15 = vpop.f32.mrb[93].mxu1  ;;  %v13814_v56 = vpop.f32.mrb[95].mxu0  ;;  %v9004_v25 = vld [vmem:[#allocation5 + $0x38] sm:$0xff]  ;;  %v8595_v3 = vpack.c.bf16 %v17704_v41, %v17704_v41 }
 0x74d   : > { %v8394_v54 = vpack.c.bf16 %v9003_v30, %v9003_v30  ;;  %v8047_v9 = vpop.f32.mrb[94].mxu1  ;;  %v14491_v59 = vld [vmem:[#allocation13] sm:$0xff]  }
 0x74e   : > { %v13796_v37 = vpop.f32.mrb[95].mxu1  ;;  %v8105_v55 = vadd.f32 %v8099_v40, %v8050_v50  ;;  %13862 = vmatmul.mubr.msk.bf16.vlgmr.msra.gmra.mrb[108].mxu0 %vm8426_vm5, %v17689_v33  ;;  %v14489_v40 = vld [vmem:[%s18230_s10 + $0x80] sm:$0xff]  }
 0x74f   : > { %13854 = vmatmul.mubr.msk.bf16.gmra.mrb[112].mxu1 %vm8426_vm5, %v8394_v54  ;;  %13865 = vmatprep.mubr.msk.bf16.mxu0 %vm8426_vm5, %v17691_v4  ;;  %v9317_v15 = vld [vmem:[#allocation4 + $0x19] ss:$2 sm:$0xff]  ;;  %v9384_v54 = vld [vmem:[#allocation4 + $0x49] ss:$2 sm:$0xff] }
 0x750   : > { %13873 = vmatprep.mubr.msk.bf16.mxu1 %vm8426_vm5, %v17657_v38  ;;  %13882 = vmatpush3.bf16.msra.mxu0 %v17655_v20  ;;  %v9009_v20 = vpack.c.bf16 %v9004_v25, %v9003_v30  ;;  %v9110_v30 = vld [vmem:[#allocation5 + $0x49] sm:$0xff]  ;;  %v9318_v56 = vpack.c.bf16 %v9317_v15, %v9317_v15  ;;  %v9385_v9 = vpack.c.bf16 %v9384_v54, %v9384_v54 }
 0x751   : > { %v8319_v5 = vpop.f32.mrb[96].mxu0  ;;  %13883 = vmatprep.subr.bf16.mxu0 %v14482_v53 }
 0x752   : > { %v13825_v28 = vpop.f32.mrb[97].mxu0 }
 0x753   : > { %v8154_v47 = vpop.f32.mrb[96].mxu1  ;;  %v8322_v42 = vpop.f32.mrb[98].mxu0 }
 0x754   : > { %v8160_v58 = vadd.f32 %v8154_v47, %v8105_v55  ;;  %v13807_v18 = vpop.f32.mrb[97].mxu1  ;;  %v13826_v38 = vpop.f32.mrb[99].mxu0  ;;  %13884 = vmatpush3.bf16.msra.mxu0 %v14482_v53  ;;  %v9482_v53 = vld [vmem:[#allocation4 + $0xa9] ss:$2 sm:$0xff] }
 0x755   : > { %v8157_v29 = vpop.f32.mrb[98].mxu1  ;;  %13905 = vmatprep.subr.bf16.mxu0 %v14485_v43  ;;  %v9483_v37 = vpack.c.bf16 %v9482_v53, %v9482_v53  ;;  %v14492_v38 = vld [vmem:[%s18234_s14 + $0x10] sm:$0xff]  }
 0x756   : > { %v13808_v2 = vpop.f32.mrb[99].mxu1  ;;  %v8215_v31 = vadd.f32 %v8209_v57, %v8160_v58  ;;  %13866 = vmatmul.mubr.msk.bf16.gmra.mrb[112].mxu0 %vm8426_vm5, %v8595_v3  ;;  %v14493_v3 = vld [vmem:[%s18234_s14 + $0x18] sm:$0xff]   ;;  %v9539_v29 = vld [vmem:[#allocation6 + $0x1] ss:$2 sm:$0xf] }
 0x757   : > { %13874 = vmatmul.mubr.msk.bf16.vlgmr.msra.gmra.mrb[116].mxu1 %vm8426_vm5, %v17677_v21  ;;  %13885 = vmatprep.mubr.msk.bf16.mxu0 %vm8426_vm5, %v17645_v12  ;;  %v14495_v2 = vld [vmem:[%s18234_s14 + $0x20] sm:$0xff]  }
 0x758   : > { %13877 = vmatprep.mubr.msk.bf16.mxu1 %vm8426_vm5, %v9009_v20  ;;  %13894 = vmatpush3.bf16.msra.mxu1 %v17669_v0 }
 0x759   : > { %13895 = vmatprep.subr.bf16.mxu1 %v14484_v36 }
 0x75b   : > { %v8264_v23 = vpop.f32.mrb[100].mxu1 }
 0x75c   : > { %v8270_v49 = vadd.f32 %v8264_v23, %v8215_v31  ;;  %v13819_v1 = vpop.f32.mrb[101].mxu1  ;;  %13896 = vmatpush3.bf16.msra.mxu1 %v14484_v36  ;;  %v9540_v36 = vpack.c.bf16 %v9539_v29, %v9539_v29  ;;  %v14496_v31 = vld [vmem:[%s18234_s14 + $0x8] sm:$0xff]  }
 0x75d   : > { %v8267_v62 = vpop.f32.mrb[102].mxu1  ;;  %13917 = vmatprep.subr.bf16.mxu1 %v14487_v60 }
 0x75e   : > { %v13820_v12 = vpop.f32.mrb[103].mxu1  ;;  %v8325_v0 = vadd.f32 %v8319_v5, %v8270_v49  ;;  %13886 = vmatmul.mubr.msk.bf16.vlgmr.msra.gmra.mrb[116].mxu0 %vm8426_vm5, %v17673_v44  ;;  %v9656_v49 = vld [vmem:[#allocation6 + $0x2] ss:$2 sm:$0xf]  ;;  %v14499_v62 = vld [vmem:[%s18234_s14 + $0x40] sm:$0xff]  }
 0x75f   : > { %13889 = vmatprep.mubr.msk.bf16.mxu0 %vm8426_vm5, %v8802_v27  ;;  %13906 = vmatpush3.bf16.msra.mxu0 %v14485_v43  ;;  %v9657_v1 = vpack.c.bf16 %v9656_v49, %v9656_v49  ;;  %v14501_v12 = vld [vmem:[%s18234_s14 + $0x48] sm:$0xff]  }
 0x760   : > { %13907 = vmatprep.subr.bf16.mxu0 %v14486_v34 }
 0x763   : > { %v8374_v19 = vpop.f32.mrb[104].mxu1  ;;  %13908 = vmatpush3.bf16.msra.mxu0 %v14486_v34  ;;  %v14498_v34 = vld [vmem:[%s18234_s14 + $0x30] sm:$0xff]  }
 0x764   : > { %v8380_v11 = vadd.f32 %v8374_v19, %v8325_v0  ;;  %v13831_v10 = vpop.f32.mrb[105].mxu1  ;;  %13929 = vmatprep.subr.bf16.mxu0 %v14489_v40 }
 0x765   : > { %v8377_v22 = vpop.f32.mrb[106].mxu1 }
 0x766   : > { %v8381_v61 = vadd.f32 %v17642_v63, %v8380_v11  ;;  %v13832_v8 = vpop.f32.mrb[107].mxu1 }
 0x768   : > { %v8382_v16 = vmax.f32 %v8381_v61, 0.0 }
 0x76a   : > { %8383 = vst [vmem:[#allocation5 + $0x41] sm:$0xff] %v8382_v16  ;;  %v8803_v24 = vpack.c.bf16 %v8382_v16, %v8382_v16  ;;  %v9114_v14 = vpack.c.bf16 %v9110_v30, %v8382_v16 }
 0x76c   : > { %13890 = vmatmul.mubr.msk.bf16.gmra.mrb[120].mxu0 %vm8426_vm5, %v8803_v24 }
 0x76d   : > { %13909 = vmatprep.mubr.msk.bf16.mxu0 %vm8426_vm5, %v17677_v21  ;;  %v14488_v21 = vld [vmem:[%s18230_s10 + $0x78] sm:$0xff]  }
 0x771   : > { %v8695_v26 = vld [vmem:[#allocation5 + $0x40] sm:$0xff]  ;;  %v9006_v52 = vld [vmem:[#allocation5 + $0x48] sm:$0xff] }
 0x772   : > { %v8699_v46 = vpack.c.bf16 %v8695_v26, %v8695_v26  ;;  %v9010_v13 = vpack.c.bf16 %v9006_v52, %v8695_v26  ;;  %v9212_v63 = vld [vmem:[#allocation5 + $0x3a] sm:$0xff]  ;;  %v8903_v57 = vld [vmem:[#allocation5 + $0x42] sm:$0xff] }
 0x773   : > { %v9217_v7 = vpack.c.bf16 %v9212_v63, %v17704_v41  ;;  %v8907_v48 = vpack.c.bf16 %v8903_v57, %v8903_v57  ;;  %v9218_v51 = vpack.c.bf16 %v9214_v6, %v8903_v57 }
 0x774   : > { %13878 = vmatmul.mubr.msk.bf16.gmra.mrb[120].mxu1 %vm8426_vm5, %v8699_v46  ;;  %13910 = vmatmul.mubr.msk.bf16.vlgmr.msra.gmra.mrb[124].mxu0 %vm8426_vm5, %v9009_v20  ;;  %v14494_v20 = vld [vmem:[%s18234_s14] sm:$0xff]  }
 0x775   : > { %13897 = vmatprep.mubr.msk.bf16.mxu1 %vm8426_vm5, %v17689_v33  ;;  %13913 = vmatprep.mubr.msk.bf16.mxu0 %vm8426_vm5, %v9010_v13  ;;  %v9111_v33 = vld [vmem:[#allocation5 + $0x51] sm:$0xff] }
 0x776   : > { %13930 = vmatpush3.bf16.msra.mxu0 %v14489_v40 }
 0x777   : > { %13931 = vmatprep.subr.bf16.mxu0 %v14490_v39 }
 0x77a   : > { %13932 = vmatpush3.bf16.msra.mxu0 %v14490_v39 }
 0x77b   : > { %13953 = vmatprep.subr.bf16.mxu0 %v17430_v32 }
 0x77c   : > { %13898 = vmatmul.mubr.msk.bf16.vlgmr.msra.gmra.mrb[124].mxu1 %vm8426_vm5, %v17691_v4  ;;  %13914 = vmatmul.mubr.msk.bf16.gmra.mrb[128].mxu0 %vm8426_vm5, %v17621_v45  ;;  %v9215_v45 = vld [vmem:[#allocation5 + $0x52] sm:$0xff] }
 0x77d   : > { %13901 = vmatprep.mubr.msk.bf16.mxu1 %vm8426_vm5, %v9217_v7  ;;  %13918 = vmatpush3.bf16.msra.mxu1 %v14487_v60  ;;  %v9219_v17 = vpack.c.bf16 %v9215_v45, %v9215_v45  ;;  %v9532_v60 = vld [vmem:[#allocation6] ss:$2 sm:$0xf] }
 0x77e   : > { %13919 = vmatprep.subr.bf16.mxu1 %v14488_v21  ;;  %13933 = vmatprep.mubr.msk.bf16.mxu0 %vm8426_vm5, %v17691_v4  ;;  %v17768_v4 = vld [vmem:[#allocation4 + $0xd8] sm:$0xff]  ;;  %v9533_v23 = vpack.c.bf16 %v9532_v60, %v9532_v60 }
 0x781   : > { %13920 = vmatpush3.bf16.msra.mxu1 %v14488_v21 }
 0x782   : > { %13941 = vmatprep.subr.bf16.mxu1 %v17430_v32 }
 0x784   : > { %13902 = vmatmul.mubr.msk.bf16.gmra.mrb[128].mxu1 %vm8426_vm5, %v8907_v48  ;;  %13934 = vmatmul.mubr.msk.bf16.vlgmr.msra.gmra.mrb[132].mxu0 %vm8426_vm5, %v9217_v7 }
 0x785   : > { %13921 = vmatprep.mubr.msk.bf16.mxu1 %vm8426_vm5, %v17673_v44  ;;  %13937 = vmatprep.mubr.msk.bf16.mxu0 %vm8426_vm5, %v9218_v51  ;;  %v9433_v44 = vld [vmem:[#allocation4 + $0x79] ss:$2 sm:$0xff] }
 0x786   : > { %13954 = vmatpush3.bf16.msra.mxu0 %v14491_v59  ;;  %v9434_v50 = vpack.c.bf16 %v9433_v44, %v9433_v44 }
 0x787   : > { %13965 = vmatprep.subr.bf16.mxu0 %v17430_v32  ;;  %v9115_v32 = vpack.c.bf16 %v9111_v33, %v9111_v33 }
 0x78c   : > { %13922 = vmatmul.mubr.msk.bf16.vlgmr.msra.gmra.mrb[132].mxu1 %vm8426_vm5, %v8802_v27  ;;  %13938 = vmatmul.mubr.msk.bf16.gmra.mrb[136].mxu0 %vm8426_vm5, %v9219_v17  ;;  %v14500_v27 = vld [vmem:[%s18234_s14 + $0x38] sm:$0xff]  }
 0x78d   : > { %13925 = vmatprep.mubr.msk.bf16.mxu1 %vm8426_vm5, %v9114_v14  ;;  %13942 = vmatpush3.bf16.msra.mxu1 %v14491_v59 }
 0x78e   : > { %13955 = vmatprep.mubr.msk.bf16.mxu0 %vm14956_vm4, %v17768_v4  ;;  %13947 = vmatprep.subr.bf16.mxu1 %v17768_v4 }
 0x794   : > { %13926 = vmatmul.mubr.msk.bf16.gmra.mrb[136].mxu1 %vm8426_vm5, %v9115_v32  ;;  %13956 = vmatmul.mubr.msk.bf16.vlgmr.msra.gmra.mrb[140].mxu0 %vm2516_vm3, %v9434_v50 }
 0x795   : > { %13943 = vmatprep.mubr.msk.bf16.mxu1 %vm14956_vm4, %v17768_v4  ;;  %13969 = vmatprep.mubr.msk.bf16.mxu0 %vm14956_vm4, %v17768_v4 }
 0x796   : > { %13966 = vmatpush3.bf16.msra.mxu0 %v14492_v38 }
 0x797   : > { %13967 = vmatprep.subr.bf16.mxu0 %v17768_v4 }
 0x79a   : > { %13968 = vmatpush3.bf16.msra.mxu0 %v14493_v3 }
 0x79b   : > { %13981 = vmatprep.subr.bf16.mxu0 %v17768_v4 }
 0x79c   : > { %13944 = vmatmul.mubr.msk.bf16.vlgmr.msra.gmra.mrb[140].mxu1 %vm2516_vm3, %v9318_v56 }
 0x79d   : > { %13948 = vmatpush3.bf16.msra.mxu1 %v14491_v59  ;;  %13949 = vmatprep.mubr.msk.bf16.mxu1 %vm14956_vm4, %v17768_v4 }
 0x79e   : > { %13959 = vmatprep.subr.bf16.mxu1 %v17768_v4  ;;  %13970 = vmatmul.mubr.msk.bf16.vlgmr.msra.gmra.mrb[144].mxu0 %vm8426_vm5, %v9540_v36 }
 0x79f   : > { %13982 = vmatpush3.bf16.msra.mxu0 %v14495_v2  ;;  %13985 = vmatprep.mubr.msk.bf16.mxu0 %vm14956_vm4, %v17768_v4 }
 0x7a0   : > { %13983 = vmatprep.subr.bf16.mxu0 %v17768_v4 }
 0x7a3   : > { %13984 = vmatpush3.bf16.msra.mxu0 %v14497_v35 }
 0x7a4   : > { %13950 = vmatmul.mubr.msk.bf16.vlgmr.msra.gmra.mrb[144].mxu1 %vm2516_vm3, %v9385_v9  ;;  %13997 = vmatprep.subr.bf16.mxu0 %v17768_v4 }
 0x7a5   : > { %13960 = vmatpush3.bf16.msra.mxu1 %v14491_v59  ;;  %13961 = vmatprep.mubr.msk.bf16.mxu1 %vm14956_vm4, %v17768_v4 }
 0x7a6   : > { %13973 = vmatprep.subr.bf16.mxu1 %v17768_v4  ;;  %13986 = vmatmul.mubr.msk.bf16.vlgmr.msra.gmra.mrb[148].mxu0 %vm8426_vm5, %v9657_v1 }
 0x7a7   : > { %13998 = vmatpush3.bf16.msra.mxu0 %v14499_v62  ;;  %14001 = vmatprep.mubr.msk.bf16.mxu0 %vm14956_vm4, %v17768_v4 }
 0x7a8   : > { %13999 = vmatprep.subr.bf16.mxu0 %v17768_v4 }
 0x7ab   : > { %14000 = vmatpush3.bf16.msra.mxu0 %v14501_v12 }
 0x7ac   : > { %13962 = vmatmul.mubr.msk.bf16.vlgmr.msra.gmra.mrb[148].mxu1 %vm2516_vm3, %v9483_v37  ;;  %14013 = vmatprep.subr.bf16.mxu0 %v17768_v4 }
 0x7ad   : > { %13977 = vmatprep.mubr.msk.bf16.mxu1 %vm14956_vm4, %v17768_v4  ;;  %13974 = vmatpush3.bf16.msra.mxu1 %v14494_v20 }
 0x7ae   : > { %13975 = vmatprep.subr.bf16.mxu1 %v17768_v4 }
 0x7b1   : > { %13976 = vmatpush3.bf16.msra.mxu1 %v14496_v31 }
 0x7b2   : > { %13989 = vmatprep.subr.bf16.mxu1 %v17768_v4 }
 0x7b4   : > { %13978 = vmatmul.mubr.msk.bf16.vlgmr.msra.gmra.mrb[152].mxu1 %vm8426_vm5, %v9533_v23 }
 0x7b5   : > { %13993 = vmatprep.mubr.msk.bf16.mxu1 %vm14956_vm4, %v17768_v4  ;;  %13990 = vmatpush3.bf16.msra.mxu1 %v14498_v34 }
 0x7b6   : > { %13991 = vmatprep.subr.bf16.mxu1 %v17768_v4 }
 0x7b9   : > { %13992 = vmatpush3.bf16.msra.mxu1 %v14500_v27 }
 0x7ba   : > { %14005 = vmatprep.subr.bf16.mxu1 %v17768_v4 }
 0x7d1   : > { %v13839_v55 = vpop.f32.mrb[100].mxu0 }
 0x7d2   : > { %v8473_v5 = vpop.f32.mrb[101].mxu0 }
 0x7d3   : > { %v13840_v41 = vpop.f32.mrb[102].mxu0 }
 0x7d4   : > { %v8476_v43 = vpop.f32.mrb[103].mxu0 }
 0x7d9   : > { %v13851_v25 = vpop.f32.mrb[108].mxu1 }
 0x7da   : > { %v8566_v28 = vadd.f32 %v13851_v25, %v13839_v55  ;;  %v8558_v47 = vpop.f32.mrb[109].mxu1 }
 0x7db   : > { %v8559_v42 = vadd.f32 %v8558_v47, %v8473_v5  ;;  %v13852_v58 = vpop.f32.mrb[110].mxu1 }
 0x7dc   : > { %v8561_v18 = vpop.f32.mrb[111].mxu1 }
 0x819   : > { %v13843_v0 = vpop.f32.mrb[104].mxu0 }
 0x81a   : > { %v8487_v40 = vpop.f32.mrb[105].mxu0 }
 0x81b   : > { %v13844_v19 = vpop.f32.mrb[106].mxu0 }
 0x81c   : > { %v8490_v11 = vpop.f32.mrb[107].mxu0 }
 0x821   : > { %v13863_v22 = vpop.f32.mrb[108].mxu0 }
 0x822   : > { %v13855_v10 = vpop.f32.mrb[112].mxu1  ;;  %v8686_v16 = vadd.f32 %v13863_v22, %v8566_v28  ;;  %v8658_v24 = vpop.f32.mrb[109].mxu0 }
 0x823   : > { %v8580_v61 = vadd.f32 %v13855_v10, %v13843_v0  ;;  %v8572_v8 = vpop.f32.mrb[113].mxu1  ;;  %v8685_v46 = vadd.f32 %v8658_v24, %v8559_v42  ;;  %v13864_v13 = vpop.f32.mrb[110].mxu0 }
 0x824   : > { %v8573_v26 = vadd.f32 %v8572_v8, %v8487_v40  ;;  %v13856_v52 = vpop.f32.mrb[114].mxu1  ;;  %v8661_v63 = vpop.f32.mrb[111].mxu0 }
 0x825   : > { %v8575_v39 = vpop.f32.mrb[115].mxu1 }
 0x829   : > { %v13867_v7 = vpop.f32.mrb[112].mxu0 }
 0x82a   : > { %v13875_v21 = vpop.f32.mrb[116].mxu1  ;;  %v8688_v48 = vadd.f32 %v13867_v7, %v8580_v61  ;;  %v8672_v59 = vpop.f32.mrb[113].mxu0 }
 0x82b   : > { %v8790_v57 = vadd.f32 %v13875_v21, %v8686_v16  ;;  %v8762_v6 = vpop.f32.mrb[117].mxu1  ;;  %v8687_v30 = vadd.f32 %v8672_v59, %v8573_v26  ;;  %v13868_v17 = vpop.f32.mrb[114].mxu0 }
 0x82c   : > { %v8789_v51 = vadd.f32 %v8762_v6, %v8685_v46  ;;  %v13876_v45 = vpop.f32.mrb[118].mxu1  ;;  %v8675_v33 = vpop.f32.mrb[115].mxu0 }
 0x82d   : > { %v8765_v14 = vpop.f32.mrb[119].mxu1 }
 0x831   : > { %v13887_v44 = vpop.f32.mrb[116].mxu0 }
 0x832   : > { %v8894_v32 = vadd.f32 %v13887_v44, %v8790_v57  ;;  %v8866_v50 = vpop.f32.mrb[117].mxu0 }
 0x833   : > { %v8893_v15 = vadd.f32 %v8866_v50, %v8789_v51  ;;  %v13888_v56 = vpop.f32.mrb[118].mxu0 }
 0x834   : > { %v8869_v54 = vpop.f32.mrb[119].mxu0 }
 0x835   : > { %v12307_v54 = vld [vmem:[#allocation14] ss:$0 sm:$0xff] }
 0x83f   : > { %v13891_v9 = vpop.f32.mrb[120].mxu0 }
 0x840   : > { %v8880_v53 = vpop.f32.mrb[121].mxu0 }
 0x841   : > { %v13892_v37 = vpop.f32.mrb[122].mxu0 }
 0x842   : > { %v8883_v55 = vpop.f32.mrb[123].mxu0  ;;  %v12310_v37 = vld [vmem:[#allocation11] ss:$0 sm:$0xff] }
 0x847   : > { %v13879_v5 = vpop.f32.mrb[120].mxu1  ;;  %v13911_v41 = vpop.f32.mrb[124].mxu0 }
 0x848   : > { %v8792_v43 = vadd.f32 %v13879_v5, %v8688_v48  ;;  %v8776_v25 = vpop.f32.mrb[121].mxu1  ;;  %v9074_v28 = vpop.f32.mrb[125].mxu0 }
 0x849   : > { %v8791_v47 = vadd.f32 %v8776_v25, %v8687_v30  ;;  %v13880_v42 = vpop.f32.mrb[122].mxu1  ;;  %v13912_v58 = vpop.f32.mrb[126].mxu0 }
 0x84a   : > { %v8896_v18 = vadd.f32 %v13891_v9, %v8792_v43  ;;  %v8779_v38 = vpop.f32.mrb[123].mxu1  ;;  %v9077_v3 = vpop.f32.mrb[127].mxu0 }
 0x84b   : > { %v8895_v20 = vadd.f32 %v8880_v53, %v8791_v47 }
 0x84f   : > { %v13899_v29 = vpop.f32.mrb[124].mxu1  ;;  %v13915_v36 = vpop.f32.mrb[128].mxu0 }
 0x850   : > { %v8998_v2 = vadd.f32 %v13899_v29, %v8894_v32  ;;  %v8970_v31 = vpop.f32.mrb[125].mxu1  ;;  %v9088_v60 = vpop.f32.mrb[129].mxu0 }
 0x851   : > { %v8997_v35 = vadd.f32 %v8970_v31, %v8893_v15  ;;  %v13900_v23 = vpop.f32.mrb[126].mxu1  ;;  %v13916_v49 = vpop.f32.mrb[130].mxu0 }
 0x852   : > { %v9102_v1 = vadd.f32 %v13911_v41, %v8998_v2  ;;  %v8973_v34 = vpop.f32.mrb[127].mxu1  ;;  %v9091_v62 = vpop.f32.mrb[131].mxu0  ;;  %v14502_v49 = vld [vmem:[%s18234_s14 + $0x50] sm:$0xff]  }
 0x853   : > { %v9101_v27 = vadd.f32 %v9074_v28, %v8997_v35 }
 0x857   : > { %v13903_v12 = vpop.f32.mrb[128].mxu1  ;;  %v13935_v0 = vpop.f32.mrb[132].mxu0 }
 0x858   : > { %v9000_v40 = vadd.f32 %v13903_v12, %v8896_v18  ;;  %v8984_v19 = vpop.f32.mrb[129].mxu1  ;;  %v9282_v11 = vpop.f32.mrb[133].mxu0 }
 0x859   : > { %v8999_v10 = vadd.f32 %v8984_v19, %v8895_v20  ;;  %v13904_v22 = vpop.f32.mrb[130].mxu1  ;;  %v13936_v61 = vpop.f32.mrb[134].mxu0 }
 0x85a   : > { %v9104_v8 = vadd.f32 %v13915_v36, %v9000_v40  ;;  %v8987_v16 = vpop.f32.mrb[131].mxu1  ;;  %v9285_v24 = vpop.f32.mrb[135].mxu0  ;;  %v14504_v22 = vld [vmem:[%s18234_s14 + $0x58] sm:$0xff]   ;;  %v14505_v61 = vld [vmem:[%s18234_s14 + $0x68] sm:$0xff]  }
 0x85b   : > { %v9103_v26 = vadd.f32 %v9088_v60, %v8999_v10 }
 0x85f   : > { %v13923_v52 = vpop.f32.mrb[132].mxu1  ;;  %v13939_v46 = vpop.f32.mrb[136].mxu0 }
 0x860   : > { %v9206_v13 = vadd.f32 %v13923_v52, %v9102_v1  ;;  %v9178_v39 = vpop.f32.mrb[133].mxu1  ;;  %v9296_v63 = vpop.f32.mrb[137].mxu0  ;;  %v14503_v1 = vld [vmem:[%s18234_s14 + $0x60] sm:$0xff]  }
 0x861   : > { %v9205_v21 = vadd.f32 %v9178_v39, %v9101_v27  ;;  %v13924_v7 = vpop.f32.mrb[134].mxu1  ;;  %v13940_v57 = vpop.f32.mrb[138].mxu0 }
 0x862   : > { %v9310_v6 = vadd.f32 %v13935_v0, %v9206_v13  ;;  %v9181_v48 = vpop.f32.mrb[135].mxu1  ;;  %v9299_v59 = vpop.f32.mrb[139].mxu0  ;;  %v14507_v13 = vld [vmem:[%s18234_s14 + $0x80] sm:$0xff]   ;;  %v14509_v7 = vld [vmem:[%s18234_s14 + $0x88] sm:$0xff]  }
 0x863   : > { %v9309_v51 = vadd.f32 %v9282_v11, %v9205_v21  ;;  %v14508_v21 = vld [vmem:[%s18234_s14 + $0x78] sm:$0xff]   ;;  %v14510_v48 = vld [vmem:[%s18234_s14 + $0x10] sm:$0xff]   ;;  %v14511_v59 = vld [vmem:[%s18234_s14] sm:$0xff]  }
 0x864   : > { %v9429_v29 = vadd.f32 %v12310_v37, %v9310_v6 }
 0x865   : > { %v9380_v25 = vadd.f32 %v12310_v37, %v9309_v51 }
 0x867   : > { %v13927_v45 = vpop.f32.mrb[136].mxu1  ;;  %v9472_v30 = vpop.f32.mrb[140].mxu0 }
 0x868   : > { %v9208_v17 = vadd.f32 %v13927_v45, %v9104_v8  ;;  %v9192_v14 = vpop.f32.mrb[137].mxu1  ;;  %v13957_v33 = vpop.f32.mrb[141].mxu0  ;;  %v9473_v5 = vadd.f32 %v12307_v54, %v9472_v30  ;;  %v14512_v30 = vld [vmem:[%s18234_s14 + $0x18] sm:$0xff]  }
 0x869   : > { %v9207_v44 = vadd.f32 %v9192_v14, %v9103_v26  ;;  %v13928_v32 = vpop.f32.mrb[138].mxu1  ;;  %v9475_v50 = vpop.f32.mrb[142].mxu0 }
 0x86a   : > { %v9312_v15 = vadd.f32 %v13939_v46, %v9208_v17  ;;  %v9195_v56 = vpop.f32.mrb[139].mxu1  ;;  %v13958_v9 = vpop.f32.mrb[143].mxu0  ;;  %v14506_v46 = vld [vmem:[%s18234_s14 + $0x70] sm:$0xff]   ;;  %v14513_v17 = vld [vmem:[%s18234_s14 + $0x8] sm:$0xff]  }
 0x86b   : > { %v9311_v53 = vadd.f32 %v9296_v63, %v9207_v44  ;;  %v14514_v44 = vld [vmem:[%s18234_s14 + $0x20] sm:$0xff]   ;;  %v14515_v32 = vld [vmem:[%s18234_s14 + $0x30] sm:$0xff]   ;;  %v14516_v56 = vld [vmem:[%s18234_s14 + $0x28] sm:$0xff]  }
 0x86c   : > { %v9527_v40 = vadd.f32 %v12310_v37, %v9312_v15 }
 0x86d   : > { %v9478_v55 = vadd.f32 %v12310_v37, %v9311_v53  ;;  %v14518_v37 = vld [vmem:[%s18234_s14 + $0x40] sm:$0xff]  }
 0x86f   : > { %v9368_v41 = vpop.f32.mrb[140].mxu1  ;;  %v9479_v43 = vadd.f32 %v9478_v55, %v9473_v5  ;;  %v14519_v55 = vld [vmem:[%s18234_s14 + $0x50] sm:$0xff]  }
 0x870   : > { %v9369_v28 = vadd.f32 %v12307_v54, %v9368_v41  ;;  %v13945_v47 = vpop.f32.mrb[141].mxu1 }
 0x871   : > { %v9480_v42 = vmax.f32 %v9479_v43, 0.0  ;;  %v9371_v58 = vpop.f32.mrb[142].mxu1  ;;  %v14520_v43 = vld [vmem:[%s18234_s14 + $0x48] sm:$0xff]  }
 0x872   : > { %v9381_v18 = vadd.f32 %v9380_v25, %v9369_v28  ;;  %v13946_v38 = vpop.f32.mrb[143].mxu1  ;;  %v14521_v25 = vld [vmem:[%s18234_s14 + $0x58] sm:$0xff]   ;;  %v14523_v58 = vld [vmem:[%s18234_s14 + $0x70] sm:$0xff]  }
 0x873   : > { %9481 = vst [vmem:[#allocation6 + $0x31] sm:$0xff] %v9480_v42  ;;  %v14522_v42 = vld [vmem:[%s18234_s14 + $0x60] sm:$0xff]  }
 0x874   : > { %v9382_v3 = vmax.f32 %v9381_v18, 0.0 }
 0x876   : > { %9383 = vst [vmem:[#allocation6 + $0x11] sm:$0xff] %v9382_v3  ;;  %v14524_v3 = vld [vmem:[%s18234_s14 + $0x68] sm:$0xff]  }
 0x877   : > { %v9423_v20 = vpop.f32.mrb[144].mxu1 }
 0x878   : > { %v9424_v36 = vadd.f32 %v12307_v54, %v9423_v20  ;;  %v13951_v2 = vpop.f32.mrb[145].mxu1  ;;  %v14525_v20 = vld [vmem:[%s18234_s14 + $0x78] sm:$0xff]  }
 0x879   : > { %v9426_v31 = vpop.f32.mrb[146].mxu1  ;;  %v14526_v2 = vld [vmem:[%s18234_s14 + $0x80] sm:$0xff]  }
 0x87a   : > { %v9430_v60 = vadd.f32 %v9429_v29, %v9424_v36  ;;  %v13952_v35 = vpop.f32.mrb[147].mxu1  ;;  %v10290_v53 = vld [vmem:[#allocation6 + $0x30] ss:$2 sm:$0xf] }
 0x87b   : > { %v10291_v41 = vpack.c.bf16 %v10290_v53, %v10290_v53  ;;  %v10353_v28 = vld [vmem:[#allocation6 + $0x31] ss:$2 sm:$0xf]  ;;  %v10416_v47 = vld [vmem:[#allocation6 + $0x32] ss:$2 sm:$0xf] }
 0x87c   : > { %v9431_v23 = vmax.f32 %v9430_v60, 0.0  ;;  %v10354_v18 = vpack.c.bf16 %v10353_v28, %v10353_v28  ;;  %v10417_v38 = vpack.c.bf16 %v10416_v47, %v10416_v47  ;;  %v14527_v35 = vld [vmem:[%s18234_s14 + $0x88] sm:$0xff]  }
 0x87d   : > { %v9719_v34 = vld [vmem:[#allocation6 + $0x10] ss:$2 sm:$0xf]  ;;  %v9782_v62 = vld [vmem:[#allocation6 + $0x11] ss:$2 sm:$0xf] }
 0x87e   : > { %9432 = vst [vmem:[#allocation6 + $0x21] sm:$0xff] %v9431_v23  ;;  %v9720_v27 = vpack.c.bf16 %v9719_v34, %v9719_v34  ;;  %v9783_v12 = vpack.c.bf16 %v9782_v62, %v9782_v62  ;;  %v9845_v24 = vld [vmem:[#allocation6 + $0x12] ss:$2 sm:$0xf]  ;;  %v18020_v28 = vld [vmem:[#allocation16] ss:$0 sm:$0xff] }
 0x87f   : > { %v9521_v0 = vpop.f32.mrb[148].mxu1  ;;  %v9846_v39 = vpack.c.bf16 %v9845_v24, %v9845_v24  ;;  %v14528_v24 = vld [vmem:[%s18477_s2 + $0x20] sm:$0xff]  }
 0x880   : > { %v9522_v19 = vadd.f32 %v12307_v54, %v9521_v0  ;;  %v13963_v11 = vpop.f32.mrb[149].mxu1  ;;  %13994 = vmatmul.mubr.msk.bf16.vlgmr.msra.gmra.mrb[156].mxu1 %vm8426_vm5, %v9720_v27  ;;  %14002 = vmatmul.mubr.msk.bf16.vlgmr.msra.gmra.mrb[152].mxu0 %vm8426_vm5, %v9783_v12  ;;  %v14517_v54 = vld [vmem:[%s18234_s14 + $0x38] sm:$0xff]  }
 0x881   : > { %v9524_v10 = vpop.f32.mrb[150].mxu1  ;;  %14006 = vmatpush3.bf16.msra.mxu1 %v14502_v49  ;;  %14014 = vmatpush3.bf16.msra.mxu0 %v14503_v1  ;;  %v9594_v1 = vpop.f32.mrb[144].mxu0 }
 0x882   : > { %v9528_v8 = vadd.f32 %v9527_v40, %v9522_v19  ;;  %v13964_v16 = vpop.f32.mrb[151].mxu1  ;;  %14007 = vmatprep.subr.bf16.mxu1 %v17768_v4  ;;  %14015 = vmatprep.subr.bf16.mxu0 %v17768_v4  ;;  %v13971_v34 = vpop.f32.mrb[145].mxu0 }
 0x883   : > { %14009 = vmatprep.mubr.msk.bf16.mxu1 %vm14956_vm4, %v17768_v4  ;;  %14017 = vmatprep.mubr.msk.bf16.mxu0 %vm14956_vm4, %v17768_v4  ;;  %v9597_v62 = vpop.f32.mrb[146].mxu0  ;;  %v10681_v34 = vld [vmem:[#allocation7 + $0x1] sm:$0xff] }
 0x884   : > { %v9529_v26 = vmax.f32 %v9528_v8, 0.0  ;;  %v13972_v27 = vpop.f32.mrb[147].mxu0 }
 0x885   : > { %14008 = vmatpush3.bf16.msra.mxu1 %v14504_v22  ;;  %14016 = vmatpush3.bf16.msra.mxu0 %v14505_v61  ;;  %v9908_v52 = vld [vmem:[#allocation6 + $0x20] ss:$2 sm:$0xf]  ;;  %v9971_v57 = vld [vmem:[#allocation6 + $0x21] ss:$2 sm:$0xf] }
 0x886   : > { %9530 = vst [vmem:[#allocation6 + $0x41] sm:$0xff] %v9529_v26  ;;  %v9909_v63 = vpack.c.bf16 %v9908_v52, %v9908_v52  ;;  %14021 = vmatprep.subr.bf16.mxu1 %v17768_v4  ;;  %14029 = vmatprep.subr.bf16.mxu0 %v17768_v4  ;;  %v10034_v6 = vld [vmem:[#allocation6 + $0x22] ss:$2 sm:$0xf]  ;;  %v9972_v51 = vpack.c.bf16 %v9971_v57, %v9971_v57  ;;  %v9711_v10 = vpop.f32.mrb[148].mxu0  ;;  %v14529_v26 = vld [vmem:[%s18477_s2] sm:$0xff]  }
 0x887   : > { %v10035_v45 = vpack.c.bf16 %v10034_v6, %v10034_v6  ;;  %v10111_v14 = vld [vmem:[#allocation6 + $0x21] ss:$2 sm:$0xf]  ;;  %v10105_v33 = vld [vmem:[#allocation6 + $0x20] ss:$2 sm:$0xf] }
 0x888   : > { %14010 = vmatmul.mubr.msk.bf16.vlgmr.msra.gmra.mrb[160].mxu1 %vm8426_vm5, %v9846_v39  ;;  %14018 = vmatmul.mubr.msk.bf16.vlgmr.msra.gmra.mrb[156].mxu0 %vm8426_vm5, %v9909_v63  ;;  %v10112_v50 = vpack.c.bf16 %v10111_v14, %v10111_v14  ;;  %v10106_v15 = vpack.c.bf16 %v10105_v33, %v10105_v33  ;;  %v10227_v9 = vld [vmem:[#allocation6 + $0x22] ss:$2 sm:$0xf]  ;;  %v9649_v12 = vpop.f32.mrb[152].mxu1  ;;  %v13987_v61 = vpop.f32.mrb[149].mxu0  ;;  %v14530_v52 = vld [vmem:[%s18477_s2 + $0x28] sm:$0xff]  }
 0x889   : > { %14022 = vmatpush3.bf16.msra.mxu1 %v14506_v46  ;;  %14030 = vmatpush3.bf16.msra.mxu0 %v14507_v13  ;;  %v10228_v5 = vpack.c.bf16 %v10227_v9, %v10227_v9  ;;  %v9650_v0 = vadd.f32 %v9649_v12, %v9594_v1  ;;  %v13979_v40 = vpop.f32.mrb[153].mxu1  ;;  %v9714_v8 = vpop.f32.mrb[150].mxu0  ;;  %v14531_v46 = vld [vmem:[%s18477_s2 + $0x8] sm:$0xff]   ;;  %v14532_v13 = vld [vmem:[%s18477_s2 + $0x30] sm:$0xff]   ;;  %v14534_v63 = vld [vmem:[%s18477_s2 + $0x38] sm:$0xff]  }
 0x88a   : > { %14023 = vmatprep.subr.bf16.mxu1 %v17768_v4  ;;  %14031 = vmatprep.subr.bf16.mxu0 %v17768_v4  ;;  %v9652_v19 = vpop.f32.mrb[154].mxu1  ;;  %v13988_v16 = vpop.f32.mrb[151].mxu0  ;;  %v14533_v39 = vld [vmem:[%s18477_s2 + $0x10] sm:$0xff]   ;;  %v14540_v61 = vld [vmem:[%s18477_s2 + $0x60] sm:$0xff]  }
 0x88b   : > { %14025 = vmatprep.mubr.msk.bf16.mxu1 %vm14956_vm4, %v17768_v4  ;;  %14033 = vmatprep.mubr.msk.bf16.mxu0 %vm14956_vm4, %v17768_v4  ;;  %v13980_v11 = vpop.f32.mrb[155].mxu1  ;;  %v9717_v22 = vadd.f32 %v9711_v10, %v9650_v0  ;;  %v14536_v0 = vld [vmem:[%s18477_s2 + $0x40] sm:$0xff]  }
 0x88d   : > { %14024 = vmatpush3.bf16.msra.mxu1 %v14508_v21  ;;  %14032 = vmatpush3.bf16.msra.mxu0 %v14509_v7  ;;  %v10479_v29 = vld [vmem:[#allocation6 + $0x40] ss:$2 sm:$0xf]  ;;  %v10542_v36 = vld [vmem:[#allocation6 + $0x41] ss:$2 sm:$0xf] }
 0x88e   : > { %14037 = vmatprep.subr.bf16.mxu1 %v17768_v4  ;;  %14045 = vmatprep.subr.bf16.mxu0 %v17768_v4  ;;  %v10480_v31 = vpack.c.bf16 %v10479_v29, %v10479_v29  ;;  %v10543_v60 = vpack.c.bf16 %v10542_v36, %v10542_v36  ;;  %v10605_v23 = vld [vmem:[#allocation6 + $0x42] ss:$2 sm:$0xf] }
 0x88f   : > { %v10606_v49 = vpack.c.bf16 %v10605_v23, %v10605_v23  ;;  %v14535_v21 = vld [vmem:[%s18477_s2 + $0x18] sm:$0xff]  }
 0x890   : > { %14026 = vmatmul.mubr.msk.bf16.vlgmr.msra.gmra.mrb[164].mxu1 %vm8426_vm5, %v9972_v51  ;;  %14034 = vmatmul.mubr.msk.bf16.vlgmr.msra.gmra.mrb[160].mxu0 %vm8426_vm5, %v10035_v45 }
 0x891   : > { %14038 = vmatpush3.bf16.msra.mxu1 %v14510_v48  ;;  %14046 = vmatpush3.bf16.msra.mxu0 %v14511_v59 }
 0x892   : > { %14039 = vmatprep.subr.bf16.mxu1 %v17768_v4  ;;  %14047 = vmatprep.subr.bf16.mxu0 %v17768_v4 }
 0x893   : > { %14041 = vmatprep.mubr.msk.bf16.mxu1 %vm14956_vm4, %v17768_v4  ;;  %14049 = vmatprep.mubr.msk.bf16.mxu0 %vm14956_vm4, %v17768_v4 }
 0x895   : > { %14040 = vmatpush3.bf16.msra.mxu1 %v14512_v30  ;;  %14048 = vmatpush3.bf16.msra.mxu0 %v14513_v17 }
 0x896   : > { %14053 = vmatprep.subr.bf16.mxu1 %v17768_v4  ;;  %14061 = vmatprep.subr.bf16.mxu0 %v17768_v4 }
 0x898   : > { %14042 = vmatmul.mubr.msk.bf16.vlgmr.msra.gmra.mrb[168].mxu1 %vm8426_vm5, %v10112_v50  ;;  %14050 = vmatmul.mubr.msk.bf16.vlgmr.msra.gmra.mrb[164].mxu0 %vm8426_vm5, %v10106_v15 }
 0x899   : > { %14054 = vmatpush3.bf16.msra.mxu1 %v14514_v44  ;;  %14062 = vmatpush3.bf16.msra.mxu0 %v14515_v32 }
 0x89a   : > { %14055 = vmatprep.subr.bf16.mxu1 %v17768_v4  ;;  %14063 = vmatprep.subr.bf16.mxu0 %v17768_v4 }
 0x89b   : > { %14057 = vmatprep.mubr.msk.bf16.mxu1 %vm14956_vm4, %v17768_v4  ;;  %14065 = vmatprep.mubr.msk.bf16.mxu0 %vm14956_vm4, %v17768_v4 }
 0x89d   : > { %14056 = vmatpush3.bf16.msra.mxu1 %v14516_v56  ;;  %14064 = vmatpush3.bf16.msra.mxu0 %v14517_v54 }
 0x89e   : > { %14069 = vmatprep.subr.bf16.mxu1 %v17768_v4  ;;  %14077 = vmatprep.subr.bf16.mxu0 %v17768_v4 }
 0x8a0   : > { %14058 = vmatmul.mubr.msk.bf16.vlgmr.msra.gmra.mrb[172].mxu1 %vm8426_vm5, %v10228_v5  ;;  %14066 = vmatmul.mubr.msk.bf16.vlgmr.msra.gmra.mrb[168].mxu0 %vm8426_vm5, %v10291_v41 }
 0x8a1   : > { %14070 = vmatpush3.bf16.msra.mxu1 %v14518_v37  ;;  %14078 = vmatpush3.bf16.msra.mxu0 %v14519_v55 }
 0x8a2   : > { %14071 = vmatprep.subr.bf16.mxu1 %v17768_v4  ;;  %14079 = vmatprep.subr.bf16.mxu0 %v17768_v4 }
 0x8a3   : > { %14073 = vmatprep.mubr.msk.bf16.mxu1 %vm14956_vm4, %v17768_v4  ;;  %14081 = vmatprep.mubr.msk.bf16.mxu0 %vm14956_vm4, %v17768_v4 }
 0x8a5   : > { %14072 = vmatpush3.bf16.msra.mxu1 %v14520_v43  ;;  %14080 = vmatpush3.bf16.msra.mxu0 %v14521_v25 }
 0x8a6   : > { %14085 = vmatprep.subr.bf16.mxu1 %v17768_v4  ;;  %14093 = vmatprep.subr.bf16.mxu0 %v17768_v4 }
 0x8a8   : > { %14074 = vmatmul.mubr.msk.bf16.vlgmr.msra.gmra.mrb[176].mxu1 %vm8426_vm5, %v10354_v18  ;;  %14082 = vmatmul.mubr.msk.bf16.vlgmr.msra.gmra.mrb[172].mxu0 %vm8426_vm5, %v10417_v38 }
 0x8a9   : > { %14086 = vmatpush3.bf16.msra.mxu1 %v14522_v42  ;;  %14094 = vmatpush3.bf16.msra.mxu0 %v14523_v58 }
 0x8aa   : > { %14087 = vmatprep.subr.bf16.mxu1 %v17768_v4  ;;  %14095 = vmatprep.subr.bf16.mxu0 %v17768_v4 }
 0x8ab   : > { %14089 = vmatprep.mubr.msk.bf16.mxu1 %vm14956_vm4, %v17768_v4  ;;  %14097 = vmatprep.mubr.msk.bf16.mxu0 %vm14956_vm4, %v17768_v4 }
 0x8ad   : > { %14088 = vmatpush3.bf16.msra.mxu1 %v14524_v3  ;;  %14096 = vmatpush3.bf16.msra.mxu0 %v14525_v20 }
 0x8ae   : > { %14101 = vmatprep.subr.bf16.mxu1 %v17768_v4  ;;  %14109 = vmatprep.subr.bf16.mxu0 %v17768_v4 }
 0x8b0   : > { %14090 = vmatmul.mubr.msk.bf16.vlgmr.msra.gmra.mrb[180].mxu1 %vm8426_vm5, %v10480_v31  ;;  %14098 = vmatmul.mubr.msk.bf16.vlgmr.msra.gmra.mrb[176].mxu0 %vm8426_vm5, %v10543_v60 }
 0x8b1   : > { %14102 = vmatpush3.bf16.msra.mxu1 %v14526_v2  ;;  %14105 = vmatprep.mubr.msk.bf16.mxu1 %vm14956_vm4, %v17768_v4 }
 0x8b2   : > { %14103 = vmatprep.subr.bf16.mxu1 %v17768_v4  ;;  %14117 = vmatprep.mubr.msk.bf16.mxu0 %vm14956_vm4, %v17768_v4 }
 0x8b3   : > { %14110 = vmatpush3.bf16.msra.mxu0 %v14528_v24 }
 0x8b4   : > { %14111 = vmatprep.subr.bf16.mxu0 %v17768_v4 }
 0x8b5   : > { %14104 = vmatpush3.bf16.msra.mxu1 %v14527_v35 }
 0x8b6   : > { %14121 = vmatprep.subr.bf16.mxu1 %v17768_v4 }
 0x8b7   : > { %14112 = vmatpush3.bf16.msra.mxu0 %v14530_v52 }
 0x8b8   : > { %14106 = vmatmul.mubr.msk.bf16.vlgmr.msra.gmra.mrb[184].mxu1 %vm8426_vm5, %v10606_v49  ;;  %14113 = vmatprep.subr.bf16.mxu0 %v17768_v4 }
 0x8b9   : > { %14129 = vmatprep.mubr.msk.bf16.mxu1 %vm14956_vm4, %v17768_v4  ;;  %14122 = vmatpush3.bf16.msra.mxu1 %v14529_v26 }
 0x8ba   : > { %14123 = vmatprep.subr.bf16.mxu1 %v17768_v4 }
 0x8bb   : > { %14114 = vmatpush3.bf16.msra.mxu0 %v14532_v13  ;;  %v14537_v13 = vld [vmem:[%s18477_s2 + $0x48] sm:$0xff]  }
 0x8bc   : > { %14115 = vmatprep.subr.bf16.mxu0 %v17768_v4 }
 0x8bd   : > { %14124 = vmatpush3.bf16.msra.mxu1 %v14531_v46 }
 0x8be   : > { %14125 = vmatprep.subr.bf16.mxu1 %v17768_v4 }
 0x8bf   : > { %14116 = vmatpush3.bf16.msra.mxu0 %v14534_v63 }
 0x8c0   : > { %14133 = vmatprep.subr.bf16.mxu0 %v17768_v4 }
 0x8c1   : > { %14126 = vmatpush3.bf16.msra.mxu1 %v14533_v39  ;;  %v14542_v39 = vld [vmem:[%s18477_s2 + $0x68] sm:$0xff]  }
 0x8c2   : > { %14127 = vmatprep.subr.bf16.mxu1 %v17768_v4 }
 0x8c5   : > { %14128 = vmatpush3.bf16.msra.mxu1 %v14535_v21 }
 0x8c6   : > { %14145 = vmatprep.subr.bf16.mxu1 %v17768_v4 }
 0x953   : > { %v9774_v7 = vpop.f32.mrb[156].mxu1  ;;  %v9837_v57 = vpop.f32.mrb[152].mxu0 }
 0x954   : > { %v9780_v6 = vadd.f32 %v9774_v7, %v9717_v22  ;;  %v13995_v48 = vpop.f32.mrb[157].mxu1  ;;  %v14003_v59 = vpop.f32.mrb[153].mxu0  ;;  %v14538_v7 = vld [vmem:[%s18477_s2 + $0x50] sm:$0xff]  }
 0x955   : > { %v9777_v51 = vpop.f32.mrb[158].mxu1  ;;  %v9840_v45 = vpop.f32.mrb[154].mxu0  ;;  %v14544_v59 = vld [vmem:[%s18477_s2 + $0x70] sm:$0xff]  }
 0x956   : > { %v9843_v30 = vadd.f32 %v9837_v57, %v9780_v6  ;;  %v13996_v17 = vpop.f32.mrb[159].mxu1  ;;  %v14004_v14 = vpop.f32.mrb[155].mxu0 }
 0x95b   : > { %v9900_v33 = vpop.f32.mrb[160].mxu1  ;;  %v9963_v44 = vpop.f32.mrb[156].mxu0 }
 0x95c   : > { %v9906_v32 = vadd.f32 %v9900_v33, %v9843_v30  ;;  %v14011_v50 = vpop.f32.mrb[161].mxu1  ;;  %v14019_v15 = vpop.f32.mrb[157].mxu0  ;;  %v14539_v33 = vld [vmem:[%s18477_s2 + $0x58] sm:$0xff]  }
 0x95d   : > { %v9903_v56 = vpop.f32.mrb[162].mxu1  ;;  %v9966_v54 = vpop.f32.mrb[158].mxu0 }
 0x95e   : > { %v9969_v9 = vadd.f32 %v9963_v44, %v9906_v32  ;;  %v14012_v53 = vpop.f32.mrb[163].mxu1  ;;  %v14020_v37 = vpop.f32.mrb[159].mxu0  ;;  %v14546_v44 = vld [vmem:[%s18477_s2 + $0x78] sm:$0xff]   ;;  %v14541_v54 = vld [vmem:[%s18477_s2 + $0x80] sm:$0xff]  }
 0x963   : > { %v10026_v55 = vpop.f32.mrb[164].mxu1  ;;  %v10089_v5 = vpop.f32.mrb[160].mxu0 }
 0x964   : > { %v10032_v41 = vadd.f32 %v10026_v55, %v9969_v9  ;;  %v14027_v43 = vpop.f32.mrb[165].mxu1  ;;  %v14035_v25 = vpop.f32.mrb[161].mxu0 }
 0x965   : > { %v10029_v47 = vpop.f32.mrb[166].mxu1  ;;  %v10092_v42 = vpop.f32.mrb[162].mxu0 }
 0x966   : > { %v10095_v58 = vadd.f32 %v10089_v5, %v10032_v41  ;;  %v14028_v18 = vpop.f32.mrb[167].mxu1  ;;  %v14036_v38 = vpop.f32.mrb[163].mxu0  ;;  %v14543_v42 = vld [vmem:[%s18477_s2 + $0x88] sm:$0xff]  }
 0x967   : > { %v14545_v18 = vld [vmem:[%s18477_s2 + $0x90] sm:$0xff]  }
 0x968   : > { %v10102_v3 = vadd.f32 %v18020_v28, %v10095_v58 }
 0x96a   : > { %v10103_v20 = vmax.f32 %v10102_v3, 0.0 }
 0x96b   : > { %v10166_v29 = vpop.f32.mrb[168].mxu1  ;;  %v10221_v36 = vpop.f32.mrb[164].mxu0 }
 0x96c   : > { %10104 = vst [vmem:[#allocation7 + $0x9] sm:$0xf] %v10103_v20  ;;  %v10222_v2 = vadd.f32 %v10221_v36, %v10166_v29  ;;  %v14043_v31 = vpop.f32.mrb[169].mxu1  ;;  %v14051_v60 = vpop.f32.mrb[165].mxu0 }
 0x96d   : > { %v10169_v35 = vpop.f32.mrb[170].mxu1  ;;  %v10224_v23 = vpop.f32.mrb[166].mxu0  ;;  %v18080_v60 = vld [vmem:[#allocation4 + $0xd8] sm:$0xff] }
 0x96e   : > { %v14044_v49 = vpop.f32.mrb[171].mxu1  ;;  %v14052_v1 = vpop.f32.mrb[167].mxu0 }
 0x973   : > { %v10671_v62 = vld [vmem:[#allocation7 + $0x8] sm:$0xf]  ;;  %v10282_v12 = vpop.f32.mrb[172].mxu1  ;;  %v10345_v19 = vpop.f32.mrb[168].mxu0 }
 0x974   : > { %v10682_v27 = vld [vmem:[#allocation7 + $0x9] sm:$0xf]  ;;  %v10288_v40 = vadd.f32 %v10282_v12, %v10222_v2  ;;  %v14059_v11 = vpop.f32.mrb[173].mxu1  ;;  %v10672_v22 = vpack.c.bf16 %v10671_v62, %v17768_v4  ;;  %v14067_v8 = vpop.f32.mrb[169].mxu0  ;;  %v14551_v12 = vld [vmem:[%s18477_s2 + $0xc8] sm:$0xff]  }
 0x975   : > { %v10683_v10 = vpack.c.bf16 %v10682_v27, %v10681_v34  ;;  %v10285_v16 = vpop.f32.mrb[174].mxu1  ;;  %v10348_v26 = vpop.f32.mrb[170].mxu0  ;;  %v10829_v32 = vld [vmem:[#allocation7 + $0x2] sm:$0xff]  ;;  %v10830_v50 = vld [vmem:[#allocation7 + $0xa] sm:$0xf]  ;;  %v14550_v27 = vld [vmem:[%s18477_s2 + $0xa8] sm:$0xff]  }
 0x976   : > { %v10351_v24 = vadd.f32 %v10345_v19, %v10288_v40  ;;  %v14060_v52 = vpop.f32.mrb[175].mxu1  ;;  %14130 = vmatmul.mubr.msk.bf16.vlgmr.msra.gmra.mrb[188].mxu1 %vm10716_vm6, %v10672_v22  ;;  %v14068_v46 = vpop.f32.mrb[171].mxu0  ;;  %v10831_v55 = vpack.c.bf16 %v10830_v50, %v10829_v32  ;;  %v14547_v2 = vld [vmem:[%s18477_s2 + $0x98] sm:$0xff]   ;;  %v14553_v40 = vld [vmem:[%s18477_s2 + $0xd0] sm:$0xff]   ;;  %v14556_v16 = vld [vmem:[%s18477_s2 + $0xe0] sm:$0xff]  }
 0x977   : > { %14118 = vmatmul.mubr.msk.bf16.vlgmr.msra.gmra.mrb[180].mxu0 %vm10716_vm6, %v10683_v10  ;;  %14146 = vmatpush3.bf16.msra.mxu1 %v14540_v61  ;;  %v10910_v35 = vld [vmem:[#allocation7 + $0x8] sm:$0xff]  ;;  %v11154_v10 = vld [vmem:[#allocation7 + $0x18] sm:$0xf] }
 0x978   : > { %14134 = vmatpush3.bf16.msra.mxu0 %v14536_v0  ;;  %14141 = vmatprep.mubr.msk.bf16.mxu0 %vm14956_vm4, %v17768_v4  ;;  %v10991_v1 = vld [vmem:[#allocation7 + $0x9] sm:$0xff]  ;;  %v14552_v0 = vld [vmem:[%s18477_s2 + $0xb0] sm:$0xff]   ;;  %v14558_v46 = vld [vmem:[%s18477_s2 + $0xe8] sm:$0xff]  }
 0x979   : > { %14135 = vmatprep.subr.bf16.mxu0 %v17768_v4  ;;  %14147 = vmatprep.subr.bf16.mxu1 %v17768_v4  ;;  %v14554_v19 = vld [vmem:[%s18477_s2 + $0xb8] sm:$0xff]   ;;  %v11540_v50 = vld [vmem:[#allocation22] sm:$0xff] }
 0x97a   : > { %14153 = vmatprep.mubr.msk.bf16.mxu1 %vm14956_vm4, %v17768_v4  ;;  %v14555_v11 = vld [vmem:[%s18477_s2 + $0xd8] sm:$0xff]  }
 0x97b   : > { %v10408_v63 = vpop.f32.mrb[176].mxu1  ;;  %v10471_v21 = vpop.f32.mrb[172].mxu0  ;;  %14148 = vmatpush3.bf16.msra.mxu1 %v14542_v39  ;;  %v14560_v39 = vld [vmem:[%s18477_s2 + $0xf0] sm:$0xff]  }
 0x97c   : > { %14136 = vmatpush3.bf16.msra.mxu0 %v14537_v13  ;;  %v10414_v57 = vadd.f32 %v10408_v63, %v10351_v24  ;;  %v14075_v6 = vpop.f32.mrb[177].mxu1  ;;  %v14083_v48 = vpop.f32.mrb[173].mxu0  ;;  %14149 = vmatprep.subr.bf16.mxu1 %v17768_v4  ;;  %v14557_v24 = vld [vmem:[%s18477_s2 + $0x100] sm:$0xff]   ;;  %v14559_v13 = vld [vmem:[%s18477_s2 + $0x108] sm:$0xff]   ;;  %v14561_v63 = vld [vmem:[%s18477_s2 + $0x110] sm:$0xff]  }
 0x97d   : > { %14137 = vmatprep.subr.bf16.mxu0 %v17768_v4  ;;  %v10411_v51 = vpop.f32.mrb[178].mxu1  ;;  %v10474_v45 = vpop.f32.mrb[174].mxu0 }
 0x97e   : > { %v10477_v30 = vadd.f32 %v10471_v21, %v10414_v57  ;;  %v14076_v17 = vpop.f32.mrb[179].mxu1  ;;  %v14084_v14 = vpop.f32.mrb[175].mxu0  ;;  %v14562_v21 = vld [vmem:[%s18477_s2 + $0xf8] sm:$0xff]   ;;  %v11235_v57 = vld [vmem:[#allocation7 + $0x19] sm:$0xf]  ;;  %v14564_v51 = vld [vmem:[#allocation19] sm:$0xff]  }
 0x97f   : > { %14150 = vmatpush3.bf16.msra.mxu1 %v14544_v59  ;;  %v11316_v59 = vld [vmem:[#allocation7 + $0x1a] sm:$0xf]  ;;  %v14565_v17 = vld [vmem:[#allocation19 + $0x8] sm:$0xff]   ;;  %v11402_v14 = vld [vmem:[#allocation6 + $0x11] ss:$2 sm:$0xf] }
 0x980   : > { %14138 = vmatpush3.bf16.msra.mxu0 %v14538_v7  ;;  %14151 = vmatprep.subr.bf16.mxu1 %v17768_v4  ;;  %v14563_v7 = vld [vmem:[%s18477_s2 + $0x118] sm:$0xff]  }
 0x981   : > { %14139 = vmatprep.subr.bf16.mxu0 %v17768_v4 }
 0x983   : > { %v10534_v15 = vpop.f32.mrb[180].mxu1  ;;  %v10597_v56 = vpop.f32.mrb[176].mxu0  ;;  %14152 = vmatpush3.bf16.msra.mxu1 %v14546_v44  ;;  %v11483_v44 = vld [vmem:[#allocation6 + $0x31] ss:$2 sm:$0xf] }
 0x984   : > { %14140 = vmatpush3.bf16.msra.mxu0 %v14539_v33  ;;  %v10540_v9 = vadd.f32 %v10534_v15, %v10477_v30  ;;  %v14091_v53 = vpop.f32.mrb[181].mxu1  ;;  %v14099_v37 = vpop.f32.mrb[177].mxu0  ;;  %14169 = vmatprep.subr.bf16.mxu1 %v17768_v4  ;;  %v11403_v33 = vpack.c.bf16 %v11402_v14, %v11402_v14  ;;  %v11484_v32 = vpack.c.bf16 %v11483_v44, %v11483_v44  ;;  %v11541_v15 = vld [vmem:[#allocation22 + $0x8] sm:$0xff] }
 0x985   : > { %14157 = vmatprep.subr.bf16.mxu0 %v17768_v4  ;;  %v10537_v5 = vpop.f32.mrb[182].mxu1  ;;  %v10600_v41 = vpop.f32.mrb[178].mxu0  ;;  %v11543_v53 = vld [vmem:[#allocation22 + $0x18] sm:$0xff] }
 0x986   : > { %v10603_v43 = vadd.f32 %v10597_v56, %v10540_v9  ;;  %v14092_v25 = vpop.f32.mrb[183].mxu1  ;;  %v14100_v47 = vpop.f32.mrb[179].mxu0  ;;  %v14253_v56 = vpack.c.bf16 %v11541_v15, %v11540_v50  ;;  %v11542_v9 = vld [vmem:[#allocation22 + $0x10] sm:$0xff]  ;;  %v11545_v5 = vld [vmem:[#allocation22 + $0x28] sm:$0xff] }
 0x987   : > { %14142 = vmatmul.mubr.msk.bf16.vlgmr.msra.gmra.mrb[184].mxu0 %vm10716_vm6, %v10831_v55  ;;  %v14256_v37 = vpack.c.bf16 %v11543_v53, %v11542_v9  ;;  %v11544_v55 = vld [vmem:[#allocation22 + $0x20] sm:$0xff]  ;;  %v11547_v25 = vld [vmem:[#allocation22 + $0x38] sm:$0xff]  ;;  %v12418_v15 = vld [vmem:[#allocation17] ss:$0 sm:$0xff] }
 0x988   : > { %14158 = vmatpush3.bf16.msra.mxu0 %v14541_v54  ;;  %14165 = vmatprep.mubr.msk.bf16.mxu0 %vm14956_vm4, %v17768_v4  ;;  %v14957_v54 = vmov 0.0|0.0   ;;  %v14259_v41 = vpack.c.bf16 %v11545_v5, %v11544_v55 }
 0x989   : > { %14159 = vmatprep.subr.bf16.mxu0 %v17768_v4 }
 0x98b   : > { %v10660_v58 = vpop.f32.mrb[184].mxu1 }
 0x98c   : > { %14160 = vmatpush3.bf16.msra.mxu0 %v14543_v42  ;;  %v10666_v38 = vadd.f32 %v10660_v58, %v10603_v43  ;;  %v14107_v3 = vpop.f32.mrb[185].mxu1  ;;  %v11546_v43 = vld [vmem:[#allocation22 + $0x30] sm:$0xff] }
 0x98d   : > { %14161 = vmatprep.subr.bf16.mxu0 %v17768_v4  ;;  %v10663_v20 = vpop.f32.mrb[186].mxu1  ;;  %v14548_v4 = vld [vmem:[%s18477_s2 + $0xa0] sm:$0xff]   ;;  %v14262_v47 = vpack.c.bf16 %v11547_v25, %v11546_v43 }
 0x98e   : > { %v10667_v29 = vadd.f32 %v18020_v28, %v10666_v38  ;;  %v14108_v36 = vpop.f32.mrb[187].mxu1  ;;  %v14549_v28 = vld [vmem:[%s18477_s2 + $0xc0] sm:$0xff]  }
 0x990   : > { %14162 = vmatpush3.bf16.msra.mxu0 %v14545_v18  ;;  %v10668_v31 = vmax.f32 %v10667_v29, 0.0 }
 0x991   : > { %14163 = vmatprep.subr.bf16.mxu0 %v18080_v60 }
 0x992   : > { %10669 = vst [vmem:[#allocation7 + $0x11] sm:$0xf] %v10668_v31 }
 0x994   : > { %14164 = vmatpush3.bf16.msra.mxu0 %v14547_v2 }
 0x995   : > { %14181 = vmatprep.subr.bf16.mxu0 %v18080_v60 }
 0x999   : > { %v10911_v23 = vld [vmem:[#allocation7 + $0x10] sm:$0xf] }
 0x99a   : > { %v10992_v49 = vld [vmem:[#allocation7 + $0x11] sm:$0xf]  ;;  %v10912_v34 = vpack.c.bf16 %v10911_v23, %v10910_v35 }
 0x99b   : > { %v10993_v62 = vpack.c.bf16 %v10992_v49, %v10991_v1  ;;  %v11072_v22 = vld [vmem:[#allocation7 + $0xa] sm:$0xff]  ;;  %v11073_v61 = vld [vmem:[#allocation7 + $0x12] sm:$0xf] }
 0x99c   : > { %14154 = vmatmul.mubr.msk.bf16.vlgmr.msra.gmra.mrb[192].mxu1 %vm10716_vm6, %v10912_v34  ;;  %v11153_v8 = vld [vmem:[#allocation7 + $0x10] sm:$0xff]  ;;  %v11074_v26 = vpack.c.bf16 %v11073_v61, %v11072_v22 }
 0x99d   : > { %14166 = vmatmul.mubr.msk.bf16.vlgmr.msra.gmra.mrb[188].mxu0 %vm10716_vm6, %v10993_v62  ;;  %14170 = vmatpush3.bf16.msra.mxu1 %v14548_v4  ;;  %v11155_v52 = vpack.c.bf16 %v11154_v10, %v11153_v8  ;;  %v11234_v6 = vld [vmem:[#allocation7 + $0x11] sm:$0xff] }
 0x99e   : > { %14182 = vmatpush3.bf16.msra.mxu0 %v14549_v28  ;;  %14171 = vmatprep.subr.bf16.mxu1 %v18080_v60  ;;  %v11315_v48 = vld [vmem:[#allocation7 + $0x12] sm:$0xff]  ;;  %v11236_v45 = vpack.c.bf16 %v11235_v57, %v11234_v6 }
 0x99f   : > { %14183 = vmatprep.subr.bf16.mxu0 %v18080_v60  ;;  %14177 = vmatprep.mubr.msk.bf16.mxu1 %vm14956_vm4, %v18080_v60  ;;  %v11317_v30 = vpack.c.bf16 %v11316_v59, %v11315_v48 }
 0x9a0   : > { %14189 = vmatprep.mubr.msk.bf16.mxu0 %vm14956_vm4, %v18080_v60 }
 0x9a1   : > { %14172 = vmatpush3.bf16.msra.mxu1 %v14550_v27 }
 0x9a2   : > { %14184 = vmatpush3.bf16.msra.mxu0 %v14551_v12  ;;  %14173 = vmatprep.subr.bf16.mxu1 %v18080_v60 }
 0x9a3   : > { %14185 = vmatprep.subr.bf16.mxu0 %v18080_v60 }
 0x9a5   : > { %14174 = vmatpush3.bf16.msra.mxu1 %v14552_v0 }
 0x9a6   : > { %14186 = vmatpush3.bf16.msra.mxu0 %v14553_v40  ;;  %14175 = vmatprep.subr.bf16.mxu1 %v18080_v60 }
 0x9a7   : > { %14187 = vmatprep.subr.bf16.mxu0 %v18080_v60 }
 0x9a9   : > { %14176 = vmatpush3.bf16.msra.mxu1 %v14554_v19 }
 0x9aa   : > { %14188 = vmatpush3.bf16.msra.mxu0 %v14555_v11  ;;  %14193 = vmatprep.subr.bf16.mxu1 %v18080_v60 }
 0x9ab   : > { %14205 = vmatprep.subr.bf16.mxu0 %v18080_v60 }
 0x9ac   : > { %14178 = vmatmul.mubr.msk.bf16.vlgmr.msra.gmra.mrb[196].mxu1 %vm10716_vm6, %v11074_v26 }
 0x9ad   : > { %14190 = vmatmul.mubr.msk.bf16.vlgmr.msra.gmra.mrb[192].mxu0 %vm10716_vm6, %v11155_v52  ;;  %14194 = vmatpush3.bf16.msra.mxu1 %v14556_v16 }
 0x9ae   : > { %14206 = vmatpush3.bf16.msra.mxu0 %v14557_v24  ;;  %14195 = vmatprep.subr.bf16.mxu1 %v18080_v60 }
 0x9af   : > { %14207 = vmatprep.subr.bf16.mxu0 %v18080_v60  ;;  %14201 = vmatprep.mubr.msk.bf16.mxu1 %vm14956_vm4, %v18080_v60 }
 0x9b0   : > { %14213 = vmatprep.mubr.msk.bf16.mxu0 %vm14956_vm4, %v18080_v60 }
 0x9b1   : > { %14196 = vmatpush3.bf16.msra.mxu1 %v14558_v46 }
 0x9b2   : > { %14208 = vmatpush3.bf16.msra.mxu0 %v14559_v13  ;;  %14197 = vmatprep.subr.bf16.mxu1 %v18080_v60 }
 0x9b3   : > { %14209 = vmatprep.subr.bf16.mxu0 %v18080_v60 }
 0x9b5   : > { %14198 = vmatpush3.bf16.msra.mxu1 %v14560_v39 }
 0x9b6   : > { %14210 = vmatpush3.bf16.msra.mxu0 %v14561_v63  ;;  %14199 = vmatprep.subr.bf16.mxu1 %v18080_v60 }
 0x9b7   : > { %14211 = vmatprep.subr.bf16.mxu0 %v18080_v60 }
 0x9b9   : > { %14200 = vmatpush3.bf16.msra.mxu1 %v14562_v21 }
 0x9ba   : > { %14212 = vmatpush3.bf16.msra.mxu0 %v14563_v7  ;;  %14217 = vmatprep.subr.bf16.mxu1 %v18080_v60 }
 0x9bb   : > { %14252 = vmatprep.subr.bf16.mxu0 %v14957_v54 }
 0x9bc   : > { %14202 = vmatmul.mubr.msk.bf16.vlgmr.msra.gmra.mrb[200].mxu1 %vm10716_vm6, %v11236_v45 }
 0x9bd   : > { %14214 = vmatmul.mubr.msk.bf16.vlgmr.msra.gmra.mrb[196].mxu0 %vm10716_vm6, %v11317_v30  ;;  %14218 = vmatpush3.bf16.msra.mxu1 %v14564_v51 }
 0x9be   : > { %14221 = vmatprep.mubr.msk.bf16.mxu1 %vm14956_vm4, %v18080_v60  ;;  %14219 = vmatprep.subr.bf16.mxu1 %v18080_v60 }
 0x9bf   : > { %14249 = vmatprep.mubr.msk.f32.mxu0 %vm14956_vm4, %v18080_v60  ;;  %14254 = vmatpush3.bf16.msra.mxu0 %v14253_v56  ;;  %v12414_v56 = vld [vmem:[#allocation20] ss:$0 sm:$0xff] }
 0x9c0   : > { %14255 = vmatprep.subr.bf16.mxu0 %v14957_v54 }
 0x9c1   : > { %14220 = vmatpush3.bf16.msra.mxu1 %v14565_v17 }
 0x9c2   : > { %14225 = vmatprep.subr.bf16.mxu1 %v18080_v60 }
 0x9c3   : > { %14257 = vmatpush3.bf16.msra.mxu0 %v14256_v37 }
 0x9c4   : > { %14222 = vmatmul.mubr.msk.bf16.vlgmr.msra.gmra.mrb[204].mxu1 %vm8426_vm5, %v11403_v33  ;;  %14258 = vmatprep.subr.bf16.mxu0 %v14957_v54 }
 0x9c5   : > { %14226 = vmatpush3.bf16.msra.mxu1 %v14564_v51  ;;  %14229 = vmatprep.mubr.msk.bf16.mxu1 %vm14956_vm4, %v18080_v60 }
 0x9c6   : > { %14227 = vmatprep.subr.bf16.mxu1 %v18080_v60 }
 0x9c7   : > { %14260 = vmatpush3.bf16.msra.mxu0 %v14259_v41 }
 0x9c8   : > { %14261 = vmatprep.subr.bf16.mxu0 %v14957_v54 }
 0x9c9   : > { %14228 = vmatpush3.bf16.msra.mxu1 %v14565_v17 }
 0x9cb   : > { %14263 = vmatpush3.bf16.msra.mxu0 %v14262_v47 }
 0x9cc   : > { %14230 = vmatmul.mubr.msk.bf16.vlgmr.msra.gmra.mrb[208].mxu1 %vm8426_vm5, %v11484_v32 }
 0xa49   : > { %v10822_v58 = vpop.f32.mrb[188].mxu1 }
 0xa4a   : > { %v10754_v42 = vpop.f32.mrb[180].mxu0  ;;  %v14131_v3 = vpop.f32.mrb[189].mxu1 }
 0xa4b   : > { %v10823_v18 = vadd.f32 %v10822_v58, %v10754_v42  ;;  %v14119_v38 = vpop.f32.mrb[181].mxu0  ;;  %v10825_v29 = vpop.f32.mrb[190].mxu1 }
 0xa4c   : > { %v10757_v20 = vpop.f32.mrb[182].mxu0  ;;  %v14132_v31 = vpop.f32.mrb[191].mxu1 }
 0xa4d   : > { %v10826_v36 = vadd.f32 %v10825_v29, %v10757_v20  ;;  %v14120_v2 = vpop.f32.mrb[183].mxu0 }
 0xa5a   : > { %v10901_v60 = vpop.f32.mrb[184].mxu0 }
 0xa5b   : > { %v10908_v35 = vadd.f32 %v10901_v60, %v10823_v18  ;;  %v14143_v4 = vpop.f32.mrb[185].mxu0 }
 0xa5c   : > { %v10904_v28 = vpop.f32.mrb[186].mxu0 }
 0xa5d   : > { %v10909_v23 = vadd.f32 %v10904_v28, %v10826_v36  ;;  %v14144_v49 = vpop.f32.mrb[187].mxu0 }
 0xa6f   : > { %v10982_v1 = vpop.f32.mrb[192].mxu1 }
 0xa70   : > { %v11063_v34 = vpop.f32.mrb[188].mxu0  ;;  %v10989_v62 = vadd.f32 %v10982_v1, %v10908_v35  ;;  %v14155_v27 = vpop.f32.mrb[193].mxu1 }
 0xa71   : > { %v14167_v12 = vpop.f32.mrb[189].mxu0  ;;  %v10985_v0 = vpop.f32.mrb[194].mxu1 }
 0xa72   : > { %v11066_v40 = vpop.f32.mrb[190].mxu0  ;;  %v11070_v19 = vadd.f32 %v11063_v34, %v10989_v62  ;;  %v10990_v11 = vadd.f32 %v10985_v0, %v10909_v23  ;;  %v14156_v10 = vpop.f32.mrb[195].mxu1 }
 0xa73   : > { %v14168_v22 = vpop.f32.mrb[191].mxu0 }
 0xa74   : > { %v11071_v61 = vadd.f32 %v11066_v40, %v10990_v11  ;;  %v11548_v40 = vld [vmem:[#allocation23] sm:$0x1] }
 0xa7f   : > { %v11144_v8 = vpop.f32.mrb[196].mxu1 }
 0xa80   : > { %v11225_v16 = vpop.f32.mrb[192].mxu0  ;;  %v11151_v24 = vadd.f32 %v11144_v8, %v11070_v19  ;;  %v14179_v26 = vpop.f32.mrb[197].mxu1 }
 0xa81   : > { %v14191_v52 = vpop.f32.mrb[193].mxu0  ;;  %v11147_v46 = vpop.f32.mrb[198].mxu1 }
 0xa82   : > { %v11228_v13 = vpop.f32.mrb[194].mxu0  ;;  %v11232_v39 = vadd.f32 %v11225_v16, %v11151_v24  ;;  %v11152_v63 = vadd.f32 %v11147_v46, %v11071_v61  ;;  %v14180_v21 = vpop.f32.mrb[199].mxu1 }
 0xa83   : > { %v14192_v7 = vpop.f32.mrb[195].mxu0 }
 0xa84   : > { %v11233_v57 = vadd.f32 %v11228_v13, %v11152_v63 }
 0xa8f   : > { %v11306_v6 = vpop.f32.mrb[200].mxu1 }
 0xa90   : > { %v11387_v48 = vpop.f32.mrb[196].mxu0  ;;  %v11313_v59 = vadd.f32 %v11306_v6, %v11232_v39  ;;  %v14203_v51 = vpop.f32.mrb[201].mxu1 }
 0xa91   : > { %v14215_v45 = vpop.f32.mrb[197].mxu0  ;;  %v11309_v30 = vpop.f32.mrb[202].mxu1 }
 0xa92   : > { %v11390_v17 = vpop.f32.mrb[198].mxu0  ;;  %v11394_v14 = vadd.f32 %v11387_v48, %v11313_v59  ;;  %v11314_v33 = vadd.f32 %v11309_v30, %v11233_v57  ;;  %v14204_v44 = vpop.f32.mrb[203].mxu1 }
 0xa93   : > { %v14216_v32 = vpop.f32.mrb[199].mxu0 }
 0xa94   : > { %v11395_v50 = vadd.f32 %v11390_v17, %v11314_v33  ;;  %v11471_v9 = vadd.f32 %v12418_v15, %v11394_v14 }
 0xa96   : > { %v11528_v58 = vadd.f32 %v12418_v15, %v11395_v50 }
 0xa97   : > { %v11459_v54 = vpop.f32.mrb[204].mxu1 }
 0xa98   : > { %v11460_v53 = vadd.f32 %v12414_v56, %v11459_v54  ;;  %v14223_v37 = vpop.f32.mrb[205].mxu1 }
 0xa99   : > { %v11462_v55 = vpop.f32.mrb[206].mxu1 }
 0xa9a   : > { %v11472_v5 = vadd.f32 %v11471_v9, %v11460_v53  ;;  %v14224_v41 = vpop.f32.mrb[207].mxu1 }
 0xa9c   : > { %v11473_v43 = vmax.f32 %v11472_v5, 0.0 }
 0xa9e   : > { %v11475_v25 = vsel %vm11474_vm7, %v11473_v43, 0.0 }
 0xa9f   : > { %v11476_v47 = vrot.slane %v11475_v25, 4  ;;  %v11522_v42 = vpop.f32.mrb[208].mxu1 }
 0xaa0   : > { %v11523_v18 = vadd.f32 %v12414_v56, %v11522_v42  ;;  %v14231_v38 = vpop.f32.mrb[209].mxu1 }
 0xaa1   : > { %v11477_v3 = vadd.f32 %v11476_v47, %v11475_v25  ;;  %v11525_v20 = vpop.f32.mrb[210].mxu1 }
 0xaa2   : > { %v11529_v29 = vadd.f32 %v11528_v58, %v11523_v18  ;;  %v14232_v36 = vpop.f32.mrb[211].mxu1 }
 0xaa3   : > { %v11478_v31 = vrot.slane %v11477_v3, 2 }
 0xaa4   : > { %v11530_v2 = vmax.f32 %v11529_v29, 0.0 }
 0xaa5   : > { %v11479_v4 = vadd.f32 %v11478_v31, %v11477_v3 }
 0xaa6   : > { %v11531_v60 = vsel %vm11474_vm7, %v11530_v2, 0.0 }
 0xaa7   : > { %v11532_v35 = vrot.slane %v11531_v60, 4  ;;  %v11480_v49 = vrot.slane %v11479_v4, 1 }
 0xaa9   : > { %v11533_v28 = vadd.f32 %v11532_v35, %v11531_v60  ;;  %v11481_v62 = vadd.f32 %v11480_v49, %v11479_v4 }
 0xaab   : > { %v11534_v23 = vrot.slane %v11533_v28, 2 }
 0xaad   : > { %v11535_v1 = vadd.f32 %v11534_v23, %v11533_v28 }
 0xaaf   : > { %v11536_v34 = vrot.slane %v11535_v1, 1 }
 0xab1   : > { %v11537_v27 = vadd.f32 %v11536_v34, %v11535_v1 }
 0xab3   : > { %v11538_v12 = vadd.f32 %v11537_v27, %v11481_v62 }
 0xab5   : > { %v11539_v0 = vmul.f32 0.125, %v11538_v12 }
 0xab7   : > { %14250 = vmatmul.mubr.msk.f32.vlgmr.msra.gmra.mrb[200].mxu0 %vm10716_vm6, %v11539_v0 }
 0xb8a   : > { %v11618_v19 = vpop.f32.mrb[200].mxu0 }
 0xb8b   : > { %v11619_v11 = vadd.f32 %v11618_v19, %v11548_v40  ;;  %v14251_v10 = vpop.f32.mrb[201].mxu0 }
 0xb8d   : > { %11622 = vst [vmem:[%s854_s25] sm:$0x1] %v11619_v11 }
 0xb8e   : > { %14865 = shalt.err (!%p14862_p2)
}
 0xb8f   : > { %s14866_s4 = scalar_lea.hbm %s18178_s16, 16  ;;  %s14870_s19 = scalar_lea.hbm %s18480_s3, 32 }
 0xb90   : > { %p14867_p3 = scmp.ne.s32.totalorder %s18178_s16, %s14866_s4  ;;  %p14871_p8 = scmp.lt.u32.totalorder %s18178_s16, %s18480_s3 }
 0xb91   : > { %p14872_p11 = scmp.lt.u32.totalorder %s14870_s19, %s14866_s4  ;;  %p14874_p1 = scmp.lt.u32.totalorder %s14866_s4, %s18178_s16 }
 0xb92   : > { %p14868_p4 = pnand %p14867_p3, %p18481_p0 }
 0xb93   : > { %p14873_p13 = por %p14872_p11, %p14871_p8 }
 0xb94   : > { %p14869_p7 = pneg %p14868_p4 }
 0xb95   : > { %p14875_p6 = por %p14874_p1, %p14873_p13 }
 0xb97   : > { %p14876_p5 = pnand %p14875_p6, %p14869_p7 }
 0xb99   : > { %14879 = shalt.err (!%p14876_p5)
}
 0xb9a   : > { %14304 = dma.vmem_to_hbm [thread:$0]  (%p18481_p0), %s18180_s22, 16, %s18178_s16, %s11624_s7  }
 0xb9b PF: > { %s18482_s29 = sld [smem:[#allocation36_spill]]  ;;  %s18483_s6 = sld [smem:[#allocation33_spill]] }
 0xb9c   : > { %s18484_s28 = sld [smem:[#allocation40_spill]] }
 0xba1   : > { %p14361_p9 = scmp.ge.s32.totalorder %s18482_s29, 2  ;;  %s11657_s5 = sand.u32 1, %s18483_s6  }
 0xba2   : > { %p18485_p12 = scmp.ne.s32.totalorder %s18484_s28, 0  ;;  %s11658_s11 = scalar_lea.sflag [#allocation10], %s11657_s5 }
 0xba4   : > { %p14338_p10 = pnand %p14361_p9, %p18485_p12 }
 0xba6   : > { %14921 = dma.done.wait (!%p14338_p10), %s11658_s11, 16  }
 0xba7   : > { %14923 = vsyncadd (!%p14338_p10), %s11658_s11, 4294967280  ;;  %s18486_s25 = sld [smem:[#allocation37_spill]]  ;;  %s18487_s4 = sld [smem:[#allocation34_spill]] }
 0xba8   : > { %s18488_s30 = sld [smem:[#allocation35_spill]]  ;;  %s18489_s24 = sld [smem:[#allocation38_spill]] }
 0xbad   : > { %p40_p2 = scmp.ge.s32.totalorder %s18486_s25, 4  }
 0xbaf   :  { %42 = sbr.rel (!%p40_p2) target bundleno = 24 (0x18), region = 239 }
 0xbb6   :  { %11670 = vsyncpa [#allocation9], 1 }
 0xbb7   :  { %11672 = vsyncpa [#allocation9 + $0x1], 1 }
 0xbb8   :  { %11673 = vsyncpa [#allocation12], 1 }
 0xbb9   :  { %11674 = vsyncpa [#allocation15], 1 }
 0xbba   :  { %11675 = vsyncpa [#allocation18], 1 }
 0xbbb   :  { %11676 = vsyncpa [#allocation21], 1 }
 0xbbc   :  { %11677 = vsyncpa [#allocation24], 1 }
 0xbbd   :  { %11678 = vsyncpa [#allocation10], 1 }
 0xbbe   :  { %11680 = vsyncpa [#allocation10 + $0x1], 1 }

</bundles_post_ra>
